<compile_context>
chip_gen: v5e
topology: v5e:2x2
jax: 0.10.0
libtpu: 0.0.40
codegen_flags: <defaults>
</compile_context>

<pallas_src>
import jax
import jax.numpy as jnp
from jax.experimental import pallas as pl
from jax.experimental.pallas import tpu as pltpu

_MIB = 1024 * 1024


def _round_hidden(hidden_features: int) -> int:
    # matches: round(2 * hidden_features / 3 / 256) * 256
    return round(2 * hidden_features / 3 / 256) * 256


def _round_up(x: int, m: int) -> int:
    return (x + m - 1) // m * m


def _vmem_capacity_bytes() -> int:
    """Per-core VMEM capacity; conservative fallback if the query fails."""
    try:
        cap = getattr(pltpu.get_tpu_info(), "vmem_capacity_bytes", None)
        if cap:
            return int(cap)
    except Exception:
        pass
    return 64 * _MIB  # v7x per-TensorCore VMEM (smallest of the three gens)


def _vmem_estimate(tm, th, to, C, x_bytes, out_bytes, w_bytes=2):
    """Rough VMEM footprint of one grid step (double-buffered blocks)."""
    return (2 * tm * C * x_bytes          # x block (double-buffered)
            + 2 * 2 * C * th * w_bytes    # gate + up weight blocks
            + 2 * th * to * w_bytes       # down-projection block
            + 2 * tm * to * out_bytes     # output block
            + tm * to * 4                 # fp32 accumulator scratch
            + 3 * tm * th * 4)            # fp32 g / u / h intermediates


def _ffn_swiglu_kernel_single(x_ref, wg_ref, w1_ref, w2_ref, o_ref):
    # Whole hidden dim in one tile: no accumulator needed, write straight out.
    x = x_ref[...].astype(wg_ref.dtype)
    g = jnp.dot(x, wg_ref[...], preferred_element_type=jnp.float32)
    u = jnp.dot(x, w1_ref[...], preferred_element_type=jnp.float32)
    h = (g * jax.nn.sigmoid(g)) * u                      # silu(g) * u in fp32
    o_ref[...] = jnp.dot(h.astype(w2_ref.dtype), w2_ref[...],
                         preferred_element_type=jnp.float32).astype(o_ref.dtype)


def _ffn_swiglu_kernel_acc(x_ref, wg_ref, w1_ref, w2_ref, o_ref, acc_ref):
    # Hidden dim tiled on the last ("arbitrary") grid axis; fp32 accumulator.
    j = pl.program_id(2)

    @pl.when(j == 0)
    def _():
        acc_ref[...] = jnp.zeros_like(acc_ref)

    x = x_ref[...].astype(wg_ref.dtype)
    g = jnp.dot(x, wg_ref[...], preferred_element_type=jnp.float32)
    u = jnp.dot(x, w1_ref[...], preferred_element_type=jnp.float32)
    h = (g * jax.nn.sigmoid(g)) * u                      # silu(g) * u in fp32
    acc_ref[...] += jnp.dot(h.astype(w2_ref.dtype), w2_ref[...],
                            preferred_element_type=jnp.float32)

    @pl.when(j == pl.num_programs(2) - 1)
    def _():
        o_ref[...] = acc_ref[...].astype(o_ref.dtype)


def prepare_ffn_swiglu_weights(wg, w1, w2, compute_dtype=jnp.bfloat16):
    """One-time parameter prep: cast (in, out)-layout weights to the MXU
    compute dtype.  Hoisted out of the per-forward path per review."""
    return (wg.astype(compute_dtype),
            w1.astype(compute_dtype),
            w2.astype(compute_dtype))


def ffn_swiglu(x, wg, w1, w2, *, tm=512, th=None, out_dtype=None,
               compute_dtype=jnp.bfloat16):
    """x: (B, L, C); wg/w1: (C, H); w2: (H, O).  Returns (B, L, O)."""
    B, L, C = x.shape
    Cg, H = wg.shape
    Hh, O = w2.shape
    assert Cg == C and Hh == H and w1.shape == (C, H)

    out_dtype = out_dtype or x.dtype
    x_bytes = jnp.dtype(x.dtype).itemsize
    out_bytes = jnp.dtype(out_dtype).itemsize
    w_bytes = jnp.dtype(compute_dtype).itemsize

    # Safety net only: a no-op when weights were prepared via
    # prepare_ffn_swiglu_weights (the intended, hoisted path).
    if wg.dtype != compute_dtype:
        wg = wg.astype(compute_dtype)
    if w1.dtype != compute_dtype:
        w1 = w1.astype(compute_dtype)
    if w2.dtype != compute_dtype:
        w2 = w2.astype(compute_dtype)

    M = B * L
    vmem_cap = _vmem_capacity_bytes()
    vmem_budget = max(24 * _MIB, vmem_cap - 12 * _MIB)

    # --- token tile: large for MXU/arith-intensity, clamped to padded M ---
    tm = min(max(128, _round_up(tm, 128)), _round_up(M, 128))

    # --- hidden tile: largest 256-multiple divisor of H that fits VMEM ---
    if th is not None:
        assert H % th == 0, "explicit th must divide H"
        cands = [th]
    elif H % 256 == 0:
        cands = [d for d in range(H, 0, -256) if H % d == 0]
    else:
        cands = [H]  # H from round(2h/3/256)*256 is a 256-multiple; guard only
    th_sel = None
    while True:
        for cand in cands:
            if _vmem_estimate(tm, cand, O, C, x_bytes, out_bytes, w_bytes) <= vmem_budget:
                th_sel = cand
                break
        if th_sel is not None or tm <= 128:
            break
        tm = max(128, tm // 2)          # shrink token tile before giving up
    if th_sel is None:
        th_sel = cands[-1]              # smallest candidate; correct even if tight
    th = th_sel
    n_h = H // th

    Mp = _round_up(M, tm)
    n_m = Mp // tm

    # --- output split: keep both v7x cores busy when there is 1 token block ---
    n_o = 2 if (n_m < 2 and O % 256 == 0) else 1
    to = O // n_o

    x2d = x.reshape(M, C)
    if Mp != M:
        x2d = jnp.pad(x2d, ((0, Mp - M), (0, 0)))

    # Cost estimate including weight re-streaming per token/output block.
    cost = pl.CostEstimate(
        flops=2 * Mp * (2 * C * H * n_o + H * O),
        transcendentals=Mp * H * n_o,
        bytes_accessed=(Mp * C * x_bytes                      # x: one DMA per token block
                        + n_m * n_o * 2 * C * H * w_bytes     # gate/up re-streamed per (i, o)
                        + n_m * H * O * w_bytes               # w2 re-streamed per token block
                        + Mp * O * out_bytes),
    )

    if n_h == 1:
        kernel = _ffn_swiglu_kernel_single
        scratch = []
    else:
        kernel = _ffn_swiglu_kernel_acc
        scratch = [pltpu.VMEM((tm, to), jnp.float32)]

    vmem_limit = int(min(vmem_cap - 2 * _MIB,
                         max(32 * _MIB,
                             _vmem_estimate(tm, th, to, C, x_bytes, out_bytes, w_bytes)
                             + 8 * _MIB)))

    out2d = pl.pallas_call(
        kernel,
        out_shape=jax.ShapeDtypeStruct((Mp, O), out_dtype),
        grid_spec=pltpu.PrefetchScalarGridSpec(
            num_scalar_prefetch=0,
            grid=(n_m, n_o, n_h),                               # H (reduction) last
            in_specs=[
                pl.BlockSpec((tm, C), lambda i, o, j: (i, 0)),   # tokens (held across o, j)
                pl.BlockSpec((C, th), lambda i, o, j: (0, j)),   # gate weight tile
                pl.BlockSpec((C, th), lambda i, o, j: (0, j)),   # up weight tile
                pl.BlockSpec((th, to), lambda i, o, j: (j, o)),  # down-projection tile
            ],
            out_specs=pl.BlockSpec((tm, to), lambda i, o, j: (i, o)),
            scratch_shapes=scratch,
        ),
        compiler_params=pltpu.CompilerParams(
            dimension_semantics=("parallel", "parallel", "arbitrary"),
            vmem_limit_bytes=vmem_limit,
        ),
        cost_estimate=cost,
    )(x2d, wg, w1, w2)

    return out2d[:M].reshape(B, L, O)


def ffn_swiglu_ref(x, wg, w1, w2):
    g = x @ wg
    u = x @ w1
    return (jax.nn.silu(g) * u) @ w2


if __name__ == "__main__":
    # Module config (small): in_features=256, hidden_features=1024 -> rounded hidden=768
    in_features = 256
    hidden_arg = 1024
    hidden = _round_hidden(hidden_arg)       # 768
    out_features = in_features               # default out_features=None -> in_features

    B, L = 2, 8                              # x: (batch=2, seq=8, channels=256)

    key = jax.random.PRNGKey(0)
    kx, kg, k1, k2 = jax.random.split(key, 4)

    x = jax.random.normal(kx, (B, L, in_features), dtype=jnp.float32)
    # nn.Linear weights are (out, in); the kernel takes the transposed (in, out) layout.
    scale_in = 1.0 / jnp.sqrt(in_features)
    scale_h = 1.0 / jnp.sqrt(hidden)
    wg = jax.random.uniform(kg, (in_features, hidden), jnp.float32, -1.0, 1.0) * scale_in
    w1 = jax.random.uniform(k1, (in_features, hidden), jnp.float32, -1.0, 1.0) * scale_in
    w2 = jax.random.uniform(k2, (hidden, out_features), jnp.float32, -1.0, 1.0) * scale_h

    # One-time weight prep (hoisted out of the forward path).
    wg_p, w1_p, w2_p = prepare_ffn_swiglu_weights(wg, w1, w2)

    y_ref = ffn_swiglu_ref(x, wg, w1, w2)

    # TODO(synk): dropout p>0 (train mode) not implemented; module default p=0 -> Identity.

    # Auto-tuned tiles: at these shapes H fits one tile (no accumulator) and the
    # output dim splits into two parallel blocks (small-M megacore path).
    y = ffn_swiglu(x, wg_p, w1_p, w2_p)
    jax.block_until_ready(y)
    assert y.shape == (B, L, out_features)
    # bf16 MXU operands with fp32 accumulation -> bf16-level tolerance.
    assert jnp.allclose(y.astype(jnp.float32), y_ref, atol=2.5e-2, rtol=2.5e-2)

    # Forced th=256 exercises the multi-step H reduction + fp32 accumulator path.
    y2 = ffn_swiglu(x, wg_p, w1_p, w2_p, th=256)
    jax.block_until_ready(y2)
    assert jnp.allclose(y2.astype(jnp.float32), y_ref, atol=2.5e-2, rtol=2.5e-2)

    print("KERNEL_OK")
</pallas_src>

<mosaic_0001>
module attributes {stable_mosaic.version = 11 : i64} {
  func.func @_ffn_swiglu_kernel_single(%arg0: i32, %arg1: i32, %arg2: i32, %arg3: memref<128x256xf32, #tpu.memory_space<vmem>>, %arg4: memref<256x768xbf16, #tpu.memory_space<vmem>>, %arg5: memref<256x768xbf16, #tpu.memory_space<vmem>>, %arg6: memref<768x128xbf16, #tpu.memory_space<vmem>>, %arg7: memref<128x128xf32, #tpu.memory_space<vmem>>) attributes {dimension_semantics = [#tpu.dimension_semantics<parallel>, #tpu.dimension_semantics<parallel>, #tpu.dimension_semantics<arbitrary>], iteration_bounds = array<i64: 1, 2, 1>, scalar_prefetch = 0 : i64, scratch_operands = 0 : i64, tpu.core_type = #tpu.core_type<tc>, window_params = [{transform_indices = @transform_0, window_bounds = array<i64: 128, 256>}, {transform_indices = @transform_1, window_bounds = array<i64: 256, 768>}, {transform_indices = @transform_2, window_bounds = array<i64: 256, 768>}, {transform_indices = @transform_3, window_bounds = array<i64: 768, 128>}, {transform_indices = @transform_4, window_bounds = array<i64: 128, 128>}]} {
    %c0 = arith.constant 0 : index
    %c0_0 = arith.constant 0 : index
    %0 = vector.load %arg3[%c0, %c0_0] : memref<128x256xf32, #tpu.memory_space<vmem>>, vector<128x256xf32>
    %1 = arith.truncf %0 : vector<128x256xf32> to vector<128x256xbf16>
    %c0_1 = arith.constant 0 : index
    %c0_2 = arith.constant 0 : index
    %2 = vector.load %arg4[%c0_1, %c0_2] : memref<256x768xbf16, #tpu.memory_space<vmem>>, vector<256x768xbf16>
    %cst = arith.constant dense<0.000000e+00> : vector<128x768xf32>
    %3 = tpu.matmul %1, %2, %cst {dimension_numbers = #tpu.dot_dimension_numbers<[1], [0], [0], [1], [0, 0, 1, 1], [], []>} : vector<128x256xbf16>, vector<256x768xbf16>, vector<128x768xf32> -> vector<128x768xf32>
    %c0_3 = arith.constant 0 : index
    %c0_4 = arith.constant 0 : index
    %4 = vector.load %arg5[%c0_3, %c0_4] : memref<256x768xbf16, #tpu.memory_space<vmem>>, vector<256x768xbf16>
    %cst_5 = arith.constant dense<0.000000e+00> : vector<128x768xf32>
    %5 = tpu.matmul %1, %4, %cst_5 {dimension_numbers = #tpu.dot_dimension_numbers<[1], [0], [0], [1], [0, 0, 1, 1], [], []>} : vector<128x256xbf16>, vector<256x768xbf16>, vector<128x768xf32> -> vector<128x768xf32>
    %6 = arith.negf %3 : vector<128x768xf32>
    %7 = math.exp %6 : vector<128x768xf32>
    %cst_6 = arith.constant 1.000000e+00 : f32
    %8 = vector.broadcast %cst_6 : f32 to vector<128x768xf32>
    %9 = arith.addf %8, %7 : vector<128x768xf32>
    %10 = arith.divf %8, %9 : vector<128x768xf32>
    %11 = arith.mulf %3, %10 : vector<128x768xf32>
    %12 = arith.mulf %11, %5 : vector<128x768xf32>
    %13 = arith.truncf %12 : vector<128x768xf32> to vector<128x768xbf16>
    %c0_7 = arith.constant 0 : index
    %c0_8 = arith.constant 0 : index
    %14 = vector.load %arg6[%c0_7, %c0_8] : memref<768x128xbf16, #tpu.memory_space<vmem>>, vector<768x128xbf16>
    %cst_9 = arith.constant dense<0.000000e+00> : vector<128x128xf32>
    %15 = tpu.matmul %13, %14, %cst_9 {dimension_numbers = #tpu.dot_dimension_numbers<[1], [0], [0], [1], [0, 0, 1, 1], [], []>} : vector<128x768xbf16>, vector<768x128xbf16>, vector<128x128xf32> -> vector<128x128xf32>
    %c0_10 = arith.constant 0 : index
    %c0_11 = arith.constant 0 : index
    %16 = vector.load %arg7[%c0_10, %c0_11] : memref<128x128xf32, #tpu.memory_space<vmem>>, vector<128x128xf32>
    tpu.vector_store %arg7[%c0_10, %c0_11], %15 {strides = array<i32>} : memref<128x128xf32, #tpu.memory_space<vmem>>, vector<128x128xf32>,
    return
  }
  func.func @transform_0(%arg0: i32, %arg1: i32, %arg2: i32) -> (i32, i32) {
    %c0_i32 = arith.constant 0 : i32
    %c0_i32_0 = arith.constant 0 : i32
    return %arg0, %c0_i32 : i32, i32
  }
  func.func @transform_1(%arg0: i32, %arg1: i32, %arg2: i32) -> (i32, i32) {
    %c0_i32 = arith.constant 0 : i32
    %c0_i32_0 = arith.constant 0 : i32
    return %c0_i32, %arg2 : i32, i32
  }
  func.func @transform_2(%arg0: i32, %arg1: i32, %arg2: i32) -> (i32, i32) {
    %c0_i32 = arith.constant 0 : i32
    %c0_i32_0 = arith.constant 0 : i32
    return %c0_i32, %arg2 : i32, i32
  }
  func.func @transform_3(%arg0: i32, %arg1: i32, %arg2: i32) -> (i32, i32) {
    %c0_i32 = arith.constant 0 : i32
    return %arg2, %arg1 : i32, i32
  }
  func.func @transform_4(%arg0: i32, %arg1: i32, %arg2: i32) -> (i32, i32) {
    %c0_i32 = arith.constant 0 : i32
    return %arg0, %arg1 : i32, i32
  }
}

</mosaic_0001>

<bundles_post_ra>
// kernel: tpu_custom_call.1
= control target key start
LH: loop header
LB: loop body
LE: loop exit
PB: predicated region body
PF: predicated region fallthrough
CT: control target
= control target key end

     0   :  { %s12063_s0 = inlined_call_operand.hbm [shape: f32[128,256], index: 0, kind: input, shape index: {}]   ;;  %s12064_s1 = inlined_call_operand.hbm [shape: bf16[256,768], index: 1, kind: input, shape index: {}]   ;;  %s12065_s2 = inlined_call_operand.hbm [shape: bf16[256,768], index: 2, kind: input, shape index: {}]   ;;  %s12066_s3 = inlined_call_operand.hbm [shape: bf16[768,256], index: 3, kind: input, shape index: {}]   ;;  %s12067_s4 = inlined_call_operand.hbm [shape: f32[128,256], index: 4, kind: output, shape index: {}]  }
   0x1   :  { %12243 = sst [smem:[#allocation131_spill]] %s12063_s0 }
   0x2   :  { %12244 = sst [smem:[#allocation132_spill]] %s12064_s1 }
   0x3   :  { %9 = vsyncpa [#allocation3], 0 }
   0x4   :  { %10 = vsyncpa [#allocation6], 0 }
   0x5   :  { %11 = vsyncpa [#allocation9], 0 }
   0x6   :  { %13 = vsyncpa [#allocation9 + $0x1], 0 }
   0x7   :  { %14 = vsyncpa [#allocation4], 0 }
   0x8   :  { %16 = vsyncpa [#allocation4 + $0x1], 0  ;;  %s7668_s15 = smov 0   ;;  %s7670_s16 = smov 0  }
   0x9   :  { %s7672_s17 = smov 0   ;;  %s7674_s18 = smov 0  }
   0xa   :  { %s7676_s19 = smov 0   ;;  %s7678_s20 = smov 0  }
   0xb LB: > { %s5600_s21 = sadd.s32 4294967295, %s7628_s20   ;;  %s5601_s22 = sadd.s32 4294967294, %s7628_s20   ;;  %s7628_s20 = sphi %s7678_s20, %s22_s20   ;;  %s7624_s19 = sphi %s7676_s19, %s13011_s19   ;;  %s7620_s18 = sphi %s7674_s18, %s13010_s18   ;;  %s7616_s17 = sphi %s7672_s17, %s13009_s17   ;;  %s7612_s16 = sphi %s7670_s16, %s13008_s16   ;;  %s7608_s15 = sphi %s7668_s15, %s13007_s15  }
   0xc   : > { %p141_p0 = scmp.ne.s32.totalorder %s7612_s16, %s7608_s15  ;;  %p7702_p1 = scmp.eq.s32.totalorder %s5600_s21, 0 }
   0xd   : > { %p7706_p2 = scmp.eq.s32.totalorder %s5600_s21, 1  ;;  %p173_p3 = scmp.eq.s32.totalorder %s5601_s22, 1 }
   0xe   : > { %p7712_p4 = por %p7702_p1, %p141_p0  ;;  %p5602_p5 = scmp.ge.s32.totalorder %s7628_s20, 1 }
   0xf   : > { %p7717_p6 = por %p173_p3, %p141_p0  ;;  %p180_p7 = scmp.lt.s32.totalorder %s7628_s20, 3 }
  0x10   : > { %s12249_s1 = sld [smem:[#allocation132_spill]]  ;;  %s7630_s5 = smov [#allocation5]  }
  0x11   : > { %p7725_p8 = pnand %p5602_p5, %p180_p7  ;;  %s214_s6 = sshll.u32 %s7630_s5, 4  ;;  %s215_s6 = int_to_ptr.vmem [resolvable:$true] %s214_s6 }
  0x12   : > { %p5606_p11 = scmp.ge.s32.totalorder %s7628_s20, 2  ;;  %s12252_s0 = sld [smem:[#allocation131_spill]] }
  0x13   : > { %p6947_p9 = pneg %p7725_p8  ;;  %s7631_s11 = smov 384  }
  0x14   : > { %s7632_s12 = smov 24   ;;  %s7633_s13 = smov [#allocation2]  }
  0x15   : > { %p7733_p10 = pnand %p6947_p9, %p7702_p1  ;;  %s197_s14 = sshll.u32 %s7633_s13, 4  ;;  %s198_s14 = int_to_ptr.vmem [resolvable:$true] %s197_s14 }
  0x16   : > { %s212_s29 = sshll.u32 %s12249_s1, 4  ;;  %s7634_s21 = smov 256   ;;  %s213_s29 = int_to_ptr.hbm [resolvable:$true] %s212_s29 }
  0x17   : > { %6953 = dma.hbm_to_vmem [thread:$0]  (!%p7733_p10), %s213_s29, 12288, %s215_s6, [#allocation6], %s7631_s11, %s7631_s11, %s7632_s12  }
  0x18   : > { %s195_s10 = sshll.u32 %s12252_s0, 4  ;;  %s7635_s22 = smov 16   ;;  %s196_s10 = int_to_ptr.hbm [resolvable:$true] %s195_s10 }
  0x19   : > { %6950 = dma.hbm_to_vmem [thread:$0]  (!%p7733_p10), %s196_s10, 4096, %s198_s14, [#allocation3], %s7634_s21, %s7634_s21, %s7635_s22  }
  0x1a   : > { %s229_s5 = sshll.u32 %s12065_s2, 4  ;;  %s7636_s29 = smov [#allocation7]   ;;  %s230_s5 = int_to_ptr.hbm [resolvable:$true] %s229_s5 }
  0x1b   : > { %s231_s6 = sshll.u32 %s7636_s29, 4  ;;  %s128_s8 = sadd.s32 1, %s7616_s17  ;;  %s232_s6 = int_to_ptr.vmem [resolvable:$true] %s231_s6 }
  0x1c   : > { %6956 = dma.hbm_to_vmem [thread:$0]  (!%p7733_p10), %s230_s5, 12288, %s232_s6, [#allocation6], %s7631_s11, %s7631_s11, %s7632_s12  }
  0x1d   : > { %s37_s9 = sadd.s32 1, %s7624_s19  ;;  %p135_p12 = scmp.ne.s32.totalorder %s7616_s17, %s7612_s16 }
  0x1e   : > { %p39_p13 = scmp.ge.s32.totalorder %s37_s9, 2  ;;  %p136_p0 = scmp.eq.s32.totalorder %s7628_s20, 0 }
  0x1f   : > { %p7757_p3 = por %p7706_p2, %p135_p12  ;;  %p6968_p5 = scmp.lt.s32.totalorder %s7628_s20, 2 }
  0x20   : > { %s13013_s9 = smov (%p39_p13, %s37_s9), 0  ;;  %p137_p7 = por %p136_p0, %p135_p12 }
  0x21   : > { %s245_s13 = sand.u32 1, %s7616_s17   ;;  %s124_s14 = ssub.s32 %s7624_s19, %s13013_s9 }
  0x22   : > { %p126_p9 = scmp.eq.s32.totalorder %s124_s14, 0  ;;  %s6929_s7 = smul.u32 384, %s245_s13 }
  0x23   : > { %s5607_s11 = sshll.u32 %s7624_s19, 2  ;;  %p6958_p10 = pnand %p6968_p5, %p137_p7 }
  0x24   : > { %s7769_s12 = scalar_select %p126_p9, %s7616_s17, %s128_s8  }
  0x25   : > { %s256_s24 = scalar_lea.hbm %s12066_s3, %s5607_s11  ;;  %s249_s28 = scalar_lea.vmem [#allocation8], %s6929_s7 }
  0x26   : > { %s257_s27 = sshll.u32 %s256_s24, 4  ;;  %s259_s5 = sshll.u32 %s249_s28, 4  ;;  %s258_s27 = int_to_ptr.hbm [resolvable:$true] %s257_s27  ;;  %s260_s5 = int_to_ptr.vmem [resolvable:$true] %s259_s5 }
  0x27   : > { %s246_s29 = scalar_lea.sflag [#allocation9], %s245_s13  ;;  %s7637_s6 = smov 128  }
  0x28   : > { %s7638_s0 = smov 64   ;;  %s7639_s1 = smov 4  }
  0x29   : > { %6960 = dma.hbm_to_vmem [thread:$0]  (!%p6958_p10), %s258_s27, 6144, %s260_s5, %s246_s29, %s7637_s6, %s7638_s0, %s7639_s1  }
  0x2a   : > { %271 = sbr.rel (%p7725_p8) target bundleno = 1205 (0x4b5), region = 36 }
  0x2f   : > { %7591 = dma.done.wait (%p7702_p1), [#allocation3], 4096  }
  0x30   : > { %7593 = vsyncadd (%p7702_p1), [#allocation3], 4294963200 }
  0x31   : > { %7595 = dma.done.wait (%p7702_p1), [#allocation6], 24576  }
  0x32   : > { %7597 = vsyncadd (%p7702_p1), [#allocation6], 4294942720  ;;  %s7785_s8 = sand.u32 1, %s7612_s16  }
  0x33   : > { %s6930_s0 = smul.u32 384, %s7785_s8  ;;  %s289_s1 = scalar_lea.sflag [#allocation9], %s7785_s8 }
  0x35   : > { %s7789_s30 = scalar_lea.vmem [#allocation8], %s6930_s0 }
  0x36   : > { %7599 = dma.done.wait (%p7712_p4), %s289_s1, 6144  }
  0x37   : > { %7601 = vsyncadd (%p7712_p4), %s289_s1, 4294961152  ;;  %v5783_v0 = vld [vmem:[#allocation5 + $0x150] sm:$0xf]  ;;  %v6718_v1 = vld [vmem:[#allocation5 + $0x164] sm:$0xf0]  ;;  %s5612_s23 = sshll.u32 %s7785_s8, 7 }
  0x38   : > { %v5975_v2 = vld [vmem:[#allocation5 + $0x2d0] sm:$0xf]  ;;  %v5784_v3 = vor.u32 %v6718_v1, %v5783_v0  ;;  %v6766_v4 = vld [vmem:[#allocation5 + $0x2e4] sm:$0xf0]  ;;  %v5759_v5 = vld [vmem:[#allocation5 + $0x120] sm:$0xf] }
  0x39   : > { %v6712_v6 = vld [vmem:[#allocation5 + $0x134] sm:$0xf0]  ;;  %v5976_v7 = vor.u32 %v6766_v4, %v5975_v2  ;;  %v5951_v8 = vld [vmem:[#allocation5 + $0x2a0] sm:$0xf]  ;;  %v5735_v12 = vld [vmem:[#allocation5 + $0xf0] sm:$0xf] }
  0x3a   : > { %v6760_v9 = vld [vmem:[#allocation5 + $0x2b4] sm:$0xf0]  ;;  %947 = vmatpush.bf16.msra.mxu0 %v5784_v3  ;;  %6913 = vmatpush.bf16.msra.mxu2 %v5784_v3  ;;  %v5760_v10 = vor.u32 %v6712_v6, %v5759_v5  ;;  %v6706_v13 = vld [vmem:[#allocation5 + $0x104] sm:$0xf0]  ;;  %v5927_v14 = vld [vmem:[#allocation5 + $0x270] sm:$0xf] }
  0x3b   : > { %996 = vmatpush.bf16.msra.mxu1 %v5976_v7  ;;  %6921 = vmatpush.bf16.msra.mxu3 %v5976_v7  ;;  %v5952_v11 = vor.u32 %v6760_v9, %v5951_v8  ;;  %v6754_v15 = vld [vmem:[#allocation5 + $0x284] sm:$0xf0]  ;;  %v5736_v16 = vor.u32 %v6706_v13, %v5735_v12  ;;  %v5711_v18 = vld [vmem:[#allocation5 + $0xc0] sm:$0xf]  ;;  %v6700_v19 = vld [vmem:[#allocation5 + $0xd4] sm:$0xf0] }
  0x3c   : > { %v5928_v17 = vor.u32 %v6754_v15, %v5927_v14  ;;  %v5903_v20 = vld [vmem:[#allocation5 + $0x240] sm:$0xf]  ;;  %v6748_v21 = vld [vmem:[#allocation5 + $0x254] sm:$0xf0]  ;;  %v5712_v22 = vor.u32 %v6700_v19, %v5711_v18  ;;  %v5687_v24 = vld [vmem:[#allocation5 + $0x90] sm:$0xf] }
  0x3d   : > { %v5904_v23 = vor.u32 %v6748_v21, %v5903_v20  ;;  %v6694_v25 = vld [vmem:[#allocation5 + $0xa4] sm:$0xf0]  ;;  %v5879_v26 = vld [vmem:[#allocation5 + $0x210] sm:$0xf]  ;;  %v5663_v30 = vld [vmem:[#allocation5 + $0x60] sm:$0xf] }
  0x3e   : > { %948 = vmatpush.bf16.msra.mxu0 %v5760_v10  ;;  %6914 = vmatpush.bf16.msra.mxu2 %v5760_v10  ;;  %v6742_v27 = vld [vmem:[#allocation5 + $0x224] sm:$0xf0]  ;;  %v5688_v28 = vor.u32 %v6694_v25, %v5687_v24  ;;  %v6688_v31 = vld [vmem:[#allocation5 + $0x74] sm:$0xf0]  ;;  %v5855_v32 = vld [vmem:[#allocation5 + $0x1e0] sm:$0xf] }
  0x3f   : > { %997 = vmatpush.bf16.msra.mxu1 %v5952_v11  ;;  %6922 = vmatpush.bf16.msra.mxu3 %v5952_v11  ;;  %v5880_v29 = vor.u32 %v6742_v27, %v5879_v26  ;;  %v6736_v33 = vld [vmem:[#allocation5 + $0x1f4] sm:$0xf0]  ;;  %v5664_v34 = vor.u32 %v6688_v31, %v5663_v30  ;;  %v5639_v36 = vld [vmem:[#allocation5 + $0x30] sm:$0xf]  ;;  %v6682_v37 = vld [vmem:[#allocation5 + $0x44] sm:$0xf0] }
  0x40   : > { %v5856_v35 = vor.u32 %v6736_v33, %v5855_v32  ;;  %v5831_v38 = vld [vmem:[#allocation5 + $0x1b0] sm:$0xf]  ;;  %v6730_v39 = vld [vmem:[#allocation5 + $0x1c4] sm:$0xf0]  ;;  %v5640_v40 = vor.u32 %v6682_v37, %v5639_v36  ;;  %v5615_v41 = vld [vmem:[#allocation5] sm:$0xf] }
  0x41   : > { %v5832_v42 = vor.u32 %v6730_v39, %v5831_v38  ;;  %v6676_v43 = vld [vmem:[#allocation5 + $0x14] sm:$0xf0]  ;;  %v5807_v44 = vld [vmem:[#allocation5 + $0x180] sm:$0xf]  ;;  %v325_v47 = vld [vmem:[#allocation2 + $0x10] sm:$0xff]  ;;  %s11989_s25 = scalar_lea.vmem [#allocation10], %s5612_s23 }
  0x42   : > { %949 = vmatpush.bf16.msra.mxu0 %v5736_v16  ;;  %6915 = vmatpush.bf16.msra.mxu2 %v5736_v16  ;;  %v6724_v45 = vld [vmem:[#allocation5 + $0x194] sm:$0xf0]  ;;  %v323_v46 = vld [vmem:[#allocation2] sm:$0xff]  ;;  %v341_v49 = vld [vmem:[#allocation2 + $0x90] sm:$0xff]  ;;  %v5616_v54 = vor.u32 %v6676_v43, %v5615_v41  ;;  %s6670_s13 = sshll.u32 %s7620_s18, 3  ;;  %s5472_s21 = sshll.u32 %s11989_s25, 4  ;;  %s5473_s21 = int_to_ptr.vmem [resolvable:$true] %s5472_s21 }
  0x43   : > { %998 = vmatpush.bf16.msra.mxu1 %v5928_v17  ;;  %6923 = vmatpush.bf16.msra.mxu3 %v5928_v17  ;;  %v339_v48 = vld [vmem:[#allocation2 + $0x80] sm:$0xff]  ;;  %v6715_v50 = vld [vmem:[#allocation5 + $0x154] sm:$0xf]  ;;  %v5785_v51 = vld [vmem:[#allocation5 + $0x168] sm:$0xf0]  ;;  %v5808_v58 = vor.u32 %v6724_v45, %v5807_v44  ;;  %v7795_v3 = vpack.c.bf16 %v325_v47, %v323_v46  ;;  %s5471_s11 = scalar_lea.hbm %s12067_s4, %s6670_s13  ;;  %s5458_s18 = scalar_lea.sflag [#allocation4], %s7785_s8 }
  0x44   : > { %v6763_v52 = vld [vmem:[#allocation5 + $0x2d4] sm:$0xf]  ;;  %v5977_v53 = vld [vmem:[#allocation5 + $0x2e8] sm:$0xf0]  ;;  %v326_v56 = vld [vmem:[#allocation2 + $0x18] sm:$0xff]  ;;  %v5788_v62 = vor.u32 %v6715_v50, %v5785_v51  ;;  %v7797_v4 = vpack.c.bf16 %v341_v49, %v339_v48  ;;  %s5474_s22 = sshll.u32 %s5471_s11, 4  ;;  %s5475_s22 = int_to_ptr.hbm [resolvable:$true] %s5474_s22 }
  0x45   : > { %v324_v55 = vld [vmem:[#allocation2 + $0x8] sm:$0xff]  ;;  %v342_v59 = vld [vmem:[#allocation2 + $0x98] sm:$0xff]  ;;  %v6709_v60 = vld [vmem:[#allocation5 + $0x124] sm:$0xf]  ;;  %v5980_v63 = vor.u32 %v6763_v52, %v5977_v53  ;;  %12254 = vst [vmem:[#allocation15_spill] sm:$0xff] %v7795_v3  ;;  %s7552_s24 = sshra.s32 %s5475_s22, 4  ;;  %s7553_s24 = int_to_ptr.hbm [resolvable:$true] %s7552_s24 }
  0x46   : > { %950 = vmatpush.bf16.msra.mxu0 %v5712_v22  ;;  %6916 = vmatpush.bf16.msra.mxu2 %v5712_v22  ;;  %v340_v57 = vld [vmem:[#allocation2 + $0x88] sm:$0xff]  ;;  %v5791_v61 = vld [vmem:[#allocation5 + $0x158] sm:$0xf]  ;;  %v6719_v0 = vld [vmem:[#allocation5 + $0x16c] sm:$0xf0]  ;;  %12255 = vst [vmem:[#allocation16_spill] sm:$0xff] %v7797_v4  ;;  %v7799_v8 = vpack.c.bf16 %v326_v56, %v324_v55  ;;  %p7559_p8 = scmp.lt.s32.totalorder %s7553_s24, %s12067_s4 }
  0x47   : > { %999 = vmatpush.bf16.msra.mxu1 %v5904_v23  ;;  %6924 = vmatpush.bf16.msra.mxu3 %v5904_v23  ;;  %v5983_v1 = vld [vmem:[#allocation5 + $0x2d8] sm:$0xf]  ;;  %v6767_v2 = vld [vmem:[#allocation5 + $0x2ec] sm:$0xf0]  ;;  %v5761_v5 = vld [vmem:[#allocation5 + $0x138] sm:$0xf0]  ;;  %v7801_v9 = vpack.c.bf16 %v342_v59, %v340_v57  ;;  %v5792_v11 = vor.u32 %v6719_v0, %v5791_v61 }
  0x48   : > { %v6757_v6 = vld [vmem:[#allocation5 + $0x2a4] sm:$0xf]  ;;  %v5953_v7 = vld [vmem:[#allocation5 + $0x2b8] sm:$0xf0]  ;;  %12256 = vst [vmem:[#allocation17_spill] sm:$0xff] %v7799_v8  ;;  %v5984_v12 = vor.u32 %v6767_v2, %v5983_v1  ;;  %v5764_v14 = vor.u32 %v6709_v60, %v5761_v5  ;;  %v329_v39 = vld [vmem:[#allocation2 + $0x30] sm:$0xff] }
  0x49   : > { %12257 = vst [vmem:[#allocation18_spill] sm:$0xff] %v7801_v9  ;;  %v6703_v10 = vld [vmem:[#allocation5 + $0xf4] sm:$0xf]  ;;  %v5767_v13 = vld [vmem:[#allocation5 + $0x128] sm:$0xf]  ;;  %v5956_v15 = vor.u32 %v6757_v6, %v5953_v7  ;;  %v327_v38 = vld [vmem:[#allocation2 + $0x20] sm:$0xff] }
  0x4a   : > { %951 = vmatpush.bf16.msra.mxu0 %v5688_v28  ;;  %6917 = vmatpush.bf16.msra.mxu2 %v5688_v28  ;;  %v6713_v16 = vld [vmem:[#allocation5 + $0x13c] sm:$0xf0]  ;;  %v5959_v17 = vld [vmem:[#allocation5 + $0x2a8] sm:$0xf]  ;;  %v5737_v19 = vld [vmem:[#allocation5 + $0x108] sm:$0xf0]  ;;  %v7807_v59 = vpack.c.bf16 %v329_v39, %v327_v38 }
  0x4b   : > { %1000 = vmatpush.bf16.msra.mxu1 %v5880_v29  ;;  %6925 = vmatpush.bf16.msra.mxu3 %v5880_v29  ;;  %v6761_v18 = vld [vmem:[#allocation5 + $0x2bc] sm:$0xf0]  ;;  %v6751_v20 = vld [vmem:[#allocation5 + $0x274] sm:$0xf]  ;;  %v5929_v21 = vld [vmem:[#allocation5 + $0x288] sm:$0xf0]  ;;  %v5768_v23 = vor.u32 %v6713_v16, %v5767_v13  ;;  %v5740_v26 = vor.u32 %v6703_v10, %v5737_v19 }
  0x4c   : > { %v6697_v22 = vld [vmem:[#allocation5 + $0xc4] sm:$0xf]  ;;  %v5960_v24 = vor.u32 %v6761_v18, %v5959_v17  ;;  %v5743_v25 = vld [vmem:[#allocation5 + $0xf8] sm:$0xf]  ;;  %v5932_v27 = vor.u32 %v6751_v20, %v5929_v21  ;;  %v6707_v28 = vld [vmem:[#allocation5 + $0x10c] sm:$0xf0] }
  0x4d   : > { %v5935_v29 = vld [vmem:[#allocation5 + $0x278] sm:$0xf]  ;;  %v6755_v30 = vld [vmem:[#allocation5 + $0x28c] sm:$0xf0]  ;;  %v5713_v31 = vld [vmem:[#allocation5 + $0xd8] sm:$0xf0] }
  0x4e   : > { %952 = vmatpush.bf16.msra.mxu0 %v5664_v34  ;;  %6918 = vmatpush.bf16.msra.mxu2 %v5664_v34  ;;  %v6745_v32 = vld [vmem:[#allocation5 + $0x244] sm:$0xf]  ;;  %v5905_v33 = vld [vmem:[#allocation5 + $0x258] sm:$0xf0]  ;;  %v6691_v34 = vld [vmem:[#allocation5 + $0x94] sm:$0xf]  ;;  %v5936_v36 = vor.u32 %v6755_v30, %v5935_v29 }
  0x4f   : > { %1001 = vmatpush.bf16.msra.mxu1 %v5856_v35  ;;  %6926 = vmatpush.bf16.msra.mxu3 %v5856_v35  ;;  %v5744_v35 = vor.u32 %v6707_v28, %v5743_v25  ;;  %v5719_v37 = vld [vmem:[#allocation5 + $0xc8] sm:$0xf]  ;;  %v5908_v41 = vor.u32 %v6745_v32, %v5905_v33  ;;  %v6749_v44 = vld [vmem:[#allocation5 + $0x25c] sm:$0xf0]  ;;  %v5689_v45 = vld [vmem:[#allocation5 + $0xa8] sm:$0xf0] }
  0x50   : > { %v5911_v43 = vld [vmem:[#allocation5 + $0x248] sm:$0xf]  ;;  %v6739_v46 = vld [vmem:[#allocation5 + $0x214] sm:$0xf]  ;;  %v5881_v47 = vld [vmem:[#allocation5 + $0x228] sm:$0xf0]  ;;  %v5692_v56 = vor.u32 %v6691_v34, %v5689_v45 }
  0x51   : > { %v343_v48 = vld [vmem:[#allocation2 + $0xa0] sm:$0xff]  ;;  %v345_v49 = vld [vmem:[#allocation2 + $0xb0] sm:$0xff]  ;;  %v328_v50 = vld [vmem:[#allocation2 + $0x28] sm:$0xff]  ;;  %v5912_v55 = vor.u32 %v6749_v44, %v5911_v43  ;;  %v5884_v57 = vor.u32 %v6739_v46, %v5881_v47  ;;  %12258 = vst [vmem:[#allocation19_spill] sm:$0xff] %v7807_v59  ;;  %s7554_s27 = scalar_lea.hbm %s7553_s24, 128  ;;  %s7558_s29 = scalar_lea.hbm %s12067_s4, 256 }
  0x52   : > { %953 = vmatpush.bf16.msra.mxu0 %v5640_v40  ;;  %6919 = vmatpush.bf16.msra.mxu2 %v5640_v40  ;;  %v5716_v40 = vor.u32 %v6697_v22, %v5713_v31  ;;  %v330_v51 = vld [vmem:[#allocation2 + $0x38] sm:$0xff]  ;;  %v344_v52 = vld [vmem:[#allocation2 + $0xa8] sm:$0xff]  ;;  %v7809_v60 = vpack.c.bf16 %v345_v49, %v343_v48  ;;  %v6695_v7 = vld [vmem:[#allocation5 + $0xac] sm:$0xf0]  ;;  %p7555_p1 = scmp.ne.s32.totalorder %s7553_s24, %s7554_s27  ;;  %p7560_p12 = scmp.lt.s32.totalorder %s7558_s29, %s7554_s27 }
  0x53   : > { %1002 = vmatpush.bf16.msra.mxu1 %v5832_v42  ;;  %6927 = vmatpush.bf16.msra.mxu3 %v5832_v42  ;;  %v6701_v42 = vld [vmem:[#allocation5 + $0xdc] sm:$0xf0]  ;;  %v346_v53 = vld [vmem:[#allocation2 + $0xb8] sm:$0xff]  ;;  %v7811_v0 = vpack.c.bf16 %v330_v51, %v328_v50  ;;  %v6727_v13 = vld [vmem:[#allocation5 + $0x1b4] sm:$0xf] }
  0x54   : > { %12259 = vst [vmem:[#allocation20_spill] sm:$0xff] %v7809_v60  ;;  %v5665_v61 = vld [vmem:[#allocation5 + $0x78] sm:$0xf0]  ;;  %v7813_v1 = vpack.c.bf16 %v346_v53, %v344_v52  ;;  %v5695_v6 = vld [vmem:[#allocation5 + $0x98] sm:$0xf]  ;;  %v347_v38 = vld [vmem:[#allocation2 + $0xc0] sm:$0xff]  ;;  %p7556_p2 = pnand %p7555_p1, %p7757_p3  ;;  %p7561_p13 = por %p7560_p12, %p7559_p8 }
  0x55   : > { %12260 = vst [vmem:[#allocation21_spill] sm:$0xff] %v7811_v0  ;;  %v5887_v10 = vld [vmem:[#allocation5 + $0x218] sm:$0xf]  ;;  %v6743_v16 = vld [vmem:[#allocation5 + $0x22c] sm:$0xf0]  ;;  %v348_v44 = vld [vmem:[#allocation2 + $0xc8] sm:$0xff] }
  0x56   : > { %954 = vmatpush.bf16.msra.mxu0 %v5616_v54  ;;  %6920 = vmatpush.bf16.msra.mxu2 %v5616_v54  ;;  %v5720_v54 = vor.u32 %v6701_v42, %v5719_v37  ;;  %12261 = vst [vmem:[#allocation22_spill] sm:$0xff] %v7813_v1  ;;  %v5671_v17 = vld [vmem:[#allocation5 + $0x68] sm:$0xf]  ;;  %v5888_v20 = vor.u32 %v6743_v16, %v5887_v10  ;;  %v6689_v21 = vld [vmem:[#allocation5 + $0x7c] sm:$0xf0]  ;;  %v333_v37 = vld [vmem:[#allocation2 + $0x50] sm:$0xff]  ;;  %p7557_p4 = pneg %p7556_p2 }
  0x57   : > { %1003 = vmatpush.bf16.msra.mxu1 %v5808_v58  ;;  %6928 = vmatpush.bf16.msra.mxu3 %v5808_v58  ;;  %v6685_v58 = vld [vmem:[#allocation5 + $0x64] sm:$0xf]  ;;  %v5863_v22 = vld [vmem:[#allocation5 + $0x1e8] sm:$0xf]  ;;  %v5809_v29 = vld [vmem:[#allocation5 + $0x198] sm:$0xf0] }
  0x58   : > { %v5668_v2 = vor.u32 %v6685_v58, %v5665_v61  ;;  %v6673_v25 = vld [vmem:[#allocation5 + $0x4] sm:$0xf]  ;;  %v5647_v30 = vld [vmem:[#allocation5 + $0x38] sm:$0xf]  ;;  %v6683_v31 = vld [vmem:[#allocation5 + $0x4c] sm:$0xf0]  ;;  %p7562_p0 = pnand %p7561_p13, %p7557_p4 }
  0x59   : > { %955 = vmatmul.bf16.vlgmr.msra.gmra.mxu0 %v7795_v3  ;;  %975 = vmatmul.bf16.vlgmr.msra.gmra.mxu2 %v7797_v4  ;;  %v5839_v32 = vld [vmem:[#allocation5 + $0x1b8] sm:$0xf]  ;;  %v6731_v33 = vld [vmem:[#allocation5 + $0x1cc] sm:$0xf0]  ;;  %v5648_v39 = vor.u32 %v6683_v31, %v5647_v30  ;;  %v5623_v46 = vld [vmem:[#allocation5 + $0x8] sm:$0xf] }
  0x5a   : > { %1045 = vmatpush.bf16.msrb.mxu2 %v5788_v62  ;;  %1004 = vmatmul.bf16.vlgmr.msra.gmra.mxu1 %v7799_v8  ;;  %v6733_v62 = vld [vmem:[#allocation5 + $0x1e4] sm:$0xf]  ;;  %v334_v42 = vld [vmem:[#allocation2 + $0x58] sm:$0xff]  ;;  %v5840_v43 = vor.u32 %v6731_v33, %v5839_v32  ;;  %v6677_v47 = vld [vmem:[#allocation5 + $0x1c] sm:$0xf0] }
  0x5b   : > { %1094 = vmatpush.bf16.msrb.mxu3 %v5980_v63  ;;  %1143 = vmatpush.bf16.msrb.mxu0 %v5792_v11  ;;  %v5857_v63 = vld [vmem:[#allocation5 + $0x1f8] sm:$0xf0]  ;;  %v6679_v11 = vld [vmem:[#allocation5 + $0x34] sm:$0xf]  ;;  %v5815_v48 = vld [vmem:[#allocation5 + $0x188] sm:$0xf] }
  0x5c   : > { %1024 = vmatmul.bf16.vlgmr.msra.gmra.mxu3 %v7801_v9  ;;  %1192 = vmatpush.bf16.msrb.mxu1 %v5984_v12  ;;  %v5860_v5 = vor.u32 %v6733_v62, %v5857_v63  ;;  %v5641_v12 = vld [vmem:[#allocation5 + $0x48] sm:$0xf0]  ;;  %v350_v45 = vld [vmem:[#allocation2 + $0xd8] sm:$0xff]  ;;  %v6725_v49 = vld [vmem:[#allocation5 + $0x19c] sm:$0xf0] }
  0x5d   : > { %v5644_v18 = vor.u32 %v6679_v11, %v5641_v12  ;;  %v7825_v53 = vpack.c.bf16 %v350_v45, %v348_v44  ;;  %v6764_v58 = vld [vmem:[#allocation5 + $0x2dc] sm:$0xf]  ;;  %v5985_v62 = vld [vmem:[#allocation5 + $0x2f0] sm:$0xf0]  ;;  %v336_v10 = vld [vmem:[#allocation2 + $0x68] sm:$0xff] }
  0x5e   : > { %1046 = vmatpush.bf16.msrb.mxu2 %v5764_v14  ;;  %v5696_v14 = vor.u32 %v6695_v7, %v5695_v6  ;;  %v5988_v63 = vor.u32 %v6764_v58, %v5985_v62  ;;  %v351_v6 = vld [vmem:[#allocation2 + $0xe0] sm:$0xff]  ;;  %v353_v7 = vld [vmem:[#allocation2 + $0xf0] sm:$0xff]  ;;  %v338_v11 = vld [vmem:[#allocation2 + $0x78] sm:$0xff] }
  0x5f   : > { %1095 = vmatpush.bf16.msrb.mxu3 %v5956_v15  ;;  %1144 = vmatpush.bf16.msrb.mxu0 %v5768_v23  ;;  %v5833_v15 = vld [vmem:[#allocation5 + $0x1c8] sm:$0xf0]  ;;  %v6737_v23 = vld [vmem:[#allocation5 + $0x1fc] sm:$0xf0]  ;;  %12265 = vst [vmem:[#allocation26_spill] sm:$0xff] %v7825_v53  ;;  %v7835_v16 = vpack.c.bf16 %v338_v11, %v336_v10 }
  0x60   : > { %1193 = vmatpush.bf16.msrb.mxu1 %v5960_v24  ;;  %v5836_v19 = vor.u32 %v6727_v13, %v5833_v15  ;;  %v5672_v24 = vor.u32 %v6689_v21, %v5671_v17  ;;  %v5864_v28 = vor.u32 %v6737_v23, %v5863_v22  ;;  %v352_v12 = vld [vmem:[#allocation2 + $0xe8] sm:$0xff]  ;;  %v354_v13 = vld [vmem:[#allocation2 + $0xf8] sm:$0xff]  ;;  %v7833_v15 = vpack.c.bf16 %v353_v7, %v351_v6  ;;  %v5961_v22 = vld [vmem:[#allocation5 + $0x2c0] sm:$0xf0] }
  0x61   : > { %12268 = vst [vmem:[#allocation29_spill] sm:$0xff] %v7835_v16  ;;  %v7837_v17 = vpack.c.bf16 %v354_v13, %v352_v12  ;;  %v5799_v23 = vld [vmem:[#allocation5 + $0x160] sm:$0xf]  ;;  %v6704_v30 = vld [vmem:[#allocation5 + $0xfc] sm:$0xf] }
  0x62   : > { %1047 = vmatpush.bf16.msrb.mxu2 %v5740_v26  ;;  %v5617_v26 = vld [vmem:[#allocation5 + $0x18] sm:$0xf0]  ;;  %12267 = vst [vmem:[#allocation28_spill] sm:$0xff] %v7833_v15  ;;  %v5745_v31 = vld [vmem:[#allocation5 + $0x110] sm:$0xf0] }
  0x63   : > { %1096 = vmatpush.bf16.msrb.mxu3 %v5932_v27  ;;  %1145 = vmatpush.bf16.msrb.mxu0 %v5744_v35  ;;  %v6721_v27 = vld [vmem:[#allocation5 + $0x184] sm:$0xf]  ;;  %v5620_v34 = vor.u32 %v6673_v25, %v5617_v26  ;;  %12269 = vst [vmem:[#allocation30_spill] sm:$0xff] %v7837_v17  ;;  %v6752_v32 = vld [vmem:[#allocation5 + $0x27c] sm:$0xf]  ;;  %v5748_v33 = vor.u32 %v6704_v30, %v5745_v31 }
  0x64   : > { %1194 = vmatpush.bf16.msrb.mxu1 %v5936_v36  ;;  %v5812_v35 = vor.u32 %v6721_v27, %v5809_v29  ;;  %v331_v36 = vld [vmem:[#allocation2 + $0x40] sm:$0xff]  ;;  %v6746_v44 = vld [vmem:[#allocation5 + $0x24c] sm:$0xf]  ;;  %v5697_v62 = vld [vmem:[#allocation5 + $0xb0] sm:$0xf0] }
  0x65   : > { %v7819_v50 = vpack.c.bf16 %v333_v37, %v331_v36  ;;  %v5991_v27 = vld [vmem:[#allocation5 + $0x2e0] sm:$0xf]  ;;  %v6714_v36 = vld [vmem:[#allocation5 + $0x144] sm:$0xf0]  ;;  %v5889_v6 = vld [vmem:[#allocation5 + $0x230] sm:$0xf0] }
  0x66   : > { %1048 = vmatpush.bf16.msrb.mxu2 %v5716_v40  ;;  %v349_v40 = vld [vmem:[#allocation2 + $0xd0] sm:$0xff]  ;;  %v6702_v10 = vld [vmem:[#allocation5 + $0xe4] sm:$0xf0]  ;;  %v6686_v31 = vld [vmem:[#allocation5 + $0x6c] sm:$0xf] }
  0x67   : > { %1097 = vmatpush.bf16.msrb.mxu3 %v5908_v41  ;;  %1146 = vmatpush.bf16.msrb.mxu0 %v5720_v54  ;;  %v332_v41 = vld [vmem:[#allocation2 + $0x48] sm:$0xff]  ;;  %12262 = vst [vmem:[#allocation23_spill] sm:$0xff] %v7819_v50  ;;  %v7821_v51 = vpack.c.bf16 %v349_v40, %v347_v38  ;;  %v5624_v54 = vor.u32 %v6677_v47, %v5623_v46  ;;  %v5913_v46 = vld [vmem:[#allocation5 + $0x260] sm:$0xf0]  ;;  %v5751_v47 = vld [vmem:[#allocation5 + $0x100] sm:$0xf] }
  0x68   : > { %1195 = vmatpush.bf16.msrb.mxu1 %v5912_v55  ;;  %v7823_v52 = vpack.c.bf16 %v334_v42, %v332_v41  ;;  %v5816_v55 = vor.u32 %v6725_v49, %v5815_v48  ;;  %v6762_v40 = vld [vmem:[#allocation5 + $0x2c4] sm:$0xf0]  ;;  %v6698_v42 = vld [vmem:[#allocation5 + $0xcc] sm:$0xf]  ;;  %v6708_v48 = vld [vmem:[#allocation5 + $0x114] sm:$0xf0]  ;;  %v5916_v49 = vor.u32 %v6746_v44, %v5913_v46 }
  0x69   : > { %960 = vmatmul.bf16.gmra.mxu0 %v7807_v59  ;;  %980 = vmatmul.bf16.gmra.mxu2 %v7809_v60  ;;  %12263 = vst [vmem:[#allocation24_spill] sm:$0xff] %v7821_v51  ;;  %v5727_v7 = vld [vmem:[#allocation5 + $0xd0] sm:$0xf] }
  0x6a   : > { %1049 = vmatpush.bf16.msrb.mxu2 %v5692_v56  ;;  %1009 = vmatmul.bf16.gmra.mxu1 %v7811_v0  ;;  %12264 = vst [vmem:[#allocation25_spill] sm:$0xff] %v7823_v52  ;;  %v6716_v56 = vld [vmem:[#allocation5 + $0x15c] sm:$0xf]  ;;  %v5728_v13 = vor.u32 %v6702_v10, %v5727_v7  ;;  %v5841_v10 = vld [vmem:[#allocation5 + $0x1d0] sm:$0xf0] }
  0x6b   : > { %1098 = vmatpush.bf16.msrb.mxu3 %v5884_v57  ;;  %1147 = vmatpush.bf16.msrb.mxu0 %v5696_v14  ;;  %v5793_v57 = vld [vmem:[#allocation5 + $0x170] sm:$0xf0]  ;;  %v6728_v7 = vld [vmem:[#allocation5 + $0x1bc] sm:$0xf] }
  0x6c   : > { %1029 = vmatmul.bf16.gmra.mxu3 %v7813_v1  ;;  %1196 = vmatpush.bf16.msrb.mxu1 %v5888_v20  ;;  %v5796_v61 = vor.u32 %v6716_v56, %v5793_v57  ;;  %v6758_v20 = vld [vmem:[#allocation5 + $0x2ac] sm:$0xf]  ;;  %v6756_v56 = vld [vmem:[#allocation5 + $0x294] sm:$0xf0] }
  0x6d   : > { %v5964_v25 = vor.u32 %v6758_v20, %v5961_v22 }
  0x6e   : > { %1050 = vmatpush.bf16.msrb.mxu2 %v5668_v2  ;;  %v335_v2 = vld [vmem:[#allocation2 + $0x60] sm:$0xff] }
  0x6f   : > { %1099 = vmatpush.bf16.msrb.mxu3 %v5860_v5  ;;  %1148 = vmatpush.bf16.msrb.mxu0 %v5672_v24  ;;  %v337_v5 = vld [vmem:[#allocation2 + $0x70] sm:$0xff]  ;;  %v6720_v24 = vld [vmem:[#allocation5 + $0x174] sm:$0xf0] }
  0x70   : > { %1197 = vmatpush.bf16.msrb.mxu1 %v5864_v28  ;;  %v7831_v14 = vpack.c.bf16 %v337_v5, %v335_v2  ;;  %v5800_v26 = vor.u32 %v6720_v24, %v5799_v23  ;;  %v6768_v28 = vld [vmem:[#allocation5 + $0x2f4] sm:$0xf0] }
  0x71   : > { %v5992_v29 = vor.u32 %v6768_v28, %v5991_v27 }
  0x72   : > { %1051 = vmatpush.bf16.msrb.mxu2 %v5644_v18  ;;  %12266 = vst [vmem:[#allocation27_spill] sm:$0xff] %v7831_v14  ;;  %v6710_v18 = vld [vmem:[#allocation5 + $0x12c] sm:$0xf] }
  0x73   : > { %1100 = vmatpush.bf16.msrb.mxu3 %v5836_v19  ;;  %1149 = vmatpush.bf16.msrb.mxu0 %v5648_v39  ;;  %v5769_v19 = vld [vmem:[#allocation5 + $0x140] sm:$0xf0]  ;;  %v5967_v39 = vld [vmem:[#allocation5 + $0x2b0] sm:$0xf] }
  0x74   : > { %1198 = vmatpush.bf16.msrb.mxu1 %v5840_v43  ;;  %v5772_v21 = vor.u32 %v6710_v18, %v5769_v19  ;;  %v5968_v41 = vor.u32 %v6762_v40, %v5967_v39  ;;  %v5721_v43 = vld [vmem:[#allocation5 + $0xe0] sm:$0xf0]  ;;  %v5919_v18 = vld [vmem:[#allocation5 + $0x250] sm:$0xf]  ;;  %v6750_v19 = vld [vmem:[#allocation5 + $0x264] sm:$0xf0] }
  0x75   : > { %v5724_v45 = vor.u32 %v6698_v42, %v5721_v43  ;;  %v5920_v20 = vor.u32 %v6750_v19, %v5919_v18  ;;  %v6696_v39 = vld [vmem:[#allocation5 + $0xb4] sm:$0xf0]  ;;  %v5871_v18 = vld [vmem:[#allocation5 + $0x1f0] sm:$0xf]  ;;  %v6738_v19 = vld [vmem:[#allocation5 + $0x204] sm:$0xf0] }
  0x76   : > { %1052 = vmatpush.bf16.msrb.mxu2 %v5620_v34  ;;  %v5937_v34 = vld [vmem:[#allocation5 + $0x290] sm:$0xf0]  ;;  %v6744_v42 = vld [vmem:[#allocation5 + $0x234] sm:$0xf0] }
  0x77   : > { %1101 = vmatpush.bf16.msrb.mxu3 %v5812_v35  ;;  %1150 = vmatpush.bf16.msrb.mxu0 %v5624_v54  ;;  %v5775_v35 = vld [vmem:[#allocation5 + $0x130] sm:$0xf]  ;;  %v5940_v37 = vor.u32 %v6752_v32, %v5937_v34  ;;  %v5752_v54 = vor.u32 %v6708_v48, %v5751_v47  ;;  %v5673_v32 = vld [vmem:[#allocation5 + $0x80] sm:$0xf0] }
  0x78   : > { %1199 = vmatpush.bf16.msrb.mxu1 %v5816_v55  ;;  %v5776_v38 = vor.u32 %v6714_v36, %v5775_v35  ;;  %v5943_v55 = vld [vmem:[#allocation5 + $0x280] sm:$0xf]  ;;  %v5676_v34 = vor.u32 %v6686_v31, %v5673_v32  ;;  %v6734_v35 = vld [vmem:[#allocation5 + $0x1ec] sm:$0xf]  ;;  %v5865_v36 = vld [vmem:[#allocation5 + $0x200] sm:$0xf0] }
  0x79   : > { %965 = vmatmul.bf16.gmra.mxu0 %v7819_v50  ;;  %985 = vmatmul.bf16.gmra.mxu2 %v7821_v51  ;;  %v5944_v57 = vor.u32 %v6756_v56, %v5943_v55 }
  0x7a   : > { %1014 = vmatmul.bf16.gmra.mxu1 %v7823_v52  ;;  %1241 = vmatpush.bf16.msra.mxu2 %v5796_v61  ;;  %v6692_v61 = vld [vmem:[#allocation5 + $0x9c] sm:$0xf] }
  0x7b   : > { %1290 = vmatpush.bf16.msra.mxu3 %v5988_v63  ;;  %1339 = vmatpush.bf16.msra.mxu0 %v5800_v26  ;;  %v6740_v63 = vld [vmem:[#allocation5 + $0x21c] sm:$0xf]  ;;  %v5700_v5 = vor.u32 %v6692_v61, %v5697_v62  ;;  %v5649_v62 = vld [vmem:[#allocation5 + $0x50] sm:$0xf0] }
  0x7c   : > { %1034 = vmatmul.bf16.gmra.mxu3 %v7825_v53  ;;  %1388 = vmatpush.bf16.msra.mxu1 %v5992_v29  ;;  %v5892_v12 = vor.u32 %v6740_v63, %v5889_v6  ;;  %v6680_v61 = vld [vmem:[#allocation5 + $0x3c] sm:$0xf] }
  0x7d   : > { %v5652_v6 = vor.u32 %v6680_v61, %v5649_v62 }
  0x7e   : > { %1242 = vmatpush.bf16.msra.mxu2 %v5772_v21 }
  0x7f   : > { %1291 = vmatpush.bf16.msra.mxu3 %v5964_v25  ;;  %1340 = vmatpush.bf16.msra.mxu0 %v5776_v38  ;;  %v5703_v38 = vld [vmem:[#allocation5 + $0xa0] sm:$0xf] }
  0x80   : > { %1389 = vmatpush.bf16.msra.mxu1 %v5968_v41  ;;  %v5704_v40 = vor.u32 %v6696_v39, %v5703_v38  ;;  %v5895_v41 = vld [vmem:[#allocation5 + $0x220] sm:$0xf]  ;;  %v6674_v38 = vld [vmem:[#allocation5 + $0xc] sm:$0xf]  ;;  %v5625_v39 = vld [vmem:[#allocation5 + $0x20] sm:$0xf0] }
  0x81   : > { %v5896_v44 = vor.u32 %v6744_v42, %v5895_v41  ;;  %v6722_v41 = vld [vmem:[#allocation5 + $0x18c] sm:$0xf]  ;;  %v5817_v42 = vld [vmem:[#allocation5 + $0x1a0] sm:$0xf0] }
  0x82   : > { %1243 = vmatpush.bf16.msra.mxu2 %v5748_v33 }
  0x83   : > { %1292 = vmatpush.bf16.msra.mxu3 %v5940_v37  ;;  %1341 = vmatpush.bf16.msra.mxu0 %v5752_v54  ;;  %v5868_v37 = vor.u32 %v6734_v35, %v5865_v36  ;;  %v6690_v54 = vld [vmem:[#allocation5 + $0x84] sm:$0xf0]  ;;  %v6684_v35 = vld [vmem:[#allocation5 + $0x54] sm:$0xf0] }
  0x84   : > { %1390 = vmatpush.bf16.msra.mxu1 %v5944_v57 }
  0x86   : > { %1244 = vmatpush.bf16.msra.mxu2 %v5724_v45 }
  0x87   : > { %1293 = vmatpush.bf16.msra.mxu3 %v5916_v49  ;;  %1342 = vmatpush.bf16.msra.mxu0 %v5728_v13  ;;  %v5679_v49 = vld [vmem:[#allocation5 + $0x70] sm:$0xf] }
  0x88   : > { %1391 = vmatpush.bf16.msra.mxu1 %v5920_v20  ;;  %v5680_v55 = vor.u32 %v6690_v54, %v5679_v49  ;;  %v5628_v49 = vor.u32 %v6674_v38, %v5625_v39  ;;  %v6717_v38 = vld [vmem:[#allocation5 + $0x164] sm:$0xf]  ;;  %v5801_v39 = vld [vmem:[#allocation5 + $0x178] sm:$0xf0] }
  0x89   : > { %970 = vmatmul.bf16.gmra.mxu0 %v7831_v14  ;;  %990 = vmatmul.bf16.gmra.mxu2 %v7833_v15 }
  0x8a   : > { %1019 = vmatmul.bf16.gmra.mxu1 %v7835_v16  ;;  %1245 = vmatpush.bf16.msra.mxu2 %v5700_v5 }
  0x8b   : > { %1294 = vmatpush.bf16.msra.mxu3 %v5892_v12  ;;  %1343 = vmatpush.bf16.msra.mxu0 %v5704_v40  ;;  %v5844_v12 = vor.u32 %v6728_v7, %v5841_v10  ;;  %v5847_v40 = vld [vmem:[#allocation5 + $0x1c0] sm:$0xf] }
  0x8c   : > { %1039 = vmatmul.bf16.gmra.mxu3 %v7837_v17  ;;  %1392 = vmatpush.bf16.msra.mxu1 %v5896_v44 }
  0x8e   : > { %1246 = vmatpush.bf16.msra.mxu2 %v5676_v34  ;;  %v5655_v34 = vld [vmem:[#allocation5 + $0x40] sm:$0xf] }
  0x8f   : > { %1295 = vmatpush.bf16.msra.mxu3 %v5868_v37  ;;  %1344 = vmatpush.bf16.msra.mxu0 %v5680_v55  ;;  %v5820_v55 = vor.u32 %v6722_v41, %v5817_v42  ;;  %v5993_v41 = vld [vmem:[#allocation5 + $0x2f8] sm:$0xf0]  ;;  %v5804_v42 = vor.u32 %v6717_v38, %v5801_v39  ;;  %v6359_v38 = vld [vmem:[#allocation7 + $0x2d0] sm:$0xf]  ;;  %v6862_v39 = vld [vmem:[#allocation7 + $0x2e4] sm:$0xf0] }
  0x92   : > { %1247 = vmatpush.bf16.msra.mxu2 %v5652_v6 }
  0x93   : > { %1296 = vmatpush.bf16.msra.mxu3 %v5844_v12 }
  0x96   : > { %1248 = vmatpush.bf16.msra.mxu2 %v5628_v49 }
  0x97   : > { %1297 = vmatpush.bf16.msra.mxu3 %v5820_v55 }
  0x99   : > { %1053 = vmatmul.bf16.vlgmr.msrb.gmra.mxu2 %v7795_v3  ;;  %1151 = vmatmul.bf16.vlgmr.msrb.gmra.mxu0 %v7795_v3 }
  0x9a   : > { %1200 = vmatmul.bf16.vlgmr.msrb.gmra.mxu1 %v7799_v8  ;;  %1437 = vmatpush.bf16.msrb.mxu2 %v5804_v42 }
  0x9c   : > { %1102 = vmatmul.bf16.vlgmr.msrb.gmra.mxu3 %v7799_v8 }
  0xa9   : > { %1058 = vmatmul.bf16.gmra.mxu2 %v7807_v59  ;;  %1156 = vmatmul.bf16.gmra.mxu0 %v7807_v59 }
  0xaa   : > { %1205 = vmatmul.bf16.gmra.mxu1 %v7811_v0 }
  0xac   : > { %1107 = vmatmul.bf16.gmra.mxu3 %v7811_v0 }
  0xb9   : > { %1063 = vmatmul.bf16.gmra.mxu2 %v7819_v50  ;;  %1161 = vmatmul.bf16.gmra.mxu0 %v7819_v50 }
  0xba   : > { %1210 = vmatmul.bf16.gmra.mxu1 %v7823_v52 }
  0xbc   : > { %1112 = vmatmul.bf16.gmra.mxu3 %v7823_v52 }
  0xc9   : > { %1068 = vmatmul.bf16.gmra.mxu2 %v7831_v14  ;;  %1166 = vmatmul.bf16.gmra.mxu0 %v7831_v14 }
  0xca   : > { %1215 = vmatmul.bf16.gmra.mxu1 %v7835_v16 }
  0xcc   : > { %1117 = vmatmul.bf16.gmra.mxu3 %v7835_v16 }
  0xd6   : > { %v956_v58 = vpop.f32.mrf.mxu0 }
  0xd7   : > { %v1005_v2 = vpop.f32.mrf.mxu1 }
  0xd8   : > { %v7859_v11 = vadd.f32 %v1005_v2, %v956_v58 }
  0xd9   : > { %1073 = vmatmul.bf16.gmra.mxu2 %v7797_v4  ;;  %1171 = vmatmul.bf16.gmra.mxu0 %v7797_v4 }
  0xda   : > { %1220 = vmatmul.bf16.gmra.mxu1 %v7801_v9 }
  0xdc   : > { %1122 = vmatmul.bf16.gmra.mxu3 %v7801_v9  ;;  %v976_v21 = vpop.f32.mrf.mxu2 }
  0xde   : > { %v7867_v24 = vpop.f32.mrf.mxu0 }
  0xdf   : > { %v1025_v22 = vpop.f32.mrf.mxu3  ;;  %v7869_v25 = vpop.f32.mrf.mxu1 }
  0xe0   : > { %v7865_v23 = vadd.f32 %v1025_v22, %v976_v21 }
  0xe4   : > { %v978_v26 = vpop.f32.mrf.mxu2 }
  0xe6   : > { %v961_v29 = vpop.f32.mrf.mxu0 }
  0xe7   : > { %v1027_v27 = vpop.f32.mrf.mxu3  ;;  %v1010_v30 = vpop.f32.mrf.mxu1 }
  0xe8   : > { %v7871_v28 = vadd.f32 %v1027_v27, %v978_v26  ;;  %v7873_v33 = vadd.f32 %v1010_v30, %v961_v29  ;;  %v5872_v26 = vor.u32 %v6738_v19, %v5871_v18  ;;  %v6678_v18 = vld [vmem:[#allocation5 + $0x24] sm:$0xf0] }
  0xe9   : > { %1078 = vmatmul.bf16.gmra.mxu2 %v7809_v60  ;;  %1176 = vmatmul.bf16.gmra.mxu0 %v7809_v60 }
  0xea   : > { %12270 = vst [vmem:[#allocation31_spill] sm:$0xff] %v7873_v33  ;;  %1225 = vmatmul.bf16.gmra.mxu1 %v7813_v1 }
  0xeb   : > { %1393 = vmatpush.bf16.msra.mxu1 %v5872_v26  ;;  %v6726_v26 = vld [vmem:[#allocation5 + $0x1a4] sm:$0xf0] }
  0xec   : > { %1127 = vmatmul.bf16.gmra.mxu3 %v7813_v1  ;;  %v981_v43 = vpop.f32.mrf.mxu2 }
  0xee   : > { %v7879_v46 = vpop.f32.mrf.mxu0 }
  0xef   : > { %v1030_v45 = vpop.f32.mrf.mxu3  ;;  %v7883_v48 = vpop.f32.mrf.mxu1 }
  0xf0   : > { %v7881_v47 = vadd.f32 %v1030_v45, %v981_v43  ;;  %v6732_v43 = vld [vmem:[#allocation5 + $0x1d4] sm:$0xf0] }
  0xf2   : > { %12271 = vst [vmem:[#allocation32_spill] sm:$0xff] %v7881_v47 }
  0xf4   : > { %v983_v56 = vpop.f32.mrf.mxu2 }
  0xf6   : > { %v966_v58 = vpop.f32.mrf.mxu0 }
  0xf7   : > { %v1032_v57 = vpop.f32.mrf.mxu3  ;;  %v1015_v63 = vpop.f32.mrf.mxu1 }
  0xf8   : > { %v7885_v2 = vadd.f32 %v1032_v57, %v983_v56  ;;  %v7887_v5 = vadd.f32 %v1015_v63, %v966_v58  ;;  %v5656_v56 = vor.u32 %v6684_v35, %v5655_v34  ;;  %v5848_v57 = vor.u32 %v6732_v43, %v5847_v40  ;;  %v6765_v40 = vld [vmem:[#allocation5 + $0x2e4] sm:$0xf] }
  0xf9   : > { %1083 = vmatmul.bf16.gmra.mxu2 %v7821_v51  ;;  %1181 = vmatmul.bf16.gmra.mxu0 %v7821_v51  ;;  %v5996_v43 = vor.u32 %v6765_v40, %v5993_v41 }
  0xfa   : > { %12272 = vst [vmem:[#allocation33_spill] sm:$0xff] %v7885_v2  ;;  %1230 = vmatmul.bf16.gmra.mxu1 %v7825_v53  ;;  %1345 = vmatpush.bf16.msra.mxu0 %v5656_v56 }
  0xfb   : > { %12273 = vst [vmem:[#allocation34_spill] sm:$0xff] %v7887_v5  ;;  %1394 = vmatpush.bf16.msra.mxu1 %v5848_v57  ;;  %1486 = vmatpush.bf16.msrb.mxu3 %v5996_v43  ;;  %v6360_v43 = vor.u32 %v6862_v39, %v6359_v38  ;;  %v6143_v38 = vld [vmem:[#allocation7 + $0x120] sm:$0xf]  ;;  %v6808_v39 = vld [vmem:[#allocation7 + $0x134] sm:$0xf0] }
  0xfc   : > { %1132 = vmatmul.bf16.gmra.mxu3 %v7825_v53  ;;  %v986_v13 = vpop.f32.mrf.mxu2 }
  0xfe   : > { %v7893_v21 = vpop.f32.mrf.mxu0 }
  0xff   : > { %v1035_v20 = vpop.f32.mrf.mxu3  ;;  %v7895_v22 = vpop.f32.mrf.mxu1 }
 0x100   : > { %v7897_v27 = vadd.f32 %v1035_v20, %v986_v13  ;;  %v5631_v13 = vld [vmem:[#allocation5 + $0x10] sm:$0xf] }
 0x101   : > { %v5823_v20 = vld [vmem:[#allocation5 + $0x190] sm:$0xf] }
 0x102   : > { %v5824_v35 = vor.u32 %v6726_v26, %v5823_v20  ;;  %v6759_v26 = vld [vmem:[#allocation5 + $0x2b4] sm:$0xf] }
 0x104   : > { %v988_v29 = vpop.f32.mrf.mxu2  ;;  %1395 = vmatpush.bf16.msra.mxu1 %v5824_v35  ;;  %v6814_v35 = vld [vmem:[#allocation7 + $0x164] sm:$0xf0] }
 0x106   : > { %v971_v31 = vpop.f32.mrf.mxu0 }
 0x107   : > { %v1037_v30 = vpop.f32.mrf.mxu3  ;;  %v1020_v32 = vpop.f32.mrf.mxu1 }
 0x108   : > { %v7903_v36 = vadd.f32 %v1037_v30, %v988_v29  ;;  %v7905_v37 = vadd.f32 %v1020_v32, %v971_v31  ;;  %v5632_v31 = vor.u32 %v6678_v18, %v5631_v13  ;;  %v6711_v13 = vld [vmem:[#allocation5 + $0x134] sm:$0xf]  ;;  %v5777_v18 = vld [vmem:[#allocation5 + $0x148] sm:$0xf0]  ;;  %2160 = vmatpush.bf16.msrb.mxu1 %v6360_v43  ;;  %v6856_v43 = vld [vmem:[#allocation7 + $0x2b4] sm:$0xf0] }
 0x109   : > { %1088 = vmatmul.bf16.gmra.mxu2 %v7833_v15  ;;  %1186 = vmatmul.bf16.gmra.mxu0 %v7833_v15  ;;  %v5780_v20 = vor.u32 %v6711_v13, %v5777_v18 }
 0x10a   : > { %1235 = vmatmul.bf16.gmra.mxu1 %v7837_v17  ;;  %12274 = vst [vmem:[#allocation35_spill] sm:$0xff] %v7905_v37  ;;  %1346 = vmatpush.bf16.msra.mxu0 %v5632_v31  ;;  %v6167_v31 = vld [vmem:[#allocation7 + $0x150] sm:$0xf] }
 0x10b   : > { %1438 = vmatpush.bf16.msrb.mxu2 %v5780_v20  ;;  %v6168_v41 = vor.u32 %v6814_v35, %v6167_v31  ;;  %v5945_v35 = vld [vmem:[#allocation5 + $0x298] sm:$0xf0] }
 0x10c   : > { %1137 = vmatmul.bf16.gmra.mxu3 %v7837_v17  ;;  %v991_v44 = vpop.f32.mrf.mxu2 }
 0x10e   : > { %v973_v54 = vpop.f32.mrf.mxu0  ;;  %2111 = vmatpush.bf16.msrb.mxu0 %v6168_v41 }
 0x10f   : > { %v1040_v45 = vpop.f32.mrf.mxu3  ;;  %v1022_v58 = vpop.f32.mrf.mxu1 }
 0x110   : > { %v7907_v61 = vadd.f32 %v1040_v45, %v991_v44  ;;  %v7909_v7 = vadd.f32 %v1022_v58, %v973_v54 }
 0x114   : > { %v993_v62 = vpop.f32.mrf.mxu2 }
 0x116   : > { %v1152_v6 = vpop.f32.mrf.mxu0 }
 0x117   : > { %v1042_v63 = vpop.f32.mrf.mxu3  ;;  %v1201_v12 = vpop.f32.mrf.mxu1 }
 0x118   : > { %v7911_v10 = vadd.f32 %v1042_v63, %v993_v62  ;;  %v7915_v30 = vadd.f32 %v1201_v12, %v1152_v6 }
 0x119   : > { %1249 = vmatmul.bf16.vlgmr.msra.gmra.mxu2 %v7795_v3  ;;  %1347 = vmatmul.bf16.vlgmr.msra.gmra.mxu0 %v7795_v3 }
 0x11a   : > { %12275 = vst [vmem:[#allocation36_spill] sm:$0xff] %v7911_v10  ;;  %1396 = vmatmul.bf16.vlgmr.msra.gmra.mxu1 %v7799_v8 }
 0x11b   : > { %12276 = vst [vmem:[#allocation37_spill] sm:$0xff] %v7915_v30 }
 0x11c   : > { %1298 = vmatmul.bf16.vlgmr.msra.gmra.mxu3 %v7799_v8  ;;  %v1054_v19 = vpop.f32.mrf.mxu2 }
 0x11e   : > { %v1154_v32 = vpop.f32.mrf.mxu0 }
 0x11f   : > { %v1103_v29 = vpop.f32.mrf.mxu3  ;;  %v1203_v34 = vpop.f32.mrf.mxu1 }
 0x120   : > { %v7919_v49 = vadd.f32 %v1103_v29, %v1054_v19  ;;  %v7921_v54 = vadd.f32 %v1203_v34, %v1154_v32  ;;  %v5969_v29 = vld [vmem:[#allocation5 + $0x2c8] sm:$0xf0] }
 0x121   : > { %v5972_v34 = vor.u32 %v6759_v26, %v5969_v29  ;;  %v6705_v29 = vld [vmem:[#allocation5 + $0x104] sm:$0xf] }
 0x122   : > { %12277 = vst [vmem:[#allocation38_spill] sm:$0xff] %v7919_v49 }
 0x123   : > { %12278 = vst [vmem:[#allocation39_spill] sm:$0xff] %v7921_v54  ;;  %1487 = vmatpush.bf16.msrb.mxu3 %v5972_v34  ;;  %v6753_v34 = vld [vmem:[#allocation5 + $0x284] sm:$0xf] }
 0x124   : > { %v1056_v44 = vpop.f32.mrf.mxu2  ;;  %v5948_v41 = vor.u32 %v6753_v34, %v5945_v35 }
 0x126   : > { %v1157_v55 = vpop.f32.mrf.mxu0 }
 0x127   : > { %v1105_v45 = vpop.f32.mrf.mxu3  ;;  %v1206_v57 = vpop.f32.mrf.mxu1  ;;  %1488 = vmatpush.bf16.msrb.mxu3 %v5948_v41 }
 0x128   : > { %v7923_v56 = vadd.f32 %v1105_v45, %v1056_v44  ;;  %v7927_v63 = vadd.f32 %v1206_v57, %v1157_v55 }
 0x129   : > { %1254 = vmatmul.bf16.gmra.mxu2 %v7807_v59  ;;  %1352 = vmatmul.bf16.gmra.mxu0 %v7807_v59 }
 0x12a   : > { %12279 = vst [vmem:[#allocation40_spill] sm:$0xff] %v7923_v56  ;;  %1401 = vmatmul.bf16.gmra.mxu1 %v7811_v0 }
 0x12b   : > { %12280 = vst [vmem:[#allocation41_spill] sm:$0xff] %v7927_v63 }
 0x12c   : > { %1303 = vmatmul.bf16.gmra.mxu3 %v7811_v0  ;;  %v1059_v58 = vpop.f32.mrf.mxu2 }
 0x12e   : > { %v1159_v6 = vpop.f32.mrf.mxu0 }
 0x12f   : > { %v1108_v62 = vpop.f32.mrf.mxu3  ;;  %v1208_v12 = vpop.f32.mrf.mxu1 }
 0x130   : > { %v7930_v19 = vadd.f32 %v1108_v62, %v1059_v58  ;;  %v7933_v45 = vadd.f32 %v1208_v12, %v1159_v6 }
 0x132   : > { %12281 = vst [vmem:[#allocation42_spill] sm:$0xff] %v7930_v19 }
 0x133   : > { %12282 = vst [vmem:[#allocation43_spill] sm:$0xff] %v7933_v45 }
 0x134   : > { %v1061_v32 = vpop.f32.mrf.mxu2 }
 0x136   : > { %v1162_v42 = vpop.f32.mrf.mxu0 }
 0x137   : > { %v1110_v40 = vpop.f32.mrf.mxu3  ;;  %v1211_v44 = vpop.f32.mrf.mxu1 }
 0x138   : > { %v7935_v55 = vadd.f32 %v1110_v40, %v1061_v32  ;;  %v7939_v18 = vadd.f32 %v1211_v44, %v1162_v42  ;;  %v5753_v32 = vld [vmem:[#allocation5 + $0x118] sm:$0xf0]  ;;  %v6335_v42 = vld [vmem:[#allocation7 + $0x2a0] sm:$0xf] }
 0x139   : > { %1259 = vmatmul.bf16.gmra.mxu2 %v7819_v50  ;;  %1357 = vmatmul.bf16.gmra.mxu0 %v7819_v50  ;;  %v5756_v40 = vor.u32 %v6705_v29, %v5753_v32 }
 0x13a   : > { %12283 = vst [vmem:[#allocation44_spill] sm:$0xff] %v7935_v55  ;;  %1406 = vmatmul.bf16.gmra.mxu1 %v7823_v52 }
 0x13b   : > { %12284 = vst [vmem:[#allocation45_spill] sm:$0xff] %v7939_v18  ;;  %1439 = vmatpush.bf16.msrb.mxu2 %v5756_v40  ;;  %v6336_v18 = vor.u32 %v6856_v43, %v6335_v42  ;;  %v5729_v40 = vld [vmem:[#allocation5 + $0xe8] sm:$0xf0] }
 0x13c   : > { %1308 = vmatmul.bf16.gmra.mxu3 %v7823_v52  ;;  %v1064_v57 = vpop.f32.mrf.mxu2 }
 0x13d   : > { %2161 = vmatpush.bf16.msrb.mxu1 %v6336_v18  ;;  %v6119_v18 = vld [vmem:[#allocation7 + $0xf0] sm:$0xf] }
 0x13e   : > { %v1164_v62 = vpop.f32.mrf.mxu0 }
 0x13f   : > { %v1113_v58 = vpop.f32.mrf.mxu3  ;;  %v1213_v13 = vpop.f32.mrf.mxu1 }
 0x140   : > { %v7942_v20 = vadd.f32 %v1113_v58, %v1064_v57  ;;  %v6144_v57 = vor.u32 %v6808_v39, %v6143_v38  ;;  %v7947_v45 = vadd.f32 %v1213_v13, %v1164_v62  ;;  %v6699_v39 = vld [vmem:[#allocation5 + $0xd4] sm:$0xf]  ;;  %v5921_v13 = vld [vmem:[#allocation5 + $0x268] sm:$0xf0] }
 0x141   : > { %v6747_v62 = vld [vmem:[#allocation5 + $0x254] sm:$0xf]  ;;  %v5732_v42 = vor.u32 %v6699_v39, %v5729_v40 }
 0x142   : > { %12285 = vst [vmem:[#allocation46_spill] sm:$0xff] %v7942_v20  ;;  %2112 = vmatpush.bf16.msrb.mxu0 %v6144_v57  ;;  %v5924_v43 = vor.u32 %v6747_v62, %v5921_v13 }
 0x143   : > { %12286 = vst [vmem:[#allocation47_spill] sm:$0xff] %v7947_v45  ;;  %v6850_v45 = vld [vmem:[#allocation7 + $0x284] sm:$0xf0]  ;;  %1440 = vmatpush.bf16.msrb.mxu2 %v5732_v42 }
 0x144   : > { %v1066_v26 = vpop.f32.mrf.mxu2  ;;  %1489 = vmatpush.bf16.msrb.mxu3 %v5924_v43  ;;  %v6095_v43 = vld [vmem:[#allocation7 + $0xc0] sm:$0xf] }
 0x146   : > { %v1167_v12 = vpop.f32.mrf.mxu0 }
 0x147   : > { %v1115_v6 = vpop.f32.mrf.mxu3  ;;  %v1216_v31 = vpop.f32.mrf.mxu1 }
 0x148   : > { %v7949_v19 = vadd.f32 %v1115_v6, %v1066_v26  ;;  %v7954_v38 = vadd.f32 %v1216_v31, %v1167_v12  ;;  %v6802_v26 = vld [vmem:[#allocation7 + $0x104] sm:$0xf0] }
 0x149   : > { %1264 = vmatmul.bf16.gmra.mxu2 %v7831_v14  ;;  %1362 = vmatmul.bf16.gmra.mxu0 %v7831_v14  ;;  %v6120_v57 = vor.u32 %v6802_v26, %v6119_v18  ;;  %v5897_v26 = vld [vmem:[#allocation5 + $0x238] sm:$0xf0] }
 0x14a   : > { %12287 = vst [vmem:[#allocation48_spill] sm:$0xff] %v7949_v19  ;;  %1411 = vmatmul.bf16.gmra.mxu1 %v7835_v16  ;;  %v6311_v19 = vld [vmem:[#allocation7 + $0x270] sm:$0xf] }
 0x14b   : > { %12288 = vst [vmem:[#allocation49_spill] sm:$0xff] %v7954_v38  ;;  %v6312_v12 = vor.u32 %v6850_v45, %v6311_v19  ;;  %2113 = vmatpush.bf16.msrb.mxu0 %v6120_v57  ;;  %v6693_v45 = vld [vmem:[#allocation5 + $0xa4] sm:$0xf]  ;;  %v6796_v57 = vld [vmem:[#allocation7 + $0xd4] sm:$0xf0] }
 0x14c   : > { %1313 = vmatmul.bf16.gmra.mxu3 %v7835_v16  ;;  %v1069_v44 = vpop.f32.mrf.mxu2 }
 0x14d   : > { %2162 = vmatpush.bf16.msrb.mxu1 %v6312_v12 }
 0x14e   : > { %v1169_v20 = vpop.f32.mrf.mxu0 }
 0x14f   : > { %v1118_v58 = vpop.f32.mrf.mxu3  ;;  %v1218_v55 = vpop.f32.mrf.mxu1 }
 0x150   : > { %v7956_v41 = vadd.f32 %v1118_v58, %v1069_v44  ;;  %v7961_v31 = vadd.f32 %v1218_v55, %v1169_v20  ;;  %v5705_v55 = vld [vmem:[#allocation5 + $0xb8] sm:$0xf0]  ;;  %v6741_v20 = vld [vmem:[#allocation5 + $0x224] sm:$0xf] }
 0x152   : > { %12289 = vst [vmem:[#allocation50_spill] sm:$0xff] %v7956_v41 }
 0x153   : > { %12291 = vst [vmem:[#allocation52_spill] sm:$0xff] %v7961_v31 }
 0x154   : > { %v1071_v29 = vpop.f32.mrf.mxu2 }
 0x156   : > { %v1172_v34 = vpop.f32.mrf.mxu0 }
 0x157   : > { %v1120_v32 = vpop.f32.mrf.mxu3  ;;  %v1221_v35 = vpop.f32.mrf.mxu1 }
 0x158   : > { %v7971_v62 = vadd.f32 %v1120_v32, %v1071_v29  ;;  %v7975_v19 = vadd.f32 %v1221_v35, %v1172_v34  ;;  %v5900_v29 = vor.u32 %v6741_v20, %v5897_v26  ;;  %v6287_v32 = vld [vmem:[#allocation7 + $0x240] sm:$0xf]  ;;  %v6096_v34 = vor.u32 %v6796_v57, %v6095_v43  ;;  %v5681_v26 = vld [vmem:[#allocation5 + $0x88] sm:$0xf0]  ;;  %v6735_v43 = vld [vmem:[#allocation5 + $0x1f4] sm:$0xf] }
 0x159   : > { %1269 = vmatmul.bf16.gmra.mxu2 %v7797_v4  ;;  %1367 = vmatmul.bf16.gmra.mxu0 %v7797_v4 }
 0x15a   : > { %1416 = vmatmul.bf16.gmra.mxu1 %v7801_v9  ;;  %12295 = vst [vmem:[#allocation56_spill] sm:$0xff] %v7971_v62  ;;  %1490 = vmatpush.bf16.msrb.mxu3 %v5900_v29  ;;  %v5873_v29 = vld [vmem:[#allocation5 + $0x208] sm:$0xf0] }
 0x15b   : > { %12296 = vst [vmem:[#allocation57_spill] sm:$0xff] %v7975_v19  ;;  %2114 = vmatpush.bf16.msrb.mxu0 %v6096_v34  ;;  %v5876_v34 = vor.u32 %v6735_v43, %v5873_v29  ;;  %v5657_v43 = vld [vmem:[#allocation5 + $0x58] sm:$0xf0]  ;;  %v6047_v29 = vld [vmem:[#allocation7 + $0x60] sm:$0xf] }
 0x15c   : > { %1318 = vmatmul.bf16.gmra.mxu3 %v7801_v9  ;;  %v1074_v6 = vpop.f32.mrf.mxu2 }
 0x15e   : > { %v7959_v56 = vpop.f32.mrf.mxu0  ;;  %1491 = vmatpush.bf16.msrb.mxu3 %v5876_v34 }
 0x15f   : > { %v1123_v63 = vpop.f32.mrf.mxu3  ;;  %12290 = vst [vmem:[#allocation51_spill] sm:$0xff] %v7959_v56  ;;  %v7963_v44 = vpop.f32.mrf.mxu1 }
 0x160   : > { %12292 = vst [vmem:[#allocation53_spill] sm:$0xff] %v7963_v44  ;;  %v7981_v56 = vadd.f32 %v1123_v63, %v1074_v6  ;;  %v6687_v6 = vld [vmem:[#allocation5 + $0x74] sm:$0xf] }
 0x161   : > { %v5684_v57 = vor.u32 %v6687_v6, %v5681_v26  ;;  %v6681_v26 = vld [vmem:[#allocation5 + $0x44] sm:$0xf] }
 0x162   : > { %12299 = vst [vmem:[#allocation60_spill] sm:$0xff] %v7981_v56  ;;  %v6838_v56 = vld [vmem:[#allocation7 + $0x224] sm:$0xf0]  ;;  %v5660_v34 = vor.u32 %v6681_v26, %v5657_v43 }
 0x164   : > { %v7966_v58 = vpop.f32.mrf.mxu2 }
 0x165   : > { %12293 = vst [vmem:[#allocation54_spill] sm:$0xff] %v7966_v58  ;;  %v6844_v58 = vld [vmem:[#allocation7 + $0x254] sm:$0xf0] }
 0x166   : > { %v1177_v40 = vpop.f32.mrf.mxu0  ;;  %v6288_v35 = vor.u32 %v6844_v58, %v6287_v32  ;;  %v6071_v32 = vld [vmem:[#allocation7 + $0x90] sm:$0xf] }
 0x167   : > { %v7969_v39 = vpop.f32.mrf.mxu3  ;;  %v1226_v13 = vpop.f32.mrf.mxu1 }
 0x168   : > { %12294 = vst [vmem:[#allocation55_spill] sm:$0xff] %v7969_v39  ;;  %v5708_v39 = vor.u32 %v6693_v45, %v5705_v55  ;;  %2163 = vmatpush.bf16.msrb.mxu1 %v6288_v35  ;;  %v7991_v58 = vadd.f32 %v1226_v13, %v1177_v40  ;;  %v6790_v35 = vld [vmem:[#allocation7 + $0xa4] sm:$0xf0] }
 0x169   : > { %1274 = vmatmul.bf16.gmra.mxu2 %v7809_v60  ;;  %1372 = vmatmul.bf16.gmra.mxu0 %v7809_v60 }
 0x16a   : > { %1441 = vmatpush.bf16.msrb.mxu2 %v5708_v39  ;;  %1421 = vmatmul.bf16.gmra.mxu1 %v7813_v1  ;;  %12302 = vst [vmem:[#allocation63_spill] sm:$0xff] %v7991_v58  ;;  %v6215_v58 = vld [vmem:[#allocation7 + $0x1b0] sm:$0xf] }
 0x16c   : > { %1323 = vmatmul.bf16.gmra.mxu3 %v7813_v1  ;;  %v1079_v18 = vpop.f32.mrf.mxu2 }
 0x16e   : > { %v7977_v12 = vpop.f32.mrf.mxu0  ;;  %1442 = vmatpush.bf16.msrb.mxu2 %v5684_v57  ;;  %v5849_v57 = vld [vmem:[#allocation5 + $0x1d8] sm:$0xf0] }
 0x16f   : > { %v1128_v42 = vpop.f32.mrf.mxu3  ;;  %12297 = vst [vmem:[#allocation58_spill] sm:$0xff] %v7977_v12  ;;  %v7979_v44 = vpop.f32.mrf.mxu1  ;;  %v6072_v12 = vor.u32 %v6790_v35, %v6071_v32  ;;  %v6784_v32 = vld [vmem:[#allocation7 + $0x74] sm:$0xf0] }
 0x170   : > { %12298 = vst [vmem:[#allocation59_spill] sm:$0xff] %v7979_v44  ;;  %v7993_v63 = vadd.f32 %v1128_v42, %v1079_v18 }
 0x171   : > { %2115 = vmatpush.bf16.msrb.mxu0 %v6072_v12  ;;  %v6729_v12 = vld [vmem:[#allocation5 + $0x1c4] sm:$0xf] }
 0x172   : > { %12303 = vst [vmem:[#allocation64_spill] sm:$0xff] %v7993_v63  ;;  %v5852_v35 = vor.u32 %v6729_v12, %v5849_v57  ;;  %1443 = vmatpush.bf16.msrb.mxu2 %v5660_v34  ;;  %v6675_v12 = vld [vmem:[#allocation5 + $0x14] sm:$0xf]  ;;  %v5633_v57 = vld [vmem:[#allocation5 + $0x28] sm:$0xf0] }
 0x173   : > { %v6778_v63 = vld [vmem:[#allocation7 + $0x44] sm:$0xf0] }
 0x174   : > { %v7984_v19 = vpop.f32.mrf.mxu2  ;;  %1492 = vmatpush.bf16.msrb.mxu3 %v5852_v35  ;;  %v5636_v35 = vor.u32 %v6675_v12, %v5633_v57 }
 0x175   : > { %12300 = vst [vmem:[#allocation61_spill] sm:$0xff] %v7984_v19 }
 0x176   : > { %v1182_v45 = vpop.f32.mrf.mxu0  ;;  %1444 = vmatpush.bf16.msrb.mxu2 %v5636_v35 }
 0x177   : > { %v7986_v62 = vpop.f32.mrf.mxu3  ;;  %v1231_v55 = vpop.f32.mrf.mxu1 }
 0x178   : > { %12301 = vst [vmem:[#allocation62_spill] sm:$0xff] %v7986_v62  ;;  %v6263_v62 = vld [vmem:[#allocation7 + $0x210] sm:$0xf]  ;;  %v7995_v19 = vadd.f32 %v1231_v55, %v1182_v45 }
 0x179   : > { %1279 = vmatmul.bf16.gmra.mxu2 %v7821_v51  ;;  %v6264_v40 = vor.u32 %v6838_v56, %v6263_v62  ;;  %1377 = vmatmul.bf16.gmra.mxu0 %v7821_v51 }
 0x17a   : > { %12304 = vst [vmem:[#allocation65_spill] sm:$0xff] %v7995_v19  ;;  %1426 = vmatmul.bf16.gmra.mxu1 %v7825_v53  ;;  %v6723_v19 = vld [vmem:[#allocation5 + $0x194] sm:$0xf] }
 0x17b   : > { %2164 = vmatpush.bf16.msrb.mxu1 %v6264_v40  ;;  %v6048_v40 = vor.u32 %v6784_v32, %v6047_v29 }
 0x17c   : > { %1328 = vmatmul.bf16.gmra.mxu3 %v7825_v53  ;;  %v1084_v39 = vpop.f32.mrf.mxu2 }
 0x17d   : > { %2116 = vmatpush.bf16.msrb.mxu0 %v6048_v40  ;;  %v6023_v40 = vld [vmem:[#allocation7 + $0x30] sm:$0xf] }
 0x17e   : > { %v7997_v44 = vpop.f32.mrf.mxu0 }
 0x17f   : > { %v1133_v20 = vpop.f32.mrf.mxu3  ;;  %12305 = vst [vmem:[#allocation66_spill] sm:$0xff] %v7997_v44  ;;  %v8000_v13 = vpop.f32.mrf.mxu1 }
 0x180   : > { %12306 = vst [vmem:[#allocation67_spill] sm:$0xff] %v8000_v13  ;;  %v8009_v45 = vadd.f32 %v1133_v20, %v1084_v39  ;;  %v6832_v39 = vld [vmem:[#allocation7 + $0x1f4] sm:$0xf0] }
 0x182   : > { %12309 = vst [vmem:[#allocation70_spill] sm:$0xff] %v8009_v45 }
 0x184   : > { %v8002_v18 = vpop.f32.mrf.mxu2 }
 0x185   : > { %12307 = vst [vmem:[#allocation68_spill] sm:$0xff] %v8002_v18 }
 0x186   : > { %v1187_v55 = vpop.f32.mrf.mxu0 }
 0x187   : > { %v8004_v42 = vpop.f32.mrf.mxu3  ;;  %v1236_v56 = vpop.f32.mrf.mxu1 }
 0x188   : > { %12308 = vst [vmem:[#allocation69_spill] sm:$0xff] %v8004_v42  ;;  %v6239_v42 = vld [vmem:[#allocation7 + $0x1e0] sm:$0xf]  ;;  %v8017_v26 = vadd.f32 %v1236_v56, %v1187_v55 }
 0x189   : > { %1284 = vmatmul.bf16.gmra.mxu2 %v7833_v15  ;;  %1382 = vmatmul.bf16.gmra.mxu0 %v7833_v15  ;;  %v6240_v13 = vor.u32 %v6832_v39, %v6239_v42 }
 0x18a   : > { %1431 = vmatmul.bf16.gmra.mxu1 %v7837_v17  ;;  %12312 = vst [vmem:[#allocation73_spill] sm:$0xff] %v8017_v26 }
 0x18b   : > { %2165 = vmatpush.bf16.msrb.mxu1 %v6240_v13  ;;  %v6024_v13 = vor.u32 %v6778_v63, %v6023_v40  ;;  %v6772_v63 = vld [vmem:[#allocation7 + $0x14] sm:$0xf0] }
 0x18c   : > { %1333 = vmatmul.bf16.gmra.mxu3 %v7837_v17  ;;  %v1089_v62 = vpop.f32.mrf.mxu2 }
 0x18d   : > { %2117 = vmatpush.bf16.msrb.mxu0 %v6024_v13  ;;  %v6811_v13 = vld [vmem:[#allocation7 + $0x154] sm:$0xf] }
 0x18e   : > { %v8012_v20 = vpop.f32.mrf.mxu0 }
 0x18f   : > { %v1138_v6 = vpop.f32.mrf.mxu3  ;;  %12310 = vst [vmem:[#allocation71_spill] sm:$0xff] %v8012_v20  ;;  %v8015_v18 = vpop.f32.mrf.mxu1  ;;  %v5825_v20 = vld [vmem:[#allocation5 + $0x1a8] sm:$0xf0] }
 0x190   : > { %12311 = vst [vmem:[#allocation72_spill] sm:$0xff] %v8015_v18  ;;  %v6826_v18 = vld [vmem:[#allocation7 + $0x1c4] sm:$0xf0]  ;;  %v5828_v39 = vor.u32 %v6723_v19, %v5825_v20  ;;  %v8021_v56 = vadd.f32 %v1138_v6, %v1089_v62  ;;  %v5999_v19 = vld [vmem:[#allocation7] sm:$0xf] }
 0x191   : > { %v6216_v55 = vor.u32 %v6826_v18, %v6215_v58  ;;  %v6191_v58 = vld [vmem:[#allocation7 + $0x180] sm:$0xf]  ;;  %v6820_v18 = vld [vmem:[#allocation7 + $0x194] sm:$0xf0]  ;;  %v6000_v40 = vor.u32 %v6772_v63, %v5999_v19 }
 0x192   : > { %12314 = vst [vmem:[#allocation75_spill] sm:$0xff] %v8021_v56  ;;  %1493 = vmatpush.bf16.msrb.mxu3 %v5828_v39  ;;  %v6192_v39 = vor.u32 %v6820_v18, %v6191_v58  ;;  %v6145_v18 = vld [vmem:[#allocation7 + $0x138] sm:$0xf0] }
 0x193   : > { %2166 = vmatpush.bf16.msrb.mxu1 %v6216_v55  ;;  %v6169_v55 = vld [vmem:[#allocation7 + $0x168] sm:$0xf0]  ;;  %2118 = vmatpush.bf16.msrb.mxu0 %v6000_v40 }
 0x194   : > { %v1091_v44 = vpop.f32.mrf.mxu2  ;;  %v6172_v56 = vor.u32 %v6811_v13, %v6169_v55  ;;  %v6337_v13 = vld [vmem:[#allocation7 + $0x2b8] sm:$0xf0]  ;;  %v6863_v55 = vld [vmem:[#allocation7 + $0x2ec] sm:$0xf0] }
 0x196   : > { %v1348_v43 = vpop.f32.mrf.mxu0  ;;  %2209 = vmatpush.bf16.msra.mxu2 %v6172_v56  ;;  %v6805_v56 = vld [vmem:[#allocation7 + $0x124] sm:$0xf] }
 0x197   : > { %v1140_v45 = vpop.f32.mrf.mxu3  ;;  %v1397_v34 = vpop.f32.mrf.mxu1  ;;  %2167 = vmatpush.bf16.msrb.mxu1 %v6192_v39  ;;  %v6853_v39 = vld [vmem:[#allocation7 + $0x2a4] sm:$0xf] }
 0x198   : > { %v8026_v12 = vadd.f32 %v1140_v45, %v1091_v44  ;;  %v8029_v20 = vadd.f32 %v1397_v34, %v1348_v43  ;;  %v6859_v44 = vld [vmem:[#allocation7 + $0x2d4] sm:$0xf] }
 0x199   : > { %1445 = vmatmul.bf16.vlgmr.msrb.gmra.mxu2 %v7795_v3  ;;  %2119 = vmatmul.bf16.vlgmr.msrb.gmra.mxu0 %v7795_v3 }
 0x19a   : > { %12316 = vst [vmem:[#allocation77_spill] sm:$0xff] %v8026_v12  ;;  %2168 = vmatmul.bf16.vlgmr.msrb.gmra.mxu1 %v7799_v8 }
 0x19b   : > { %12317 = vst [vmem:[#allocation78_spill] sm:$0xff] %v8029_v20 }
 0x19c   : > { %v1250_v29 = vpop.f32.mrf.mxu2  ;;  %1494 = vmatmul.bf16.vlgmr.msrb.gmra.mxu3 %v7799_v8 }
 0x19e   : > { %v8019_v42 = vpop.f32.mrf.mxu0 }
 0x19f   : > { %v1299_v32 = vpop.f32.mrf.mxu3  ;;  %12313 = vst [vmem:[#allocation74_spill] sm:$0xff] %v8019_v42  ;;  %v8024_v26 = vpop.f32.mrf.mxu1 }
 0x1a0   : > { %12315 = vst [vmem:[#allocation76_spill] sm:$0xff] %v8024_v26  ;;  %v8031_v45 = vadd.f32 %v1299_v32, %v1250_v29  ;;  %v6361_v26 = vld [vmem:[#allocation7 + $0x2e8] sm:$0xf0] }
 0x1a1   : > { %v6364_v38 = vor.u32 %v6859_v44, %v6361_v26  ;;  %v6340_v44 = vor.u32 %v6853_v39, %v6337_v13  ;;  %v6799_v39 = vld [vmem:[#allocation7 + $0xf4] sm:$0xf] }
 0x1a2   : > { %12318 = vst [vmem:[#allocation79_spill] sm:$0xff] %v8031_v45 }
 0x1a3   : > { %2258 = vmatpush.bf16.msra.mxu3 %v6364_v38 }
 0x1a4   : > { %v1252_v57 = vpop.f32.mrf.mxu2 }
 0x1a6   : > { %v1353_v31 = vpop.f32.mrf.mxu0 }
 0x1a7   : > { %v1301_v35 = vpop.f32.mrf.mxu3  ;;  %v1402_v42 = vpop.f32.mrf.mxu1  ;;  %2259 = vmatpush.bf16.msra.mxu3 %v6340_v44 }
 0x1a8   : > { %v8041_v19 = vadd.f32 %v1301_v35, %v1252_v57  ;;  %v8043_v63 = vadd.f32 %v1402_v42, %v1353_v31  ;;  %v6148_v57 = vor.u32 %v6805_v56, %v6145_v18  ;;  %v6175_v35 = vld [vmem:[#allocation7 + $0x158] sm:$0xf]  ;;  %v6815_v31 = vld [vmem:[#allocation7 + $0x16c] sm:$0xf0] }
 0x1a9   : > { %1450 = vmatmul.bf16.gmra.mxu2 %v7807_v59  ;;  %2124 = vmatmul.bf16.gmra.mxu0 %v7807_v59  ;;  %v6367_v42 = vld [vmem:[#allocation7 + $0x2d8] sm:$0xf] }
 0x1aa   : > { %12321 = vst [vmem:[#allocation82_spill] sm:$0xff] %v8041_v19  ;;  %2173 = vmatmul.bf16.gmra.mxu1 %v7811_v0  ;;  %2210 = vmatpush.bf16.msra.mxu2 %v6148_v57 }
 0x1ab   : > { %12322 = vst [vmem:[#allocation83_spill] sm:$0xff] %v8043_v63 }
 0x1ac   : > { %v1255_v62 = vpop.f32.mrf.mxu2  ;;  %1499 = vmatmul.bf16.gmra.mxu3 %v7811_v0 }
 0x1ae   : > { %v8033_v12 = vpop.f32.mrf.mxu0 }
 0x1af   : > { %v1304_v6 = vpop.f32.mrf.mxu3  ;;  %12319 = vst [vmem:[#allocation80_spill] sm:$0xff] %v8033_v12  ;;  %v8035_v41 = vpop.f32.mrf.mxu1  ;;  %v6368_v12 = vor.u32 %v6863_v55, %v6367_v42 }
 0x1b0   : > { %12320 = vst [vmem:[#allocation81_spill] sm:$0xff] %v8035_v41  ;;  %v6176_v41 = vor.u32 %v6815_v31, %v6175_v35  ;;  %v8053_v45 = vadd.f32 %v1304_v6, %v1255_v62  ;;  %v6121_v6 = vld [vmem:[#allocation7 + $0x108] sm:$0xf0]  ;;  %v6151_v31 = vld [vmem:[#allocation7 + $0x128] sm:$0xf] }
 0x1b1   : > { %2356 = vmatpush.bf16.msra.mxu1 %v6368_v12  ;;  %v6847_v12 = vld [vmem:[#allocation7 + $0x274] sm:$0xf]  ;;  %v6313_v35 = vld [vmem:[#allocation7 + $0x288] sm:$0xf0] }
 0x1b2   : > { %12325 = vst [vmem:[#allocation86_spill] sm:$0xff] %v8053_v45  ;;  %2307 = vmatpush.bf16.msra.mxu0 %v6176_v41  ;;  %v6124_v41 = vor.u32 %v6799_v39, %v6121_v6 }
 0x1b4   : > { %v1257_v43 = vpop.f32.mrf.mxu2  ;;  %2211 = vmatpush.bf16.msra.mxu2 %v6124_v41 }
 0x1b6   : > { %v1358_v29 = vpop.f32.mrf.mxu0 }
 0x1b7   : > { %v1306_v34 = vpop.f32.mrf.mxu3  ;;  %v1407_v32 = vpop.f32.mrf.mxu1 }
 0x1b8   : > { %v8055_v56 = vadd.f32 %v1306_v34, %v1257_v43  ;;  %v8057_v18 = vadd.f32 %v1407_v32, %v1358_v29  ;;  %v6316_v43 = vor.u32 %v6847_v12, %v6313_v35  ;;  %v6809_v34 = vld [vmem:[#allocation7 + $0x13c] sm:$0xf0]  ;;  %v6343_v29 = vld [vmem:[#allocation7 + $0x2a8] sm:$0xf] }
 0x1b9   : > { %1455 = vmatmul.bf16.gmra.mxu2 %v7819_v50  ;;  %2129 = vmatmul.bf16.gmra.mxu0 %v7819_v50  ;;  %v6152_v55 = vor.u32 %v6809_v34, %v6151_v31 }
 0x1ba   : > { %12326 = vst [vmem:[#allocation87_spill] sm:$0xff] %v8055_v56  ;;  %2178 = vmatmul.bf16.gmra.mxu1 %v7823_v52  ;;  %2260 = vmatpush.bf16.msra.mxu3 %v6316_v43 }
 0x1bb   : > { %12327 = vst [vmem:[#allocation88_spill] sm:$0xff] %v8057_v18  ;;  %2308 = vmatpush.bf16.msra.mxu0 %v6152_v55  ;;  %v6793_v55 = vld [vmem:[#allocation7 + $0xc4] sm:$0xf]  ;;  %v6803_v18 = vld [vmem:[#allocation7 + $0x10c] sm:$0xf0] }
 0x1bc   : > { %v1260_v58 = vpop.f32.mrf.mxu2  ;;  %1504 = vmatmul.bf16.gmra.mxu3 %v7823_v52 }
 0x1be   : > { %v8048_v38 = vpop.f32.mrf.mxu0 }
 0x1bf   : > { %v1309_v26 = vpop.f32.mrf.mxu3  ;;  %12323 = vst [vmem:[#allocation84_spill] sm:$0xff] %v8048_v38  ;;  %v8050_v40 = vpop.f32.mrf.mxu1 }
 0x1c0   : > { %12324 = vst [vmem:[#allocation85_spill] sm:$0xff] %v8050_v40  ;;  %v8062_v13 = vadd.f32 %v1309_v26, %v1260_v58  ;;  %v6857_v58 = vld [vmem:[#allocation7 + $0x2bc] sm:$0xf0] }
 0x1c1   : > { %v6344_v26 = vor.u32 %v6857_v58, %v6343_v29  ;;  %v6097_v58 = vld [vmem:[#allocation7 + $0xd8] sm:$0xf0] }
 0x1c2   : > { %12328 = vst [vmem:[#allocation89_spill] sm:$0xff] %v8062_v13 }
 0x1c3   : > { %2357 = vmatpush.bf16.msra.mxu1 %v6344_v26  ;;  %v6841_v26 = vld [vmem:[#allocation7 + $0x244] sm:$0xf] }
 0x1c4   : > { %v1262_v63 = vpop.f32.mrf.mxu2 }
 0x1c6   : > { %v1363_v40 = vpop.f32.mrf.mxu0 }
 0x1c7   : > { %v1311_v19 = vpop.f32.mrf.mxu3  ;;  %v1412_v38 = vpop.f32.mrf.mxu1 }
 0x1c8   : > { %v8072_v12 = vadd.f32 %v1311_v19, %v1262_v63  ;;  %v8074_v35 = vadd.f32 %v1412_v38, %v1363_v40  ;;  %v6100_v19 = vor.u32 %v6793_v55, %v6097_v58  ;;  %v6319_v38 = vld [vmem:[#allocation7 + $0x278] sm:$0xf]  ;;  %v6851_v40 = vld [vmem:[#allocation7 + $0x28c] sm:$0xf0] }
 0x1c9   : > { %1460 = vmatmul.bf16.gmra.mxu2 %v7831_v14  ;;  %2134 = vmatmul.bf16.gmra.mxu0 %v7831_v14 }
 0x1ca   : > { %2183 = vmatmul.bf16.gmra.mxu1 %v7835_v16  ;;  %12331 = vst [vmem:[#allocation92_spill] sm:$0xff] %v8072_v12  ;;  %2212 = vmatpush.bf16.msra.mxu2 %v6100_v19  ;;  %v6787_v19 = vld [vmem:[#allocation7 + $0x94] sm:$0xf]  ;;  %v6839_v12 = vld [vmem:[#allocation7 + $0x22c] sm:$0xf0] }
 0x1cb   : > { %12332 = vst [vmem:[#allocation93_spill] sm:$0xff] %v8074_v35 }
 0x1cc   : > { %v1265_v57 = vpop.f32.mrf.mxu2  ;;  %1509 = vmatmul.bf16.gmra.mxu3 %v7835_v16  ;;  %v6779_v16 = vld [vmem:[#allocation7 + $0x4c] sm:$0xf0] }
 0x1ce   : > { %v8065_v32 = vpop.f32.mrf.mxu0 }
 0x1cf   : > { %v1314_v62 = vpop.f32.mrf.mxu3  ;;  %12329 = vst [vmem:[#allocation90_spill] sm:$0xff] %v8065_v32  ;;  %v8067_v42 = vpop.f32.mrf.mxu1  ;;  %v6127_v32 = vld [vmem:[#allocation7 + $0xf8] sm:$0xf] }
 0x1d0   : > { %12330 = vst [vmem:[#allocation91_spill] sm:$0xff] %v8067_v42  ;;  %v8076_v41 = vadd.f32 %v1314_v62, %v1265_v57  ;;  %v6289_v42 = vld [vmem:[#allocation7 + $0x258] sm:$0xf0] }
 0x1d1   : > { %v6292_v63 = vor.u32 %v6841_v26, %v6289_v42 }
 0x1d2   : > { %12333 = vst [vmem:[#allocation94_spill] sm:$0xff] %v8076_v41 }
 0x1d3   : > { %2261 = vmatpush.bf16.msra.mxu3 %v6292_v63 }
 0x1d4   : > { %v1267_v44 = vpop.f32.mrf.mxu2 }
 0x1d6   : > { %v1368_v6 = vpop.f32.mrf.mxu0 }
 0x1d7   : > { %v1316_v39 = vpop.f32.mrf.mxu3  ;;  %v1417_v13 = vpop.f32.mrf.mxu1 }
 0x1d8   : > { %v8090_v41 = vadd.f32 %v1316_v39, %v1267_v44  ;;  %v8092_v42 = vadd.f32 %v1417_v13, %v1368_v6  ;;  %v6845_v44 = vld [vmem:[#allocation7 + $0x25c] sm:$0xf0] }
 0x1d9   : > { %1465 = vmatmul.bf16.gmra.mxu2 %v7797_v4  ;;  %2139 = vmatmul.bf16.gmra.mxu0 %v7797_v4  ;;  %v6193_v4 = vld [vmem:[#allocation7 + $0x198] sm:$0xf0] }
 0x1da   : > { %2188 = vmatmul.bf16.gmra.mxu1 %v7801_v9  ;;  %12338 = vst [vmem:[#allocation99_spill] sm:$0xff] %v8090_v41 }
 0x1db   : > { %12339 = vst [vmem:[#allocation100_spill] sm:$0xff] %v8092_v42 }
 0x1dc   : > { %1514 = vmatmul.bf16.gmra.mxu3 %v7801_v9  ;;  %v1270_v31 = vpop.f32.mrf.mxu2 }
 0x1de   : > { %v8079_v34 = vpop.f32.mrf.mxu0 }
 0x1df   : > { %v1319_v43 = vpop.f32.mrf.mxu3  ;;  %12334 = vst [vmem:[#allocation95_spill] sm:$0xff] %v8079_v34  ;;  %v8081_v29 = vpop.f32.mrf.mxu1  ;;  %v6128_v34 = vor.u32 %v6803_v18, %v6127_v32  ;;  %v6073_v32 = vld [vmem:[#allocation7 + $0xa8] sm:$0xf0] }
 0x1e0   : > { %12335 = vst [vmem:[#allocation96_spill] sm:$0xff] %v8081_v29  ;;  %v6320_v29 = vor.u32 %v6851_v40, %v6319_v38  ;;  %v8094_v26 = vadd.f32 %v1319_v43, %v1270_v31  ;;  %v6835_v38 = vld [vmem:[#allocation7 + $0x214] sm:$0xf]  ;;  %v6265_v40 = vld [vmem:[#allocation7 + $0x228] sm:$0xf0]  ;;  %v6076_v39 = vor.u32 %v6787_v19, %v6073_v32 }
 0x1e1   : > { %2309 = vmatpush.bf16.msra.mxu0 %v6128_v34  ;;  %v6295_v34 = vld [vmem:[#allocation7 + $0x248] sm:$0xf]  ;;  %v6268_v13 = vor.u32 %v6835_v38, %v6265_v40  ;;  %v6381_v38 = vmul.f32 -1.442695, %v7859_v11 }
 0x1e2   : > { %2358 = vmatpush.bf16.msra.mxu1 %v6320_v29  ;;  %12340 = vst [vmem:[#allocation101_spill] sm:$0xff] %v8094_v26  ;;  %2213 = vmatpush.bf16.msra.mxu2 %v6076_v39  ;;  %v6296_v43 = vor.u32 %v6845_v44, %v6295_v34  ;;  %v6781_v44 = vld [vmem:[#allocation7 + $0x64] sm:$0xf]  ;;  %v6271_v26 = vld [vmem:[#allocation7 + $0x218] sm:$0xf] }
 0x1e3   : > { %2262 = vmatpush.bf16.msra.mxu3 %v6268_v13  ;;  %7034 = vpow2.f32 %v6381_v38  ;;  %v6049_v13 = vld [vmem:[#allocation7 + $0x78] sm:$0xf0] }
 0x1e4   : > { %v8083_v57 = vpop.f32.mrf.mxu2  ;;  %v6052_v38 = vor.u32 %v6781_v44, %v6049_v13  ;;  %v6435_v44 = vmul.f32 -1.442695, %v7871_v28 }
 0x1e5   : > { %12336 = vst [vmem:[#allocation97_spill] sm:$0xff] %v8083_v57  ;;  %v6797_v57 = vld [vmem:[#allocation7 + $0xdc] sm:$0xf0] }
 0x1e6   : > { %v1373_v55 = vpop.f32.mrf.mxu0  ;;  %2359 = vmatpush.bf16.msra.mxu1 %v6296_v43  ;;  %v6241_v43 = vld [vmem:[#allocation7 + $0x1f8] sm:$0xf0]  ;;  %2214 = vmatpush.bf16.msra.mxu2 %v6052_v38 }
 0x1e7   : > { %v8085_v62 = vpop.f32.mrf.mxu3  ;;  %v1422_v58 = vpop.f32.mrf.mxu1 }
 0x1e8   : > { %12337 = vst [vmem:[#allocation98_spill] sm:$0xff] %v8085_v62  ;;  %v6103_v62 = vld [vmem:[#allocation7 + $0xc8] sm:$0xf]  ;;  %v8102_v29 = vadd.f32 %v1422_v58, %v1373_v55  ;;  %v6429_v58 = vmul.f32 -1.442695, %v7865_v23 }
 0x1e9   : > { %1470 = vmatmul.bf16.gmra.mxu2 %v7809_v60  ;;  %v6104_v31 = vor.u32 %v6797_v57, %v6103_v62  ;;  %2144 = vmatmul.bf16.gmra.mxu0 %v7809_v60  ;;  %v8110_v57 = vadd.f32 %v7869_v25, %v7867_v24 }
 0x1ea   : > { %12343 = vst [vmem:[#allocation104_spill] sm:$0xff] %v8102_v29  ;;  %2193 = vmatmul.bf16.gmra.mxu1 %v7813_v1  ;;  %7036 = vpow2.f32 %v6429_v58  ;;  %v6791_v29 = vld [vmem:[#allocation7 + $0xac] sm:$0xf0] }
 0x1eb   : > { %2310 = vmatpush.bf16.msra.mxu0 %v6104_v31  ;;  %v6387_v34 = vmul.f32 -1.442695, %v8110_v57  ;;  %v6829_v31 = vld [vmem:[#allocation7 + $0x1e4] sm:$0xf] }
 0x1ec   : > { %1519 = vmatmul.bf16.gmra.mxu3 %v7813_v1  ;;  %v1275_v63 = vpop.f32.mrf.mxu2  ;;  %v6244_v41 = vor.u32 %v6829_v31, %v6241_v43  ;;  %v6775_v31 = vld [vmem:[#allocation7 + $0x34] sm:$0xf]  ;;  %v6025_v43 = vld [vmem:[#allocation7 + $0x48] sm:$0xf0] }
 0x1ed   : > { %7038 = vpow2.f32 %v6387_v34  ;;  %v6393_v34 = vmul.f32 -1.442695, %v7873_v33 }
 0x1ee   : > { %v8097_v6 = vpop.f32.mrf.mxu0  ;;  %2263 = vmatpush.bf16.msra.mxu3 %v6244_v41  ;;  %v6055_v41 = vld [vmem:[#allocation7 + $0x68] sm:$0xf] }
 0x1ef   : > { %v1324_v18 = vpop.f32.mrf.mxu3  ;;  %12341 = vst [vmem:[#allocation102_spill] sm:$0xff] %v8097_v6  ;;  %v8099_v42 = vpop.f32.mrf.mxu1 }
 0x1f0   : > { %12342 = vst [vmem:[#allocation103_spill] sm:$0xff] %v8099_v42  ;;  %v6079_v42 = vld [vmem:[#allocation7 + $0x98] sm:$0xf]  ;;  %v7035_v6 = vpop.eup %7034  ;;  %v8123_v56 = vadd.f32 %v1324_v18, %v1275_v63 }
 0x1f1   : > { %v6080_v35 = vor.u32 %v6791_v29, %v6079_v42  ;;  %v8127_v58 = vadd.f32 1.0, %v7035_v6  ;;  %v7037_v29 = vpop.eup %7036 }
 0x1f2   : > { %12346 = vst [vmem:[#allocation107_spill] sm:$0xff] %v8123_v56 }
 0x1f3   : > { %2311 = vmatpush.bf16.msra.mxu0 %v6080_v35  ;;  %7040 = vrcp.f32 %v8127_v58  ;;  %v7039_v6 = vpop.eup %7038  ;;  %v8139_v35 = vadd.f32 1.0, %v7037_v29  ;;  %vm3088_vm0 = vweird.f32 %v8127_v58 }
 0x1f4   : > { %v1277_v19 = vpop.f32.mrf.mxu2  ;;  %7042 = vpow2.f32 %v6435_v44 }
 0x1f5   : > { %7044 = vpow2.f32 %v6393_v34  ;;  %v6028_v34 = vor.u32 %v6775_v31, %v6025_v43  ;;  %vm3808_vm4 = vweird.f32 %v8139_v35 }
 0x1f6   : > { %v1378_v40 = vpop.f32.mrf.mxu0  ;;  %7046 = vrcp.f32 %v8139_v35 }
 0x1f7   : > { %v1326_v32 = vpop.f32.mrf.mxu3  ;;  %v1427_v39 = vpop.f32.mrf.mxu1  ;;  %2215 = vmatpush.bf16.msra.mxu2 %v6028_v34 }
 0x1f8   : > { %v8131_v42 = vadd.f32 %v1326_v32, %v1277_v19  ;;  %v8145_v32 = vadd.f32 1.0, %v7039_v6  ;;  %v8147_v13 = vadd.f32 %v1427_v39, %v1378_v40  ;;  %v6217_v6 = vld [vmem:[#allocation7 + $0x1c8] sm:$0xf0]  ;;  %v6247_v40 = vld [vmem:[#allocation7 + $0x1e8] sm:$0xf] }
 0x1f9   : > { %1475 = vmatmul.bf16.gmra.mxu2 %v7821_v51  ;;  %2149 = vmatmul.bf16.gmra.mxu0 %v7821_v51  ;;  %v8149_v38 = vpop.eup %7040  ;;  %v6833_v39 = vld [vmem:[#allocation7 + $0x1fc] sm:$0xf0] }
 0x1fa   : > { %2198 = vmatmul.bf16.gmra.mxu1 %v7825_v53  ;;  %12347 = vst [vmem:[#allocation108_spill] sm:$0xff] %v8131_v42  ;;  %v6823_v42 = vld [vmem:[#allocation7 + $0x1b4] sm:$0xf]  ;;  %v7043_v56 = vpop.eup %7042  ;;  %7048 = vrcp.f32 %v8145_v32  ;;  %v6248_v43 = vor.u32 %v6833_v39, %v6247_v40  ;;  %v6447_v40 = vmul.f32 -1.442695, %v7885_v2  ;;  %vm3089_vm1 = vweird.f32 %v8149_v38 }
 0x1fb   : > { %12348 = vst [vmem:[#allocation109_spill] sm:$0xff] %v8147_v13  ;;  %v6220_v13 = vor.u32 %v6823_v42, %v6217_v6  ;;  %v8165_v31 = vadd.f32 1.0, %v7043_v56  ;;  %vm8213_vm3 = vmor %vm3088_vm0, %vm3089_vm1  ;;  %vm3178_vm6 = vweird.f32 %v8145_v32 }
 0x1fc   : > { %1524 = vmatmul.bf16.gmra.mxu3 %v7825_v53  ;;  %v8112_v62 = vpop.f32.mrf.mxu2 }
 0x1fd   : > { %2264 = vmatpush.bf16.msra.mxu3 %v6220_v13  ;;  %v3902_v10 = vand.u32 2147483647, %v8165_v31  ;;  %vm3898_vm12 = vweird.f32 %v8165_v31 }
 0x1fe   : > { %v8118_v24 = vpop.f32.mrf.mxu0 }
 0x1ff   : > { %v8114_v55 = vpop.f32.mrf.mxu3  ;;  %12344 = vst [vmem:[#allocation105_spill] sm:$0xff] %v8118_v24  ;;  %v8120_v25 = vpop.f32.mrf.mxu1  ;;  %v6272_v24 = vor.u32 %v6839_v12, %v6271_v26  ;;  %v6785_v12 = vld [vmem:[#allocation7 + $0x7c] sm:$0xf0]  ;;  %vm8325_vm15 = vcmp.eq.f32.partialorder %v3902_v10, 8.507059e+37 }
 0x200   : > { %12345 = vst [vmem:[#allocation106_spill] sm:$0xff] %v8120_v25  ;;  %v6441_v25 = vmul.f32 -1.442695, %v7881_v47  ;;  %v8182_v42 = vadd.f32 %v8114_v55, %v8112_v62  ;;  %v6417_v47 = vmul.f32 -1.442695, %v7905_v37 }
 0x201   : > { %2360 = vmatpush.bf16.msra.mxu1 %v6272_v24  ;;  %v6056_v24 = vor.u32 %v6785_v12, %v6055_v41  ;;  %v7045_v41 = vpop.eup %7044  ;;  %v3084_v12 = vmul.f32 %v8149_v38, %v8127_v58  ;;  %v6827_v37 = vld [vmem:[#allocation7 + $0x1cc] sm:$0xf0] }
 0x202   : > { %7050 = vpow2.f32 %v6441_v25  ;;  %v8168_v45 = vadd.f32 1.0, %v7045_v41  ;;  %v8170_v20 = vpop.eup %7046  ;;  %v6405_v25 = vmul.f32 -1.442695, %v7887_v5  ;;  %12352 = vst [vmem:[#allocation113_spill] sm:$0xff] %v8182_v42  ;;  %v3092_v41 = vand.u32 2147483647, %v8127_v58 }
 0x203   : > { %2312 = vmatpush.bf16.msra.mxu0 %v6056_v24  ;;  %v8162_v24 = vadd.f32 %v7883_v48, %v7879_v46  ;;  %v3085_v53 = vsub.f32 1.0, %v3084_v12  ;;  %v8177_v48 = vpop.eup %7048  ;;  %7052 = vrcp.f32 %v8165_v31  ;;  %v3094_v12 = vand.u32 2147483648, %v8127_v58  ;;  %v6223_v58 = vld [vmem:[#allocation7 + $0x1b8] sm:$0xf] }
 0x204   : > { %v8133_v63 = vpop.f32.mrf.mxu2  ;;  %7054 = vrcp.f32 %v8168_v45  ;;  %v3804_v62 = vmul.f32 %v8170_v20, %v8139_v35  ;;  %v3174_v55 = vmul.f32 %v8177_v48, %v8145_v32  ;;  %vm8204_vm2 = vcmp.eq.f32.partialorder %v3092_v41, 8.507059e+37 }
 0x205   : > { %12349 = vst [vmem:[#allocation110_spill] sm:$0xff] %v8162_v24  ;;  %2361 = vmatpush.bf16.msra.mxu1 %v6248_v43  ;;  %v6399_v56 = vmul.f32 -1.442695, %v8162_v24  ;;  %v3086_v43 = vmul.f32 %v8149_v38, %v3085_v53  ;;  %7056 = vpow2.f32 %v6405_v25  ;;  %vm3809_vm5 = vweird.f32 %v8170_v20 }
 0x206   : > { %v8141_v26 = vpop.f32.mrf.mxu0  ;;  %v3805_v51 = vsub.f32 1.0, %v3804_v62  ;;  %v3175_v1 = vsub.f32 1.0, %v3174_v55  ;;  %v6031_v62 = vld [vmem:[#allocation7 + $0x38] sm:$0xf]  ;;  %vm3179_vm8 = vweird.f32 %v8177_v48  ;;  %vm8296_vm10 = vmor %vm3808_vm4, %vm3809_vm5  ;;  %vm3268_vm13 = vweird.f32 %v8168_v45 }
 0x207   : > { %v8135_v18 = vpop.f32.mrf.mxu3  ;;  %v8143_v19 = vpop.f32.mrf.mxu1  ;;  %7058 = vpow2.f32 %v6399_v56  ;;  %v3087_v25 = vadd.f32 %v8149_v38, %v3086_v43  ;;  %v3812_v56 = vand.u32 2147483647, %v8139_v35  ;;  %v6001_v43 = vld [vmem:[#allocation7 + $0x18] sm:$0xf0]  ;;  %vm8311_vm11 = vmor %vm3178_vm6, %vm3179_vm8  ;;  %v3272_v53 = vand.u32 2147483647, %v8168_v45 }
 0x208   : > { %v7051_v39 = vpop.eup %7050  ;;  %7060 = vpow2.f32 %v6447_v40  ;;  %v3806_v50 = vmul.f32 %v8170_v20, %v3805_v51  ;;  %v3176_v5 = vmul.f32 %v8177_v48, %v3175_v1  ;;  %v8247_v30 = vadd.f32 %v8135_v18, %v8133_v63 }
 0x209   : > { %1480 = vmatmul.bf16.gmra.mxu2 %v7833_v15  ;;  %2154 = vmatmul.bf16.gmra.mxu0 %v7833_v15  ;;  %v8202_v42 = vadd.f32 1.0, %v7051_v39  ;;  %v3095_v15 = vor.u32 1.1754944e-38, %v3094_v12  ;;  %v3182_v39 = vand.u32 2147483647, %v8145_v32  ;;  %v6769_v12 = vld [vmem:[#allocation7 + $0x4] sm:$0xf]  ;;  %v3091_v52 = vsel %vm8213_vm3, %v8149_v38, %v3087_v25 }
 0x20a   : > { %2203 = vmatmul.bf16.gmra.mxu1 %v7837_v17  ;;  %12359 = vst [vmem:[#allocation116_spill] sm:$0xff] %v8247_v30  ;;  %v6032_v1 = vor.u32 %v6779_v16, %v6031_v62  ;;  %v8262_v63 = vadd.f32 %v7895_v22, %v7893_v21  ;;  %vm8268_vm7 = vcmp.eq.f32.partialorder %v3812_v56, 8.507059e+37  ;;  %v3177_v21 = vadd.f32 %v8177_v48, %v3176_v5  ;;  %v6007_v56 = vld [vmem:[#allocation7 + $0x8] sm:$0xf]  ;;  %v6812_v16 = vld [vmem:[#allocation7 + $0x15c] sm:$0xf] }
 0x20b   : > { %7062 = vrcp.f32 %v8202_v42  ;;  %vm8273_vm9 = vcmp.eq.f32.partialorder %v3182_v39, 8.507059e+37  ;;  %v6453_v22 = vmul.f32 -1.442695, %v7897_v27  ;;  %v6773_v39 = vld [vmem:[#allocation7 + $0x1c] sm:$0xf0]  ;;  %vm8396_vm3 = vcmp.eq.f32.partialorder %v3272_v53, 8.507059e+37 }
 0x20c   : > { %1529 = vmatmul.bf16.gmra.mxu3 %v7837_v17  ;;  %v8152_v44 = vpop.f32.mrf.mxu2  ;;  %v8208_v17 = vpop.eup %7052  ;;  %7064 = vpow2.f32 %v6417_v47  ;;  %2313 = vmatpush.bf16.msra.mxu0 %v6032_v1  ;;  %v6199_v62 = vld [vmem:[#allocation7 + $0x188] sm:$0xf]  ;;  %vm3988_vm4 = vweird.f32 %v8202_v42 }
 0x20d   : > { %v8211_v60 = vpop.eup %7054  ;;  %vm3899_vm14 = vweird.f32 %v8208_v17  ;;  %v12401_v30 = vld [vmem:[#allocation32_spill] sm:$0xff] }
 0x20e   : > { %v8173_v34 = vpop.f32.mrf.mxu0  ;;  %v7057_v9 = vpop.eup %7056  ;;  %v3264_v38 = vmul.f32 %v8211_v60, %v8168_v45  ;;  %vm3269_vm0 = vweird.f32 %v8211_v60  ;;  %vm8365_vm1 = vmor %vm3898_vm12, %vm3899_vm14 }
 0x20f   : > { %v8154_v29 = vpop.f32.mrf.mxu3  ;;  %12350 = vst [vmem:[#allocation111_spill] sm:$0xff] %v8173_v34  ;;  %v8175_v46 = vpop.f32.mrf.mxu1  ;;  %v3184_v34 = vand.u32 2147483648, %v8145_v32  ;;  %v8243_v33 = vadd.f32 1.0, %v7057_v9  ;;  %v3181_v32 = vsel %vm8311_vm11, %v8177_v48, %v3177_v21  ;;  %v6459_v48 = vmul.f32 -1.442695, %v7903_v36 }
 0x210   : > { %12351 = vst [vmem:[#allocation112_spill] sm:$0xff] %v8175_v46  ;;  %v3814_v46 = vand.u32 2147483648, %v8139_v35  ;;  %v7059_v24 = vpop.eup %7058 }
 0x211   : > { %v8221_v41 = vor.u32 1.1754944e-38, %v3184_v34  ;;  %v3894_v34 = vmul.f32 %v8208_v17, %v8165_v31  ;;  %v7061_v49 = vpop.eup %7060  ;;  %v8255_v25 = vadd.f32 1.0, %v7059_v24  ;;  %7066 = vrcp.f32 %v8243_v33 }
 0x212   : > { %v8218_v40 = vor.u32 1.1754944e-38, %v3814_v46  ;;  %v6817_v46 = vld [vmem:[#allocation7 + $0x184] sm:$0xf]  ;;  %v8258_v0 = vadd.f32 1.0, %v7061_v49  ;;  %v8264_v18 = vpop.eup %7062  ;;  %v3904_v49 = vand.u32 2147483648, %v8165_v31 }
 0x213   : > { %v6196_v51 = vor.u32 %v6817_v46, %v6193_v4  ;;  %v3895_v9 = vsub.f32 1.0, %v3894_v34  ;;  %7068 = vrcp.f32 %v8255_v25  ;;  %v6821_v34 = vld [vmem:[#allocation7 + $0x19c] sm:$0xf0]  ;;  %vm3989_vm6 = vweird.f32 %v8264_v18 }
 0x214   : > { %v8184_v6 = vpop.f32.mrf.mxu2  ;;  %7070 = vrcp.f32 %v8258_v0  ;;  %v6200_v21 = vor.u32 %v6821_v34, %v6199_v62  ;;  %v3905_v35 = vor.u32 1.1754944e-38, %v3904_v49  ;;  %vm8439_vm8 = vmor %vm3988_vm4, %vm3989_vm6 }
 0x215   : > { %2265 = vmatpush.bf16.msra.mxu3 %v6196_v51  ;;  %v3896_v5 = vmul.f32 %v8208_v17, %v3895_v9  ;;  %7072 = vpow2.f32 %v6453_v22 }
 0x216   : > { %v8224_v55 = vpop.f32.mrf.mxu0 }
 0x217   : > { %v8186_v13 = vpop.f32.mrf.mxu3  ;;  %v8226_v2 = vpop.f32.mrf.mxu1 }
 0x218   : > { %v2170_v10 = vadd.f32 %v8226_v2, %v8224_v55  ;;  %v3186_v55 = vsel %vm8273_vm9, %v8221_v41, %v3181_v32  ;;  %vm3448_vm9 = vweird.f32 %v8243_v33 }
 0x219   : > { %v8404_v34 = vmul.f32 %v3186_v55, %v8110_v57 }
 0x21b   : > { %12382 = vst [vmem:[#allocation123_spill] sm:$0xff] %v8404_v34 }
 0x21c   : > { %v8233_v14 = vpop.f32.mrf.mxu2  ;;  %2266 = vmatmul.bf16.vlgmr.msra.gmra.mxu3 %v7799_v8 }
 0x21d   : > { %12357 = vst [vmem:[#allocation114_spill] sm:$0xff] %v8233_v14  ;;  %v6004_v14 = vor.u32 %v6769_v12, %v6001_v43  ;;  %v8331_v43 = vadd.f32 %v8186_v13, %v8184_v6  ;;  %v3897_v6 = vadd.f32 %v8208_v17, %v3896_v5  ;;  %v6177_v5 = vld [vmem:[#allocation7 + $0x170] sm:$0xf0] }
 0x21e   : > { %v8288_v47 = vpop.f32.mrf.mxu0 }
 0x21f   : > { %v8235_v54 = vpop.f32.mrf.mxu3  ;;  %2216 = vmatpush.bf16.msra.mxu2 %v6004_v14  ;;  %v3807_v14 = vadd.f32 %v8170_v20, %v3806_v50  ;;  %12366 = vst [vmem:[#allocation119_spill] sm:$0xff] %v8288_v47  ;;  %v8290_v24 = vpop.f32.mrf.mxu1  ;;  %v3364_v50 = vand.u32 2147483648, %v8255_v25 }
 0x220   : > { %12358 = vst [vmem:[#allocation115_spill] sm:$0xff] %v8235_v54  ;;  %v8251_v54 = vadd.f32 %v8143_v19, %v8141_v26  ;;  %v3096_v26 = vsel %vm8204_vm2, %v3095_v15, %v3091_v52  ;;  %v6224_v52 = vor.u32 %v6827_v37, %v6223_v58  ;;  %v3265_v15 = vsub.f32 1.0, %v3264_v38  ;;  %vm8386_vm2 = vmor %vm3268_vm13, %vm3269_vm0 }
 0x221   : > { %v8285_v19 = vadd.f32 %v8154_v29, %v8152_v44  ;;  %12367 = vst [vmem:[#allocation120_spill] sm:$0xff] %v8290_v24  ;;  %v3984_v37 = vmul.f32 %v8264_v18, %v8202_v42  ;;  %v6411_v44 = vmul.f32 -1.442695, %v8262_v63  ;;  %v4523_v29 = vmul.f32 %v3096_v26, %v7859_v11 }
 0x222   : > { %12360 = vst [vmem:[#allocation117_spill] sm:$0xff] %v8251_v54  ;;  %2217 = vmatmul.bf16.vlgmr.msra.gmra.mxu2 %v7795_v3  ;;  %2362 = vmatpush.bf16.msra.mxu1 %v6224_v52  ;;  %v3811_v11 = vsel %vm8296_vm10, %v8170_v20, %v3807_v14  ;;  %v7065_v20 = vpop.eup %7064  ;;  %v3266_v51 = vmul.f32 %v8211_v60, %v3265_v15  ;;  %v3274_v26 = vand.u32 2147483648, %v8168_v45  ;;  %v3992_v15 = vand.u32 2147483647, %v8202_v42 }
 0x223   : > { %12365 = vst [vmem:[#allocation118_spill] sm:$0xff] %v8285_v19  ;;  %v8341_v1 = vpop.eup %7066  ;;  %v3985_v13 = vsub.f32 1.0, %v3984_v37  ;;  %7074 = vpow2.f32 %v6411_v44  ;;  %v6008_v58 = vor.u32 %v6773_v39, %v6007_v56  ;;  %v8348_v14 = vmul.f32 %v4523_v29, %v2170_v10 }
 0x224   : > { %12374 = vst [vmem:[#allocation121_spill] sm:$0xff] %v8331_v43  ;;  %v8333_v46 = vpop.f32.mrf.mxu2  ;;  %v8344_v9 = vpop.eup %7068  ;;  %v3816_v2 = vsel %vm8268_vm7, %v8218_v40, %v3811_v11  ;;  %v8359_v22 = vadd.f32 1.0, %v7065_v20  ;;  %v3267_v4 = vadd.f32 %v8211_v60, %v3266_v51  ;;  %v3994_v40 = vand.u32 2147483648, %v8202_v42 }
 0x225   : > { %12375 = vst [vmem:[#allocation122_spill] sm:$0xff] %v8348_v14  ;;  %v8350_v52 = vpop.eup %7070  ;;  %2314 = vmatpush.bf16.msra.mxu0 %v6008_v58  ;;  %v3444_v41 = vmul.f32 %v8341_v1, %v8243_v33  ;;  %7076 = vpow2.f32 %v6459_v48  ;;  %v3901_v29 = vsel %vm8365_vm1, %v8208_v17, %v3897_v6  ;;  %v3986_v39 = vmul.f32 %v8264_v18, %v3985_v13  ;;  %v12390_v17 = vld [vmem:[#allocation36_spill] sm:$0xff] }
 0x226   : > { %2363 = vmatpush.bf16.msra.mxu1 %v6200_v21  ;;  %v8373_v37 = vpop.f32.mrf.mxu0  ;;  %v3354_v11 = vmul.f32 %v8344_v9, %v8255_v25  ;;  %v7073_v32 = vpop.eup %7072  ;;  %v8394_v62 = vmul.f32 %v3816_v2, %v7865_v23  ;;  %v3275_v31 = vor.u32 1.1754944e-38, %v3274_v26  ;;  %v4074_v45 = vmul.f32 %v8350_v52, %v8258_v0 }
 0x227   : > { %v8335_v38 = vpop.f32.mrf.mxu3  ;;  %v8375_v44 = vpop.f32.mrf.mxu1  ;;  %7078 = vrcp.f32 %v8359_v22  ;;  %v6180_v23 = vor.u32 %v6812_v16, %v6177_v5  ;;  %v3906_v51 = vsel %vm8325_vm15, %v3905_v35, %v3901_v29  ;;  %v3271_v48 = vsel %vm8386_vm2, %v8211_v60, %v3267_v4 }
 0x228   : > { %2315 = vmatmul.bf16.vlgmr.msra.gmra.mxu0 %v7795_v3  ;;  %vm8418_vm5 = vcmp.eq.f32.partialorder %v3992_v15, 8.507059e+37  ;;  %v3995_v10 = vor.u32 1.1754944e-38, %v3994_v40  ;;  %v3445_v6 = vsub.f32 1.0, %v3444_v41  ;;  %v3987_v13 = vadd.f32 %v8264_v18, %v3986_v39 }
 0x229   : > { %v7075_v49 = vpop.eup %7074  ;;  %2364 = vmatmul.bf16.vlgmr.msra.gmra.mxu1 %v7799_v8  ;;  %v3355_v58 = vsub.f32 1.0, %v3354_v11  ;;  %v8424_v26 = vadd.f32 1.0, %v7073_v32  ;;  %2405 = vmatpush.bf16.msrb.mxu2 %v6180_v23  ;;  %vm3358_vm7 = vweird.f32 %v8255_v25  ;;  %v3362_v21 = vand.u32 2147483647, %v8255_v25  ;;  %v12389_v11 = vld [vmem:[#allocation21_spill] sm:$0xff] }
 0x22a   : > { %v4075_v60 = vsub.f32 1.0, %v4074_v45  ;;  %v8428_v2 = vadd.f32 1.0, %v7075_v49  ;;  %v8431_v55 = vmul.f32 %v3906_v51, %v7871_v28  ;;  %v3276_v15 = vsel %vm8396_vm3, %v3275_v31, %v3271_v48  ;;  %v6860_v49 = vld [vmem:[#allocation7 + $0x2dc] sm:$0xf]  ;;  %v6369_v23 = vld [vmem:[#allocation7 + $0x2f0] sm:$0xf0] }
 0x22b   : > { %v7077_v12 = vpop.eup %7076  ;;  %v6465_v4 = vmul.f32 -1.442695, %v7907_v61  ;;  %v4082_v41 = vand.u32 2147483647, %v8258_v0  ;;  %v3446_v16 = vmul.f32 %v8341_v1, %v3445_v6  ;;  %v6423_v28 = vmul.f32 -1.442695, %v7909_v7 }
 0x22c   : > { %v8409_v53 = vpop.f32.mrf.mxu2  ;;  %v3991_v42 = vsel %vm8439_vm8, %v8264_v18, %v3987_v13  ;;  %v3356_v56 = vmul.f32 %v8344_v9, %v3355_v58  ;;  %7080 = vrcp.f32 %v8424_v26  ;;  %v8459_v39 = vadd.f32 1.0, %v7077_v12  ;;  %2271 = vmatmul.bf16.gmra.mxu3 %v12389_v11 }
 0x22d   : > { %v8452_v35 = vpop.eup %7078  ;;  %v4076_v32 = vmul.f32 %v8350_v52, %v4075_v60  ;;  %vm3449_vm10 = vweird.f32 %v8341_v1  ;;  %7082 = vrcp.f32 %v8428_v2  ;;  %v6471_v31 = vmul.f32 -1.442695, %v12390_v17 }
 0x22e   : > { %v8448_v5 = vpop.f32.mrf.mxu0  ;;  %vm3359_vm11 = vweird.f32 %v8344_v9  ;;  %v4084_v18 = vand.u32 2147483648, %v8258_v0  ;;  %v3454_v45 = vand.u32 2147483648, %v8243_v33  ;;  %7084 = vpow2.f32 %v6465_v4  ;;  %vm8485_vm13 = vmor %vm3448_vm9, %vm3449_vm10 }
 0x22f   : > { %v8411_v20 = vpop.f32.mrf.mxu3  ;;  %12387 = vst [vmem:[#allocation124_spill] sm:$0xff] %v8448_v5  ;;  %v8450_v29 = vpop.f32.mrf.mxu1  ;;  %v3447_v6 = vadd.f32 %v8341_v1, %v3446_v16  ;;  %v3452_v13 = vand.u32 2147483647, %v8243_v33  ;;  %v3624_v58 = vmul.f32 %v8452_v35, %v8359_v22  ;;  %7086 = vpow2.f32 %v6423_v28  ;;  %v12393_v16 = vld [vmem:[#allocation37_spill] sm:$0xff]  ;;  %vm8505_vm15 = vmor %vm3358_vm7, %vm3359_vm11 }
 0x230   : > { %12388 = vst [vmem:[#allocation125_spill] sm:$0xff] %v8450_v29  ;;  %v3996_v12 = vsel %vm8418_vm5, %v3995_v10, %v3991_v42  ;;  %v3357_v60 = vadd.f32 %v8344_v9, %v3356_v56  ;;  %vm4079_vm12 = vweird.f32 %v8350_v52  ;;  %7088 = vrcp.f32 %v8459_v39  ;;  %v6854_v42 = vld [vmem:[#allocation7 + $0x2ac] sm:$0xf] }
 0x231   : > { %v4077_v40 = vadd.f32 %v8350_v52, %v4076_v32  ;;  %7090 = vpow2.f32 %v6471_v31  ;;  %v6383_v57 = vmul.f32 -1.442695, %v12393_v16  ;;  %v6372_v10 = vor.u32 %v6860_v49, %v6369_v23  ;;  %v12400_v23 = vld [vmem:[#allocation31_spill] sm:$0xff] }
 0x232   : > { %2222 = vmatmul.bf16.gmra.mxu2 %v7807_v59  ;;  %v8492_v28 = vpop.eup %7080  ;;  %vm8494_vm14 = vcmp.eq.f32.partialorder %v3362_v21, 8.507059e+37  ;;  %v3365_v56 = vor.u32 1.1754944e-38, %v3364_v50  ;;  %v3455_v33 = vor.u32 1.1754944e-38, %v3454_v45  ;;  %v4174_v43 = vand.u32 2147483648, %v8424_v26 }
 0x233   : > { %v8499_v54 = vpop.eup %7082  ;;  %vm4078_vm0 = vweird.f32 %v8258_v0  ;;  %v3451_v21 = vsel %vm8485_vm13, %v8341_v1, %v3447_v6  ;;  %vm8513_vm1 = vcmp.eq.f32.partialorder %v3452_v13, 8.507059e+37  ;;  %v3625_v31 = vsub.f32 1.0, %v3624_v58  ;;  %2454 = vmatpush.bf16.msrb.mxu3 %v6372_v10  ;;  %v6183_v1 = vld [vmem:[#allocation7 + $0x160] sm:$0xf] }
 0x234   : > { %v8469_v51 = vpop.f32.mrf.mxu2  ;;  %v7085_v25 = vpop.eup %7084  ;;  %v4535_v19 = vmul.f32 %v3276_v15, %v12400_v23  ;;  %v8523_v29 = vmul.f32 %v3996_v12, %v12401_v30  ;;  %vm8527_vm2 = vmor %vm4078_vm0, %vm4079_vm12  ;;  %vm8531_vm3 = vcmp.eq.f32.partialorder %v4082_v41, 8.507059e+37  ;;  %v4085_v6 = vor.u32 1.1754944e-38, %v4084_v18  ;;  %v6153_v15 = vld [vmem:[#allocation7 + $0x140] sm:$0xf0] }
 0x235   : > { %v7087_v13 = vpop.eup %7086  ;;  %v3361_v58 = vsel %vm8505_vm15, %v8344_v9, %v3357_v60  ;;  %v4081_v30 = vsel %vm8527_vm2, %v8350_v52, %v4077_v40  ;;  %7092 = vpow2.f32 %v6383_v57  ;;  %v3456_v41 = vsel %vm8513_vm1, %v3455_v33, %v3451_v21  ;;  %v12406_v9 = vld [vmem:[#allocation114_spill] sm:$0xff]  ;;  %v12407_v60 = vld [vmem:[#allocation115_spill] sm:$0xff] }
 0x236   : > { %v8517_v45 = vpop.f32.mrf.mxu0  ;;  %v8543_v12 = vpop.eup %7088  ;;  %v4164_v18 = vmul.f32 %v8492_v28, %v8424_v26  ;;  %v8549_v4 = vor.u32 1.1754944e-38, %v4174_v43  ;;  %v8553_v10 = vadd.f32 %v12407_v60, %v12406_v9  ;;  %v3534_v32 = vmul.f32 %v8499_v54, %v8428_v2  ;;  %v6806_v60 = vld [vmem:[#allocation7 + $0x12c] sm:$0xf] }
 0x237   : > { %v8471_v48 = vpop.f32.mrf.mxu3  ;;  %v8519_v49 = vpop.f32.mrf.mxu1  ;;  %v3626_v33 = vmul.f32 %v8452_v35, %v3625_v31  ;;  %v3632_v21 = vand.u32 2147483647, %v8359_v22  ;;  %v3634_v43 = vand.u32 2147483648, %v8359_v22  ;;  %v8565_v50 = vsel %vm8494_vm14, %v3365_v56, %v3361_v58  ;;  %v6345_v56 = vld [vmem:[#allocation7 + $0x2c0] sm:$0xf0] }
 0x238   : > { %2320 = vmatmul.bf16.gmra.mxu0 %v7807_v59  ;;  %12408 = vst [vmem:[#allocation36_spill] sm:$0xff] %v8553_v10  ;;  %v7091_v57 = vpop.eup %7090  ;;  %v8569_v23 = vsel %vm8531_vm3, %v4085_v6, %v4081_v30  ;;  %v8571_v0 = vadd.f32 1.0, %v7085_v25  ;;  %v8573_v9 = vadd.f32 1.0, %v7087_v13  ;;  %v12409_v10 = vld [vmem:[#allocation34_spill] sm:$0xff]  ;;  %v8578_v5 = vmul.f32 %v8543_v12, %v8459_v39  ;;  %v12411_v59 = vld [vmem:[#allocation23_spill] sm:$0xff] }
 0x239   : > { %2369 = vmatmul.bf16.gmra.mxu1 %v12389_v11  ;;  %v4547_v31 = vmul.f32 %v3456_v41, %v12409_v10  ;;  %vm3628_vm4 = vweird.f32 %v8359_v22  ;;  %vm3629_vm5 = vweird.f32 %v8452_v35  ;;  %v4165_v6 = vsub.f32 1.0, %v4164_v18  ;;  %v6816_v30 = vld [vmem:[#allocation7 + $0x174] sm:$0xf0]  ;;  %v6375_v41 = vld [vmem:[#allocation7 + $0x2e0] sm:$0xf] }
 0x23a   : > { %v8582_v25 = vadd.f32 1.0, %v7091_v57  ;;  %v8586_v13 = vadd.f32 %v8335_v38, %v8333_v46  ;;  %v2175_v58 = vadd.f32 %v8375_v44, %v8373_v37  ;;  %v3535_v14 = vsub.f32 1.0, %v3534_v32  ;;  %v6864_v11 = vld [vmem:[#allocation7 + $0x2f4] sm:$0xf0]  ;;  %vm8600_vm6 = vmor %vm3628_vm4, %vm3629_vm5  ;;  %v6858_v46 = vld [vmem:[#allocation7 + $0x2c4] sm:$0xf0] }
 0x23b   : > { %v7093_v10 = vpop.eup %7092  ;;  %v3627_v34 = vadd.f32 %v8452_v35, %v3626_v33  ;;  %v6156_v24 = vor.u32 %v6806_v60, %v6153_v15  ;;  %v6348_v47 = vor.u32 %v6854_v42, %v6345_v56  ;;  %vm8604_vm7 = vcmp.eq.f32.partialorder %v3632_v21, 8.507059e+37  ;;  %v12417_v15 = vld [vmem:[#allocation25_spill] sm:$0xff] }
 0x23c   : > { %v8556_v52 = vpop.f32.mrf.mxu2  ;;  %12410 = vst [vmem:[#allocation37_spill] sm:$0xff] %v8586_v13  ;;  %7094 = vrcp.f32 %v8571_v0  ;;  %v8609_v37 = vmul.f32 %v4535_v19, %v2175_v58  ;;  %v6184_v44 = vor.u32 %v6816_v30, %v6183_v1  ;;  %2276 = vmatmul.bf16.gmra.mxu3 %v12417_v15  ;;  %vm4168_vm8 = vweird.f32 %v8424_v26  ;;  %v6129_v56 = vld [vmem:[#allocation7 + $0x110] sm:$0xf0]  ;;  %v6810_v30 = vld [vmem:[#allocation7 + $0x144] sm:$0xf0] }
 0x23d   : > { %vm3538_vm9 = vweird.f32 %v8428_v2  ;;  %v4255_v22 = vsub.f32 1.0, %v8578_v5  ;;  %v3635_v32 = vor.u32 1.1754944e-38, %v3634_v43  ;;  %7096 = vrcp.f32 %v8573_v9  ;;  %2406 = vmatpush.bf16.msrb.mxu2 %v6156_v24  ;;  %2455 = vmatpush.bf16.msrb.mxu3 %v6348_v47  ;;  %v6321_v58 = vld [vmem:[#allocation7 + $0x290] sm:$0xf0]  ;;  %v6842_v1 = vld [vmem:[#allocation7 + $0x24c] sm:$0xf] }
 0x23e   : > { %v8592_v18 = vpop.f32.mrf.mxu0  ;;  %12416 = vst [vmem:[#allocation31_spill] sm:$0xff] %v8609_v37  ;;  %v6376_v33 = vor.u32 %v6864_v11, %v6375_v41  ;;  %7098 = vrcp.f32 %v8582_v25  ;;  %v8617_v21 = vadd.f32 1.0, %v7093_v10  ;;  %2503 = vmatpush.bf16.msrb.mxu0 %v6184_v44  ;;  %v8621_v19 = vadd.f32 %v8411_v20, %v8409_v53  ;;  %v6800_v11 = vld [vmem:[#allocation7 + $0xfc] sm:$0xf]  ;;  %v6351_v10 = vld [vmem:[#allocation7 + $0x2b0] sm:$0xf] }
 0x23f   : > { %v1505_v40 = vpop.f32.mrf.mxu3  ;;  %v8594_v57 = vpop.f32.mrf.mxu1  ;;  %v8625_v60 = vadd.f32 %v8471_v48, %v8469_v51  ;;  %v4166_v42 = vmul.f32 %v8492_v28, %v4165_v6  ;;  %v3631_v47 = vsel %vm8600_vm6, %v8452_v35, %v3627_v34  ;;  %v2180_v24 = vadd.f32 %v8519_v49, %v8517_v45  ;;  %v6848_v53 = vld [vmem:[#allocation7 + $0x27c] sm:$0xf]  ;;  %v6159_v49 = vld [vmem:[#allocation7 + $0x130] sm:$0xf]  ;;  %v12433_v13 = vld [vmem:[#allocation40_spill] sm:$0xff] }
 0x240   : > { %12418 = vst [vmem:[#allocation32_spill] sm:$0xff] %v8621_v19  ;;  %2552 = vmatpush.bf16.msrb.mxu1 %v6376_v33  ;;  %v8634_v20 = vadd.f32 %v1505_v40, %v8556_v52  ;;  %v3536_v51 = vmul.f32 %v8499_v54, %v3535_v14  ;;  %v3542_v48 = vand.u32 2147483647, %v8428_v2  ;;  %v6132_v6 = vor.u32 %v6800_v11, %v6129_v56  ;;  %v12425_v56 = vld [vmem:[#allocation38_spill] sm:$0xff]  ;;  %v12429_v52 = vld [vmem:[#allocation39_spill] sm:$0xff] }
 0x241   : > { %12419 = vst [vmem:[#allocation114_spill] sm:$0xff] %v8625_v60  ;;  %vm4258_vm10 = vweird.f32 %v8459_v39  ;;  %v8641_v35 = vmul.f32 %v4547_v31, %v2180_v24  ;;  %v6324_v45 = vor.u32 %v6848_v53, %v6321_v58  ;;  %v3636_v14 = vsel %vm8604_vm7, %v3635_v32, %v3631_v47  ;;  %v6105_v58 = vld [vmem:[#allocation7 + $0xe0] sm:$0xf0] }
 0x242   : > { %2227 = vmatmul.bf16.gmra.mxu2 %v12411_v59  ;;  %12420 = vst [vmem:[#allocation115_spill] sm:$0xff] %v8634_v20  ;;  %v8643_v41 = vpop.eup %7094  ;;  %7100 = vrcp.f32 %v8617_v21  ;;  %v6160_v40 = vor.u32 %v6810_v30, %v6159_v49  ;;  %v8652_v31 = vadd.f32 %v8492_v28, %v4166_v42  ;;  %vm4169_vm11 = vweird.f32 %v8492_v28  ;;  %v12428_v49 = vld [vmem:[#allocation35_spill] sm:$0xff] }
 0x243   : > { %12421 = vst [vmem:[#allocation34_spill] sm:$0xff] %v8641_v35  ;;  %2407 = vmatpush.bf16.msrb.mxu2 %v6132_v6  ;;  %v8649_v44 = vpop.eup %7096  ;;  %vm3539_vm12 = vweird.f32 %v8499_v54  ;;  %v4256_v33 = vmul.f32 %v8543_v12, %v4255_v22  ;;  %2456 = vmatpush.bf16.msrb.mxu3 %v6324_v45  ;;  %v12422_v24 = vand.u32 2147483647, %v8424_v26  ;;  %v8666_v42 = vadd.f32 %v8499_v54, %v3536_v51  ;;  %v6794_v6 = vld [vmem:[#allocation7 + $0xcc] sm:$0xf]  ;;  %vm8685_vm0 = vmor %vm4168_vm8, %vm4169_vm11 }
 0x244   : > { %v1458_v5 = vpop.f32.mrf.mxu2  ;;  %v8657_v47 = vpop.eup %7098  ;;  %vm4259_vm14 = vweird.f32 %v8543_v12  ;;  %v6382_v53 = vmul.f32 -1.442695, %v12425_v56  ;;  %2504 = vmatpush.bf16.msrb.mxu0 %v6160_v40  ;;  %v6352_v22 = vor.u32 %v6858_v46, %v6351_v10  ;;  %vm8670_vm15 = vcmp.eq.f32.partialorder %v3542_v48, 8.507059e+37  ;;  %v6297_v40 = vld [vmem:[#allocation7 + $0x260] sm:$0xf0]  ;;  %vm8706_vm1 = vmor %vm3538_vm9, %vm3539_vm12 }
 0x245   : > { %vm8661_vm13 = vcmp.eq.f32.partialorder %v12422_v24, 8.507059e+37  ;;  %v4559_v30 = vmul.f32 %v3636_v14, %v12428_v49  ;;  %v4344_v24 = vmul.f32 %v8643_v41, %v8571_v0  ;;  %v6389_v51 = vmul.f32 -1.442695, %v12429_v52  ;;  %vm8723_vm2 = vmor %vm4258_vm10, %vm4259_vm14 }
 0x246   : > { %v2135_v38 = vpop.f32.mrf.mxu0  ;;  %v3714_v14 = vmul.f32 %v8649_v44, %v8573_v9  ;;  %v6108_v46 = vor.u32 %v6794_v6, %v6105_v58  ;;  %v6300_v49 = vor.u32 %v6842_v1, %v6297_v40  ;;  %v4171_v26 = vsel %vm8685_vm0, %v8492_v28, %v8652_v31  ;;  %2553 = vmatpush.bf16.msrb.mxu1 %v6352_v22  ;;  %v12436_v28 = vld [vmem:[#allocation41_spill] sm:$0xff]  ;;  %v6852_v58 = vld [vmem:[#allocation7 + $0x294] sm:$0xf0] }
 0x247   : > { %v1507_v43 = vpop.f32.mrf.mxu3  ;;  %v2184_v32 = vpop.f32.mrf.mxu1  ;;  %v4257_v60 = vadd.f32 %v8543_v12, %v4256_v33  ;;  %v4434_v19 = vmul.f32 %v8657_v47, %v8582_v25  ;;  %v6388_v37 = vmul.f32 -1.442695, %v12433_v13  ;;  %v6395_v31 = vmul.f32 -1.442695, %v12436_v28 }
 0x248   : > { %2325 = vmatmul.bf16.gmra.mxu0 %v12411_v59  ;;  %v8679_v34 = vadd.f32 %v1507_v43, %v1458_v5  ;;  %v2185_v10 = vadd.f32 %v2184_v32, %v2135_v38  ;;  %v6135_v5 = vld [vmem:[#allocation7 + $0x100] sm:$0xf]  ;;  %v6804_v43 = vld [vmem:[#allocation7 + $0x114] sm:$0xf0]  ;;  %v8700_v32 = vpop.eup %7100  ;;  %2408 = vmatpush.bf16.msrb.mxu2 %v6108_v46  ;;  %v3541_v40 = vsel %vm8706_vm1, %v8499_v54, %v8666_v42  ;;  %v4345_v48 = vsub.f32 1.0, %v4344_v24 }
 0x249   : > { %2374 = vmatmul.bf16.gmra.mxu1 %v12417_v15  ;;  %v6327_v38 = vld [vmem:[#allocation7 + $0x280] sm:$0xf]  ;;  %2457 = vmatpush.bf16.msrb.mxu3 %v6300_v49  ;;  %v6136_v6 = vor.u32 %v6804_v43, %v6135_v5  ;;  %7102 = vpow2.f32 %v6382_v53  ;;  %v4261_v54 = vsel %vm8723_vm2, %v8543_v12, %v4257_v60  ;;  %v4435_v42 = vsub.f32 1.0, %v4434_v19  ;;  %v12445_v60 = vld [vmem:[#allocation29_spill] sm:$0xff] }
 0x24a   : > { %12430 = vst [vmem:[#allocation38_spill] sm:$0xff] %v8679_v34  ;;  %v8711_v33 = vmul.f32 %v4559_v30, %v2185_v10  ;;  %v6328_v15 = vor.u32 %v6852_v58, %v6327_v38  ;;  %v4352_v10 = vand.u32 2147483647, %v8571_v0  ;;  %7104 = vpow2.f32 %v6389_v51  ;;  %v12441_v24 = vld [vmem:[#allocation27_spill] sm:$0xff] }
 0x24b   : > { %2505 = vmatpush.bf16.msrb.mxu0 %v6136_v6  ;;  %v3114_v53 = vmul.f32 %v8700_v32, %v8617_v21  ;;  %7106 = vpow2.f32 %v6388_v37  ;;  %v12443_v5 = vand.u32 2147483647, %v8459_v39  ;;  %v12444_v12 = vand.u32 2147483648, %v8459_v39 }
 0x24c   : > { %v1461_v34 = vpop.f32.mrf.mxu2  ;;  %12437 = vst [vmem:[#allocation35_spill] sm:$0xff] %v8711_v33  ;;  %2554 = vmatpush.bf16.msrb.mxu1 %v6328_v15  ;;  %7108 = vpow2.f32 %v6395_v31  ;;  %2281 = vmatmul.bf16.gmra.mxu3 %v12445_v60  ;;  %v8749_v37 = vsel %vm8661_vm13, %v8549_v4, %v4171_v26  ;;  %v4346_v15 = vmul.f32 %v8643_v41, %v4345_v48  ;;  %v3722_v43 = vand.u32 2147483647, %v8573_v9  ;;  %v6063_v33 = vld [vmem:[#allocation7 + $0x70] sm:$0xf] }
 0x24d   : > { %vm4263_vm3 = vcmp.eq.f32.partialorder %v12443_v5, 8.507059e+37  ;;  %v4265_v19 = vor.u32 1.1754944e-38, %v12444_v12  ;;  %vm4348_vm4 = vweird.f32 %v8571_v0  ;;  %vm8762_vm5 = vcmp.eq.f32.partialorder %v4352_v10, 8.507059e+37  ;;  %v6788_v10 = vld [vmem:[#allocation7 + $0x9c] sm:$0xf] }
 0x24e   : > { %v8735_v46 = vpop.f32.mrf.mxu0  ;;  %v4436_v48 = vmul.f32 %v8657_v47, %v4435_v42  ;;  %v3115_v30 = vsub.f32 1.0, %v3114_v53  ;;  %vm4349_vm6 = vweird.f32 %v8643_v41  ;;  %vm3718_vm7 = vweird.f32 %v8573_v9 }
 0x24f   : > { %v1510_v20 = vpop.f32.mrf.mxu3  ;;  %v8737_v49 = vpop.f32.mrf.mxu1  ;;  %v8758_v39 = vsel %vm4263_vm3, %v4265_v19, %v4261_v54  ;;  %vm4438_vm8 = vweird.f32 %v8582_v25  ;;  %v4347_v54 = vadd.f32 %v8643_v41, %v4346_v15  ;;  %vm8772_vm9 = vcmp.eq.f32.partialorder %v3722_v43, 8.507059e+37  ;;  %vm8791_vm12 = vmor %vm4348_vm4, %vm4349_vm6 }
 0x250   : > { %v8713_v22 = vadd.f32 %v1510_v20, %v1461_v34  ;;  %v4354_v20 = vand.u32 2147483648, %v8571_v0  ;;  %v3715_v34 = vsub.f32 1.0, %v3714_v14  ;;  %v12442_v14 = vand.u32 2147483648, %v8428_v2  ;;  %v12446_v2 = vld [vmem:[#allocation42_spill] sm:$0xff]  ;;  %v7103_v4 = vpop.eup %7102 }
 0x251   : > { %v6394_v38 = vmul.f32 -1.442695, %v12446_v2  ;;  %v7105_v45 = vpop.eup %7104  ;;  %vm3719_vm10 = vweird.f32 %v8649_v44  ;;  %v4437_v5 = vadd.f32 %v8657_v47, %v4436_v48  ;;  %vm4439_vm11 = vweird.f32 %v8657_v47  ;;  %v12471_v0 = vld [vmem:[#allocation18_spill] sm:$0xff] }
 0x252   : > { %12438 = vst [vmem:[#allocation39_spill] sm:$0xff] %v8713_v22  ;;  %2232 = vmatmul.bf16.gmra.mxu2 %v12441_v24  ;;  %v3545_v51 = vor.u32 1.1754944e-38, %v12442_v14  ;;  %v3716_v31 = vmul.f32 %v8649_v44, %v3715_v34  ;;  %v4355_v58 = vor.u32 1.1754944e-38, %v4354_v20  ;;  %v7107_v34 = vpop.eup %7106  ;;  %v4442_v20 = vand.u32 2147483647, %v8582_v25  ;;  %vm8806_vm13 = vmor %vm3718_vm7, %vm3719_vm10 }
 0x253   : > { %7110 = vpow2.f32 %v6394_v38  ;;  %v7109_v42 = vpop.eup %7108  ;;  %v4444_v14 = vand.u32 2147483648, %v8582_v25  ;;  %v3116_v12 = vmul.f32 %v8700_v32, %v3115_v30  ;;  %v8785_v19 = vadd.f32 1.0, %v7105_v45  ;;  %vm8822_vm0 = vmor %vm4438_vm8, %vm4439_vm11 }
 0x254   : > { %v8756_v1 = vsel %vm8670_vm15, %v3545_v51, %v3541_v40  ;;  %v1463_v6 = vpop.f32.mrf.mxu2  ;;  %v3724_v40 = vand.u32 2147483648, %v8573_v9  ;;  %v3717_v53 = vadd.f32 %v8649_v44, %v3716_v31  ;;  %v8780_v51 = vadd.f32 1.0, %v7103_v4 }
 0x255   : > { %v3122_v4 = vand.u32 2147483647, %v8617_v21  ;;  %v3124_v48 = vand.u32 2147483648, %v8617_v21  ;;  %v8797_v22 = vadd.f32 1.0, %v7107_v34  ;;  %v4351_v30 = vsel %vm8791_vm12, %v8643_v41, %v4347_v54 }
 0x256   : > { %v2140_v15 = vpop.f32.mrf.mxu0  ;;  %v3725_v31 = vor.u32 1.1754944e-38, %v3724_v40  ;;  %vm3118_vm14 = vweird.f32 %v8617_v21  ;;  %vm3119_vm15 = vweird.f32 %v8700_v32  ;;  %v8812_v45 = vadd.f32 1.0, %v7109_v42  ;;  %v12467_v40 = vld [vmem:[#allocation110_spill] sm:$0xff] }
 0x257   : > { %v1512_v11 = vpop.f32.mrf.mxu3  ;;  %v2189_v43 = vpop.f32.mrf.mxu1  ;;  %v3721_v41 = vsel %vm8806_vm13, %v8649_v44, %v3717_v53  ;;  %vm8826_vm1 = vcmp.eq.f32.partialorder %v4442_v20, 8.507059e+37  ;;  %7112 = vrcp.f32 %v8780_v51  ;;  %v3109_v34 = vand.u32 2147483648, %v8780_v51  ;;  %vm8848_vm2 = vmor %vm3118_vm14, %vm3119_vm15 }
 0x258   : > { %2330 = vmatmul.bf16.gmra.mxu0 %v12441_v24  ;;  %v4441_v25 = vsel %vm8822_vm0, %v8657_v47, %v4437_v5  ;;  %v4445_v53 = vor.u32 1.1754944e-38, %v4444_v14  ;;  %v3117_v20 = vadd.f32 %v8700_v32, %v3116_v12  ;;  %7114 = vrcp.f32 %v8785_v19  ;;  %v6081_v5 = vld [vmem:[#allocation7 + $0xb0] sm:$0xf0] }
 0x259   : > { %2379 = vmatmul.bf16.gmra.mxu1 %v12445_v60  ;;  %v7111_v42 = vpop.eup %7110  ;;  %v4356_v38 = vsel %vm8762_vm5, %v4355_v58, %v4351_v30  ;;  %vm8852_vm3 = vcmp.eq.f32.partialorder %v3122_v4, 8.507059e+37  ;;  %v3125_v47 = vor.u32 1.1754944e-38, %v3124_v48  ;;  %7116 = vrcp.f32 %v8797_v22 }
 0x25a   : > { %v3726_v14 = vsel %vm8772_vm9, %v3725_v31, %v3721_v41  ;;  %7118 = vrcp.f32 %v8812_v45  ;;  %v8860_v26 = vadd.f32 %v1512_v11, %v1463_v6  ;;  %v2190_v58 = vadd.f32 %v2189_v43, %v2140_v15  ;;  %v12464_v31 = vld [vmem:[#allocation43_spill] sm:$0xff]  ;;  %v12465_v6 = vld [vmem:[#allocation44_spill] sm:$0xff] }
 0x25b   : > { %v4446_v21 = vsel %vm8826_vm1, %v4445_v53, %v4441_v25  ;;  %v8865_v12 = vor.u32 1.1754944e-38, %v3109_v34  ;;  %v8867_v4 = vadd.f32 1.0, %v7111_v42  ;;  %v3121_v48 = vsel %vm8848_vm2, %v8700_v32, %v3117_v20  ;;  %v12466_v15 = vld [vmem:[#allocation16_spill] sm:$0xff]  ;;  %v12469_v42 = vld [vmem:[#allocation33_spill] sm:$0xff] }
 0x25c   : > { %v8833_v54 = vpop.f32.mrf.mxu2  ;;  %12463 = vst [vmem:[#allocation40_spill] sm:$0xff] %v8860_v26  ;;  %v6401_v30 = vmul.f32 -1.442695, %v12464_v31  ;;  %v6400_v11 = vmul.f32 -1.442695, %v12465_v6  ;;  %v8880_v34 = vmul.f32 %v8565_v50, %v12467_v40  ;;  %v8884_v25 = vmul.f32 %v8569_v23, %v12469_v42  ;;  %v12470_v53 = vld [vmem:[#allocation45_spill] sm:$0xff]  ;;  %2286 = vmatmul.bf16.gmra.mxu3 %v12471_v0 }
 0x25d   : > { %v8876_v9 = vpop.eup %7112  ;;  %v8888_v32 = vmul.f32 %v8749_v37, %v7897_v27  ;;  %v6407_v20 = vmul.f32 -1.442695, %v12470_v53  ;;  %v4553_v50 = vmul.f32 %v8756_v1, %v8262_v63  ;;  %v8898_v40 = vmul.f32 %v8758_v39, %v7903_v36  ;;  %v6836_v37 = vld [vmem:[#allocation7 + $0x21c] sm:$0xf]  ;;  %v6273_v42 = vld [vmem:[#allocation7 + $0x230] sm:$0xf0] }
 0x25e   : > { %v2142_v43 = vpop.f32.mrf.mxu0  ;;  %12468 = vst [vmem:[#allocation41_spill] sm:$0xff] %v8880_v34  ;;  %v8892_v26 = vpop.eup %7114  ;;  %v8901_v23 = vmul.f32 %v4356_v38, %v7907_v61  ;;  %v8904_v27 = vmul.f32 %v8394_v62, %v2190_v58  ;;  %v6111_v34 = vld [vmem:[#allocation7 + $0xd0] sm:$0xf]  ;;  %v4565_v59 = vmul.f32 %v3726_v14, %v7909_v7  ;;  %v8910_v8 = vmul.f32 %v4446_v21, %v12390_v17  ;;  %v6798_v61 = vld [vmem:[#allocation7 + $0xe4] sm:$0xf0] }
 0x25f   : > { %v8835_v44 = vpop.f32.mrf.mxu3  ;;  %v2191_v41 = vpop.f32.mrf.mxu1  ;;  %v8914_v36 = vsel %vm8852_vm3, %v3125_v47, %v3121_v48  ;;  %7120 = vrcp.f32 %v8867_v4  ;;  %v6303_v63 = vld [vmem:[#allocation7 + $0x250] sm:$0xf]  ;;  %v6846_v62 = vld [vmem:[#allocation7 + $0x264] sm:$0xf0]  ;;  %v8921_v58 = vmul.f32 %v8876_v9, %v8780_v51  ;;  %v2182_v7 = vadd.f32 %v8594_v57, %v8592_v18  ;;  %v6782_v21 = vld [vmem:[#allocation7 + $0x6c] sm:$0xf] }
 0x260   : > { %12472 = vst [vmem:[#allocation42_spill] sm:$0xff] %v8904_v27  ;;  %v8906_v24 = vpop.eup %7116  ;;  %7122 = vpow2.f32 %v6401_v30  ;;  %v2187_v17 = vadd.f32 %v8737_v49, %v8735_v46  ;;  %v8929_v60 = vmul.f32 %v8892_v26, %v8785_v19  ;;  %v6084_v47 = vor.u32 %v6788_v10, %v6081_v5  ;;  %v6057_v48 = vld [vmem:[#allocation7 + $0x80] sm:$0xf0]  ;;  %v6830_v18 = vld [vmem:[#allocation7 + $0x1ec] sm:$0xf] }
 0x261   : > { %12473 = vst [vmem:[#allocation43_spill] sm:$0xff] %v8910_v8  ;;  %v8917_v38 = vpop.eup %7118  ;;  %7124 = vpow2.f32 %v6400_v11  ;;  %v6276_v14 = vor.u32 %v6836_v37, %v6273_v42  ;;  %v6112_v3 = vor.u32 %v6798_v61, %v6111_v34  ;;  %v6304_v8 = vor.u32 %v6846_v62, %v6303_v63  ;;  %v6249_v57 = vld [vmem:[#allocation7 + $0x200] sm:$0xf0]  ;;  %v6087_v6 = vld [vmem:[#allocation7 + $0xa0] sm:$0xf]  ;;  %v12478_v62 = vld [vmem:[#allocation46_spill] sm:$0xff] }
 0x262   : > { %2237 = vmatmul.bf16.gmra.mxu2 %v12466_v15  ;;  %v8933_v30 = vadd.f32 %v8835_v44, %v8833_v54  ;;  %v2192_v53 = vadd.f32 %v2191_v41, %v2142_v43  ;;  %v3189_v46 = vmul.f32 %v8906_v24, %v8797_v22  ;;  %v3294_v49 = vmul.f32 %v8917_v38, %v8812_v45  ;;  %v6792_v10 = vld [vmem:[#allocation7 + $0xb4] sm:$0xf0]  ;;  %v6279_v11 = vld [vmem:[#allocation7 + $0x220] sm:$0xf] }
 0x263   : > { %7126 = vpow2.f32 %v6407_v20  ;;  %2409 = vmatpush.bf16.msrb.mxu2 %v6084_v47  ;;  %2458 = vmatpush.bf16.msrb.mxu3 %v6276_v14  ;;  %v6840_v34 = vld [vmem:[#allocation7 + $0x234] sm:$0xf0]  ;;  %vm3208_vm4 = vweird.f32 %v8785_v19  ;;  %v3214_v54 = vand.u32 2147483648, %v8785_v19  ;;  %v8943_v44 = vmul.f32 %v4553_v50, %v2182_v7 }
 0x264   : > { %v1468_v1 = vpop.f32.mrf.mxu2  ;;  %12474 = vst [vmem:[#allocation110_spill] sm:$0xff] %v8933_v30  ;;  %v8945_v43 = vmul.f32 %v4565_v59, %v2187_v17  ;;  %2506 = vmatpush.bf16.msrb.mxu0 %v6112_v3  ;;  %2555 = vmatpush.bf16.msrb.mxu1 %v6304_v8  ;;  %v6060_v20 = vor.u32 %v6782_v21, %v6057_v48  ;;  %v3100_v61 = vsub.f32 1.0, %v8921_v58  ;;  %vm3103_vm5 = vweird.f32 %v8780_v51 }
 0x265   : > { %12476 = vst [vmem:[#allocation126_spill] sm:$0xff] %v8943_v44  ;;  %v8947_v42 = vpop.eup %7120  ;;  %v3205_v63 = vsub.f32 1.0, %v8929_v60  ;;  %v8955_v3 = vmul.f32 %v8431_v55, %v2192_v53  ;;  %v6252_v8 = vor.u32 %v6830_v18, %v6249_v57  ;;  %v6088_v59 = vor.u32 %v6792_v10, %v6087_v6 }
 0x266   : > { %12477 = vst [vmem:[#allocation127_spill] sm:$0xff] %v8945_v43  ;;  %v2145_v41 = vpop.f32.mrf.mxu0  ;;  %v7123_v50 = vpop.eup %7122  ;;  %v6280_v7 = vor.u32 %v6840_v34, %v6279_v11  ;;  %v3190_v47 = vsub.f32 1.0, %v3189_v46  ;;  %v3197_v58 = vand.u32 2147483647, %v8797_v22  ;;  %v3199_v14 = vand.u32 2147483648, %v8797_v22 }
 0x267   : > { %v1517_v39 = vpop.f32.mrf.mxu3  ;;  %v2194_v37 = vpop.f32.mrf.mxu1  ;;  %12479 = vst [vmem:[#allocation46_spill] sm:$0xff] %v8955_v3  ;;  %2410 = vmatpush.bf16.msrb.mxu2 %v6060_v20  ;;  %2459 = vmatpush.bf16.msrb.mxu3 %v6252_v8  ;;  %v3101_v57 = vmul.f32 %v8876_v9, %v3100_v61  ;;  %vm3104_vm6 = vweird.f32 %v8876_v9  ;;  %v3304_v46 = vand.u32 2147483648, %v8812_v45  ;;  %v8975_v10 = vadd.f32 1.0, %v7123_v50  ;;  %v12485_v50 = vld [vmem:[#allocation20_spill] sm:$0xff] }
 0x268   : > { %v8939_v5 = vadd.f32 %v1517_v39, %v1468_v1  ;;  %v6406_v1 = vmul.f32 -1.442695, %v12478_v62  ;;  %v2195_v39 = vadd.f32 %v2194_v37, %v2145_v41  ;;  %2335 = vmatmul.bf16.gmra.mxu0 %v12466_v15  ;;  %v7125_v17 = vpop.eup %7124  ;;  %v3295_v41 = vsub.f32 1.0, %v3294_v49  ;;  %2556 = vmatpush.bf16.msrb.mxu1 %v6280_v7  ;;  %vm9018_vm13 = vmor %vm3103_vm5, %vm3104_vm6 }
 0x269   : > { %2384 = vmatmul.bf16.gmra.mxu1 %v12471_v0  ;;  %2507 = vmatpush.bf16.msrb.mxu0 %v6088_v59  ;;  %v7127_v18 = vpop.eup %7126  ;;  %v3206_v49 = vmul.f32 %v8892_v26, %v3205_v63  ;;  %v3191_v34 = vmul.f32 %v8906_v24, %v3190_v47  ;;  %v8980_v37 = vor.u32 1.1754944e-38, %v3199_v14  ;;  %v3279_v20 = vmul.f32 %v8947_v42, %v8867_v4 }
 0x26a   : > { %12475 = vst [vmem:[#allocation33_spill] sm:$0xff] %v8939_v5  ;;  %v8961_v60 = vmul.f32 %v8523_v29, %v2195_v39  ;;  %v8971_v29 = vor.u32 1.1754944e-38, %v3214_v54  ;;  %7128 = vpow2.f32 %v6406_v1  ;;  %v8984_v54 = vadd.f32 1.0, %v7125_v17  ;;  %v6776_v5 = vld [vmem:[#allocation7 + $0x3c] sm:$0xf] }
 0x26b   : > { %v12482_v61 = vand.u32 2147483647, %v8780_v51  ;;  %vm3209_vm8 = vweird.f32 %v8892_v26  ;;  %v3296_v63 = vmul.f32 %v8917_v38, %v3295_v41  ;;  %vm3298_vm9 = vweird.f32 %v8812_v45  ;;  %v12491_v41 = vld [vmem:[#allocation22_spill] sm:$0xff] }
 0x26c   : > { %12480 = vst [vmem:[#allocation128_spill] sm:$0xff] %v8961_v60  ;;  %v1471_v21 = vpop.f32.mrf.mxu2  ;;  %v8995_v1 = vadd.f32 1.0, %v7127_v18  ;;  %v3102_v7 = vadd.f32 %v8876_v9, %v3101_v57  ;;  %v12486_v17 = vand.u32 2147483647, %v8785_v19  ;;  %vm3194_vm11 = vweird.f32 %v8906_v24  ;;  %2291 = vmatmul.bf16.gmra.mxu3 %v12491_v41  ;;  %vm9030_vm15 = vmor %vm3208_vm4, %vm3209_vm8  ;;  %v6225_v18 = vld [vmem:[#allocation7 + $0x1d0] sm:$0xf0] }
 0x26d   : > { %vm8988_vm7 = vcmp.eq.f32.partialorder %v12482_v61, 8.507059e+37  ;;  %vm9006_vm12 = vcmp.eq.f32.partialorder %v3197_v58, 8.507059e+37  ;;  %v3207_v57 = vadd.f32 %v8892_v26, %v3206_v49  ;;  %vm3299_vm14 = vweird.f32 %v8917_v38  ;;  %v12494_v58 = vld [vmem:[#allocation47_spill] sm:$0xff]  ;;  %v6828_v60 = vld [vmem:[#allocation7 + $0x1d4] sm:$0xf0] }
 0x26e   : > { %v2147_v8 = vpop.f32.mrf.mxu0  ;;  %vm9001_vm10 = vcmp.eq.f32.partialorder %v12486_v17, 8.507059e+37  ;;  %7130 = vrcp.f32 %v8975_v10  ;;  %v6413_v61 = vmul.f32 -1.442695, %v12494_v58  ;;  %v3192_v51 = vadd.f32 %v8906_v24, %v3191_v34  ;;  %v6033_v34 = vld [vmem:[#allocation7 + $0x50] sm:$0xf0]  ;;  %vm9051_vm1 = vmor %vm3298_vm9, %vm3299_vm14 }
 0x26f   : > { %v1520_v48 = vpop.f32.mrf.mxu3  ;;  %v2196_v59 = vpop.f32.mrf.mxu1  ;;  %v3280_v17 = vsub.f32 1.0, %v3279_v20  ;;  %v3287_v11 = vand.u32 2147483647, %v8867_v4  ;;  %7132 = vrcp.f32 %v8984_v54  ;;  %vm3193_vm0 = vweird.f32 %v8797_v22  ;;  %v6824_v20 = vld [vmem:[#allocation7 + $0x1bc] sm:$0xf] }
 0x270   : > { %v8963_v55 = vadd.f32 %v1520_v48, %v1471_v21  ;;  %v3302_v21 = vand.u32 2147483647, %v8812_v45  ;;  %v9011_v48 = vor.u32 1.1754944e-38, %v3304_v46  ;;  %v7129_v6 = vpop.eup %7128  ;;  %v3297_v19 = vadd.f32 %v8917_v38, %v3296_v63  ;;  %vm9062_vm2 = vmor %vm3193_vm0, %vm3194_vm11 }
 0x271   : > { %7134 = vrcp.f32 %v8995_v1  ;;  %v3106_v30 = vsel %vm9018_vm13, %v8876_v9, %v3102_v7  ;;  %v3289_v22 = vand.u32 2147483648, %v8867_v4  ;;  %v2197_v27 = vadd.f32 %v2196_v59, %v2147_v8 }
 0x272   : > { %12481 = vst [vmem:[#allocation129_spill] sm:$0xff] %v8963_v55  ;;  %2242 = vmatmul.bf16.gmra.mxu2 %v12485_v50  ;;  %v9039_v55 = vmul.f32 %v8914_v36, %v12393_v16  ;;  %v12499_v36 = vld [vmem:[#allocation48_spill] sm:$0xff]  ;;  %v3211_v3 = vsel %vm9030_vm15, %v8892_v26, %v3207_v57  ;;  %7136 = vpow2.f32 %v6413_v61  ;;  %v6036_v7 = vor.u32 %v6776_v5, %v6033_v34  ;;  %v12505_v61 = vld [vmem:[#allocation49_spill] sm:$0xff] }
 0x273   : > { %v6412_v63 = vmul.f32 -1.442695, %v12499_v36  ;;  %v3196_v8 = vsel %vm9062_vm2, %v8906_v24, %v3192_v51  ;;  %v3281_v59 = vmul.f32 %v8947_v42, %v3280_v17  ;;  %v9072_v46 = vadd.f32 1.0, %v7129_v6  ;;  %v6786_v57 = vld [vmem:[#allocation7 + $0x84] sm:$0xf0] }
 0x274   : > { %v1473_v49 = vpop.f32.mrf.mxu2  ;;  %v6228_v26 = vor.u32 %v6824_v20, %v6225_v18  ;;  %v9074_v43 = vpop.eup %7130  ;;  %vm9079_vm3 = vcmp.eq.f32.partialorder %v3302_v21, 8.507059e+37  ;;  %2411 = vmatpush.bf16.msrb.mxu2 %v6036_v7  ;;  %v6064_v24 = vor.u32 %v6786_v57, %v6063_v33  ;;  %v3111_v6 = vsel %vm8988_vm7, %v8865_v12, %v3106_v30  ;;  %v6255_v17 = vld [vmem:[#allocation7 + $0x1f0] sm:$0xf]  ;;  %v6201_v30 = vld [vmem:[#allocation7 + $0x1a0] sm:$0xf0] }
 0x275   : > { %v9084_v51 = vpop.eup %7132  ;;  %vm3283_vm4 = vweird.f32 %v8867_v4  ;;  %7138 = vpow2.f32 %v6412_v63  ;;  %v3216_v33 = vsel %vm9001_vm10, %v8971_v29, %v3211_v3  ;;  %v3201_v12 = vsel %vm9006_vm12, %v8980_v37, %v3196_v8  ;;  %v12513_v4 = vld [vmem:[#allocation50_spill] sm:$0xff] }
 0x276   : > { %v2150_v34 = vpop.f32.mrf.mxu0  ;;  %2460 = vmatpush.bf16.msrb.mxu3 %v6228_v26  ;;  %vm3284_vm5 = vweird.f32 %v8947_v42  ;;  %vm9102_vm6 = vcmp.eq.f32.partialorder %v3287_v11, 8.507059e+37  ;;  %v3282_v39 = vadd.f32 %v8947_v42, %v3281_v59  ;;  %v3384_v3 = vmul.f32 %v9074_v43, %v8975_v10  ;;  %2508 = vmatpush.bf16.msrb.mxu0 %v6064_v24 }
 0x277   : > { %v1522_v53 = vpop.f32.mrf.mxu3  ;;  %v2199_v21 = vpop.f32.mrf.mxu1  ;;  %7140 = vrcp.f32 %v9072_v46  ;;  %v3369_v47 = vmul.f32 %v9084_v51, %v8984_v54  ;;  %v9125_v7 = vmul.f32 %v3111_v6, %v12425_v56  ;;  %v9128_v18 = vmul.f32 %v3216_v33, %v12429_v52  ;;  %vm9140_vm7 = vmor %vm3283_vm4, %vm3284_vm5 }
 0x278   : > { %v9066_v45 = vadd.f32 %v1522_v53, %v1473_v49  ;;  %v3301_v53 = vsel %vm9051_vm1, %v8917_v38, %v3297_v19  ;;  %v6419_v49 = vmul.f32 -1.442695, %v12505_v61  ;;  %v9091_v38 = vmul.f32 %v8884_v25, %v2197_v27  ;;  %v6834_v19 = vld [vmem:[#allocation7 + $0x204] sm:$0xf0]  ;;  %v9093_v20 = vpop.eup %7134  ;;  %2340 = vmatmul.bf16.gmra.mxu0 %v12485_v50 }
 0x279   : > { %v3290_v25 = vor.u32 1.1754944e-38, %v3289_v22  ;;  %v3306_v27 = vsel %vm9079_vm3, %v9011_v48, %v3301_v53  ;;  %2389 = vmatmul.bf16.gmra.mxu1 %v12491_v41  ;;  %v7137_v37 = vpop.eup %7136  ;;  %v2200_v14 = vadd.f32 %v2199_v21, %v2150_v34  ;;  %v6256_v16 = vor.u32 %v6834_v19, %v6255_v17  ;;  %v12514_v34 = vld [vmem:[#allocation24_spill] sm:$0xff]  ;;  %v12515_v19 = vld [vmem:[#allocation26_spill] sm:$0xff] }
 0x27a   : > { %12502 = vst [vmem:[#allocation47_spill] sm:$0xff] %v9066_v45  ;;  %7142 = vpow2.f32 %v6419_v49  ;;  %v3394_v48 = vand.u32 2147483648, %v8975_v10  ;;  %v3474_v22 = vmul.f32 %v9093_v20, %v8995_v1  ;;  %v9131_v8 = vmul.f32 %v3201_v12, %v12433_v13  ;;  %v6780_v17 = vld [vmem:[#allocation7 + $0x54] sm:$0xf0]  ;;  %v12536_v45 = vld [vmem:[#allocation28_spill] sm:$0xff] }
 0x27b   : > { %12506 = vst [vmem:[#allocation48_spill] sm:$0xff] %v9091_v38  ;;  %v9134_v59 = vmul.f32 %v8888_v32, %v2200_v14  ;;  %2557 = vmatpush.bf16.msrb.mxu1 %v6256_v16  ;;  %v7139_v26 = vpop.eup %7138  ;;  %v3385_v56 = vsub.f32 1.0, %v3384_v3  ;;  %vm3388_vm8 = vweird.f32 %v8975_v10  ;;  %v3392_v52 = vand.u32 2147483647, %v8975_v10  ;;  %v6770_v14 = vld [vmem:[#allocation7 + $0xc] sm:$0xf] }
 0x27c   : > { %v1476_v29 = vpop.f32.mrf.mxu2  ;;  %v9146_v13 = vadd.f32 1.0, %v7137_v37  ;;  %v9149_v32 = vmul.f32 %v3306_v27, %v12436_v28  ;;  %v3286_v53 = vsel %vm9140_vm7, %v8947_v42, %v3282_v39  ;;  %v3370_v5 = vsub.f32 1.0, %v3369_v47  ;;  %2296 = vmatmul.bf16.gmra.mxu3 %v12515_v19  ;;  %v6009_v16 = vld [vmem:[#allocation7 + $0x20] sm:$0xf0] }
 0x27d   : > { %12510 = vst [vmem:[#allocation130_spill] sm:$0xff] %v9134_v59  ;;  %v6418_v49 = vmul.f32 -1.442695, %v12513_v4  ;;  %v9156_v6 = vpop.eup %7140  ;;  %v9158_v21 = vor.u32 1.1754944e-38, %v3394_v48  ;;  %vm3373_vm9 = vweird.f32 %v8984_v54  ;;  %v3475_v28 = vsub.f32 1.0, %v3474_v22 }
 0x27e   : > { %v2152_v24 = vpop.f32.mrf.mxu0  ;;  %v3379_v42 = vand.u32 2147483648, %v8984_v54  ;;  %v3482_v27 = vand.u32 2147483647, %v8995_v1  ;;  %v3484_v39 = vand.u32 2147483648, %v8995_v1  ;;  %v9166_v3 = vadd.f32 1.0, %v7139_v26 }
 0x27f   : > { %v1525_v11 = vpop.f32.mrf.mxu3  ;;  %v2201_v33 = vpop.f32.mrf.mxu1  ;;  %vm3478_vm10 = vweird.f32 %v8995_v1  ;;  %7144 = vrcp.f32 %v9146_v13  ;;  %v6818_v48 = vld [vmem:[#allocation7 + $0x18c] sm:$0xf]  ;;  %v3371_v22 = vmul.f32 %v9084_v51, %v3370_v5  ;;  %v3459_v26 = vmul.f32 %v9156_v6, %v9072_v46  ;;  %v6813_v59 = vld [vmem:[#allocation7 + $0x164] sm:$0xf] }
 0x280   : > { %v9120_v63 = vadd.f32 %v1525_v11, %v1476_v29  ;;  %v7143_v12 = vpop.eup %7142  ;;  %v3291_v29 = vsel %vm9102_vm6, %v3290_v25, %v3286_v53  ;;  %v3386_v11 = vmul.f32 %v9074_v43, %v3385_v56  ;;  %7146 = vpow2.f32 %v6418_v49  ;;  %v6039_v25 = vld [vmem:[#allocation7 + $0x40] sm:$0xf]  ;;  %v12519_v5 = vld [vmem:[#allocation52_spill] sm:$0xff] }
 0x281   : > { %v2202_v57 = vadd.f32 %v2201_v33, %v2152_v24  ;;  %vm3389_vm11 = vweird.f32 %v9074_v43  ;;  %v3476_v56 = vmul.f32 %v9093_v20, %v3475_v28  ;;  %v9178_v53 = vadd.f32 1.0, %v7143_v12 }
 0x282   : > { %12509 = vst [vmem:[#allocation49_spill] sm:$0xff] %v9120_v63  ;;  %2247 = vmatmul.bf16.gmra.mxu2 %v12514_v34  ;;  %v6231_v63 = vld [vmem:[#allocation7 + $0x1c0] sm:$0xf]  ;;  %vm9182_vm12 = vcmp.eq.f32.partialorder %v3392_v52, 8.507059e+37  ;;  %7148 = vrcp.f32 %v9166_v3  ;;  %v6425_v49 = vmul.f32 -1.442695, %v12519_v5  ;;  %v6012_v24 = vor.u32 %v6770_v14, %v6009_v16  ;;  %vm9204_vm15 = vmor %vm3388_vm8, %vm3389_vm11 }
 0x283   : > { %v6204_v33 = vor.u32 %v6818_v48, %v6201_v30  ;;  %v3387_v38 = vadd.f32 %v9074_v43, %v3386_v11  ;;  %vm3374_vm13 = vweird.f32 %v9084_v51  ;;  %v6040_v28 = vor.u32 %v6780_v17, %v6039_v25 }
 0x284   : > { %v1478_v37 = vpop.f32.mrf.mxu2  ;;  %v6232_v12 = vor.u32 %v6828_v60, %v6231_v63  ;;  %vm3479_vm14 = vweird.f32 %v9093_v20  ;;  %v3460_v52 = vsub.f32 1.0, %v3459_v26  ;;  %2412 = vmatpush.bf16.msrb.mxu2 %v6012_v24  ;;  %v9198_v16 = vmul.f32 %v3291_v29, %v12446_v2  ;;  %vm9214_vm0 = vmor %vm3373_vm9, %vm3374_vm13  ;;  %v12528_v29 = vld [vmem:[#allocation57_spill] sm:$0xff] }
 0x285   : > { %2461 = vmatpush.bf16.msrb.mxu3 %v6204_v33  ;;  %v9195_v14 = vpop.eup %7144  ;;  %v3380_v63 = vor.u32 1.1754944e-38, %v3379_v42  ;;  %7150 = vrcp.f32 %v9178_v53  ;;  %2509 = vmatpush.bf16.msrb.mxu0 %v6040_v28  ;;  %v3477_v10 = vadd.f32 %v9093_v20, %v3476_v56  ;;  %vm9219_vm1 = vcmp.eq.f32.partialorder %v3482_v27, 8.507059e+37  ;;  %vm9232_vm2 = vmor %vm3478_vm10, %vm3479_vm14  ;;  %v6774_v42 = vld [vmem:[#allocation7 + $0x24] sm:$0xf0] }
 0x286   : > { %2558 = vmatpush.bf16.msrb.mxu1 %v6232_v12  ;;  %v7147_v48 = vpop.eup %7146  ;;  %7152 = vpow2.f32 %v6425_v49  ;;  %v3391_v26 = vsel %vm9204_vm15, %v9074_v43, %v3387_v38  ;;  %v3485_v27 = vor.u32 1.1754944e-38, %v3484_v39  ;;  %v3467_v30 = vand.u32 2147483647, %v9072_v46 }
 0x287   : > { %v1527_v47 = vpop.f32.mrf.mxu3  ;;  %v2204_v11 = vpop.f32.mrf.mxu1  ;;  %v3461_v1 = vmul.f32 %v9156_v6, %v3460_v52  ;;  %v3564_v33 = vmul.f32 %v9195_v14, %v9146_v13  ;;  %v9250_v28 = vadd.f32 1.0, %v7147_v48  ;;  %v3469_v12 = vand.u32 2147483648, %v9072_v46 }
 0x288   : > { %v9180_v9 = vadd.f32 %v1527_v47, %v1478_v37  ;;  %v3372_v37 = vadd.f32 %v9084_v51, %v3371_v22  ;;  %v9193_v47 = vmul.f32 %v8898_v40, %v2202_v57  ;;  %v12523_v40 = vld [vmem:[#allocation56_spill] sm:$0xff]  ;;  %v6431_v22 = vmul.f32 -1.442695, %v12528_v29  ;;  %2345 = vmatmul.bf16.gmra.mxu0 %v12514_v34  ;;  %v9238_v24 = vpop.eup %7148  ;;  %v6861_v34 = vld [vmem:[#allocation7 + $0x2e4] sm:$0xf] }
 0x289   : > { %v6424_v17 = vmul.f32 -1.442695, %v12523_v40  ;;  %2394 = vmatmul.bf16.gmra.mxu1 %v12515_v19  ;;  %v3396_v60 = vsel %vm9182_vm12, %v9158_v21, %v3391_v26  ;;  %vm3463_vm4 = vweird.f32 %v9072_v46  ;;  %vm3464_vm5 = vweird.f32 %v9156_v6  ;;  %v12544_v46 = vld [vmem:[#allocation53_spill] sm:$0xff] }
 0x28a   : > { %12516 = vst [vmem:[#allocation50_spill] sm:$0xff] %v9180_v9  ;;  %v2155_v9 = vpop.f32.mrf.mxu0  ;;  %v3376_v43 = vsel %vm9214_vm0, %v9084_v51, %v3372_v37  ;;  %v3481_v51 = vsel %vm9232_vm2, %v9093_v20, %v3477_v10  ;;  %v3574_v37 = vand.u32 2147483648, %v9146_v13  ;;  %vm9271_vm6 = vcmp.eq.f32.partialorder %v3467_v30, 8.507059e+37  ;;  %vm9302_vm8 = vmor %vm3463_vm4, %vm3464_vm5 }
 0x28b   : > { %12520 = vst [vmem:[#allocation52_spill] sm:$0xff] %v9193_v47  ;;  %v2205_v25 = vadd.f32 %v2204_v11, %v2155_v9  ;;  %7154 = vpow2.f32 %v6424_v17  ;;  %v9260_v52 = vpop.eup %7150  ;;  %v12533_v17 = vand.u32 2147483647, %v8984_v54  ;;  %v3572_v2 = vand.u32 2147483647, %v9146_v13 }
 0x28c   : > { %v1481_v56 = vpop.f32.mrf.mxu2  ;;  %7156 = vpow2.f32 %v6431_v22  ;;  %v7153_v20 = vpop.eup %7152  ;;  %v3486_v54 = vsel %vm9219_vm1, %v3485_v27, %v3481_v51  ;;  %v3462_v21 = vadd.f32 %v9156_v6, %v3461_v1  ;;  %v3565_v10 = vsub.f32 1.0, %v3564_v33  ;;  %v12537_v22 = vld [vmem:[#allocation30_spill] sm:$0xff] }
 0x28d   : > { %v9253_v9 = vmul.f32 %v8901_v23, %v2205_v25  ;;  %vm3378_vm3 = vcmp.eq.f32.partialorder %v12533_v17, 8.507059e+37  ;;  %v3549_v23 = vmul.f32 %v9238_v24, %v9166_v3  ;;  %7158 = vrcp.f32 %v9250_v28  ;;  %2301 = vmatmul.bf16.gmra.mxu3 %v12537_v22  ;;  %v6185_v47 = vld [vmem:[#allocation7 + $0x178] sm:$0xf0] }
 0x28e   : > { %v3381_v11 = vsel %vm3378_vm3, %v3380_v63, %v3376_v43  ;;  %v9283_v57 = vmul.f32 %v3396_v60, %v12464_v31  ;;  %v3470_v30 = vor.u32 1.1754944e-38, %v3469_v12  ;;  %vm3568_vm7 = vweird.f32 %v9146_v13  ;;  %v6207_v60 = vld [vmem:[#allocation7 + $0x190] sm:$0xf]  ;;  %v6822_v12 = vld [vmem:[#allocation7 + $0x1a4] sm:$0xf0] }
 0x28f   : > { %v1530_v49 = vpop.f32.mrf.mxu3  ;;  %12532 = vst [vmem:[#allocation57_spill] sm:$0xff] %v9253_v9  ;;  %v2206_v26 = vpop.f32.mrf.mxu1  ;;  %v9286_v25 = vor.u32 1.1754944e-38, %v3574_v37  ;;  %v3550_v1 = vsub.f32 1.0, %v3549_v23  ;;  %v3654_v33 = vmul.f32 %v9260_v52, %v9178_v53  ;;  %v9293_v51 = vadd.f32 1.0, %v7153_v20 }
 0x290   : > { %v9244_v38 = vadd.f32 %v1530_v49, %v1481_v56  ;;  %v6015_v56 = vld [vmem:[#allocation7 + $0x10] sm:$0xf]  ;;  %v12538_v49 = vld [vmem:[#allocation44_spill] sm:$0xff]  ;;  %v3466_v35 = vsel %vm9302_vm8, %v9156_v6, %v3462_v21  ;;  %vm3553_vm9 = vweird.f32 %v9166_v3  ;;  %v6208_v19 = vor.u32 %v6822_v12, %v6207_v60 }
 0x291   : > { %v7155_v27 = vpop.eup %7154  ;;  %v9289_v43 = vmul.f32 %v3381_v11, %v12538_v49  ;;  %v6016_v20 = vor.u32 %v6774_v42, %v6015_v56  ;;  %v12545_v56 = vld [vmem:[#allocation54_spill] sm:$0xff]  ;;  %v12546_v42 = vld [vmem:[#allocation55_spill] sm:$0xff]  ;;  %v3655_v11 = vsub.f32 1.0, %v3654_v33  ;;  %7160 = vrcp.f32 %v9293_v51 }
 0x292   : > { %12531 = vst [vmem:[#allocation56_spill] sm:$0xff] %v9244_v38  ;;  %2252 = vmatmul.bf16.gmra.mxu2 %v12536_v45  ;;  %v2157_v63 = vpop.f32.mrf.mxu0  ;;  %v7157_v39 = vpop.eup %7156  ;;  %v12539_v38 = vld [vmem:[#allocation45_spill] sm:$0xff]  ;;  %2559 = vmatpush.bf16.msrb.mxu1 %v6208_v19  ;;  %vm3569_vm10 = vweird.f32 %v9195_v14  ;;  %vm9330_vm11 = vcmp.eq.f32.partialorder %v3572_v2, 8.507059e+37  ;;  %v3557_v60 = vand.u32 2147483647, %v9166_v3  ;;  %vm3554_vm12 = vweird.f32 %v9238_v24 }
 0x293   : > { %v9296_v37 = vmul.f32 %v3486_v54, %v12539_v38  ;;  %v2207_v23 = vadd.f32 %v2206_v26, %v2157_v63  ;;  %v3566_v38 = vmul.f32 %v9195_v14, %v3565_v10  ;;  %v12543_v54 = vld [vmem:[#allocation51_spill] sm:$0xff]  ;;  %v6377_v63 = vld [vmem:[#allocation7 + $0x2f8] sm:$0xf0]  ;;  %v9317_v26 = vadd.f32 1.0, %v7155_v27  ;;  %2510 = vmatpush.bf16.msrb.mxu0 %v6016_v20  ;;  %v9323_v21 = vpop.eup %7158  ;;  %vm9366_vm14 = vmor %vm3568_vm7, %vm3569_vm10 }
 0x294   : > { %v1483_v17 = vpop.f32.mrf.mxu2  ;;  %v9315_v44 = vadd.f32 %v12544_v46, %v12543_v54  ;;  %v6380_v6 = vor.u32 %v6861_v34, %v6377_v63  ;;  %v3551_v10 = vmul.f32 %v9238_v24, %v3550_v1  ;;  %v9327_v54 = vadd.f32 1.0, %v7157_v39  ;;  %v12549_v34 = vld [vmem:[#allocation43_spill] sm:$0xff]  ;;  %v12551_v1 = vld [vmem:[#allocation60_spill] sm:$0xff]  ;;  %v6872_v46 = vld [vmem:[%s7789_s30 + $0x38] sm:$0xff] }
 0x295   : > { %v3471_v39 = vsel %vm9271_vm6, %v3470_v30, %v3466_v35  ;;  %v3567_v19 = vadd.f32 %v9195_v14, %v3566_v38  ;;  %v3662_v2 = vand.u32 2147483647, %v9178_v53  ;;  %v6430_v33 = vmul.f32 -1.442695, %v12551_v1  ;;  %v6807_v30 = vld [vmem:[#allocation7 + $0x134] sm:$0xf]  ;;  %vm9380_vm0 = vmor %vm3553_vm9, %vm3554_vm12 }
 0x296   : > { %2650 = vmatpush.bf16.msra.mxu3 %v6380_v6  ;;  %v3639_v12 = vmul.f32 %v9323_v21, %v9250_v28  ;;  %7162 = vrcp.f32 %v9317_v26  ;;  %v3552_v35 = vadd.f32 %v9238_v24, %v3551_v10  ;;  %v3656_v48 = vmul.f32 %v9260_v52, %v3655_v11  ;;  %v6161_v38 = vld [vmem:[#allocation7 + $0x148] sm:$0xf0]  ;;  %v12552_v63 = vld [vmem:[#allocation63_spill] sm:$0xff] }
 0x297   : > { %v1532_v31 = vpop.f32.mrf.mxu3  ;;  %7164 = vrcp.f32 %v9327_v54  ;;  %vm3658_vm13 = vweird.f32 %v9178_v53  ;;  %v6353_v6 = vld [vmem:[#allocation7 + $0x2c8] sm:$0xf0]  ;;  %vm3659_vm15 = vweird.f32 %v9260_v52  ;;  %5147 = vmatpush.bf16.msra.mxu0 %v6872_v46  ;;  %v3571_v10 = vsel %vm9366_vm14, %v9195_v14, %v3567_v19 }
 0x298   : > { %v9306_v49 = vadd.f32 %v1532_v31, %v1483_v17  ;;  %v9321_v17 = vadd.f32 %v12546_v42, %v12545_v56  ;;  %v6188_v31 = vor.u32 %v6813_v59, %v6185_v47  ;;  %v3559_v59 = vand.u32 2147483648, %v9166_v3  ;;  %2350 = vmatmul.bf16.gmra.mxu0 %v12536_v45  ;;  %vm9402_vm2 = vmor %vm3658_vm13, %vm3659_vm15 }
 0x299   : > { %v9337_v47 = vmul.f32 %v12549_v34, %v2207_v23  ;;  %v6437_v23 = vmul.f32 -1.442695, %v9315_v44  ;;  %2399 = vmatmul.bf16.gmra.mxu1 %v12537_v22  ;;  %v6443_v56 = vmul.f32 -1.442695, %v12552_v63  ;;  %v6164_v42 = vor.u32 %v6807_v30, %v6161_v38  ;;  %v9360_v34 = vpop.eup %7160  ;;  %v6880_v38 = vld [vmem:[%s7789_s30 + $0x78] sm:$0xff] }
 0x29a   : > { %12542 = vst [vmem:[#allocation44_spill] sm:$0xff] %v9306_v49  ;;  %2601 = vmatpush.bf16.msra.mxu2 %v6188_v31  ;;  %v6436_v20 = vmul.f32 -1.442695, %v9321_v17  ;;  %v6855_v31 = vld [vmem:[#allocation7 + $0x2b4] sm:$0xf]  ;;  %v3664_v49 = vand.u32 2147483648, %v9178_v53  ;;  %7166 = vpow2.f32 %v6430_v33  ;;  %v3556_v46 = vsel %vm9380_vm0, %v9238_v24, %v3552_v35  ;;  %5196 = vmatpush.bf16.msra.mxu1 %v6880_v38 }
 0x29b   : > { %12550 = vst [vmem:[#allocation45_spill] sm:$0xff] %v9337_v47  ;;  %v6356_v30 = vor.u32 %v6855_v31, %v6353_v6  ;;  %vm9384_vm1 = vcmp.eq.f32.partialorder %v3557_v60, 8.507059e+37  ;;  %v3640_v33 = vsub.f32 1.0, %v3639_v12  ;;  %7168 = vpow2.f32 %v6437_v23  ;;  %v12561_v23 = vld [vmem:[#allocation15_spill] sm:$0xff]  ;;  %v12565_v6 = vld [vmem:[#allocation64_spill] sm:$0xff] }
 0x29c   : > { %v3657_v14 = vadd.f32 %v9260_v52, %v3656_v48  ;;  %v3649_v19 = vand.u32 2147483648, %v9250_v28  ;;  %7170 = vpow2.f32 %v6436_v20  ;;  %v9393_v3 = vpop.eup %7162  ;;  %v9396_v60 = vmul.f32 %v3471_v39, %v12478_v62  ;;  %v12564_v39 = vld [vmem:[#allocation17_spill] sm:$0xff] }
 0x29d   : > { %2651 = vmatpush.bf16.msra.mxu3 %v6356_v30  ;;  %v3560_v31 = vor.u32 1.1754944e-38, %v3559_v59  ;;  %v3744_v24 = vmul.f32 %v9360_v34, %v9293_v51  ;;  %7172 = vpow2.f32 %v6443_v56  ;;  %v9409_v20 = vpop.eup %7164  ;;  %v3576_v62 = vsel %vm9330_vm11, %v9286_v25, %v3571_v10 }
 0x29e   : > { %2602 = vmatpush.bf16.msra.mxu2 %v6164_v42  ;;  %vm9414_vm3 = vcmp.eq.f32.partialorder %v3662_v2, 8.507059e+37  ;;  %v3665_v53 = vor.u32 1.1754944e-38, %v3664_v49  ;;  %vm3643_vm4 = vweird.f32 %v9250_v28  ;;  %2462 = vmatmul.bf16.vlgmr.msrb.gmra.mxu3 %v12564_v39  ;;  %v3641_v48 = vmul.f32 %v9323_v21, %v3640_v33 }
 0x29f   : > { %v3561_v35 = vsel %vm9384_vm1, %v3560_v31, %v3556_v46  ;;  %v3647_v56 = vand.u32 2147483647, %v9250_v28  ;;  %v3754_v42 = vand.u32 2147483648, %v9293_v51  ;;  %v3661_v25 = vsel %vm9402_vm2, %v9260_v52, %v3657_v14  ;;  %v2267_v33 = vpop.f32.mrf.mxu3 }
 0x2a0   : > { %v7167_v27 = vpop.eup %7166  ;;  %v9428_v2 = vor.u32 1.1754944e-38, %v3649_v19  ;;  %v3729_v49 = vmul.f32 %v9393_v3, %v9317_v26  ;;  %v6442_v10 = vmul.f32 -1.442695, %v12565_v6  ;;  %v9434_v30 = vmul.f32 %v3576_v62, %v12494_v58 }
 0x2a1   : > { %v7169_v11 = vpop.eup %7168  ;;  %vm3644_vm5 = vweird.f32 %v9323_v21  ;;  %v3745_v38 = vsub.f32 1.0, %v3744_v24  ;;  %v3834_v13 = vmul.f32 %v9409_v20, %v9327_v54  ;;  %v9440_v46 = vmul.f32 %v3561_v35, %v12499_v36 }
 0x2a2   : > { %2413 = vmatmul.bf16.vlgmr.msrb.gmra.mxu2 %v12561_v23  ;;  %v7171_v52 = vpop.eup %7170  ;;  %vm3748_vm6 = vweird.f32 %v9293_v51  ;;  %v3752_v14 = vand.u32 2147483647, %v9293_v51  ;;  %v3666_v58 = vsel %vm9414_vm3, %v3665_v53, %v3661_v25  ;;  %v3642_v12 = vadd.f32 %v9323_v21, %v3641_v48  ;;  %vm9471_vm8 = vmor %vm3643_vm4, %vm3644_vm5 }
 0x2a3   : > { %v7173_v31 = vpop.eup %7172  ;;  %vm9447_vm7 = vcmp.eq.f32.partialorder %v3647_v56, 8.507059e+37  ;;  %v9451_v62 = vor.u32 1.1754944e-38, %v3754_v42  ;;  %v9453_v47 = vadd.f32 1.0, %v7167_v27  ;;  %v3730_v36 = vsub.f32 1.0, %v3729_v49  ;;  %v12571_v49 = vld [vmem:[#allocation58_spill] sm:$0xff] }
 0x2a4   : > { %v9455_v35 = vadd.f32 1.0, %v7169_v11  ;;  %7174 = vpow2.f32 %v6442_v10  ;;  %v3746_v59 = vmul.f32 %v9360_v34, %v3745_v38  ;;  %v3737_v53 = vand.u32 2147483647, %v9317_v26  ;;  %v12572_v10 = vld [vmem:[#allocation59_spill] sm:$0xff] }
 0x2a5   : > { %v2218_v9 = vpop.f32.mrf.mxu2  ;;  %v2316_v22 = vpop.f32.mrf.mxu0  ;;  %v3835_v48 = vsub.f32 1.0, %v3834_v13  ;;  %v9462_v56 = vadd.f32 1.0, %v7171_v52  ;;  %v9465_v42 = vmul.f32 %v3666_v58, %v12505_v61  ;;  %vm3733_vm9 = vweird.f32 %v9317_v26  ;;  %v6137_v58 = vld [vmem:[#allocation7 + $0x118] sm:$0xf0] }
 0x2a6   : > { %v2268_v19 = vadd.f32 %v2267_v33, %v2218_v9  ;;  %v2365_v25 = vpop.f32.mrf.mxu1  ;;  %v9480_v11 = vadd.f32 %v12572_v10, %v12571_v49  ;;  %v3646_v61 = vsel %vm9471_vm8, %v9323_v21, %v3642_v12  ;;  %vm3749_vm10 = vweird.f32 %v9360_v34  ;;  %v12576_v21 = vld [vmem:[#allocation62_spill] sm:$0xff]  ;;  %v6849_v12 = vld [vmem:[#allocation7 + $0x284] sm:$0xf] }
 0x2a7   : > { %v2366_v38 = vadd.f32 %v2365_v25, %v2316_v22  ;;  %vm9486_vm11 = vcmp.eq.f32.partialorder %v3752_v14, 8.507059e+37  ;;  %v3739_v13 = vand.u32 2147483648, %v9317_v26  ;;  %7176 = vrcp.f32 %v9453_v47  ;;  %v12575_v22 = vld [vmem:[#allocation61_spill] sm:$0xff]  ;;  %v2269_v27 = vpop.f32.mrf.mxu3  ;;  %v6329_v10 = vld [vmem:[#allocation7 + $0x298] sm:$0xf0]  ;;  %vm9521_vm14 = vmor %vm3748_vm6, %vm3749_vm10 }
 0x2a8   : > { %v9458_v9 = vmul.f32 %v9125_v7, %v2268_v19  ;;  %v9476_v7 = vadd.f32 1.0, %v7173_v31  ;;  %2511 = vmatmul.bf16.vlgmr.msrb.gmra.mxu0 %v12561_v23  ;;  %v3731_v33 = vmul.f32 %v9393_v3, %v3730_v36  ;;  %7178 = vrcp.f32 %v9455_v35  ;;  %v6801_v31 = vld [vmem:[#allocation7 + $0x104] sm:$0xf] }
 0x2a9   : > { %v9497_v52 = vadd.f32 %v12576_v21, %v12575_v22  ;;  %v9500_v14 = vmul.f32 %v9039_v55, %v2366_v38  ;;  %2560 = vmatmul.bf16.vlgmr.msrb.gmra.mxu1 %v12564_v39  ;;  %v3747_v25 = vadd.f32 %v9360_v34, %v3746_v59  ;;  %v3836_v36 = vmul.f32 %v9409_v20, %v3835_v48  ;;  %v6871_v22 = vld [vmem:[%s7789_s30 + $0x30] sm:$0xff] }
 0x2aa   : > { %12568 = vst [vmem:[#allocation51_spill] sm:$0xff] %v9458_v9  ;;  %7180 = vrcp.f32 %v9462_v56  ;;  %v6140_v49 = vor.u32 %v6801_v31, %v6137_v58  ;;  %v6879_v21 = vld [vmem:[%s7789_s30 + $0x70] sm:$0xff]  ;;  %v7175_v23 = vpop.eup %7174  ;;  %v6449_v55 = vmul.f32 -1.442695, %v9480_v11  ;;  %v6332_v39 = vor.u32 %v6849_v12, %v6329_v10  ;;  %5148 = vmatpush.bf16.msra.mxu0 %v6871_v22  ;;  %v12583_v10 = vld [vmem:[#allocation19_spill] sm:$0xff] }
 0x2ab   : > { %12577 = vst [vmem:[#allocation53_spill] sm:$0xff] %v9500_v14  ;;  %7182 = vrcp.f32 %v9476_v7  ;;  %vm3838_vm12 = vweird.f32 %v9327_v54  ;;  %vm3839_vm13 = vweird.f32 %v9409_v20  ;;  %v3842_v59 = vand.u32 2147483647, %v9327_v54  ;;  %5197 = vmatpush.bf16.msra.mxu1 %v6879_v21 }
 0x2ac   : > { %v3844_v48 = vand.u32 2147483648, %v9327_v54  ;;  %2603 = vmatpush.bf16.msra.mxu2 %v6140_v49  ;;  %v3651_v31 = vsel %vm9447_vm7, %v9428_v2, %v3646_v61  ;;  %v3732_v58 = vadd.f32 %v9393_v3, %v3731_v33  ;;  %vm3734_vm15 = vweird.f32 %v9393_v3  ;;  %2652 = vmatpush.bf16.msra.mxu3 %v6332_v39  ;;  %vm9549_vm1 = vmor %vm3838_vm12, %vm3839_vm13 }
 0x2ad   : > { %v2220_v19 = vpop.f32.mrf.mxu2  ;;  %v2318_v12 = vpop.f32.mrf.mxu0  ;;  %v3751_v51 = vsel %vm9521_vm14, %v9360_v34, %v3747_v25  ;;  %vm9535_vm0 = vcmp.eq.f32.partialorder %v3737_v53, 8.507059e+37  ;;  %v3837_v61 = vadd.f32 %v9409_v20, %v3836_v36  ;;  %v9540_v33 = vadd.f32 1.0, %v7175_v23  ;;  %v12586_v25 = vld [vmem:[#allocation21_spill] sm:$0xff]  ;;  %vm9566_vm2 = vmor %vm3733_vm9, %vm3734_vm15 }
 0x2ae   : > { %v2270_v38 = vadd.f32 %v2269_v27, %v2220_v19  ;;  %v9530_v24 = vpop.eup %7176  ;;  %v2367_v49 = vpop.f32.mrf.mxu1  ;;  %7184 = vpow2.f32 %v6449_v55  ;;  %v6448_v34 = vmul.f32 -1.442695, %v9497_v52  ;;  %2467 = vmatmul.bf16.gmra.mxu3 %v12586_v25  ;;  %v9560_v22 = vmul.f32 %v3651_v31, %v12513_v4 }
 0x2af   : > { %v2368_v53 = vadd.f32 %v2367_v49, %v2318_v12  ;;  %v3740_v21 = vor.u32 1.1754944e-38, %v3739_v13  ;;  %vm9570_vm3 = vcmp.eq.f32.partialorder %v3842_v59, 8.507059e+37  ;;  %v3756_v4 = vsel %vm9486_vm11, %v9451_v62, %v3751_v51  ;;  %v2272_v62 = vpop.f32.mrf.mxu3  ;;  %v12592_v49 = vld [vmem:[#allocation65_spill] sm:$0xff] }
 0x2b0   : > { %v9528_v27 = vmul.f32 %v9131_v8, %v2270_v38  ;;  %v9543_v8 = vpop.eup %7178  ;;  %v3845_v38 = vor.u32 1.1754944e-38, %v3844_v48  ;;  %v3736_v26 = vsel %vm9566_vm2, %v9393_v3, %v3732_v58  ;;  %v3829_v31 = vand.u32 2147483648, %v9453_v47 }
 0x2b1   : > { %v9557_v36 = vpop.eup %7180  ;;  %v9584_v12 = vmul.f32 %v9128_v18, %v2368_v53  ;;  %v3841_v59 = vsel %vm9549_vm1, %v9409_v20, %v3837_v61  ;;  %v3819_v48 = vmul.f32 %v9530_v24, %v9453_v47  ;;  %v3934_v28 = vand.u32 2147483648, %v9455_v35 }
 0x2b2   : > { %12580 = vst [vmem:[#allocation54_spill] sm:$0xff] %v9528_v27  ;;  %2418 = vmatmul.bf16.gmra.mxu2 %v12583_v10  ;;  %v9574_v19 = vpop.eup %7182  ;;  %7186 = vrcp.f32 %v9540_v33  ;;  %v3924_v3 = vmul.f32 %v9543_v8, %v9455_v35  ;;  %v9598_v51 = vmul.f32 %v3756_v4, %v12519_v5  ;;  %v9602_v20 = vmul.f32 %v9557_v36, %v9462_v56  ;;  %v12596_v27 = vld [vmem:[#allocation66_spill] sm:$0xff] }
 0x2b3   : > { %12591 = vst [vmem:[#allocation55_spill] sm:$0xff] %v9584_v12  ;;  %7188 = vpow2.f32 %v6448_v34  ;;  %v9606_v61 = vmul.f32 %v9574_v19, %v9476_v7  ;;  %v6455_v39 = vmul.f32 -1.442695, %v12592_v49  ;;  %v3741_v34 = vsel %vm9535_vm0, %v3740_v21, %v3736_v26 }
 0x2b4   : > { %v7185_v53 = vpop.eup %7184  ;;  %v9618_v18 = vor.u32 1.1754944e-38, %v3829_v31  ;;  %v9620_v23 = vor.u32 1.1754944e-38, %v3934_v28  ;;  %v3820_v2 = vsub.f32 1.0, %v3819_v48  ;;  %v3925_v21 = vsub.f32 1.0, %v3924_v3  ;;  %v6795_v28 = vld [vmem:[#allocation7 + $0xd4] sm:$0xf] }
 0x2b5   : > { %v2223_v13 = vpop.f32.mrf.mxu2  ;;  %v2321_v5 = vpop.f32.mrf.mxu0  ;;  %v3919_v26 = vand.u32 2147483648, %v9462_v56  ;;  %v9628_v55 = vadd.f32 1.0, %v7185_v53  ;;  %7190 = vpow2.f32 %v6455_v39  ;;  %v9632_v31 = vmul.f32 %v3741_v34, %v12523_v40  ;;  %v6113_v40 = vld [vmem:[#allocation7 + $0xe8] sm:$0xf0]  ;;  %v6843_v3 = vld [vmem:[#allocation7 + $0x254] sm:$0xf] }
 0x2b6   : > { %v2273_v58 = vadd.f32 %v2272_v62, %v2223_v13  ;;  %v3846_v62 = vsel %vm9570_vm3, %v3845_v38, %v3841_v59  ;;  %v2370_v12 = vpop.f32.mrf.mxu1  ;;  %vm3823_vm4 = vweird.f32 %v9453_v47  ;;  %vm3824_vm5 = vweird.f32 %v9530_v24  ;;  %v6305_v53 = vld [vmem:[#allocation7 + $0x268] sm:$0xf0] }
 0x2b7   : > { %v2371_v54 = vadd.f32 %v2370_v12, %v2321_v5  ;;  %v9635_v59 = vmul.f32 %v3846_v62, %v12528_v29  ;;  %vm3928_vm6 = vweird.f32 %v9455_v35  ;;  %vm3929_vm7 = vweird.f32 %v9543_v8  ;;  %v12595_v29 = vld [vmem:[#allocation70_spill] sm:$0xff]  ;;  %v6870_v34 = vld [vmem:[%s7789_s30 + $0x28] sm:$0xff]  ;;  %vm9709_vm15 = vmor %vm3823_vm4, %vm3824_vm5 }
 0x2b8   : > { %v9614_v4 = vmul.f32 %v9198_v16, %v2273_v58  ;;  %v9624_v13 = vpop.eup %7186  ;;  %v3910_v16 = vsub.f32 1.0, %v9602_v20  ;;  %v4015_v58 = vsub.f32 1.0, %v9606_v61  ;;  %2516 = vmatmul.bf16.gmra.mxu0 %v12583_v10  ;;  %vm4018_vm8 = vweird.f32 %v9476_v7  ;;  %v2274_v61 = vpop.f32.mrf.mxu3  ;;  %v6878_v5 = vld [vmem:[%s7789_s30 + $0x68] sm:$0xff]  ;;  %vm9738_vm2 = vmor %vm3928_vm6, %vm3929_vm7 }
 0x2b9   : > { %v7189_v38 = vpop.eup %7188  ;;  %v9641_v12 = vmul.f32 %v9149_v32, %v2371_v54  ;;  %2565 = vmatmul.bf16.gmra.mxu1 %v12586_v25  ;;  %v6454_v20 = vmul.f32 -1.442695, %v12595_v29  ;;  %v6116_v39 = vor.u32 %v6795_v28, %v6113_v40  ;;  %v4022_v32 = vand.u32 2147483647, %v9476_v7  ;;  %v12597_v28 = vld [vmem:[#allocation67_spill] sm:$0xff]  ;;  %5149 = vmatpush.bf16.msra.mxu0 %v6870_v34 }
 0x2ba   : > { %12593 = vst [vmem:[#allocation43_spill] sm:$0xff] %v9614_v4  ;;  %v3999_v54 = vmul.f32 %v9624_v13, %v9540_v33  ;;  %v6308_v14 = vor.u32 %v6843_v3, %v6305_v53  ;;  %v3821_v25 = vmul.f32 %v9530_v24, %v3820_v2  ;;  %vm3913_vm9 = vweird.f32 %v9462_v56  ;;  %5198 = vmatpush.bf16.msra.mxu1 %v6878_v5  ;;  %v12599_v3 = vld [vmem:[#allocation68_spill] sm:$0xff]  ;;  %v12602_v53 = vld [vmem:[#allocation23_spill] sm:$0xff] }
 0x2bb   : > { %12594 = vst [vmem:[#allocation60_spill] sm:$0xff] %v9641_v12  ;;  %v9654_v10 = vor.u32 1.1754944e-38, %v3919_v26  ;;  %v9656_v9 = vadd.f32 1.0, %v7189_v38  ;;  %v9660_v40 = vadd.f32 %v12597_v28, %v12596_v27  ;;  %2604 = vmatpush.bf16.msra.mxu2 %v6116_v39  ;;  %v3926_v45 = vmul.f32 %v9543_v8, %v3925_v21  ;;  %v7191_v26 = vpop.eup %7190 }
 0x2bc   : > { %v4024_v41 = vand.u32 2147483648, %v9476_v7  ;;  %7192 = vrcp.f32 %v9628_v55  ;;  %2653 = vmatpush.bf16.msra.mxu3 %v6308_v14  ;;  %v3911_v38 = vmul.f32 %v9557_v36, %v3910_v16  ;;  %v4016_v27 = vmul.f32 %v9574_v19, %v4015_v58 }
 0x2bd   : > { %v2225_v48 = vpop.f32.mrf.mxu2  ;;  %7194 = vpow2.f32 %v6454_v20  ;;  %v12603_v34 = vand.u32 2147483647, %v9453_v47  ;;  %vm9681_vm11 = vcmp.eq.f32.partialorder %v4022_v32, 8.507059e+37  ;;  %v4000_v16 = vsub.f32 1.0, %v3999_v54  ;;  %v12608_v20 = vld [vmem:[#allocation25_spill] sm:$0xff] }
 0x2be   : > { %v2275_v62 = vadd.f32 %v2274_v61, %v2225_v48  ;;  %v2323_v48 = vpop.f32.mrf.mxu0  ;;  %v12600_v61 = vld [vmem:[#allocation69_spill] sm:$0xff]  ;;  %v2372_v21 = vpop.f32.mrf.mxu1  ;;  %vm4003_vm12 = vweird.f32 %v9540_v33  ;;  %2472 = vmatmul.bf16.gmra.mxu3 %v12608_v20  ;;  %v12609_v28 = vand.u32 2147483647, %v9455_v35  ;;  %vm4019_vm14 = vweird.f32 %v9574_v19 }
 0x2bf   : > { %v9672_v39 = vadd.f32 %v12600_v61, %v12599_v3  ;;  %vm9677_vm10 = vcmp.eq.f32.partialorder %v12603_v34, 8.507059e+37  ;;  %v2373_v58 = vadd.f32 %v2372_v21, %v2323_v48  ;;  %7196 = vrcp.f32 %v9656_v9  ;;  %vm9723_vm1 = vmor %vm4018_vm8, %vm4019_vm14 }
 0x2c0   : > { %v9666_v2 = vmul.f32 %v9289_v43, %v2275_v62  ;;  %v3822_v62 = vadd.f32 %v9530_v24, %v3821_v25  ;;  %vm9692_vm13 = vcmp.eq.f32.partialorder %v12609_v28, 8.507059e+37  ;;  %v6461_v32 = vmul.f32 -1.442695, %v9660_v40 }
 0x2c1   : > { %12601 = vst [vmem:[#allocation64_spill] sm:$0xff] %v9672_v39  ;;  %v3927_v54 = vadd.f32 %v9543_v8, %v3926_v45  ;;  %v4025_v48 = vor.u32 1.1754944e-38, %v4024_v41  ;;  %v9700_v61 = vadd.f32 1.0, %v7191_v26  ;;  %v9703_v21 = vmul.f32 %v9283_v57, %v2373_v58  ;;  %v2277_v26 = vpop.f32.mrf.mxu3 }
 0x2c2   : > { %12598 = vst [vmem:[#allocation63_spill] sm:$0xff] %v9666_v2  ;;  %2423 = vmatmul.bf16.gmra.mxu2 %v12602_v53  ;;  %v3912_v28 = vadd.f32 %v9557_v36, %v3911_v38  ;;  %vm3914_vm0 = vweird.f32 %v9557_v36  ;;  %v4017_v41 = vadd.f32 %v9574_v19, %v4016_v27  ;;  %v6460_v45 = vmul.f32 -1.442695, %v9672_v39  ;;  %v9717_v57 = vpop.eup %7192  ;;  %v12617_v38 = vld [vmem:[#allocation73_spill] sm:$0xff] }
 0x2c3   : > { %12612 = vst [vmem:[#allocation58_spill] sm:$0xff] %v9703_v21  ;;  %v4001_v58 = vmul.f32 %v9624_v13, %v4000_v16  ;;  %v6467_v5 = vmul.f32 -1.442695, %v12617_v38  ;;  %v7195_v2 = vpop.eup %7194  ;;  %v3826_v39 = vsel %vm9709_vm15, %v9530_v24, %v3822_v62  ;;  %v4007_v16 = vand.u32 2147483647, %v9540_v33  ;;  %vm9751_vm3 = vmor %vm3913_vm9, %vm3914_vm0  ;;  %v6877_v24 = vld [vmem:[%s7789_s30 + $0x60] sm:$0xff] }
 0x2c4   : > { %7198 = vpow2.f32 %v6461_v32  ;;  %vm4004_vm4 = vweird.f32 %v9624_v13  ;;  %v4104_v34 = vmul.f32 %v9717_v57, %v9628_v55  ;;  %v9771_v12 = vadd.f32 1.0, %v7195_v2  ;;  %5199 = vmatpush.bf16.msra.mxu1 %v6877_v24 }
 0x2c5   : > { %v2228_v25 = vpop.f32.mrf.mxu2  ;;  %7200 = vrcp.f32 %v9700_v61  ;;  %v9760_v32 = vpop.eup %7196  ;;  %v4002_v27 = vadd.f32 %v9624_v13, %v4001_v58  ;;  %vm9782_vm6 = vmor %vm4003_vm12, %vm4004_vm4  ;;  %vm9786_vm7 = vcmp.eq.f32.partialorder %v4007_v16, 8.507059e+37  ;;  %vm4108_vm8 = vweird.f32 %v9628_v55 }
 0x2c6   : > { %v2278_v4 = vadd.f32 %v2277_v26, %v2228_v25  ;;  %v4009_v25 = vand.u32 2147483648, %v9540_v33  ;;  %v3931_v26 = vsel %vm9738_vm2, %v9543_v8, %v3927_v54  ;;  %v2326_v35 = vpop.f32.mrf.mxu0  ;;  %v3916_v8 = vsel %vm9751_vm3, %v9557_v36, %v3912_v28  ;;  %v2375_v7 = vpop.f32.mrf.mxu1  ;;  %v6789_v28 = vld [vmem:[#allocation7 + $0xa4] sm:$0xf] }
 0x2c7   : > { %v4021_v54 = vsel %vm9723_vm1, %v9574_v19, %v4017_v41  ;;  %7202 = vpow2.f32 %v6460_v45  ;;  %v12623_v36 = vand.u32 2147483647, %v9462_v56  ;;  %v3936_v56 = vsel %vm9692_vm13, %v9620_v23, %v3931_v26  ;;  %v6089_v41 = vld [vmem:[#allocation7 + $0xb8] sm:$0xf0]  ;;  %v6837_v45 = vld [vmem:[#allocation7 + $0x224] sm:$0xf] }
 0x2c8   : > { %v9758_v62 = vmul.f32 %v9396_v60, %v2278_v4  ;;  %7204 = vpow2.f32 %v6467_v5  ;;  %v2376_v60 = vadd.f32 %v2375_v7, %v2326_v35  ;;  %v3831_v4 = vsel %vm9677_vm10, %v9618_v18, %v3826_v39  ;;  %2521 = vmatmul.bf16.gmra.mxu0 %v12602_v53  ;;  %v6869_v26 = vld [vmem:[%s7789_s30 + $0x20] sm:$0xff] }
 0x2c9   : > { %vm3918_vm5 = vcmp.eq.f32.partialorder %v12623_v36, 8.507059e+37  ;;  %v4010_v5 = vor.u32 1.1754944e-38, %v4009_v25  ;;  %v4089_v33 = vmul.f32 %v9760_v32, %v9656_v9  ;;  %2570 = vmatmul.bf16.gmra.mxu1 %v12608_v20  ;;  %v4026_v23 = vsel %vm9681_vm11, %v4025_v48, %v4021_v54  ;;  %v2279_v58 = vpop.f32.mrf.mxu3  ;;  %v6281_v25 = vld [vmem:[#allocation7 + $0x238] sm:$0xf0]  ;;  %5150 = vmatpush.bf16.msra.mxu0 %v6869_v26  ;;  %v12635_v26 = vld [vmem:[#allocation75_spill] sm:$0xff] }
 0x2ca   : > { %12622 = vst [vmem:[#allocation59_spill] sm:$0xff] %v9758_v62  ;;  %v3921_v18 = vsel %vm3918_vm5, %v9654_v10, %v3916_v8  ;;  %v9798_v39 = vmul.f32 %v9296_v37, %v2376_v60  ;;  %v7199_v47 = vpop.eup %7198  ;;  %v4105_v3 = vsub.f32 1.0, %v4104_v34  ;;  %v4114_v10 = vand.u32 2147483648, %v9628_v55 }
 0x2cb   : > { %v6092_v16 = vor.u32 %v6789_v28, %v6089_v41  ;;  %v9806_v37 = vpop.eup %7200  ;;  %v4006_v35 = vsel %vm9782_vm6, %v9624_v13, %v4002_v27  ;;  %7206 = vrcp.f32 %v9771_v12  ;;  %v6284_v7 = vor.u32 %v6837_v45, %v6281_v25  ;;  %v12631_v41 = vld [vmem:[#allocation29_spill] sm:$0xff] }
 0x2cc   : > { %12628 = vst [vmem:[#allocation61_spill] sm:$0xff] %v9798_v39  ;;  %v9813_v48 = vmul.f32 %v3831_v4, %v12551_v1  ;;  %v9816_v54 = vmul.f32 %v3936_v56, %v9315_v44  ;;  %v4112_v34 = vand.u32 2147483647, %v9628_v55  ;;  %v9821_v13 = vmul.f32 %v3921_v18, %v9321_v17  ;;  %v12630_v18 = vld [vmem:[#allocation27_spill] sm:$0xff] }
 0x2cd   : > { %v2230_v43 = vpop.f32.mrf.mxu2  ;;  %v7203_v14 = vpop.eup %7202  ;;  %2605 = vmatpush.bf16.msra.mxu2 %v6092_v16  ;;  %v4090_v27 = vsub.f32 1.0, %v4089_v33  ;;  %v9823_v36 = vadd.f32 1.0, %v7199_v47  ;;  %2654 = vmatpush.bf16.msra.mxu3 %v6284_v7  ;;  %v9829_v44 = vmul.f32 %v4026_v23, %v12552_v63  ;;  %v4011_v4 = vsel %vm9786_vm7, %v4010_v5, %v4006_v35  ;;  %v12636_v35 = vld [vmem:[#allocation71_spill] sm:$0xff]  ;;  %v6831_v47 = vld [vmem:[#allocation7 + $0x1f4] sm:$0xf]  ;;  %v12646_v63 = vld [vmem:[#allocation78_spill] sm:$0xff] }
 0x2ce   : > { %v2280_v8 = vadd.f32 %v2279_v58, %v2230_v43  ;;  %v7205_v60 = vpop.eup %7204  ;;  %v2328_v19 = vpop.f32.mrf.mxu0  ;;  %v4106_v56 = vmul.f32 %v9717_v57, %v4105_v3  ;;  %v4115_v43 = vor.u32 1.1754944e-38, %v4114_v10  ;;  %vm4093_vm9 = vweird.f32 %v9656_v9  ;;  %2477 = vmatmul.bf16.gmra.mxu3 %v12631_v41 }
 0x2cf   : > { %v2377_v17 = vpop.f32.mrf.mxu1  ;;  %v4097_v33 = vand.u32 2147483647, %v9656_v9  ;;  %vm9840_vm10 = vcmp.eq.f32.partialorder %v4112_v34, 8.507059e+37  ;;  %v4099_v2 = vand.u32 2147483648, %v9656_v9  ;;  %v4194_v5 = vmul.f32 %v9806_v37, %v9700_v61 }
 0x2d0   : > { %v9826_v1 = vmul.f32 %v9440_v46, %v2280_v8  ;;  %v9837_v46 = vadd.f32 1.0, %v7203_v14  ;;  %v2378_v28 = vadd.f32 %v2377_v17, %v2328_v19  ;;  %v9847_v45 = vadd.f32 1.0, %v7205_v60  ;;  %v12637_v8 = vld [vmem:[#allocation72_spill] sm:$0xff] }
 0x2d1   : > { %v9851_v23 = vpop.eup %7206  ;;  %v9854_v3 = vmul.f32 %v4011_v4, %v12565_v6  ;;  %v4091_v10 = vmul.f32 %v9760_v32, %v4090_v27  ;;  %7208 = vrcp.f32 %v9823_v36  ;;  %v4107_v25 = vadd.f32 %v9717_v57, %v4106_v56  ;;  %v2282_v6 = vpop.f32.mrf.mxu3 }
 0x2d2   : > { %12629 = vst [vmem:[#allocation62_spill] sm:$0xff] %v9826_v1  ;;  %2428 = vmatmul.bf16.gmra.mxu2 %v12630_v18  ;;  %v9859_v58 = vmul.f32 %v9434_v30, %v2378_v28  ;;  %vm4109_vm11 = vweird.f32 %v9717_v57  ;;  %v6466_v24 = vmul.f32 -1.442695, %v12635_v26  ;;  %v9866_v7 = vadd.f32 %v12637_v8, %v12636_v35  ;;  %v12642_v30 = vld [vmem:[#allocation77_spill] sm:$0xff] }
 0x2d3   : > { %vm4198_vm12 = vweird.f32 %v9700_v61  ;;  %7210 = vrcp.f32 %v9837_v46  ;;  %v4195_v34 = vsub.f32 1.0, %v4194_v5  ;;  %v4204_v60 = vand.u32 2147483648, %v9700_v61  ;;  %vm9880_vm13 = vmor %vm4108_vm8, %vm4109_vm11 }
 0x2d4   : > { %12634 = vst [vmem:[#allocation65_spill] sm:$0xff] %v9859_v58  ;;  %v9875_v27 = vmul.f32 %v9851_v23, %v9771_v12  ;;  %7212 = vrcp.f32 %v9847_v45  ;;  %v4092_v4 = vadd.f32 %v9760_v32, %v4091_v10  ;;  %vm4094_vm14 = vweird.f32 %v9760_v32  ;;  %v6868_v58 = vld [vmem:[%s7789_s30 + $0x18] sm:$0xff] }
 0x2d5   : > { %v2233_v16 = vpop.f32.mrf.mxu2  ;;  %v4202_v56 = vand.u32 2147483647, %v9700_v61  ;;  %v4111_v5 = vsel %vm9880_vm13, %v9717_v57, %v4107_v25  ;;  %vm9893_vm15 = vcmp.eq.f32.partialorder %v4097_v33, 8.507059e+37  ;;  %7214 = vpow2.f32 %v6466_v24  ;;  %vm9904_vm0 = vmor %vm4093_vm9, %vm4094_vm14  ;;  %v6257_v57 = vld [vmem:[#allocation7 + $0x208] sm:$0xf0]  ;;  %5151 = vmatpush.bf16.msra.mxu0 %v6868_v58 }
 0x2d6   : > { %v2283_v14 = vadd.f32 %v2282_v6, %v2233_v16  ;;  %v2331_v17 = vpop.f32.mrf.mxu0  ;;  %v6473_v16 = vmul.f32 -1.442695, %v9866_v7  ;;  %v4100_v8 = vor.u32 1.1754944e-38, %v4099_v2  ;;  %v4189_v6 = vand.u32 2147483648, %v9771_v12 }
 0x2d7   : > { %v2380_v10 = vpop.f32.mrf.mxu1  ;;  %v9898_v35 = vpop.eup %7208  ;;  %v4196_v33 = vmul.f32 %v9806_v37, %v4195_v34  ;;  %v9909_v25 = vor.u32 1.1754944e-38, %v4204_v60  ;;  %v4180_v24 = vsub.f32 1.0, %v9875_v27  ;;  %v4187_v19 = vand.u32 2147483647, %v9771_v12  ;;  %v6783_v27 = vld [vmem:[#allocation7 + $0x74] sm:$0xf] }
 0x2d8   : > { %v9888_v28 = vmul.f32 %v9560_v22, %v2283_v14  ;;  %v6472_v22 = vmul.f32 -1.442695, %v12642_v30  ;;  %v2381_v14 = vadd.f32 %v2380_v10, %v2331_v17  ;;  %2526 = vmatmul.bf16.gmra.mxu0 %v12630_v18  ;;  %v4116_v17 = vsel %vm9840_vm10, %v4115_v43, %v4111_v5  ;;  %v6065_v10 = vld [vmem:[#allocation7 + $0x88] sm:$0xf0] }
 0x2d9   : > { %v9914_v2 = vpop.eup %7210  ;;  %v4096_v9 = vsel %vm9904_vm0, %v9760_v32, %v4092_v4  ;;  %vm4199_vm1 = vweird.f32 %v9806_v37  ;;  %2575 = vmatmul.bf16.gmra.mxu1 %v12631_v41  ;;  %v4284_v43 = vmul.f32 %v9898_v35, %v9823_v36  ;;  %7216 = vpow2.f32 %v6473_v16  ;;  %v2284_v4 = vpop.f32.mrf.mxu3 }
 0x2da   : > { %v9923_v34 = vmul.f32 %v9465_v42, %v2381_v14  ;;  %v9926_v39 = vpop.eup %7212  ;;  %v6385_v32 = vmul.f32 -1.442695, %v12646_v63  ;;  %v6068_v5 = vor.u32 %v6783_v27, %v6065_v10  ;;  %v6876_v42 = vld [vmem:[%s7789_s30 + $0x58] sm:$0xff]  ;;  %v9933_v14 = vor.u32 1.1754944e-38, %v4189_v6  ;;  %vm9951_vm4 = vmor %vm4198_vm12, %vm4199_vm1 }
 0x2db   : > { %7218 = vpow2.f32 %v6472_v22  ;;  %v6260_v41 = vor.u32 %v6831_v47, %v6257_v57  ;;  %v7215_v18 = vpop.eup %7214  ;;  %v9936_v62 = vmul.f32 %v4116_v17, %v9480_v11  ;;  %v9939_v1 = vadd.f32 %v9806_v37, %v4196_v33  ;;  %5200 = vmatpush.bf16.msra.mxu1 %v6876_v42 }
 0x2dc   : > { %12645 = vst [vmem:[#allocation70_spill] sm:$0xff] %v9923_v34  ;;  %vm4183_vm2 = vweird.f32 %v9771_v12  ;;  %vm4184_vm3 = vweird.f32 %v9851_v23  ;;  %v4269_v16 = vmul.f32 %v9914_v2, %v9837_v46  ;;  %2606 = vmatpush.bf16.msra.mxu2 %v6068_v5  ;;  %v4101_v6 = vsel %vm9893_vm15, %v4100_v8, %v4096_v9  ;;  %v12651_v8 = vld [vmem:[#allocation79_spill] sm:$0xff]  ;;  %v6233_v34 = vld [vmem:[#allocation7 + $0x1d8] sm:$0xf0] }
 0x2dd   : > { %v2235_v60 = vpop.f32.mrf.mxu2  ;;  %v4294_v47 = vand.u32 2147483648, %v9823_v36  ;;  %v4374_v22 = vmul.f32 %v9926_v39, %v9847_v45  ;;  %2655 = vmatpush.bf16.msra.mxu3 %v6260_v41  ;;  %vm9961_vm5 = vcmp.eq.f32.partialorder %v4202_v56, 8.507059e+37  ;;  %v4181_v61 = vmul.f32 %v9851_v23, %v4180_v24  ;;  %vm10012_vm9 = vmor %vm4183_vm2, %vm4184_vm3 }
 0x2de   : > { %v2285_v21 = vadd.f32 %v2284_v4, %v2235_v60  ;;  %v2333_v33 = vpop.f32.mrf.mxu0  ;;  %v4285_v55 = vsub.f32 1.0, %v4284_v43  ;;  %7220 = vpow2.f32 %v6385_v32  ;;  %v6384_v9 = vmul.f32 -1.442695, %v12651_v8  ;;  %2482 = vmatmul.bf16.gmra.mxu3 %v12471_v0  ;;  %v6041_v43 = vld [vmem:[#allocation7 + $0x58] sm:$0xf0] }
 0x2df   : > { %v2382_v60 = vpop.f32.mrf.mxu1  ;;  %vm4288_vm6 = vweird.f32 %v9823_v36  ;;  %v7217_v56 = vpop.eup %7216  ;;  %v9974_v27 = vmul.f32 %v4101_v6, %v9497_v52  ;;  %v4201_v24 = vsel %vm9951_vm4, %v9806_v37, %v9939_v1  ;;  %v4270_v10 = vsub.f32 1.0, %v4269_v16  ;;  %v6825_v16 = vld [vmem:[#allocation7 + $0x1c4] sm:$0xf] }
 0x2e0   : > { %v9959_v17 = vmul.f32 %v9632_v31, %v2285_v21  ;;  %v4292_v31 = vand.u32 2147483647, %v9823_v36  ;;  %v9970_v21 = vadd.f32 1.0, %v7215_v18  ;;  %v2383_v41 = vadd.f32 %v2382_v60, %v2333_v33 }
 0x2e1   : > { %v7219_v32 = vpop.eup %7218  ;;  %vm9982_vm7 = vcmp.eq.f32.partialorder %v4187_v19, 8.507059e+37  ;;  %v9986_v4 = vor.u32 1.1754944e-38, %v4294_v47  ;;  %v4375_v52 = vsub.f32 1.0, %v4374_v22  ;;  %v4182_v37 = vadd.f32 %v9851_v23, %v4181_v61  ;;  %v2287_v19 = vpop.f32.mrf.mxu3  ;;  %v12655_v61 = vld [vmem:[#allocation74_spill] sm:$0xff]  ;;  %v6777_v47 = vld [vmem:[#allocation7 + $0x44] sm:$0xf] }
 0x2e2   : > { %2433 = vmatmul.bf16.gmra.mxu2 %v12466_v15  ;;  %v9990_v57 = vmul.f32 %v9598_v51, %v2383_v41  ;;  %v4286_v1 = vmul.f32 %v9898_v35, %v4285_v55  ;;  %7222 = vpow2.f32 %v6384_v9  ;;  %v9996_v6 = vadd.f32 1.0, %v7217_v56  ;;  %v12656_v55 = vld [vmem:[#allocation76_spill] sm:$0xff] }
 0x2e3   : > { %7224 = vrcp.f32 %v9970_v21  ;;  %vm4289_vm8 = vweird.f32 %v9898_v35  ;;  %v4271_v51 = vmul.f32 %v9914_v2, %v4270_v10  ;;  %v10002_v33 = vadd.f32 1.0, %v7219_v32 }
 0x2e4   : > { %12654 = vst [vmem:[#allocation66_spill] sm:$0xff] %v9990_v57  ;;  %v7221_v22 = vpop.eup %7220  ;;  %v10006_v60 = vadd.f32 %v12656_v55, %v12655_v61  ;;  %v4376_v41 = vmul.f32 %v9926_v39, %v4375_v52  ;;  %vm4378_vm10 = vweird.f32 %v9847_v45  ;;  %vm4379_vm11 = vweird.f32 %v9926_v39  ;;  %vm10037_vm14 = vmor %vm4288_vm6, %vm4289_vm8  ;;  %v12666_v55 = vld [vmem:[#allocation82_spill] sm:$0xff] }
 0x2e5   : > { %v2238_v42 = vpop.f32.mrf.mxu2  ;;  %v4186_v32 = vsel %vm10012_vm9, %v9851_v23, %v4182_v37  ;;  %vm10025_vm12 = vcmp.eq.f32.partialorder %v4292_v31, 8.507059e+37  ;;  %vm4274_vm13 = vweird.f32 %v9914_v2  ;;  %v4382_v52 = vand.u32 2147483647, %v9847_v45  ;;  %vm10049_vm15 = vmor %vm4378_vm10, %vm4379_vm11 }
 0x2e6   : > { %v2288_v11 = vadd.f32 %v2287_v19, %v2238_v42  ;;  %v2336_v56 = vpop.f32.mrf.mxu0  ;;  %v4384_v42 = vand.u32 2147483648, %v9847_v45  ;;  %v4287_v61 = vadd.f32 %v9898_v35, %v4286_v1  ;;  %7226 = vrcp.f32 %v9996_v6 }
 0x2e7   : > { %v2385_v19 = vpop.f32.mrf.mxu1  ;;  %v10042_v23 = vadd.f32 1.0, %v7221_v22  ;;  %7228 = vrcp.f32 %v10002_v33  ;;  %v6391_v36 = vmul.f32 -1.442695, %v10006_v60  ;;  %v6390_v9 = vmul.f32 -1.442695, %v12666_v55 }
 0x2e8   : > { %v10020_v10 = vmul.f32 %v9813_v48, %v2288_v11  ;;  %v2386_v31 = vadd.f32 %v2385_v19, %v2336_v56  ;;  %v7223_v37 = vpop.eup %7222  ;;  %v4272_v11 = vadd.f32 %v9914_v2, %v4271_v51  ;;  %2531 = vmatmul.bf16.gmra.mxu0 %v12466_v15  ;;  %v4206_v51 = vsel %vm9961_vm5, %v9909_v25, %v4201_v24 }
 0x2e9   : > { %v10057_v22 = vpop.eup %7224  ;;  %vm4273_vm0 = vweird.f32 %v9837_v46  ;;  %v4377_v45 = vadd.f32 %v9926_v39, %v4376_v41  ;;  %2580 = vmatmul.bf16.gmra.mxu1 %v12471_v0  ;;  %v4191_v58 = vsel %vm9982_vm7, %v9933_v14, %v4186_v32  ;;  %vm10071_vm1 = vcmp.eq.f32.partialorder %v4382_v52, 8.507059e+37  ;;  %v2289_v5 = vpop.f32.mrf.mxu3  ;;  %v6874_v0 = vld [vmem:[%s7789_s30 + $0x48] sm:$0xff] }
 0x2ea   : > { %12659 = vst [vmem:[#allocation67_spill] sm:$0xff] %v10020_v10  ;;  %v10065_v56 = vmul.f32 %v9635_v59, %v2386_v31  ;;  %v4385_v24 = vor.u32 1.1754944e-38, %v4384_v42  ;;  %v6044_v41 = vor.u32 %v6777_v47, %v6041_v43  ;;  %v6867_v59 = vld [vmem:[%s7789_s30 + $0x10] sm:$0xff]  ;;  %vm10081_vm2 = vmor %vm4273_vm0, %vm4274_vm13  ;;  %7230 = vrcp.f32 %v10042_v23 }
 0x2eb   : > { %v6875_v31 = vld [vmem:[%s7789_s30 + $0x50] sm:$0xff]  ;;  %v10086_v14 = vadd.f32 1.0, %v7223_v37  ;;  %v6236_v32 = vor.u32 %v6825_v16, %v6233_v34  ;;  %v4291_v43 = vsel %vm10037_vm14, %v9898_v35, %v4287_v61  ;;  %v4276_v47 = vsel %vm10081_vm2, %v9914_v2, %v4272_v11  ;;  %5152 = vmatpush.bf16.msra.mxu0 %v6867_v59 }
 0x2ec   : > { %12667 = vst [vmem:[#allocation68_spill] sm:$0xff] %v10065_v56  ;;  %v4359_v52 = vmul.f32 %v10057_v22, %v9970_v21  ;;  %7232 = vpow2.f32 %v6391_v36  ;;  %2607 = vmatpush.bf16.msra.mxu2 %v6044_v41  ;;  %v10096_v42 = vpop.eup %7226  ;;  %v4381_v34 = vsel %vm10049_vm15, %v9926_v39, %v4377_v45  ;;  %5201 = vmatpush.bf16.msra.mxu1 %v6875_v31  ;;  %v12674_v37 = vand.u32 2147483647, %v9837_v46  ;;  %v6771_v56 = vld [vmem:[#allocation7 + $0x14] sm:$0xf] }
 0x2ed   : > { %v2240_v19 = vpop.f32.mrf.mxu2  ;;  %7234 = vpow2.f32 %v6390_v9  ;;  %2656 = vmatpush.bf16.msra.mxu3 %v6236_v32  ;;  %v10105_v2 = vpop.eup %7228  ;;  %v10108_v57 = vmul.f32 %v4206_v51, %v12592_v49  ;;  %v10111_v48 = vmul.f32 %v4191_v58, %v12595_v29  ;;  %v12675_v39 = vand.u32 2147483648, %v9837_v46  ;;  %v12676_v29 = vld [vmem:[#allocation22_spill] sm:$0xff] }
 0x2ee   : > { %v2290_v18 = vadd.f32 %v2289_v5, %v2240_v19  ;;  %v12672_v5 = vld [vmem:[#allocation83_spill] sm:$0xff]  ;;  %v2338_v35 = vpop.f32.mrf.mxu0  ;;  %vm4278_vm3 = vcmp.eq.f32.partialorder %v12674_v37, 8.507059e+37  ;;  %v4369_v36 = vand.u32 2147483648, %v9970_v21  ;;  %7236 = vrcp.f32 %v10086_v14  ;;  %2487 = vmatmul.bf16.gmra.mxu3 %v12676_v29 }
 0x2ef   : > { %v6397_v16 = vmul.f32 -1.442695, %v12672_v5  ;;  %v4280_v11 = vor.u32 1.1754944e-38, %v12675_v39  ;;  %v2387_v1 = vpop.f32.mrf.mxu1  ;;  %v4386_v51 = vsel %vm10071_vm1, %v4385_v24, %v4381_v34  ;;  %v4360_v46 = vsub.f32 1.0, %v4359_v52  ;;  %v12678_v34 = vld [vmem:[#allocation64_spill] sm:$0xff] }
 0x2f0   : > { %v10103_v61 = vmul.f32 %v9821_v13, %v2290_v18  ;;  %v4296_v13 = vsel %vm10025_vm12, %v9986_v4, %v4291_v43  ;;  %v2388_v49 = vadd.f32 %v2387_v1, %v2338_v35  ;;  %v10128_v19 = vpop.eup %7230  ;;  %v4464_v4 = vmul.f32 %v10096_v42, %v9996_v6  ;;  %5202 = vmatpush.bf16.msra.mxu1 %v6874_v0 }
 0x2f1   : > { %v4281_v9 = vsel %vm4278_vm3, %v4280_v11, %v4276_v47  ;;  %v4449_v12 = vmul.f32 %v10105_v2, %v10002_v33  ;;  %7238 = vpow2.f32 %v6397_v16  ;;  %v10138_v25 = vmul.f32 %v4296_v13, %v9660_v40  ;;  %v2292_v18 = vpop.f32.mrf.mxu3 }
 0x2f2   : > { %12673 = vst [vmem:[#allocation69_spill] sm:$0xff] %v10103_v61  ;;  %2438 = vmatmul.bf16.gmra.mxu2 %v12485_v50  ;;  %v10135_v58 = vmul.f32 %v9816_v54, %v2388_v49  ;;  %v7233_v59 = vpop.eup %7232  ;;  %vm4363_vm4 = vweird.f32 %v9970_v21  ;;  %v4367_v24 = vand.u32 2147483647, %v9970_v21  ;;  %v4474_v31 = vand.u32 2147483648, %v9996_v6  ;;  %v12684_v54 = vld [vmem:[#allocation81_spill] sm:$0xff] }
 0x2f3   : > { %v7235_v32 = vpop.eup %7234  ;;  %v10143_v43 = vor.u32 1.1754944e-38, %v4369_v36  ;;  %v4459_v47 = vand.u32 2147483648, %v10002_v33  ;;  %v10149_v16 = vmul.f32 %v4281_v9, %v12678_v34  ;;  %v10152_v40 = vmul.f32 %v4386_v51, %v12617_v38  ;;  %v12683_v34 = vld [vmem:[#allocation80_spill] sm:$0xff] }
 0x2f4   : > { %12677 = vst [vmem:[#allocation23_spill] sm:$0xff] %v10135_v58  ;;  %v4361_v35 = vmul.f32 %v10057_v22, %v4360_v46  ;;  %v4472_v37 = vand.u32 2147483647, %v9996_v6  ;;  %v10156_v39 = vpop.eup %7236  ;;  %v4465_v11 = vsub.f32 1.0, %v4464_v4  ;;  %vm4468_vm5 = vweird.f32 %v9996_v6  ;;  %v6017_v58 = vld [vmem:[#allocation7 + $0x28] sm:$0xf0] }
 0x2f5   : > { %v2243_v41 = vpop.f32.mrf.mxu2  ;;  %v4450_v1 = vsub.f32 1.0, %v4449_v12  ;;  %v10159_v13 = vadd.f32 1.0, %v7233_v59  ;;  %vm4364_vm6 = vweird.f32 %v10057_v22  ;;  %vm10165_vm7 = vcmp.eq.f32.partialorder %v4367_v24, 8.507059e+37  ;;  %v6209_v61 = vld [vmem:[#allocation7 + $0x1a8] sm:$0xf0] }
 0x2f6   : > { %v2293_v52 = vadd.f32 %v2292_v18, %v2243_v41  ;;  %v2341_v36 = vpop.f32.mrf.mxu0  ;;  %v10169_v9 = vor.u32 1.1754944e-38, %v4474_v31  ;;  %v3144_v51 = vmul.f32 %v10128_v19, %v10042_v23  ;;  %v10173_v46 = vadd.f32 1.0, %v7235_v32  ;;  %vm10206_vm10 = vmor %vm4363_vm4, %vm4364_vm6  ;;  %v12709_v38 = vld [vmem:[#allocation84_spill] sm:$0xff] }
 0x2f7   : > { %v2390_v4 = vpop.f32.mrf.mxu1  ;;  %v7239_v12 = vpop.eup %7238  ;;  %v4457_v41 = vand.u32 2147483647, %v10002_v33  ;;  %v10176_v59 = vor.u32 1.1754944e-38, %v4459_v47  ;;  %v4362_v24 = vadd.f32 %v10057_v22, %v4361_v35  ;;  %vm4453_vm8 = vweird.f32 %v10002_v33 }
 0x2f8   : > { %v10162_v49 = vmul.f32 %v9854_v3, %v2293_v52  ;;  %v12682_v3 = vld [vmem:[#allocation86_spill] sm:$0xff]  ;;  %v2391_v52 = vadd.f32 %v2390_v4, %v2341_v36  ;;  %vm3148_vm9 = vweird.f32 %v10042_v23  ;;  %v3152_v31 = vand.u32 2147483647, %v10042_v23  ;;  %2536 = vmatmul.bf16.gmra.mxu0 %v12485_v50 }
 0x2f9   : > { %v6396_v18 = vmul.f32 -1.442695, %v12682_v3  ;;  %v3129_v32 = vmul.f32 %v10156_v39, %v10086_v14  ;;  %v10187_v45 = vadd.f32 %v12684_v54, %v12683_v34  ;;  %v4466_v47 = vmul.f32 %v10096_v42, %v4465_v11  ;;  %2585 = vmatmul.bf16.gmra.mxu1 %v12676_v29  ;;  %v6819_v54 = vld [vmem:[#allocation7 + $0x194] sm:$0xf]  ;;  %v2294_v11 = vpop.f32.mrf.mxu3 }
 0x2fa   : > { %12679 = vst [vmem:[#allocation25_spill] sm:$0xff] %v10162_v49  ;;  %v4451_v35 = vmul.f32 %v10105_v2, %v4450_v1  ;;  %7240 = vrcp.f32 %v10159_v13  ;;  %v10194_v36 = vmul.f32 %v9829_v44, %v2391_v52  ;;  %v3145_v34 = vsub.f32 1.0, %v3144_v51  ;;  %v6866_v1 = vld [vmem:[%s7789_s30 + $0x8] sm:$0xff]  ;;  %v12710_v49 = vld [vmem:[#allocation85_spill] sm:$0xff] }
 0x2fb   : > { %7242 = vrcp.f32 %v10173_v46  ;;  %v10198_v50 = vadd.f32 1.0, %v7239_v12  ;;  %v6020_v10 = vor.u32 %v6771_v56, %v6017_v58  ;;  %v3154_v52 = vand.u32 2147483648, %v10042_v23  ;;  %5153 = vmatpush.bf16.msra.mxu0 %v6866_v1 }
 0x2fc   : > { %12685 = vst [vmem:[#allocation73_spill] sm:$0xff] %v10194_v36  ;;  %7244 = vpow2.f32 %v6396_v18  ;;  %v6212_v29 = vor.u32 %v6819_v54, %v6209_v61  ;;  %v4366_v56 = vsel %vm10206_vm10, %v10057_v22, %v4362_v24  ;;  %vm4469_vm11 = vweird.f32 %v10096_v42 }
 0x2fd   : > { %v2245_v4 = vpop.f32.mrf.mxu2  ;;  %vm10215_vm12 = vcmp.eq.f32.partialorder %v4472_v37, 8.507059e+37  ;;  %vm10219_vm13 = vcmp.eq.f32.partialorder %v4457_v41, 8.507059e+37  ;;  %v3130_v12 = vsub.f32 1.0, %v3129_v32  ;;  %v6403_v15 = vmul.f32 -1.442695, %v10187_v45  ;;  %2608 = vmatpush.bf16.msra.mxu2 %v6020_v10  ;;  %vm10252_vm1 = vmor %vm4468_vm5, %vm4469_vm11 }
 0x2fe   : > { %v2295_v51 = vadd.f32 %v2294_v11, %v2245_v4  ;;  %v4467_v61 = vadd.f32 %v10096_v42, %v4466_v47  ;;  %vm4454_vm14 = vweird.f32 %v10105_v2  ;;  %v3139_v22 = vand.u32 2147483648, %v10086_v14  ;;  %v2343_v18 = vpop.f32.mrf.mxu0  ;;  %2657 = vmatpush.bf16.msra.mxu3 %v6212_v29  ;;  %v12695_v4 = vld [vmem:[#allocation24_spill] sm:$0xff] }
 0x2ff   : > { %v4452_v41 = vadd.f32 %v10105_v2, %v4451_v35  ;;  %v3146_v24 = vmul.f32 %v10128_v19, %v3145_v34  ;;  %vm10232_vm15 = vcmp.eq.f32.partialorder %v3152_v31, 8.507059e+37  ;;  %v3137_v10 = vand.u32 2147483647, %v10086_v14  ;;  %v2392_v47 = vpop.f32.mrf.mxu1  ;;  %v12696_v31 = vld [vmem:[#allocation26_spill] sm:$0xff]  ;;  %vm10267_vm3 = vmor %vm4453_vm8, %vm4454_vm14 }
 0x300   : > { %v10228_v37 = vmul.f32 %v9974_v27, %v2295_v51  ;;  %7246 = vrcp.f32 %v10198_v50  ;;  %v10239_v54 = vpop.eup %7240  ;;  %v4371_v0 = vsel %vm10165_vm7, %v10143_v43, %v4366_v56  ;;  %v3155_v27 = vor.u32 1.1754944e-38, %v3154_v52  ;;  %2492 = vmatmul.bf16.gmra.mxu3 %v12696_v31  ;;  %v12701_v52 = vld [vmem:[#allocation87_spill] sm:$0xff] }
 0x301   : > { %vm3133_vm0 = vweird.f32 %v10086_v14  ;;  %v2393_v29 = vadd.f32 %v2392_v47, %v2343_v18  ;;  %v10246_v35 = vpop.eup %7242  ;;  %vm3149_vm2 = vweird.f32 %v10128_v19  ;;  %v3131_v43 = vmul.f32 %v10156_v39, %v3130_v12  ;;  %v2297_v47 = vpop.f32.mrf.mxu3 }
 0x302   : > { %12692 = vst [vmem:[#allocation75_spill] sm:$0xff] %v10228_v37  ;;  %2443 = vmatmul.bf16.gmra.mxu2 %v12695_v4  ;;  %7248 = vpow2.f32 %v6403_v15  ;;  %v7245_v11 = vpop.eup %7244  ;;  %v4471_v1 = vsel %vm10252_vm1, %v10096_v42, %v4467_v61  ;;  %v3140_v44 = vor.u32 1.1754944e-38, %v3139_v22  ;;  %v6402_v51 = vmul.f32 -1.442695, %v12701_v52  ;;  %v12705_v22 = vld [vmem:[#allocation88_spill] sm:$0xff]  ;;  %vm10290_vm5 = vmor %vm3148_vm9, %vm3149_vm2 }
 0x303   : > { %v10273_v15 = vmul.f32 %v9936_v62, %v2393_v29  ;;  %v4456_v12 = vsel %vm10267_vm3, %v10105_v2, %v4452_v41  ;;  %v3147_v42 = vadd.f32 %v10128_v19, %v3146_v24  ;;  %vm10279_vm4 = vcmp.eq.f32.partialorder %v3137_v10, 8.507059e+37  ;;  %v12708_v2 = vld [vmem:[#allocation89_spill] sm:$0xff]  ;;  %v6873_v62 = vld [vmem:[%s7789_s30 + $0x40] sm:$0xff] }
 0x304   : > { %v3234_v33 = vmul.f32 %v10239_v54, %v10159_v13  ;;  %v6409_v18 = vmul.f32 -1.442695, %v12705_v22  ;;  %vm3134_vm6 = vweird.f32 %v10156_v39  ;;  %v6408_v41 = vmul.f32 -1.442695, %v12708_v2  ;;  %5203 = vmatpush.bf16.msra.mxu1 %v6873_v62 }
 0x305   : > { %12702 = vst [vmem:[#allocation71_spill] sm:$0xff] %v10273_v15  ;;  %v2248_v56 = vpop.f32.mrf.mxu2  ;;  %v3132_v34 = vadd.f32 %v10156_v39, %v3131_v43  ;;  %v3219_v6 = vmul.f32 %v10246_v35, %v10173_v46  ;;  %v10303_v23 = vadd.f32 1.0, %v7245_v11  ;;  %v10307_v37 = vadd.f32 %v12710_v49, %v12709_v38  ;;  %vm10326_vm7 = vmor %vm3133_vm0, %vm3134_vm6  ;;  %v12743_v15 = vld [vmem:[#allocation17_spill] sm:$0xff] }
 0x306   : > { %v2298_v24 = vadd.f32 %v2297_v47, %v2248_v56  ;;  %v10298_v29 = vpop.eup %7246  ;;  %v4476_v56 = vsel %vm10215_vm12, %v10169_v9, %v4471_v1  ;;  %v4461_v47 = vsel %vm10219_vm13, %v10176_v59, %v4456_v12  ;;  %7250 = vpow2.f32 %v6402_v51  ;;  %v2346_v10 = vpop.f32.mrf.mxu0 }
 0x307   : > { %v3151_v11 = vsel %vm10290_vm5, %v10128_v19, %v3147_v42  ;;  %v3235_v49 = vsub.f32 1.0, %v3234_v33  ;;  %v3242_v38 = vand.u32 2147483647, %v10159_v13  ;;  %7252 = vpow2.f32 %v6409_v18  ;;  %v2395_v58 = vpop.f32.mrf.mxu1  ;;  %v6865_v18 = vld [vmem:[%s7789_s30] sm:$0xff] }
 0x308   : > { %v10316_v43 = vmul.f32 %v10111_v48, %v2298_v24  ;;  %v7249_v36 = vpop.eup %7248  ;;  %v3244_v48 = vand.u32 2147483648, %v10159_v13  ;;  %v3324_v19 = vmul.f32 %v10298_v29, %v10198_v50  ;;  %7254 = vpow2.f32 %v6408_v41  ;;  %2541 = vmatmul.bf16.gmra.mxu0 %v12695_v4 }
 0x309   : > { %v2396_v59 = vadd.f32 %v2395_v58, %v2346_v10  ;;  %v3136_v21 = vsel %vm10326_vm7, %v10156_v39, %v3132_v34  ;;  %v3220_v1 = vsub.f32 1.0, %v3219_v6  ;;  %7256 = vrcp.f32 %v10303_v23  ;;  %2590 = vmatmul.bf16.gmra.mxu1 %v12696_v31  ;;  %5154 = vmatpush.bf16.msra.mxu0 %v6865_v18 }
 0x30a   : > { %12711 = vst [vmem:[#allocation72_spill] sm:$0xff] %v10316_v43  ;;  %v6415_v14 = vmul.f32 -1.442695, %v10307_v37  ;;  %v10340_v51 = vmul.f32 %v4371_v0, %v12635_v26  ;;  %v3156_v12 = vsel %vm10232_vm15, %v3155_v27, %v3151_v11  ;;  %v10344_v42 = vadd.f32 1.0, %v7249_v36  ;;  %v2299_v36 = vpop.f32.mrf.mxu3 }
 0x30b   : > { %v10347_v33 = vmul.f32 %v10108_v57, %v2396_v59  ;;  %v10353_v41 = vmul.f32 %v4476_v56, %v9866_v7  ;;  %v10356_v24 = vmul.f32 %v4461_v47, %v12642_v30  ;;  %v3236_v26 = vmul.f32 %v10239_v54, %v3235_v49 }
 0x30c   : > { %vm3238_vm8 = vweird.f32 %v10159_v13  ;;  %v7251_v32 = vpop.eup %7250  ;;  %v3141_v57 = vsel %vm10279_vm4, %v3140_v44, %v3136_v21  ;;  %v3227_v0 = vand.u32 2147483647, %v10173_v46  ;;  %v3325_v27 = vsub.f32 1.0, %v3324_v19 }
 0x30d   : > { %12714 = vst [vmem:[#allocation77_spill] sm:$0xff] %v10347_v33  ;;  %v2250_v39 = vpop.f32.mrf.mxu2  ;;  %v7253_v7 = vpop.eup %7252  ;;  %v10364_v34 = vmul.f32 %v3156_v12, %v12646_v63  ;;  %vm10366_vm9 = vcmp.eq.f32.partialorder %v3242_v38, 8.507059e+37  ;;  %v3245_v6 = vor.u32 1.1754944e-38, %v3244_v48  ;;  %v3221_v56 = vmul.f32 %v10246_v35, %v3220_v1  ;;  %v12718_v48 = vld [vmem:[#allocation28_spill] sm:$0xff]  ;;  %v12742_v12 = vld [vmem:[#allocation15_spill] sm:$0xff] }
 0x30e   : > { %v2300_v10 = vadd.f32 %v2299_v36, %v2250_v39  ;;  %7258 = vpow2.f32 %v6415_v14  ;;  %v7255_v61 = vpop.eup %7254  ;;  %vm3223_vm10 = vweird.f32 %v10173_v46  ;;  %v3229_v44 = vand.u32 2147483648, %v10173_v46  ;;  %v2348_v47 = vpop.f32.mrf.mxu0  ;;  %v6912_v46 = vld [vmem:[%s7789_s30 + $0x178] sm:$0xff] }
 0x30f   : > { %7260 = vrcp.f32 %v10344_v42  ;;  %v10377_v63 = vpop.eup %7256  ;;  %v10380_v49 = vmul.f32 %v3141_v57, %v12651_v8  ;;  %v3237_v38 = vadd.f32 %v10239_v54, %v3236_v26  ;;  %vm3239_vm11 = vweird.f32 %v10239_v54  ;;  %v2397_v9 = vpop.f32.mrf.mxu1  ;;  %v12721_v8 = vld [vmem:[#allocation30_spill] sm:$0xff]  ;;  %5392 = vmatpush.bf16.msrb.mxu1 %v6912_v46 }
 0x310   : > { %v10375_v11 = vmul.f32 %v10149_v16, %v2300_v10  ;;  %v10384_v58 = vadd.f32 1.0, %v7251_v32  ;;  %vm10387_vm12 = vcmp.eq.f32.partialorder %v3227_v0, 8.507059e+37  ;;  %v3326_v16 = vmul.f32 %v10298_v29, %v3325_v27  ;;  %2497 = vmatmul.bf16.gmra.mxu3 %v12721_v8  ;;  %vm10403_vm14 = vmor %vm3238_vm8, %vm3239_vm11 }
 0x311   : > { %v10392_v59 = vadd.f32 1.0, %v7253_v7  ;;  %v2398_v21 = vadd.f32 %v2397_v9, %v2348_v47  ;;  %v3222_v1 = vadd.f32 %v10246_v35, %v3221_v56  ;;  %vm3224_vm13 = vweird.f32 %v10246_v35  ;;  %v6888_v7 = vld [vmem:[%s7789_s30 + $0xb8] sm:$0xff] }
 0x312   : > { %12717 = vst [vmem:[#allocation78_spill] sm:$0xff] %v10375_v11  ;;  %2448 = vmatmul.bf16.gmra.mxu2 %v12718_v48  ;;  %v10397_v14 = vadd.f32 1.0, %v7255_v61  ;;  %vm3328_vm15 = vweird.f32 %v10198_v50  ;;  %vm3329_vm0 = vweird.f32 %v10298_v29  ;;  %v3309_v18 = vmul.f32 %v10377_v63, %v10303_v23  ;;  %v2302_v0 = vpop.f32.mrf.mxu3  ;;  %vm10426_vm1 = vmor %vm3223_vm10, %vm3224_vm13  ;;  %v6896_v56 = vld [vmem:[%s7789_s30 + $0xf8] sm:$0xff] }
 0x313   : > { %v10412_v62 = vmul.f32 %v10138_v25, %v2398_v21  ;;  %v3241_v13 = vsel %vm10403_vm14, %v10239_v54, %v3237_v38  ;;  %v3332_v32 = vand.u32 2147483647, %v10198_v50  ;;  %v3334_v57 = vand.u32 2147483648, %v10198_v50  ;;  %vm10443_vm2 = vmor %vm3328_vm15, %vm3329_vm0  ;;  %5245 = vmatpush.bf16.msrb.mxu2 %v6888_v7  ;;  %5294 = vmatpush.bf16.msrb.mxu3 %v6896_v56 }
 0x314   : > { %v7259_v36 = vpop.eup %7258  ;;  %7262 = vrcp.f32 %v10384_v58  ;;  %v3327_v10 = vadd.f32 %v10298_v29, %v3326_v16  ;;  %v3226_v47 = vsel %vm10426_vm1, %v10246_v35, %v3222_v1  ;;  %v3230_v38 = vor.u32 1.1754944e-38, %v3229_v44 }
 0x315   : > { %12724 = vst [vmem:[#allocation79_spill] sm:$0xff] %v10412_v62  ;;  %v2253_v26 = vpop.f32.mrf.mxu2  ;;  %v10420_v27 = vpop.eup %7260  ;;  %7264 = vrcp.f32 %v10392_v59  ;;  %v3319_v9 = vand.u32 2147483648, %v10303_v23  ;;  %v3246_v16 = vsel %vm10366_vm9, %v3245_v6, %v3241_v13  ;;  %v3310_v21 = vsub.f32 1.0, %v3309_v18 }
 0x316   : > { %v2303_v54 = vadd.f32 %v2302_v0, %v2253_v26  ;;  %7266 = vrcp.f32 %v10397_v14  ;;  %v10451_v39 = vadd.f32 1.0, %v7259_v36  ;;  %v2351_v35 = vpop.f32.mrf.mxu0  ;;  %vm10456_vm3 = vcmp.eq.f32.partialorder %v3332_v32, 8.507059e+37  ;;  %v12732_v0 = vld [vmem:[#allocation92_spill] sm:$0xff]  ;;  %v12733_v36 = vld [vmem:[#allocation93_spill] sm:$0xff] }
 0x317   : > { %v3335_v1 = vor.u32 1.1754944e-38, %v3334_v57  ;;  %v3414_v26 = vmul.f32 %v10420_v27, %v10344_v42  ;;  %v6414_v30 = vmul.f32 -1.442695, %v12732_v0  ;;  %v2400_v6 = vpop.f32.mrf.mxu1  ;;  %v3231_v18 = vsel %vm10387_vm12, %v3230_v38, %v3226_v47  ;;  %v6904_v38 = vld [vmem:[%s7789_s30 + $0x138] sm:$0xff] }
 0x318   : > { %v10454_v44 = vmul.f32 %v10340_v51, %v2303_v54  ;;  %v3331_v51 = vsel %vm10443_vm2, %v10298_v29, %v3327_v10  ;;  %vm3313_vm4 = vweird.f32 %v10303_v23  ;;  %v6421_v13 = vmul.f32 -1.442695, %v12733_v36  ;;  %2546 = vmatmul.bf16.gmra.mxu0 %v12718_v48  ;;  %v6895_v48 = vld [vmem:[%s7789_s30 + $0xf0] sm:$0xff] }
 0x319   : > { %v2401_v32 = vadd.f32 %v2400_v6, %v2351_v35  ;;  %v10473_v25 = vmul.f32 %v3246_v16, %v10006_v60  ;;  %v3317_v54 = vand.u32 2147483647, %v10303_v23  ;;  %v10476_v19 = vor.u32 1.1754944e-38, %v3319_v9  ;;  %2595 = vmatmul.bf16.gmra.mxu1 %v12721_v8  ;;  %5343 = vmatpush.bf16.msrb.mxu0 %v6904_v38  ;;  %v12739_v38 = vld [vmem:[#allocation91_spill] sm:$0xff] }
 0x31a   : > { %12729 = vst [vmem:[#allocation74_spill] sm:$0xff] %v10454_v44  ;;  %v10470_v57 = vpop.eup %7262  ;;  %v3424_v7 = vand.u32 2147483648, %v10344_v42  ;;  %v3311_v10 = vmul.f32 %v10377_v63, %v3310_v21  ;;  %v3422_v56 = vand.u32 2147483647, %v10344_v42  ;;  %7268 = vrcp.f32 %v10451_v39  ;;  %v2304_v6 = vpop.f32.mrf.mxu3  ;;  %5295 = vmatpush.bf16.msrb.mxu3 %v6895_v48 }
 0x31b   : > { %v10480_v29 = vpop.eup %7264  ;;  %v10486_v47 = vmul.f32 %v10152_v40, %v2401_v32  ;;  %v10494_v16 = vmul.f32 %v3231_v18, %v12666_v55  ;;  %v3336_v21 = vsel %vm10456_vm3, %v3335_v1, %v3331_v51  ;;  %v3415_v35 = vsub.f32 1.0, %v3414_v26 }
 0x31c   : > { %v10491_v9 = vpop.eup %7266  ;;  %vm3418_vm5 = vweird.f32 %v10344_v42  ;;  %7270 = vpow2.f32 %v6414_v30  ;;  %v3399_v40 = vmul.f32 %v10470_v57, %v10384_v58  ;;  %v3409_v32 = vand.u32 2147483648, %v10384_v58 }
 0x31d   : > { %12734 = vst [vmem:[#allocation76_spill] sm:$0xff] %v10486_v47  ;;  %v2255_v60 = vpop.f32.mrf.mxu2  ;;  %7272 = vpow2.f32 %v6421_v13  ;;  %vm3314_vm6 = vweird.f32 %v10377_v63  ;;  %vm10503_vm7 = vcmp.eq.f32.partialorder %v3317_v54, 8.507059e+37  ;;  %v10507_v50 = vor.u32 1.1754944e-38, %v3424_v7 }
 0x31e   : > { %v2305_v61 = vadd.f32 %v2304_v6, %v2255_v60  ;;  %v3407_v1 = vand.u32 2147483647, %v10384_v58  ;;  %v3504_v26 = vmul.f32 %v10480_v29, %v10392_v59  ;;  %v10513_v30 = vmul.f32 %v3336_v21, %v12672_v5  ;;  %v2353_v13 = vpop.f32.mrf.mxu0  ;;  %v12738_v60 = vld [vmem:[#allocation90_spill] sm:$0xff]  ;;  %v12740_v5 = vld [vmem:[#allocation119_spill] sm:$0xff]  ;;  %v12741_v21 = vld [vmem:[#allocation120_spill] sm:$0xff] }
 0x31f   : > { %v3312_v18 = vadd.f32 %v10377_v63, %v3311_v10  ;;  %v3489_v51 = vmul.f32 %v10491_v9, %v10397_v14  ;;  %v3416_v7 = vmul.f32 %v10420_v27, %v3415_v35  ;;  %vm3419_vm8 = vweird.f32 %v10420_v27  ;;  %v2402_v6 = vpop.f32.mrf.mxu1  ;;  %vm10541_vm10 = vmor %vm3313_vm4, %vm3314_vm6 }
 0x320   : > { %v10519_v54 = vmul.f32 %v10356_v24, %v2305_v61  ;;  %vm3508_vm9 = vweird.f32 %v10392_v59  ;;  %v10526_v46 = vadd.f32 %v12739_v38, %v12738_v60  ;;  %v2172_v10 = vadd.f32 %v12741_v21, %v12740_v5  ;;  %v10531_v33 = vpop.eup %7268  ;;  %2658 = vmatmul.bf16.vlgmr.msra.gmra.mxu3 %v12743_v15  ;;  %vm10584_vm14 = vmor %vm3418_vm5, %vm3419_vm8 }
 0x321   : > { %v3400_v24 = vsub.f32 1.0, %v3399_v40  ;;  %v10533_v61 = vor.u32 1.1754944e-38, %v3409_v32  ;;  %v3512_v35 = vand.u32 2147483647, %v10392_v59  ;;  %v2403_v62 = vadd.f32 %v2402_v6, %v2353_v13  ;;  %v12746_v32 = vld [vmem:[#allocation94_spill] sm:$0xff] }
 0x322   : > { %12737 = vst [vmem:[#allocation82_spill] sm:$0xff] %v10519_v54  ;;  %2609 = vmatmul.bf16.vlgmr.msra.gmra.mxu2 %v12742_v12  ;;  %v7271_v60 = vpop.eup %7270  ;;  %v3505_v12 = vsub.f32 1.0, %v3504_v26  ;;  %v3514_v40 = vand.u32 2147483648, %v10392_v59  ;;  %v6420_v5 = vmul.f32 -1.442695, %v12746_v32  ;;  %v3316_v15 = vsel %vm10541_vm10, %v10377_v63, %v3312_v18  ;;  %v6887_v26 = vld [vmem:[%s7789_s30 + $0xb0] sm:$0xff]  ;;  %v2463_v21 = vpop.f32.mrf.mxu3 }
 0x323   : > { %v7273_v13 = vpop.eup %7272  ;;  %vm3404_vm11 = vweird.f32 %v10470_v57  ;;  %v3490_v23 = vsub.f32 1.0, %v3489_v51  ;;  %v10554_v6 = vmul.f32 %v10353_v41, %v2403_v62  ;;  %v3417_v43 = vadd.f32 %v10420_v27, %v3416_v7  ;;  %v12750_v18 = vld [vmem:[#allocation123_spill] sm:$0xff]  ;;  %5246 = vmatpush.bf16.msrb.mxu2 %v6887_v26 }
 0x324   : > { %vm10559_vm12 = vcmp.eq.f32.partialorder %v3422_v56, 8.507059e+37  ;;  %vm3403_vm13 = vweird.f32 %v10384_v58  ;;  %v3497_v38 = vand.u32 2147483647, %v10397_v14  ;;  %v6427_v63 = vmul.f32 -1.442695, %v10526_v46 }
 0x325   : > { %12747 = vst [vmem:[#allocation83_spill] sm:$0xff] %v10554_v6  ;;  %v2414_v8 = vpop.f32.mrf.mxu2  ;;  %v4625_v51 = vmul.f32 %v12750_v18, %v2172_v10  ;;  %v3401_v41 = vmul.f32 %v10470_v57, %v3400_v24  ;;  %v10568_v62 = vadd.f32 1.0, %v7271_v60  ;;  %v3506_v7 = vmul.f32 %v10480_v29, %v3505_v12  ;;  %v12755_v60 = vld [vmem:[#allocation99_spill] sm:$0xff]  ;;  %vm10640_vm5 = vmor %vm3403_vm13, %vm3404_vm11 }
 0x326   : > { %v2464_v44 = vadd.f32 %v2463_v21, %v2414_v8  ;;  %v3594_v54 = vmul.f32 %v10531_v33, %v10451_v39  ;;  %v10575_v31 = vadd.f32 1.0, %v7273_v13  ;;  %7274 = vpow2.f32 %v6420_v5  ;;  %v2512_v5 = vpop.f32.mrf.mxu0 }
 0x327   : > { %v3321_v10 = vsel %vm10503_vm7, %v10476_v19, %v3316_v15  ;;  %vm10588_vm15 = vcmp.eq.f32.partialorder %v3512_v35, 8.507059e+37  ;;  %v3491_v24 = vmul.f32 %v10491_v9, %v3490_v23  ;;  %v6426_v12 = vmul.f32 -1.442695, %v12755_v60  ;;  %v12758_v35 = vld [vmem:[#allocation122_spill] sm:$0xff]  ;;  %v2561_v13 = vpop.f32.mrf.mxu1 }
 0x328   : > { %v10595_v55 = vmul.f32 %v10380_v49, %v2464_v44  ;;  %v3421_v42 = vsel %vm10584_vm14, %v10420_v27, %v3417_v43  ;;  %vm10600_vm0 = vcmp.eq.f32.partialorder %v3407_v1, 8.507059e+37  ;;  %vm3509_vm1 = vweird.f32 %v10480_v29  ;;  %v12759_v44 = vld [vmem:[#allocation100_spill] sm:$0xff] }
 0x329   : > { %7276 = vpow2.f32 %v6427_v63  ;;  %v4715_v21 = vpack.c.bf16 %v4625_v51, %v12758_v35  ;;  %v3402_v15 = vadd.f32 %v10470_v57, %v3401_v41  ;;  %vm3494_vm2 = vweird.f32 %v10491_v9  ;;  %vm10614_vm3 = vmor %vm3508_vm9, %vm3509_vm1  ;;  %v12762_v63 = vld [vmem:[#allocation101_spill] sm:$0xff]  ;;  %v12764_v41 = vld [vmem:[#allocation51_spill] sm:$0xff] }
 0x32a   : > { %7278 = vrcp.f32 %v10568_v62  ;;  %v2562_v49 = vadd.f32 %v2561_v13, %v2512_v5  ;;  %v3507_v43 = vadd.f32 %v10480_v29, %v3506_v7  ;;  %v3595_v27 = vsub.f32 1.0, %v3594_v54  ;;  %v12763_v54 = vld [vmem:[#allocation54_spill] sm:$0xff]  ;;  %v6903_v5 = vld [vmem:[%s7789_s30 + $0x130] sm:$0xff] }
 0x32b   : > { %7280 = vrcp.f32 %v10575_v31  ;;  %v6433_v1 = vmul.f32 -1.442695, %v12759_v44  ;;  %5155 = vmatmul.bf16.vlgmr.msra.gmra.mxu0 %v4715_v21  ;;  %v3492_v26 = vadd.f32 %v10491_v9, %v3491_v24  ;;  %v6432_v18 = vmul.f32 -1.442695, %v12762_v63  ;;  %v6911_v35 = vld [vmem:[%s7789_s30 + $0x170] sm:$0xff] }
 0x32c   : > { %7282 = vpow2.f32 %v6426_v12  ;;  %v10621_v51 = vmul.f32 %v10364_v34, %v2562_v49  ;;  %v12765_v7 = vpack.c.bf16 %v12763_v54, %v12764_v41  ;;  %v7275_v59 = vpop.eup %7274  ;;  %v10629_v21 = vmul.f32 %v3321_v10, %v12682_v3  ;;  %v2465_v12 = vpop.f32.mrf.mxu3  ;;  %5344 = vmatpush.bf16.msrb.mxu0 %v6903_v5  ;;  %5393 = vmatpush.bf16.msrb.mxu1 %v6911_v35  ;;  %v12773_v41 = vld [vmem:[#allocation125_spill] sm:$0xff]  ;;  %v12774_v5 = vld [vmem:[#allocation19_spill] sm:$0xff]  ;;  %v6886_v49 = vld [vmem:[%s7789_s30 + $0xa8] sm:$0xff] }
 0x32d   : > { %v2416_v48 = vpop.f32.mrf.mxu2  ;;  %v3515_v13 = vor.u32 1.1754944e-38, %v3514_v40  ;;  %vm3493_vm4 = vweird.f32 %v10397_v14  ;;  %v3499_v24 = vand.u32 2147483648, %v10397_v14  ;;  %v3426_v34 = vsel %vm10559_vm12, %v10507_v50, %v3421_v42  ;;  %v6894_v3 = vld [vmem:[%s7789_s30 + $0xe8] sm:$0xff]  ;;  %v12778_v50 = vld [vmem:[#allocation41_spill] sm:$0xff]  ;;  %5247 = vmatpush.bf16.msrb.mxu2 %v6886_v49 }
 0x32e   : > { %5204 = vmatmul.bf16.vlgmr.msra.gmra.mxu1 %v12765_v7  ;;  %vm10644_vm6 = vcmp.eq.f32.partialorder %v3497_v38, 8.507059e+37  ;;  %v3602_v40 = vand.u32 2147483647, %v10451_v39  ;;  %v2466_v14 = vadd.f32 %v2465_v12, %v2416_v48  ;;  %v3406_v11 = vsel %vm10640_vm5, %v10470_v57, %v3402_v15  ;;  %vm10657_vm7 = vmor %vm3493_vm4, %vm3494_vm2  ;;  %v2514_v15 = vpop.f32.mrf.mxu0  ;;  %5296 = vmatpush.bf16.msrb.mxu3 %v6894_v3 }
 0x32f   : > { %v7277_v10 = vpop.eup %7276  ;;  %v3511_v58 = vsel %vm10614_vm3, %v10480_v29, %v3507_v43  ;;  %v3596_v38 = vmul.f32 %v10531_v33, %v3595_v27  ;;  %7284 = vpow2.f32 %v6433_v1  ;;  %v3496_v54 = vsel %vm10657_vm7, %v10491_v9, %v3492_v26  ;;  %v12772_v1 = vld [vmem:[#allocation124_spill] sm:$0xff]  ;;  %v2563_v48 = vpop.f32.mrf.mxu1 }
 0x330   : > { %v10662_v42 = vpop.eup %7278  ;;  %v10667_v57 = vadd.f32 1.0, %v7275_v59  ;;  %7286 = vpow2.f32 %v6432_v18  ;;  %v10670_v29 = vmul.f32 %v10494_v16, %v2466_v14  ;;  %v3500_v23 = vor.u32 1.1754944e-38, %v3499_v24  ;;  %v12775_v59 = vld [vmem:[#allocation21_spill] sm:$0xff] }
 0x331   : > { %v10672_v43 = vpop.eup %7280  ;;  %vm3598_vm8 = vweird.f32 %v10451_v39  ;;  %v3604_v27 = vand.u32 2147483648, %v10451_v39  ;;  %v2177_v7 = vadd.f32 %v12773_v41, %v12772_v1  ;;  %v10680_v26 = vmul.f32 %v3426_v34, %v10187_v45  ;;  %2663 = vmatmul.bf16.gmra.mxu3 %v12775_v59  ;;  %v6893_v41 = vld [vmem:[%s7789_s30 + $0xe0] sm:$0xff] }
 0x332   : > { %2614 = vmatmul.bf16.gmra.mxu2 %v12774_v5  ;;  %v7283_v9 = vpop.eup %7282  ;;  %v3411_v16 = vsel %vm10600_vm0, %v10533_v61, %v3406_v11  ;;  %v2564_v18 = vadd.f32 %v2563_v48, %v2514_v15  ;;  %v3516_v24 = vsel %vm10588_vm15, %v3515_v13, %v3511_v58  ;;  %v3501_v12 = vsel %vm10644_vm6, %v3500_v23, %v3496_v54  ;;  %v12782_v23 = vld [vmem:[#allocation96_spill] sm:$0xff]  ;;  %v12783_v5 = vld [vmem:[#allocation97_spill] sm:$0xff] }
 0x333   : > { %v3597_v45 = vadd.f32 %v10531_v33, %v3596_v38  ;;  %vm3599_vm9 = vweird.f32 %v10531_v33  ;;  %vm10694_vm10 = vcmp.eq.f32.partialorder %v3602_v40, 8.507059e+37  ;;  %v3579_v61 = vmul.f32 %v10662_v42, %v10568_v62  ;;  %5297 = vmatpush.bf16.msrb.mxu3 %v6893_v41 }
 0x334   : > { %7288 = vrcp.f32 %v10667_v57  ;;  %v10701_v34 = vadd.f32 1.0, %v7277_v10  ;;  %v10704_v8 = vmul.f32 %v10473_v25, %v2564_v18  ;;  %v10709_v11 = vmul.f32 %v3411_v16, %v12701_v52  ;;  %v2468_v54 = vpop.f32.mrf.mxu3  ;;  %vm10720_vm11 = vmor %vm3598_vm8, %vm3599_vm9  ;;  %v12781_v52 = vld [vmem:[#allocation95_spill] sm:$0xff] }
 0x335   : > { %v2419_v13 = vpop.f32.mrf.mxu2  ;;  %v7285_v14 = vpop.eup %7284  ;;  %v3684_v40 = vmul.f32 %v10672_v43, %v10575_v31  ;;  %v10713_v58 = vadd.f32 1.0, %v7283_v9  ;;  %v4637_v38 = vmul.f32 %v12778_v50, %v2177_v7  ;;  %v3605_v15 = vor.u32 1.1754944e-38, %v3604_v27  ;;  %v12784_v9 = vld [vmem:[#allocation98_spill] sm:$0xff]  ;;  %v12788_v25 = vld [vmem:[#allocation63_spill] sm:$0xff] }
 0x336   : > { %v7287_v10 = vpop.eup %7286  ;;  %v10726_v1 = vadd.f32 %v12782_v23, %v12781_v52  ;;  %v2469_v48 = vadd.f32 %v2468_v54, %v2419_v13  ;;  %v10731_v7 = vmul.f32 %v3516_v24, %v12705_v22  ;;  %v10734_v39 = vmul.f32 %v3501_v12, %v12708_v2  ;;  %v2517_v13 = vpop.f32.mrf.mxu0  ;;  %v12789_v52 = vld [vmem:[#allocation43_spill] sm:$0xff] }
 0x337   : > { %v3601_v27 = vsel %vm10720_vm11, %v10531_v33, %v3597_v45  ;;  %v10741_v16 = vadd.f32 %v12784_v9, %v12783_v5  ;;  %v3580_v18 = vsub.f32 1.0, %v3579_v61  ;;  %7290 = vrcp.f32 %v10701_v34  ;;  %v2566_v12 = vpop.f32.mrf.mxu1  ;;  %v12786_v33 = vld [vmem:[#allocation31_spill] sm:$0xff]  ;;  %v6902_v5 = vld [vmem:[%s7789_s30 + $0x128] sm:$0xff] }
 0x338   : > { %v10744_v59 = vadd.f32 1.0, %v7285_v14  ;;  %v10747_v22 = vmul.f32 %v10629_v21, %v2469_v48  ;;  %v3685_v24 = vsub.f32 1.0, %v3684_v40  ;;  %7292 = vrcp.f32 %v10713_v58  ;;  %v6910_v9 = vld [vmem:[%s7789_s30 + $0x168] sm:$0xff]  ;;  %5345 = vmatpush.bf16.msrb.mxu0 %v6902_v5 }
 0x339   : > { %v10750_v2 = vadd.f32 1.0, %v7287_v10  ;;  %v4721_v45 = vpack.c.bf16 %v4637_v38, %v12786_v33  ;;  %vm3583_vm12 = vweird.f32 %v10568_v62  ;;  %v3589_v61 = vand.u32 2147483648, %v10568_v62  ;;  %5394 = vmatpush.bf16.msrb.mxu1 %v6910_v9 }
 0x33a   : > { %12785 = vst [vmem:[#allocation64_spill] sm:$0xff] %v10747_v22  ;;  %v10753_v49 = vpop.eup %7288  ;;  %v6439_v3 = vmul.f32 -1.442695, %v10726_v1  ;;  %v2567_v21 = vadd.f32 %v2566_v12, %v2517_v13  ;;  %v3587_v14 = vand.u32 2147483647, %v10568_v62  ;;  %vm3688_vm13 = vweird.f32 %v10575_v31 }
 0x33b   : > { %v3692_v40 = vand.u32 2147483647, %v10575_v31  ;;  %v6438_v50 = vmul.f32 -1.442695, %v10741_v16  ;;  %5160 = vmatmul.bf16.gmra.mxu0 %v4721_v45  ;;  %v3606_v38 = vsel %vm10694_vm10, %v3605_v15, %v3601_v27  ;;  %v3581_v54 = vmul.f32 %v10662_v42, %v3580_v18 }
 0x33c   : > { %7294 = vrcp.f32 %v10744_v59  ;;  %v10767_v10 = vmul.f32 %v10513_v30, %v2567_v21  ;;  %v12790_v23 = vpack.c.bf16 %v12788_v25, %v12789_v52  ;;  %v3686_v13 = vmul.f32 %v10672_v43, %v3685_v24  ;;  %v2470_v15 = vpop.f32.mrf.mxu3 }
 0x33d   : > { %v2421_v48 = vpop.f32.mrf.mxu2  ;;  %v3694_v12 = vand.u32 2147483648, %v10575_v31  ;;  %v3669_v19 = vmul.f32 %v10753_v49, %v10667_v57  ;;  %7296 = vrcp.f32 %v10750_v2  ;;  %v10779_v27 = vpop.eup %7290  ;;  %v10781_v30 = vor.u32 1.1754944e-38, %v3589_v61 }
 0x33e   : > { %12787 = vst [vmem:[#allocation86_spill] sm:$0xff] %v10767_v10  ;;  %5209 = vmatmul.bf16.gmra.mxu1 %v12790_v23  ;;  %v3679_v18 = vand.u32 2147483648, %v10667_v57  ;;  %7298 = vpow2.f32 %v6439_v3  ;;  %v2471_v33 = vadd.f32 %v2470_v15, %v2421_v48  ;;  %v10784_v45 = vpop.eup %7292  ;;  %v10787_v24 = vmul.f32 %v3606_v38, %v10307_v37  ;;  %v2519_v52 = vpop.f32.mrf.mxu0  ;;  %v12800_v15 = vld [vmem:[#allocation107_spill] sm:$0xff] }
 0x33f   : > { %vm10789_vm14 = vcmp.eq.f32.partialorder %v3587_v14, 8.507059e+37  ;;  %vm3689_vm15 = vweird.f32 %v10672_v43  ;;  %v3784_v61 = vand.u32 2147483648, %v10701_v34  ;;  %7300 = vpow2.f32 %v6438_v50  ;;  %v2568_v50 = vpop.f32.mrf.mxu1 }
 0x340   : > { %v3582_v25 = vadd.f32 %v10662_v42, %v3581_v54  ;;  %vm3584_vm0 = vweird.f32 %v10662_v42  ;;  %vm10797_vm1 = vcmp.eq.f32.partialorder %v3692_v40, 8.507059e+37  ;;  %v10802_v37 = vmul.f32 %v10709_v11, %v2471_v33  ;;  %vm10814_vm2 = vmor %vm3688_vm13, %vm3689_vm15 }
 0x341   : > { %v3687_v14 = vadd.f32 %v10672_v43, %v3686_v13  ;;  %v3695_v38 = vor.u32 1.1754944e-38, %v3694_v12  ;;  %v3670_v23 = vsub.f32 1.0, %v3669_v19  ;;  %v3774_v48 = vmul.f32 %v10779_v27, %v10701_v34  ;;  %2668 = vmatmul.bf16.gmra.mxu3 %v12608_v20  ;;  %vm10830_vm3 = vmor %vm3583_vm12, %vm3584_vm0 }
 0x342   : > { %12795 = vst [vmem:[#allocation80_spill] sm:$0xff] %v10802_v37  ;;  %2619 = vmatmul.bf16.gmra.mxu2 %v12602_v53  ;;  %v10808_v54 = vpop.eup %7294  ;;  %v3677_v11 = vand.u32 2147483647, %v10667_v57  ;;  %v10819_v5 = vor.u32 1.1754944e-38, %v3679_v18  ;;  %v3759_v9 = vmul.f32 %v10784_v45, %v10713_v58  ;;  %v2569_v13 = vadd.f32 %v2568_v50, %v2519_v52 }
 0x343   : > { %v10824_v53 = vpop.eup %7296  ;;  %vm3673_vm4 = vweird.f32 %v10667_v57  ;;  %v3782_v12 = vand.u32 2147483647, %v10701_v34  ;;  %v10836_v19 = vor.u32 1.1754944e-38, %v3784_v61  ;;  %v6444_v18 = vmul.f32 -1.442695, %v12800_v15  ;;  %v6885_v61 = vld [vmem:[%s7789_s30 + $0xa0] sm:$0xff] }
 0x344   : > { %v7299_v33 = vpop.eup %7298  ;;  %v3586_v62 = vsel %vm10830_vm3, %v10662_v42, %v3582_v25  ;;  %vm3674_vm5 = vweird.f32 %v10753_v49  ;;  %v3767_v52 = vand.u32 2147483647, %v10713_v58  ;;  %v10847_v50 = vmul.f32 %v10680_v26, %v2569_v13  ;;  %v12801_v42 = vld [vmem:[#allocation104_spill] sm:$0xff]  ;;  %v2473_v31 = vpop.f32.mrf.mxu3  ;;  %5248 = vmatpush.bf16.msrb.mxu2 %v6885_v61 }
 0x345   : > { %v2424_v56 = vpop.f32.mrf.mxu2  ;;  %v7301_v35 = vpop.eup %7300  ;;  %v3691_v20 = vsel %vm10814_vm2, %v10672_v43, %v3687_v14  ;;  %v3671_v47 = vmul.f32 %v10753_v49, %v3670_v23  ;;  %v3775_v6 = vsub.f32 1.0, %v3774_v48  ;;  %vm3778_vm6 = vweird.f32 %v10701_v34  ;;  %vm10900_vm10 = vmor %vm3673_vm4, %vm3674_vm5  ;;  %v12830_v34 = vld [vmem:[#allocation113_spill] sm:$0xff] }
 0x346   : > { %v6445_v25 = vmul.f32 -1.442695, %v12801_v42  ;;  %v3760_v22 = vsub.f32 1.0, %v3759_v9  ;;  %v3769_v26 = vand.u32 2147483648, %v10713_v58  ;;  %v2474_v13 = vadd.f32 %v2473_v31, %v2424_v56 }
 0x347   : > { %vm10860_vm7 = vcmp.eq.f32.partialorder %v3677_v11, 8.507059e+37  ;;  %v3864_v43 = vmul.f32 %v10808_v54, %v10744_v59  ;;  %v3849_v14 = vmul.f32 %v10824_v53, %v10750_v2  ;;  %v10868_v23 = vadd.f32 1.0, %v7299_v33  ;;  %v2522_v11 = vpop.f32.mrf.mxu0 }
 0x348   : > { %7302 = vpow2.f32 %v6444_v18  ;;  %v3591_v56 = vsel %vm10789_vm14, %v10781_v30, %v3586_v62  ;;  %v3696_v41 = vsel %vm10797_vm1, %v3695_v38, %v3691_v20  ;;  %vm3763_vm8 = vweird.f32 %v10713_v58  ;;  %v2571_v30 = vpop.f32.mrf.mxu1  ;;  %v12805_v18 = vld [vmem:[#allocation103_spill] sm:$0xff] }
 0x349   : > { %v10876_v48 = vadd.f32 1.0, %v7301_v35  ;;  %v10879_v9 = vmul.f32 %v10734_v39, %v2474_v13  ;;  %v3672_v61 = vadd.f32 %v10753_v49, %v3671_v47  ;;  %v3776_v33 = vmul.f32 %v10779_v27, %v3775_v6  ;;  %v12804_v35 = vld [vmem:[#allocation102_spill] sm:$0xff]  ;;  %v12806_v6 = vld [vmem:[#allocation108_spill] sm:$0xff] }
 0x34a   : > { %vm3868_vm9 = vweird.f32 %v10744_v59  ;;  %v3872_v21 = vand.u32 2147483647, %v10744_v59  ;;  %7304 = vpow2.f32 %v6445_v25  ;;  %v3761_v3 = vmul.f32 %v10784_v45, %v3760_v22  ;;  %v12807_v13 = vld [vmem:[#allocation126_spill] sm:$0xff] }
 0x34b   : > { %v3874_v38 = vand.u32 2147483648, %v10744_v59  ;;  %v10889_v20 = vadd.f32 %v12805_v18, %v12804_v35  ;;  %v2572_v39 = vadd.f32 %v2571_v30, %v2522_v11  ;;  %v3865_v47 = vsub.f32 1.0, %v3864_v43  ;;  %v12808_v25 = vld [vmem:[#allocation34_spill] sm:$0xff]  ;;  %v12815_v30 = vld [vmem:[#allocation59_spill] sm:$0xff] }
 0x34c   : > { %v3850_v62 = vsub.f32 1.0, %v3849_v14  ;;  %7306 = vrcp.f32 %v10868_v23  ;;  %v6450_v31 = vmul.f32 -1.442695, %v12806_v6  ;;  %v12809_v37 = vpack.c.bf16 %v12807_v13, %v12808_v25  ;;  %v12814_v11 = vld [vmem:[#allocation62_spill] sm:$0xff]  ;;  %v6901_v18 = vld [vmem:[%s7789_s30 + $0x120] sm:$0xff] }
 0x34d   : > { %vm3779_vm11 = vweird.f32 %v10779_v27  ;;  %vm10905_vm12 = vcmp.eq.f32.partialorder %v3782_v12, 8.507059e+37  ;;  %v10909_v14 = vor.u32 1.1754944e-38, %v3769_v26  ;;  %7308 = vrcp.f32 %v10876_v48  ;;  %v2426_v35 = vpop.f32.mrf.mxu2  ;;  %v6909_v13 = vld [vmem:[%s7789_s30 + $0x160] sm:$0xff]  ;;  %5346 = vmatpush.bf16.msrb.mxu0 %v6901_v18 }
 0x34e   : > { %5165 = vmatmul.bf16.gmra.mxu0 %v12809_v37  ;;  %v10913_v37 = vmul.f32 %v10731_v7, %v2572_v39  ;;  %v12816_v57 = vpack.c.bf16 %v12814_v11, %v12815_v30  ;;  %v7303_v25 = vpop.eup %7302  ;;  %v4556_v12 = vmul.f32 %v3591_v56, %v12732_v0  ;;  %v10922_v10 = vmul.f32 %v3696_v41, %v12733_v36  ;;  %v2475_v11 = vpop.f32.mrf.mxu3  ;;  %vm10950_vm0 = vmor %vm3778_vm6, %vm3779_vm11 }
 0x34f   : > { %v3676_v26 = vsel %vm10900_vm10, %v10753_v49, %v3672_v61  ;;  %v3777_v7 = vadd.f32 %v10779_v27, %v3776_v33  ;;  %vm10928_vm13 = vcmp.eq.f32.partialorder %v3767_v52, 8.507059e+37  ;;  %v3762_v30 = vadd.f32 %v10784_v45, %v3761_v3  ;;  %5395 = vmatpush.bf16.msrb.mxu1 %v6909_v13  ;;  %v12826_v13 = vld [vmem:[#allocation29_spill] sm:$0xff] }
 0x350   : > { %5214 = vmatmul.bf16.gmra.mxu1 %v12816_v57  ;;  %vm3764_vm14 = vweird.f32 %v10784_v45  ;;  %v6451_v0 = vmul.f32 -1.442695, %v10889_v20  ;;  %v2476_v56 = vadd.f32 %v2475_v11, %v2426_v35  ;;  %v7305_v36 = vpop.eup %7304  ;;  %v3866_v41 = vmul.f32 %v10808_v54, %v3865_v47  ;;  %v2573_v22 = vpop.f32.mrf.mxu1  ;;  %v12825_v57 = vld [vmem:[#allocation27_spill] sm:$0xff]  ;;  %v12829_v11 = vld [vmem:[#allocation109_spill] sm:$0xff] }
 0x351   : > { %vm10936_vm15 = vcmp.eq.f32.partialorder %v3872_v21, 8.507059e+37  ;;  %v10940_v52 = vor.u32 1.1754944e-38, %v3874_v38  ;;  %v3851_v61 = vmul.f32 %v10824_v53, %v3850_v62  ;;  %7310 = vpow2.f32 %v6450_v31  ;;  %v2524_v38 = vpop.f32.mrf.mxu0  ;;  %vm10968_vm2 = vmor %vm3763_vm8, %vm3764_vm14  ;;  %2673 = vmatmul.bf16.gmra.mxu3 %v12826_v13 }
 0x352   : > { %v3681_v33 = vsel %vm10860_vm7, %v10819_v5, %v3676_v26  ;;  %vm3853_vm1 = vweird.f32 %v10750_v2  ;;  %v10955_v21 = vadd.f32 1.0, %v7303_v25  ;;  %v10957_v47 = vmul.f32 %v4556_v12, %v2476_v56  ;;  %v10959_v62 = vpop.eup %7306  ;;  %2624 = vmatmul.bf16.gmra.mxu2 %v12825_v57 }
 0x353   : > { %v3781_v5 = vsel %vm10950_vm0, %v10779_v27, %v3777_v7  ;;  %vm3869_vm3 = vweird.f32 %v10808_v54  ;;  %v3857_v40 = vand.u32 2147483647, %v10750_v2  ;;  %v3859_v31 = vand.u32 2147483648, %v10750_v2  ;;  %v10976_v35 = vpop.eup %7308 }
 0x354   : > { %v3766_v58 = vsel %vm10968_vm2, %v10784_v45, %v3762_v30  ;;  %v10981_v27 = vadd.f32 1.0, %v7305_v36  ;;  %7312 = vpow2.f32 %v6451_v0  ;;  %v2574_v18 = vadd.f32 %v2573_v22, %v2524_v38  ;;  %vm10993_vm5 = vmor %vm3868_vm9, %vm3869_vm3  ;;  %v6884_v36 = vld [vmem:[%s7789_s30 + $0x98] sm:$0xff] }
 0x355   : > { %v3867_v25 = vadd.f32 %v10808_v54, %v3866_v41  ;;  %v3852_v12 = vadd.f32 %v10824_v53, %v3851_v61  ;;  %vm3854_vm4 = vweird.f32 %v10824_v53  ;;  %v3954_v7 = vmul.f32 %v10959_v62, %v10868_v23  ;;  %v2429_v56 = vpop.f32.mrf.mxu2  ;;  %v6892_v41 = vld [vmem:[%s7789_s30 + $0xd8] sm:$0xff]  ;;  %5249 = vmatpush.bf16.msrb.mxu2 %v6884_v36 }
 0x356   : > { %7314 = vrcp.f32 %v10955_v21  ;;  %v6457_v30 = vmul.f32 -1.442695, %v12829_v11  ;;  %v11002_v0 = vmul.f32 %v10787_v24, %v2574_v18  ;;  %v4562_v59 = vmul.f32 %v3681_v33, %v12746_v32  ;;  %v2478_v57 = vpop.f32.mrf.mxu3  ;;  %vm11020_vm6 = vmor %vm3853_vm1, %vm3854_vm4  ;;  %5298 = vmatpush.bf16.msrb.mxu3 %v6892_v41 }
 0x357   : > { %v7311_v61 = vpop.eup %7310  ;;  %v3786_v3 = vsel %vm10905_vm12, %v10836_v19, %v3781_v5  ;;  %v3939_v38 = vmul.f32 %v10976_v35, %v10876_v48  ;;  %v6456_v22 = vmul.f32 -1.442695, %v12830_v34  ;;  %v3771_v24 = vsel %vm10928_vm13, %v10909_v14, %v3766_v58 }
 0x358   : > { %7316 = vrcp.f32 %v10981_v27  ;;  %v2479_v19 = vadd.f32 %v2478_v57, %v2429_v56  ;;  %v3871_v14 = vsel %vm10993_vm5, %v10808_v54, %v3867_v25  ;;  %v3856_v2 = vsel %vm11020_vm6, %v10824_v53, %v3852_v12  ;;  %v2576_v53 = vpop.f32.mrf.mxu1 }
 0x359   : > { %vm11033_vm7 = vcmp.eq.f32.partialorder %v3857_v40, 8.507059e+37  ;;  %v3860_v33 = vor.u32 1.1754944e-38, %v3859_v31  ;;  %v3955_v58 = vsub.f32 1.0, %v3954_v7  ;;  %v11037_v18 = vadd.f32 1.0, %v7311_v61  ;;  %v2527_v13 = vpop.f32.mrf.mxu0  ;;  %v12836_v61 = vld [vmem:[#allocation127_spill] sm:$0xff] }
 0x35a   : > { %v7313_v5 = vpop.eup %7312  ;;  %7318 = vpow2.f32 %v6457_v30  ;;  %v11039_v56 = vmul.f32 %v4562_v59, %v2479_v19  ;;  %v11042_v45 = vmul.f32 %v3786_v3, %v10526_v46  ;;  %v4568_v54 = vmul.f32 %v3771_v24, %v12755_v60  ;;  %v12837_v59 = vld [vmem:[#allocation35_spill] sm:$0xff] }
 0x35b   : > { %v3940_v25 = vsub.f32 1.0, %v3939_v38  ;;  %7320 = vpow2.f32 %v6456_v22  ;;  %v3876_v31 = vsel %vm10936_vm15, %v10940_v52, %v3871_v14  ;;  %v3962_v12 = vand.u32 2147483647, %v10868_v23  ;;  %v12839_v38 = vld [vmem:[#allocation105_spill] sm:$0xff]  ;;  %v12840_v22 = vld [vmem:[#allocation106_spill] sm:$0xff] }
 0x35c   : > { %12835 = vst [vmem:[#allocation81_spill] sm:$0xff] %v11039_v56  ;;  %v11045_v40 = vpop.eup %7314  ;;  %v3964_v7 = vand.u32 2147483648, %v10868_v23  ;;  %v2577_v30 = vadd.f32 %v2576_v53, %v2527_v13  ;;  %v3861_v46 = vsel %vm11033_vm7, %v3860_v33, %v3856_v2  ;;  %v3947_v60 = vand.u32 2147483647, %v10876_v48  ;;  %v6900_v14 = vld [vmem:[%s7789_s30 + $0x118] sm:$0xff] }
 0x35d   : > { %v3949_v36 = vand.u32 2147483648, %v10876_v48  ;;  %v11056_v41 = vadd.f32 1.0, %v7313_v5  ;;  %v12838_v49 = vpack.c.bf16 %v12836_v61, %v12837_v59  ;;  %v3956_v3 = vmul.f32 %v10959_v62, %v3955_v58  ;;  %v2431_v19 = vpop.f32.mrf.mxu2  ;;  %v6908_v2 = vld [vmem:[%s7789_s30 + $0x158] sm:$0xff]  ;;  %5347 = vmatpush.bf16.msrb.mxu0 %v6900_v14 }
 0x35e   : > { %v11061_v52 = vpop.eup %7316  ;;  %7322 = vrcp.f32 %v11037_v18  ;;  %v11067_v57 = vadd.f32 %v12840_v22, %v12839_v38  ;;  %v11070_v24 = vmul.f32 %v10922_v10, %v2577_v30  ;;  %v12842_v32 = vpack.c.bf16 %v9959_v17, %v9888_v28  ;;  %v2480_v58 = vpop.f32.mrf.mxu3  ;;  %v12843_v28 = vld [vmem:[#allocation116_spill] sm:$0xff]  ;;  %5396 = vmatpush.bf16.msrb.mxu1 %v6908_v2  ;;  %v12849_v14 = vld [vmem:[#allocation18_spill] sm:$0xff] }
 0x35f   : > { %5170 = vmatmul.bf16.gmra.mxu0 %v12838_v49  ;;  %v11078_v39 = vmul.f32 %v3876_v31, %v12759_v44  ;;  %vm3958_vm8 = vweird.f32 %v10868_v23  ;;  %v3941_v33 = vmul.f32 %v10976_v35, %v3940_v25  ;;  %v4029_v5 = vmul.f32 %v11045_v40, %v10955_v21 }
 0x360   : > { %12841 = vst [vmem:[#allocation24_spill] sm:$0xff] %v11070_v24  ;;  %5219 = vmatmul.bf16.gmra.mxu1 %v12842_v32  ;;  %v7319_v10 = vpop.eup %7318  ;;  %v3965_v13 = vor.u32 1.1754944e-38, %v3964_v7  ;;  %vm3943_vm9 = vweird.f32 %v10876_v48  ;;  %v6462_v17 = vmul.f32 -1.442695, %v12843_v28  ;;  %v2481_v53 = vadd.f32 %v2480_v58, %v2431_v19  ;;  %v2578_v22 = vpop.f32.mrf.mxu1  ;;  %v12863_v24 = vld [vmem:[#allocation46_spill] sm:$0xff] }
 0x361   : > { %v7321_v30 = vpop.eup %7320  ;;  %v4574_v44 = vmul.f32 %v3861_v46, %v12762_v63  ;;  %vm3959_vm10 = vweird.f32 %v10959_v62  ;;  %vm11088_vm11 = vcmp.eq.f32.partialorder %v3962_v12, 8.507059e+37  ;;  %v3950_v31 = vor.u32 1.1754944e-38, %v3949_v36  ;;  %v2529_v46 = vpop.f32.mrf.mxu0  ;;  %2678 = vmatmul.bf16.gmra.mxu3 %v12849_v14 }
 0x362   : > { %v4044_v7 = vmul.f32 %v11061_v52, %v10981_v27  ;;  %v3957_v61 = vadd.f32 %v10959_v62, %v3956_v3  ;;  %vm11095_vm12 = vcmp.eq.f32.partialorder %v3947_v60, 8.507059e+37  ;;  %7324 = vrcp.f32 %v11056_v41  ;;  %v12848_v3 = vld [vmem:[#allocation16_spill] sm:$0xff]  ;;  %vm11119_vm15 = vmor %vm3958_vm8, %vm3959_vm10 }
 0x363   : > { %v6463_v63 = vmul.f32 -1.442695, %v11067_v57  ;;  %v11101_v49 = vmul.f32 %v4568_v54, %v2481_v53  ;;  %v3942_v12 = vadd.f32 %v10976_v35, %v3941_v33  ;;  %vm3944_vm13 = vweird.f32 %v10976_v35  ;;  %2629 = vmatmul.bf16.gmra.mxu2 %v12848_v3  ;;  %v6891_v3 = vld [vmem:[%s7789_s30 + $0xd0] sm:$0xff] }
 0x364   : > { %v4030_v36 = vsub.f32 1.0, %v4029_v5  ;;  %v11105_v38 = vadd.f32 1.0, %v7319_v10  ;;  %v11108_v60 = vpop.eup %7322  ;;  %vm4048_vm14 = vweird.f32 %v10981_v27  ;;  %v4052_v32 = vand.u32 2147483647, %v10981_v27  ;;  %vm11135_vm0 = vmor %vm3943_vm9, %vm3944_vm13  ;;  %5299 = vmatpush.bf16.msrb.mxu3 %v6891_v3 }
 0x365   : > { %v11112_v19 = vadd.f32 1.0, %v7321_v30  ;;  %7326 = vpow2.f32 %v6462_v17  ;;  %v2579_v54 = vadd.f32 %v2578_v22, %v2529_v46  ;;  %v4054_v33 = vand.u32 2147483648, %v10981_v27  ;;  %v2434_v46 = vpop.f32.mrf.mxu2  ;;  %v6883_v22 = vld [vmem:[%s7789_s30 + $0x90] sm:$0xff] }
 0x366   : > { %v4037_v5 = vand.u32 2147483647, %v10955_v21  ;;  %v4039_v58 = vand.u32 2147483648, %v10955_v21  ;;  %v3961_v17 = vsel %vm11119_vm15, %v10959_v62, %v3957_v61  ;;  %v4045_v53 = vsub.f32 1.0, %v4044_v7  ;;  %v2483_v14 = vpop.f32.mrf.mxu3  ;;  %5250 = vmatpush.bf16.msrb.mxu2 %v6883_v22 }
 0x367   : > { %7328 = vpow2.f32 %v6463_v63  ;;  %v11140_v30 = vmul.f32 %v11042_v45, %v2579_v54  ;;  %v3946_v62 = vsel %vm11135_vm0, %v10976_v35, %v3942_v12  ;;  %v4031_v61 = vmul.f32 %v11045_v40, %v4030_v36  ;;  %v12855_v45 = vld [vmem:[#allocation118_spill] sm:$0xff]  ;;  %v12862_v35 = vld [vmem:[#allocation112_spill] sm:$0xff] }
 0x368   : > { %v4119_v48 = vmul.f32 %v11108_v60, %v11037_v18  ;;  %7330 = vrcp.f32 %v11105_v38  ;;  %v11151_v7 = vpop.eup %7324  ;;  %v6468_v63 = vmul.f32 -1.442695, %v12855_v45  ;;  %v2484_v54 = vadd.f32 %v2483_v14, %v2434_v46 }
 0x369   : > { %12854 = vst [vmem:[#allocation87_spill] sm:$0xff] %v11140_v30  ;;  %7332 = vrcp.f32 %v11112_v19  ;;  %v11157_v12 = vor.u32 1.1754944e-38, %v4054_v33  ;;  %vm4033_vm1 = vweird.f32 %v10955_v21  ;;  %v4040_v36 = vor.u32 1.1754944e-38, %v4039_v58  ;;  %v2532_v22 = vpop.f32.mrf.mxu0  ;;  %v12864_v30 = vld [vmem:[#allocation42_spill] sm:$0xff] }
 0x36a   : > { %v4144_v2 = vand.u32 2147483648, %v11056_v41  ;;  %v3966_v10 = vsel %vm11088_vm11, %v3965_v13, %v3961_v17  ;;  %v4046_v43 = vmul.f32 %v11061_v52, %v4045_v53  ;;  %vm4034_vm2 = vweird.f32 %v11045_v40  ;;  %v12860_v17 = vld [vmem:[#allocation117_spill] sm:$0xff]  ;;  %v2581_v53 = vpop.f32.mrf.mxu1  ;;  %v12875_v21 = vld [vmem:[#allocation22_spill] sm:$0xff] }
 0x36b   : > { %v7327_v23 = vpop.eup %7326  ;;  %vm11165_vm3 = vcmp.eq.f32.partialorder %v4037_v5, 8.507059e+37  ;;  %v11169_v33 = vmul.f32 %v4574_v44, %v2484_v54  ;;  %v3951_v58 = vsel %vm11095_vm12, %v3950_v31, %v3946_v62  ;;  %vm11173_vm4 = vcmp.eq.f32.partialorder %v4052_v32, 8.507059e+37  ;;  %v12861_v54 = vld [vmem:[#allocation111_spill] sm:$0xff]  ;;  %vm11205_vm6 = vmor %vm4033_vm1, %vm4034_vm2 }
 0x36c   : > { %v4032_v13 = vadd.f32 %v11045_v40, %v4031_v61  ;;  %v4134_v25 = vmul.f32 %v11151_v7, %v11056_v41  ;;  %v6469_v5 = vmul.f32 -1.442695, %v12860_v17  ;;  %vm4049_vm5 = vweird.f32 %v11061_v52 }
 0x36d   : > { %v7329_v14 = vpop.eup %7328  ;;  %v4120_v44 = vsub.f32 1.0, %v4119_v48  ;;  %7334 = vpow2.f32 %v6468_v63  ;;  %v2582_v59 = vadd.f32 %v2581_v53, %v2532_v22  ;;  %v4142_v32 = vand.u32 2147483647, %v11056_v41  ;;  %vm11221_vm7 = vmor %vm4048_vm14, %vm4049_vm5 }
 0x36e   : > { %v11182_v31 = vpop.eup %7330  ;;  %v11185_v62 = vor.u32 1.1754944e-38, %v4144_v2  ;;  %v11187_v61 = vadd.f32 1.0, %v7327_v23  ;;  %v11191_v26 = vadd.f32 %v12862_v35, %v12861_v54  ;;  %v12865_v56 = vpack.c.bf16 %v12863_v24, %v12864_v30  ;;  %v12869_v24 = vld [vmem:[#allocation67_spill] sm:$0xff]  ;;  %v12873_v54 = vld [vmem:[#allocation121_spill] sm:$0xff] }
 0x36f   : > { %v11196_v48 = vpop.eup %7332  ;;  %v4581_v63 = vmul.f32 %v3966_v10, %v10726_v1  ;;  %v4580_v22 = vmul.f32 %v3951_v58, %v10741_v16  ;;  %v4047_v53 = vadd.f32 %v11061_v52, %v4046_v43  ;;  %v11210_v35 = vmul.f32 %v11078_v39, %v2582_v59  ;;  %v2436_v1 = vpop.f32.mrf.mxu2  ;;  %v6899_v10 = vld [vmem:[%s7789_s30 + $0x110] sm:$0xff] }
 0x370   : > { %5175 = vmatmul.bf16.gmra.mxu0 %v12865_v56  ;;  %v12868_v56 = vld [vmem:[#allocation69_spill] sm:$0xff]  ;;  %v4036_v43 = vsel %vm11205_vm6, %v11045_v40, %v4032_v13  ;;  %v4135_v39 = vsub.f32 1.0, %v4134_v25  ;;  %vm4138_vm8 = vweird.f32 %v11056_v41  ;;  %v11229_v23 = vadd.f32 1.0, %v7329_v14  ;;  %v2485_v58 = vpop.f32.mrf.mxu3 }
 0x371   : > { %v12870_v30 = vpack.c.bf16 %v12868_v56, %v12869_v24  ;;  %v6907_v16 = vld [vmem:[%s7789_s30 + $0x150] sm:$0xff]  ;;  %7336 = vpow2.f32 %v6469_v5  ;;  %v4121_v59 = vmul.f32 %v11108_v60, %v4120_v44  ;;  %v4224_v27 = vmul.f32 %v11182_v31, %v11105_v38  ;;  %5348 = vmatpush.bf16.msrb.mxu0 %v6899_v10  ;;  %v2534_v2 = vpop.f32.mrf.mxu0  ;;  %2683 = vmatmul.bf16.gmra.mxu3 %v12875_v21 }
 0x372   : > { %v6474_v56 = vmul.f32 -1.442695, %v12873_v54  ;;  %v2486_v24 = vadd.f32 %v2485_v58, %v2436_v1  ;;  %5397 = vmatpush.bf16.msrb.mxu1 %v6907_v16  ;;  %vm4123_vm9 = vweird.f32 %v11037_v18  ;;  %v4209_v40 = vmul.f32 %v11196_v48, %v11112_v19  ;;  %v2583_v16 = vpop.f32.mrf.mxu1  ;;  %v12874_v58 = vld [vmem:[#allocation20_spill] sm:$0xff] }
 0x373   : > { %5224 = vmatmul.bf16.gmra.mxu1 %v12870_v30  ;;  %7338 = vrcp.f32 %v11187_v61  ;;  %v6475_v13 = vmul.f32 -1.442695, %v11191_v26  ;;  %v7335_v25 = vpop.eup %7334  ;;  %v4051_v5 = vsel %vm11221_vm7, %v11061_v52, %v4047_v53  ;;  %v4127_v14 = vand.u32 2147483647, %v11037_v18  ;;  %2634 = vmatmul.bf16.gmra.mxu2 %v12874_v58 }
 0x374   : > { %v4129_v44 = vand.u32 2147483648, %v11037_v18  ;;  %v11245_v30 = vmul.f32 %v4580_v22, %v2486_v24  ;;  %v4041_v1 = vsel %vm11165_vm3, %v4040_v36, %v4036_v43  ;;  %v4136_v10 = vmul.f32 %v11151_v7, %v4135_v39  ;;  %v12894_v36 = vld [vmem:[#allocation36_spill] sm:$0xff] }
 0x375   : > { %vm4124_vm10 = vweird.f32 %v11108_v60  ;;  %7340 = vrcp.f32 %v11229_v23  ;;  %v4122_v52 = vadd.f32 %v11108_v60, %v4121_v59  ;;  %v4225_v53 = vsub.f32 1.0, %v4224_v27 }
 0x376   : > { %7342 = vpow2.f32 %v6474_v56  ;;  %v2584_v22 = vadd.f32 %v2583_v16, %v2534_v2  ;;  %vm11255_vm11 = vcmp.eq.f32.partialorder %v4142_v32, 8.507059e+37  ;;  %v4210_v43 = vsub.f32 1.0, %v4209_v40  ;;  %v6882_v40 = vld [vmem:[%s7789_s30 + $0x88] sm:$0xff]  ;;  %vm11285_vm14 = vmor %vm4123_vm9, %vm4124_vm10 }
 0x377   : > { %v7337_v46 = vpop.eup %7336  ;;  %v11259_v39 = vadd.f32 1.0, %v7335_v25  ;;  %7344 = vpow2.f32 %v6475_v13  ;;  %v4056_v59 = vsel %vm11173_vm4, %v11157_v12, %v4051_v5  ;;  %vm4139_vm12 = vweird.f32 %v11151_v7  ;;  %v2439_v56 = vpop.f32.mrf.mxu2  ;;  %v6890_v25 = vld [vmem:[%s7789_s30 + $0xc8] sm:$0xff]  ;;  %5251 = vmatpush.bf16.msrb.mxu2 %v6882_v40 }
 0x378   : > { %vm11267_vm13 = vcmp.eq.f32.partialorder %v4127_v14, 8.507059e+37  ;;  %v11271_v32 = vmul.f32 %v4581_v63, %v2584_v22  ;;  %v4586_v13 = vmul.f32 %v4041_v1, %v12800_v15  ;;  %v4137_v16 = vadd.f32 %v11151_v7, %v4136_v10  ;;  %v2488_v5 = vpop.f32.mrf.mxu3  ;;  %5300 = vmatpush.bf16.msrb.mxu3 %v6890_v25  ;;  %vm11305_vm15 = vmor %vm4138_vm8, %vm4139_vm12  ;;  %v6906_v1 = vld [vmem:[%s7789_s30 + $0x148] sm:$0xff] }
 0x379   : > { %v11275_v2 = vpop.eup %7338  ;;  %v4232_v3 = vand.u32 2147483647, %v11105_v38  ;;  %v4234_v12 = vand.u32 2147483648, %v11105_v38  ;;  %v4226_v14 = vmul.f32 %v11182_v31, %v4225_v53  ;;  %v11290_v58 = vadd.f32 1.0, %v7337_v46  ;;  %v12892_v46 = vld [vmem:[#allocation25_spill] sm:$0xff]  ;;  %5398 = vmatpush.bf16.msrb.mxu1 %v6906_v1 }
 0x37a   : > { %v2489_v15 = vadd.f32 %v2488_v5, %v2439_v56  ;;  %v4126_v18 = vsel %vm11285_vm14, %v11108_v60, %v4122_v52  ;;  %v4130_v22 = vor.u32 1.1754944e-38, %v4129_v44  ;;  %v4211_v21 = vmul.f32 %v11196_v48, %v4210_v43  ;;  %v2537_v44 = vpop.f32.mrf.mxu0  ;;  %v2586_v5 = vpop.f32.mrf.mxu1 }
 0x37b   : > { %v11294_v10 = vpop.eup %7340  ;;  %7346 = vrcp.f32 %v11259_v39  ;;  %vm4228_vm0 = vweird.f32 %v11105_v38  ;;  %vm4229_vm1 = vweird.f32 %v11182_v31  ;;  %v4299_v60 = vmul.f32 %v11275_v2, %v11187_v61 }
 0x37c   : > { %v7343_v53 = vpop.eup %7342  ;;  %v11313_v52 = vmul.f32 %v4586_v13, %v2489_v15  ;;  %v4587_v56 = vmul.f32 %v4056_v59, %v12801_v42  ;;  %v4141_v41 = vsel %vm11305_vm15, %v11151_v7, %v4137_v16  ;;  %vm11319_vm2 = vcmp.eq.f32.partialorder %v4232_v3, 8.507059e+37  ;;  %vm11329_vm3 = vmor %vm4228_vm0, %vm4229_vm1  ;;  %v12888_v3 = vld [vmem:[#allocation48_spill] sm:$0xff] }
 0x37d   : > { %v7345_v43 = vpop.eup %7344  ;;  %v4235_v25 = vor.u32 1.1754944e-38, %v4234_v12  ;;  %v4131_v63 = vsel %vm11267_vm13, %v4130_v22, %v4126_v18  ;;  %v4227_v13 = vadd.f32 %v11182_v31, %v4226_v14  ;;  %7348 = vrcp.f32 %v11290_v58  ;;  %v12889_v12 = vld [vmem:[#allocation128_spill] sm:$0xff] }
 0x37e   : > { %v2587_v42 = vadd.f32 %v2586_v5, %v2537_v44  ;;  %v4212_v59 = vadd.f32 %v11196_v48, %v4211_v21  ;;  %vm4214_vm4 = vweird.f32 %v11196_v48  ;;  %v4314_v27 = vmul.f32 %v11294_v10, %v11229_v23  ;;  %v12891_v21 = vld [vmem:[#allocation75_spill] sm:$0xff] }
 0x37f   : > { %v11337_v16 = vadd.f32 1.0, %v7343_v53  ;;  %v12890_v14 = vpack.c.bf16 %v12888_v3, %v12889_v12  ;;  %v4146_v38 = vsel %vm11255_vm11, %v11185_v62, %v4141_v41  ;;  %v4300_v15 = vsub.f32 1.0, %v4299_v60  ;;  %v2441_v5 = vpop.f32.mrf.mxu2  ;;  %v6898_v53 = vld [vmem:[%s7789_s30 + $0x108] sm:$0xff]  ;;  %v12897_v12 = vld [vmem:[#allocation37_spill] sm:$0xff] }
 0x380   : > { %v11345_v18 = vadd.f32 1.0, %v7345_v43  ;;  %v11347_v22 = vmul.f32 %v4587_v56, %v2587_v42  ;;  %v12893_v44 = vpack.c.bf16 %v12891_v21, %v12892_v46  ;;  %vm4213_vm5 = vweird.f32 %v11112_v19  ;;  %v2490_v43 = vpop.f32.mrf.mxu3  ;;  %5349 = vmatpush.bf16.msrb.mxu0 %v6898_v53 }
 0x381   : > { %5180 = vmatmul.bf16.gmra.mxu0 %v12890_v14  ;;  %v11354_v24 = vpop.eup %7346  ;;  %v4217_v3 = vand.u32 2147483647, %v11112_v19  ;;  %v4219_v62 = vand.u32 2147483648, %v11112_v19  ;;  %v6386_v60 = vmul.f32 -1.442695, %v12894_v36  ;;  %v4592_v56 = vmul.f32 %v4131_v63, %v12806_v6  ;;  %vm11366_vm6 = vmor %vm4213_vm5, %vm4214_vm4 }
 0x382   : > { %v4231_v41 = vsel %vm11329_vm3, %v11182_v31, %v4227_v13  ;;  %v6392_v14 = vmul.f32 -1.442695, %v12897_v12  ;;  %v2491_v21 = vadd.f32 %v2490_v43, %v2441_v5  ;;  %v4593_v19 = vmul.f32 %v4146_v38, %v10889_v20  ;;  %v2539_v46 = vpop.f32.mrf.mxu0  ;;  %v6881_v43 = vld [vmem:[%s7789_s30 + $0x80] sm:$0xff] }
 0x383   : > { %5229 = vmatmul.bf16.gmra.mxu1 %v12893_v44  ;;  %v4216_v6 = vsel %vm11366_vm6, %v11196_v48, %v4212_v59  ;;  %v4315_v63 = vsub.f32 1.0, %v4314_v27  ;;  %7350 = vrcp.f32 %v11337_v16  ;;  %v11376_v31 = vpop.eup %7348  ;;  %v4301_v13 = vmul.f32 %v11275_v2, %v4300_v15  ;;  %v2588_v59 = vpop.f32.mrf.mxu1  ;;  %2639 = vmatmul.bf16.gmra.mxu2 %v12695_v4  ;;  %v12898_v44 = vld [vmem:[#allocation26_spill] sm:$0xff] }
 0x384   : > { %v4389_v7 = vmul.f32 %v11354_v24, %v11259_v39  ;;  %7352 = vrcp.f32 %v11345_v18  ;;  %v11382_v1 = vmul.f32 %v4592_v56, %v2491_v21  ;;  %v4236_v20 = vsel %vm11319_vm2, %v4235_v25, %v4231_v41  ;;  %2688 = vmatmul.bf16.gmra.mxu3 %v12898_v44  ;;  %v6889_v56 = vld [vmem:[%s7789_s30 + $0xc0] sm:$0xff]  ;;  %5252 = vmatpush.bf16.msrb.mxu2 %v6881_v43 }
 0x385   : > { %vm4218_vm7 = vcmp.eq.f32.partialorder %v4217_v3, 8.507059e+37  ;;  %v4220_v48 = vor.u32 1.1754944e-38, %v4219_v62  ;;  %7354 = vpow2.f32 %v6386_v60  ;;  %v4322_v27 = vand.u32 2147483647, %v11229_v23  ;;  %5301 = vmatpush.bf16.msrb.mxu3 %v6889_v56  ;;  %v6897_v43 = vld [vmem:[%s7789_s30 + $0x100] sm:$0xff] }
 0x386   : > { %v4324_v38 = vand.u32 2147483648, %v11229_v23  ;;  %7356 = vpow2.f32 %v6392_v14  ;;  %v2589_v15 = vadd.f32 %v2588_v59, %v2539_v46  ;;  %v4316_v40 = vmul.f32 %v11294_v10, %v4315_v63  ;;  %5350 = vmatpush.bf16.msrb.mxu0 %v6897_v43 }
 0x387   : > { %v4221_v5 = vsel %vm4218_vm7, %v4220_v48, %v4216_v6  ;;  %v4404_v25 = vmul.f32 %v11376_v31, %v11290_v58  ;;  %v4748_v53 = vpack.c.bf16 %v11382_v1, %v11313_v52  ;;  %v4302_v4 = vadd.f32 %v11275_v2, %v4301_v13  ;;  %v2444_v60 = vpop.f32.mrf.mxu2 }
 0x388   : > { %vm4304_vm8 = vweird.f32 %v11275_v2  ;;  %v4390_v3 = vsub.f32 1.0, %v4389_v7  ;;  %v11397_v62 = vmul.f32 %v4593_v19, %v2589_v15  ;;  %v4599_v42 = vmul.f32 %v4236_v20, %v12829_v11  ;;  %v2493_v6 = vpop.f32.mrf.mxu3 }
 0x389   : > { %v11401_v41 = vpop.eup %7350  ;;  %vm4318_vm9 = vweird.f32 %v11229_v23  ;;  %v4307_v14 = vand.u32 2147483647, %v11187_v61  ;;  %v4309_v21 = vand.u32 2147483648, %v11187_v61  ;;  %v4598_v13 = vmul.f32 %v4221_v5, %v12830_v34  ;;  %v6905_v34 = vld [vmem:[%s7789_s30 + $0x140] sm:$0xff] }
 0x38a   : > { %v11407_v63 = vpop.eup %7352  ;;  %vm11410_vm10 = vcmp.eq.f32.partialorder %v4322_v27, 8.507059e+37  ;;  %vm4303_vm11 = vweird.f32 %v11187_v61  ;;  %v2494_v7 = vadd.f32 %v2493_v6, %v2444_v60  ;;  %v4317_v20 = vadd.f32 %v11294_v10, %v4316_v40  ;;  %v2542_v5 = vpop.f32.mrf.mxu0  ;;  %v12905_v6 = vld [vmem:[#allocation52_spill] sm:$0xff]  ;;  %5399 = vmatpush.bf16.msrb.mxu1 %v6905_v34 }
 0x38b   : > { %v7355_v46 = vpop.eup %7354  ;;  %vm4319_vm12 = vweird.f32 %v11294_v10  ;;  %v4325_v48 = vor.u32 1.1754944e-38, %v4324_v38  ;;  %vm11421_vm13 = vmor %vm4303_vm11, %vm4304_vm8  ;;  %v4405_v59 = vsub.f32 1.0, %v4404_v25  ;;  %v4391_v15 = vmul.f32 %v11354_v24, %v4390_v3  ;;  %v2591_v60 = vpop.f32.mrf.mxu1 }
 0x38c   : > { %v7357_v61 = vpop.eup %7356  ;;  %v4306_v27 = vsel %vm11421_vm13, %v11275_v2, %v4302_v4  ;;  %v4479_v44 = vmul.f32 %v11401_v41, %v11337_v16  ;;  %v11431_v38 = vmul.f32 %v4598_v13, %v2494_v7  ;;  %vm4308_vm14 = vcmp.eq.f32.partialorder %v4307_v14, 8.507059e+37  ;;  %vm11439_vm0 = vmor %vm4318_vm9, %vm4319_vm12  ;;  %v12906_v13 = vld [vmem:[#allocation130_spill] sm:$0xff] }
 0x38d   : > { %v4310_v40 = vor.u32 1.1754944e-38, %v4309_v21  ;;  %vm4408_vm15 = vweird.f32 %v11290_v58  ;;  %v4412_v25 = vand.u32 2147483647, %v11290_v58  ;;  %vm4393_vm1 = vweird.f32 %v11259_v39  ;;  %v12908_v2 = vld [vmem:[#allocation78_spill] sm:$0xff] }
 0x38e   : > { %vm4394_vm2 = vweird.f32 %v11354_v24  ;;  %v11445_v4 = vadd.f32 1.0, %v7355_v46  ;;  %v2592_v3 = vadd.f32 %v2591_v60, %v2542_v5  ;;  %v4321_v56 = vsel %vm11439_vm0, %v11294_v10, %v4317_v20  ;;  %v12909_v10 = vld [vmem:[#allocation72_spill] sm:$0xff] }
 0x38f   : > { %v4311_v14 = vsel %vm4308_vm14, %v4310_v40, %v4306_v27  ;;  %v4494_v23 = vmul.f32 %v11407_v63, %v11345_v18  ;;  %v11453_v21 = vadd.f32 1.0, %v7357_v61  ;;  %v12907_v7 = vpack.c.bf16 %v12905_v6, %v12906_v13  ;;  %v2446_v27 = vpop.f32.mrf.mxu2  ;;  %v12911_v6 = vld [vmem:[#allocation32_spill] sm:$0xff]  ;;  %vm11480_vm4 = vmor %vm4393_vm1, %vm4394_vm2 }
 0x390   : > { %v4406_v46 = vmul.f32 %v11376_v31, %v4405_v59  ;;  %v4392_v5 = vadd.f32 %v11354_v24, %v4391_v15  ;;  %v4480_v60 = vsub.f32 1.0, %v4479_v44  ;;  %v11461_v11 = vmul.f32 %v4599_v42, %v2592_v3  ;;  %v2495_v59 = vpop.f32.mrf.mxu3  ;;  %v12912_v42 = vld [vmem:[#allocation114_spill] sm:$0xff] }
 0x391   : > { %5185 = vmatmul.bf16.gmra.mxu0 %v12907_v7  ;;  %v12910_v20 = vpack.c.bf16 %v12908_v2, %v12909_v10  ;;  %vm4409_vm3 = vweird.f32 %v11376_v31  ;;  %v4397_v61 = vand.u32 2147483647, %v11259_v39  ;;  %v4399_v40 = vand.u32 2147483648, %v11259_v39 }
 0x392   : > { %v6398_v13 = vmul.f32 -1.442695, %v12911_v6  ;;  %v4604_v15 = vmul.f32 %v4311_v14, %v12843_v28  ;;  %7358 = vrcp.f32 %v11445_v4  ;;  %v6404_v44 = vmul.f32 -1.442695, %v12912_v42  ;;  %vm11496_vm5 = vmor %vm4408_vm15, %vm4409_vm3 }
 0x393   : > { %5234 = vmatmul.bf16.gmra.mxu1 %v12910_v20  ;;  %v2496_v3 = vadd.f32 %v2495_v59, %v2446_v27  ;;  %v4326_v43 = vsel %vm11410_vm10, %v4325_v48, %v4321_v56  ;;  %v4414_v7 = vand.u32 2147483648, %v11290_v58  ;;  %v4495_v34 = vsub.f32 1.0, %v4494_v23  ;;  %v2544_v56 = vpop.f32.mrf.mxu0  ;;  %v12920_v20 = vld [vmem:[#allocation30_spill] sm:$0xff] }
 0x394   : > { %7360 = vrcp.f32 %v11453_v21  ;;  %v4407_v28 = vadd.f32 %v11376_v31, %v4406_v46  ;;  %v4396_v19 = vsel %vm11480_vm4, %v11354_v24, %v4392_v5  ;;  %v4481_v48 = vmul.f32 %v11401_v41, %v4480_v60  ;;  %v2593_v24 = vpop.f32.mrf.mxu1  ;;  %v12919_v5 = vld [vmem:[#allocation28_spill] sm:$0xff]  ;;  %2693 = vmatmul.bf16.gmra.mxu3 %v12920_v20 }
 0x395   : > { %v11490_v14 = vmul.f32 %v4604_v15, %v2496_v3  ;;  %vm11500_vm6 = vcmp.eq.f32.partialorder %v4412_v25, 8.507059e+37  ;;  %v4400_v46 = vor.u32 1.1754944e-38, %v4399_v40  ;;  %7362 = vpow2.f32 %v6398_v13  ;;  %2644 = vmatmul.bf16.gmra.mxu2 %v12919_v5 }
 0x396   : > { %v4605_v60 = vmul.f32 %v4326_v43, %v11067_v57  ;;  %vm4398_vm7 = vcmp.eq.f32.partialorder %v4397_v61, 8.507059e+37  ;;  %7364 = vpow2.f32 %v6404_v44  ;;  %v2594_v10 = vadd.f32 %v2593_v24, %v2544_v56 }
 0x397   : > { %v4415_v58 = vor.u32 1.1754944e-38, %v4414_v7  ;;  %v4401_v27 = vsel %vm4398_vm7, %v4400_v46, %v4396_v19  ;;  %v4496_v59 = vmul.f32 %v11407_v63, %v4495_v34  ;;  %v4754_v25 = vpack.c.bf16 %v11490_v14, %v11431_v38  ;;  %v2449_v13 = vpop.f32.mrf.mxu2 }
 0x398   : > { %v11510_v15 = vpop.eup %7358  ;;  %v4411_v40 = vsel %vm11496_vm5, %v11376_v31, %v4407_v28  ;;  %v4482_v57 = vadd.f32 %v11401_v41, %v4481_v48  ;;  %vm4484_vm8 = vweird.f32 %v11401_v41  ;;  %v11517_v61 = vmul.f32 %v4605_v60, %v2594_v10  ;;  %v2498_v43 = vpop.f32.mrf.mxu3 }
 0x399   : > { %vm4483_vm9 = vweird.f32 %v11337_v16  ;;  %v4489_v3 = vand.u32 2147483648, %v11337_v16  ;;  %v4610_v7 = vmul.f32 %v4401_v27, %v12855_v45  ;;  %v4487_v2 = vand.u32 2147483647, %v11337_v16 }
 0x39a   : > { %v11519_v44 = vpop.eup %7360  ;;  %v2499_v34 = vadd.f32 %v2498_v43, %v2449_v13  ;;  %v4416_v19 = vsel %vm11500_vm6, %v4415_v58, %v4411_v40  ;;  %v4497_v48 = vadd.f32 %v11407_v63, %v4496_v59  ;;  %vm4498_vm10 = vweird.f32 %v11345_v18  ;;  %vm11534_vm12 = vmor %vm4483_vm9, %vm4484_vm8 }
 0x39b   : > { %v7363_v28 = vpop.eup %7362  ;;  %vm4499_vm11 = vweird.f32 %v11407_v63  ;;  %v4486_v56 = vsel %vm11534_vm12, %v11401_v41, %v4482_v57  ;;  %v3159_v39 = vmul.f32 %v11510_v15, %v11445_v4  ;;  %v3249_v23 = vmul.f32 %v11519_v44, %v11453_v21  ;;  %v2547_v46 = vpop.f32.mrf.mxu0 }
 0x39c   : > { %v7365_v16 = vpop.eup %7364  ;;  %v11545_v24 = vmul.f32 %v4610_v7, %v2499_v34  ;;  %v4502_v5 = vand.u32 2147483647, %v11345_v18  ;;  %v4504_v60 = vand.u32 2147483648, %v11345_v18  ;;  %v4490_v10 = vor.u32 1.1754944e-38, %v4489_v3  ;;  %v2596_v20 = vpop.f32.mrf.mxu1  ;;  %vm11550_vm13 = vmor %vm4498_vm10, %vm4499_vm11  ;;  %v12925_v18 = vld [vmem:[#allocation45_spill] sm:$0xff]  ;;  %v12928_v34 = vld [vmem:[#allocation115_spill] sm:$0xff] }
 0x39d   : > { %v4611_v58 = vmul.f32 %v4416_v19, %v12860_v17  ;;  %vm4488_vm14 = vcmp.eq.f32.partialorder %v4487_v2, 8.507059e+37  ;;  %v11554_v41 = vadd.f32 1.0, %v7363_v28  ;;  %v2597_v59 = vadd.f32 %v2596_v20, %v2547_v46  ;;  %v12926_v3 = vld [vmem:[#allocation57_spill] sm:$0xff]  ;;  %v12929_v2 = vld [vmem:[#allocation82_spill] sm:$0xff] }
 0x39e   : > { %v4501_v40 = vsel %vm11550_vm13, %v11407_v63, %v4497_v48  ;;  %v4491_v57 = vsel %vm4488_vm14, %v4490_v10, %v4486_v56  ;;  %v11559_v13 = vadd.f32 1.0, %v7365_v16  ;;  %v12927_v43 = vpack.c.bf16 %v12925_v18, %v12926_v3  ;;  %v12930_v28 = vld [vmem:[#allocation74_spill] sm:$0xff]  ;;  %v12934_v3 = vld [vmem:[#allocation53_spill] sm:$0xff] }
 0x39f   : > { %v3160_v17 = vsub.f32 1.0, %v3159_v39  ;;  %v3250_v7 = vsub.f32 1.0, %v3249_v23  ;;  %v6410_v19 = vmul.f32 -1.442695, %v12928_v34  ;;  %v11565_v45 = vmul.f32 %v4611_v58, %v2597_v59  ;;  %v2451_v20 = vpop.f32.mrf.mxu2  ;;  %v12932_v56 = vld [vmem:[#allocation38_spill] sm:$0xff] }
 0x3a0   : > { %v12931_v46 = vpack.c.bf16 %v12929_v2, %v12930_v28  ;;  %vm4503_vm15 = vcmp.eq.f32.partialorder %v4502_v5, 8.507059e+37  ;;  %v4505_v63 = vor.u32 1.1754944e-38, %v4504_v60  ;;  %v2500_v48 = vpop.f32.mrf.mxu3  ;;  %v4616_v16 = vmul.f32 %v4491_v57, %v12873_v54  ;;  %v12933_v60 = vld [vmem:[#allocation55_spill] sm:$0xff] }
 0x3a1   : > { %5190 = vmatmul.bf16.gmra.mxu0 %v12927_v43  ;;  %7366 = vrcp.f32 %v11554_v41  ;;  %v6416_v10 = vmul.f32 -1.442695, %v12932_v56  ;;  %v2501_v39 = vadd.f32 %v2500_v48, %v2451_v20  ;;  %v3161_v58 = vmul.f32 %v11510_v15, %v3160_v17 }
 0x3a2   : > { %v4506_v23 = vsel %vm4503_vm15, %v4505_v63, %v4501_v40  ;;  %7368 = vrcp.f32 %v11559_v13  ;;  %v3251_v27 = vmul.f32 %v11519_v44, %v3250_v7  ;;  %v12935_v54 = vpack.c.bf16 %v12933_v60, %v12934_v3 }
 0x3a3   : > { %5239 = vmatmul.bf16.gmra.mxu1 %v12931_v46  ;;  %7370 = vpow2.f32 %v6410_v19  ;;  %v2549_v59 = vpop.f32.mrf.mxu0  ;;  %v11576_v18 = vmul.f32 %v4616_v16, %v2501_v39  ;;  %v4617_v57 = vmul.f32 %v4506_v23, %v11191_v26  ;;  %v12936_v40 = vpack.c.bf16 %v10670_v29, %v10595_v55 }
 0x3a4   : > { %v2598_v5 = vpop.f32.mrf.mxu1  ;;  %7372 = vpow2.f32 %v6416_v10  ;;  %vm3164_vm0 = vweird.f32 %v11510_v15  ;;  %v3162_v19 = vadd.f32 %v11510_v15, %v3161_v58  ;;  %v3252_v2 = vadd.f32 %v11519_v44, %v3251_v27  ;;  %v12941_v58 = vld [vmem:[#allocation39_spill] sm:$0xff] }
 0x3a5   : > { %5253 = vmatmul.bf16.vlgmr.msrb.gmra.mxu2 %v12935_v54  ;;  %v2599_v43 = vadd.f32 %v2598_v5, %v2549_v59  ;;  %5302 = vmatmul.bf16.vlgmr.msrb.gmra.mxu3 %v12936_v40  ;;  %vm3254_vm1 = vweird.f32 %v11519_v44  ;;  %vm3163_vm2 = vweird.f32 %v11445_v4  ;;  %v3169_v55 = vand.u32 2147483648, %v11445_v4 }
 0x3a6   : > { %v3259_v29 = vand.u32 2147483648, %v11453_v21  ;;  %vm11600_vm3 = vmor %vm3163_vm2, %vm3164_vm0  ;;  %v3167_v16 = vand.u32 2147483647, %v11445_v4  ;;  %vm3253_vm4 = vweird.f32 %v11453_v21  ;;  %v3257_v10 = vand.u32 2147483647, %v11453_v21 }
 0x3a7   : > { %v11588_v7 = vpop.eup %7366  ;;  %v11593_v26 = vmul.f32 %v4617_v57, %v2599_v43  ;;  %v2610_v28 = vpop.f32.mrf.mxu2  ;;  %vm11609_vm5 = vmor %vm3253_vm4, %vm3254_vm1  ;;  %v6422_v27 = vmul.f32 -1.442695, %v12941_v58  ;;  %v3166_v5 = vsel %vm11600_vm3, %v11510_v15, %v3162_v19  ;;  %v3170_v54 = vor.u32 1.1754944e-38, %v3169_v55 }
 0x3a8   : > { %v11595_v46 = vpop.eup %7368  ;;  %v2659_v20 = vpop.f32.mrf.mxu3  ;;  %v3256_v4 = vsel %vm11609_vm5, %v11519_v44, %v3252_v2  ;;  %v3339_v21 = vmul.f32 %v11588_v7, %v11554_v41  ;;  %v3260_v57 = vor.u32 1.1754944e-38, %v3259_v29  ;;  %vm3168_vm6 = vcmp.eq.f32.partialorder %v3167_v16, 8.507059e+37 }
 0x3a9   : > { %v7371_v63 = vpop.eup %7370  ;;  %v3429_v60 = vmul.f32 %v11595_v46, %v11559_v13  ;;  %vm3258_vm7 = vcmp.eq.f32.partialorder %v3257_v10, 8.507059e+37  ;;  %v3171_v15 = vsel %vm3168_vm6, %v3170_v54, %v3166_v5  ;;  %v12942_v44 = vpack.c.bf16 %v10704_v8, %v10621_v51  ;;  %v12943_v5 = vld [vmem:[#allocation40_spill] sm:$0xff] }
 0x3aa   : > { %v7373_v59 = vpop.eup %7372  ;;  %v11624_v43 = vadd.f32 1.0, %v7371_v63  ;;  %v3261_v19 = vsel %vm3258_vm7, %v3260_v57, %v3256_v4  ;;  %v3340_v2 = vsub.f32 1.0, %v3339_v21  ;;  %7374 = vpow2.f32 %v6422_v27  ;;  %v12947_v57 = vld [vmem:[#allocation80_spill] sm:$0xff] }
 0x3ab   : > { %v5156_v3 = vpop.f32.mrf.mxu0  ;;  %v11628_v23 = vadd.f32 1.0, %v7373_v59  ;;  %v3430_v39 = vsub.f32 1.0, %v3429_v60  ;;  %v2660_v55 = vadd.f32 %v2659_v20, %v2610_v28  ;;  %v4528_v16 = vmul.f32 %v3171_v15, %v12894_v36  ;;  %v12944_v60 = vld [vmem:[#allocation58_spill] sm:$0xff] }
 0x3ac   : > { %v5205_v40 = vpop.f32.mrf.mxu1  ;;  %7376 = vrcp.f32 %v11624_v43  ;;  %v4534_v10 = vmul.f32 %v3261_v19, %v12897_v12  ;;  %v6428_v4 = vmul.f32 -1.442695, %v12943_v5  ;;  %v3341_v51 = vmul.f32 %v11588_v7, %v3340_v2 }
 0x3ad   : > { %v11626_v48 = vadd.f32 %v5205_v40, %v5156_v3  ;;  %7378 = vrcp.f32 %v11628_v23  ;;  %v3431_v8 = vmul.f32 %v11595_v46, %v3430_v39  ;;  %v4624_v21 = vmul.f32 %v4528_v16, %v2660_v55  ;;  %v12945_v3 = vld [vmem:[#allocation60_spill] sm:$0xff] }
 0x3ae   : > { %v12946_v36 = vpack.c.bf16 %v12944_v60, %v12945_v3  ;;  %7380 = vpow2.f32 %v6428_v4  ;;  %v12948_v40 = vld [vmem:[#allocation64_spill] sm:$0xff]  ;;  %vm3344_vm8 = vweird.f32 %v11588_v7  ;;  %v3342_v39 = vadd.f32 %v11588_v7, %v3341_v51 }
 0x3af   : > { %v2612_v29 = vpop.f32.mrf.mxu2  ;;  %v12949_v15 = vpack.c.bf16 %v12947_v57, %v12948_v40  ;;  %vm3434_vm9 = vweird.f32 %v11595_v46  ;;  %vm3343_vm10 = vweird.f32 %v11554_v41  ;;  %v3347_v4 = vand.u32 2147483647, %v11554_v41 }
 0x3b0   : > { %v2661_v63 = vpop.f32.mrf.mxu3  ;;  %v7375_v12 = vpop.eup %7374  ;;  %vm11661_vm11 = vmor %vm3343_vm10, %vm3344_vm8  ;;  %vm3433_vm12 = vweird.f32 %v11559_v13  ;;  %vm3523_vm2 = vweird.f32 %v11624_v43  ;;  %vm3613_vm4 = vweird.f32 %v11628_v23 }
 0x3b1   : > { %5351 = vmatmul.bf16.vlgmr.msrb.gmra.mxu0 %v12942_v44  ;;  %v2662_v59 = vadd.f32 %v2661_v63, %v2612_v29  ;;  %v3432_v44 = vadd.f32 %v11595_v46, %v3431_v8  ;;  %v3349_v29 = vand.u32 2147483648, %v11554_v41  ;;  %v3439_v63 = vand.u32 2147483648, %v11559_v13  ;;  %vm11668_vm13 = vmor %vm3433_vm12, %vm3434_vm9 }
 0x3b2   : > { %v11650_v19 = vpop.eup %7376  ;;  %vm3348_vm14 = vcmp.eq.f32.partialorder %v3347_v4, 8.507059e+37 }
 0x3b3   : > { %v11640_v27 = vpop.f32.mrf.mxu0  ;;  %v4630_v28 = vmul.f32 %v4534_v10, %v2662_v59  ;;  %v11656_v55 = vpop.eup %7378  ;;  %v3437_v59 = vand.u32 2147483647, %v11559_v13  ;;  %v3519_v8 = vmul.f32 %v11650_v19, %v11624_v43  ;;  %v3436_v41 = vsel %vm11668_vm13, %v11595_v46, %v3432_v44  ;;  %v12954_v46 = vld [vmem:[#allocation86_spill] sm:$0xff] }
 0x3b4   : > { %v11642_v20 = vpop.f32.mrf.mxu1  ;;  %v3609_v60 = vmul.f32 %v11656_v55, %v11628_v23  ;;  %v3350_v3 = vor.u32 1.1754944e-38, %v3349_v29  ;;  %v12955_v44 = vpack.c.bf16 %v10847_v50, %v12954_v46  ;;  %vm3524_vm0 = vweird.f32 %v11650_v19 }
 0x3b5   : > { %5258 = vmatmul.bf16.gmra.mxu2 %v12946_v36  ;;  %v4720_v54 = vpack.c.bf16 %v4630_v28, %v4624_v21  ;;  %5307 = vmatmul.bf16.gmra.mxu3 %v12949_v15  ;;  %v7381_v21 = vpop.eup %7380  ;;  %v3346_v28 = vsel %vm11661_vm11, %v11588_v7, %v3342_v39  ;;  %v3440_v36 = vor.u32 1.1754944e-38, %v3439_v63  ;;  %vm3438_vm15 = vcmp.eq.f32.partialorder %v3437_v59, 8.507059e+37  ;;  %vm11721_vm3 = vmor %vm3523_vm2, %vm3524_vm0 }
 0x3b6   : > { %v3351_v15 = vsel %vm3348_vm14, %v3350_v3, %v3346_v28  ;;  %v3520_v7 = vsub.f32 1.0, %v3519_v8  ;;  %v11686_v39 = vadd.f32 1.0, %v7381_v21  ;;  %v3610_v51 = vsub.f32 1.0, %v3609_v60 }
 0x3b7   : > { %5400 = vmatmul.bf16.vlgmr.msrb.gmra.mxu1 %v4720_v54  ;;  %v2615_v2 = vpop.f32.mrf.mxu2  ;;  %v11682_v54 = vadd.f32 1.0, %v7375_v12  ;;  %v3441_v10 = vsel %vm3438_vm15, %v3440_v36, %v3436_v41  ;;  %v12956_v12 = vld [vmem:[#allocation110_spill] sm:$0xff]  ;;  %v4540_v59 = vmul.f32 %v3351_v15, %v12911_v6  ;;  %v12957_v41 = vld [vmem:[#allocation33_spill] sm:$0xff]  ;;  %vm3614_vm1 = vweird.f32 %v11656_v55 }
 0x3b8   : > { %v2664_v16 = vpop.f32.mrf.mxu3  ;;  %v6434_v63 = vmul.f32 -1.442695, %v12956_v12  ;;  %v4546_v28 = vmul.f32 %v3441_v10, %v12912_v42  ;;  %v6440_v8 = vmul.f32 -1.442695, %v12957_v41  ;;  %v3611_v50 = vmul.f32 %v11656_v55, %v3610_v51  ;;  %v12958_v36 = vld [vmem:[#allocation65_spill] sm:$0xff]  ;;  %vm3615_vm5 = vmor %vm3613_vm4, %vm3614_vm1 }
 0x3b9   : > { %v2665_v17 = vadd.f32 %v2664_v16, %v2615_v2  ;;  %7382 = vrcp.f32 %v11682_v54  ;;  %v12959_v6 = vld [vmem:[#allocation61_spill] sm:$0xff]  ;;  %v12961_v42 = vpack.c.bf16 %v10957_v47, %v10879_v9  ;;  %v3527_v9 = vand.u32 2147483647, %v11624_v43 }
 0x3ba   : > { %7384 = vrcp.f32 %v11686_v39  ;;  %v3612_v46 = vadd.f32 %v11656_v55, %v3611_v50  ;;  %v3619_v47 = vand.u32 2147483648, %v11628_v23  ;;  %vm3703_vm10 = vweird.f32 %v11682_v54 }
 0x3bb   : > { %v5161_v13 = vpop.f32.mrf.mxu0  ;;  %v4636_v2 = vmul.f32 %v4540_v59, %v2665_v17  ;;  %7386 = vpow2.f32 %v6434_v63  ;;  %vm3528_vm6 = vcmp.eq.f32.partialorder %v3527_v9, 8.507059e+37  ;;  %vm3793_vm12 = vweird.f32 %v11686_v39 }
 0x3bc   : > { %v5210_v57 = vpop.f32.mrf.mxu1  ;;  %7388 = vpow2.f32 %v6440_v8 }
 0x3bd   : > { %v11684_v40 = vadd.f32 %v5210_v57, %v5161_v13  ;;  %v3521_v13 = vmul.f32 %v11650_v19, %v3520_v7  ;;  %v12960_v57 = vpack.c.bf16 %v12958_v36, %v12959_v6  ;;  %v3529_v7 = vand.u32 2147483648, %v11624_v43 }
 0x3bf   : > { %v2617_v29 = vpop.f32.mrf.mxu2  ;;  %v11709_v10 = vpop.eup %7382  ;;  %v3522_v17 = vadd.f32 %v11650_v19, %v3521_v13  ;;  %v3616_v13 = vsel %vm3615_vm5, %v11656_v55, %v3612_v46  ;;  %v12964_v55 = vpack.c.bf16 %v11002_v0, %v10913_v37 }
 0x3c0   : > { %v2666_v4 = vpop.f32.mrf.mxu3  ;;  %v11716_v51 = vpop.eup %7384  ;;  %v3699_v43 = vmul.f32 %v11709_v10, %v11682_v54  ;;  %vm3704_vm8 = vweird.f32 %v11709_v10 }
 0x3c1   : > { %5356 = vmatmul.bf16.gmra.mxu0 %v12955_v44  ;;  %v2667_v21 = vadd.f32 %v2666_v4, %v2617_v29  ;;  %v3617_v4 = vand.u32 2147483647, %v11628_v23  ;;  %v7387_v59 = vpop.eup %7386  ;;  %v3789_v50 = vmul.f32 %v11716_v51, %v11686_v39  ;;  %vm3794_vm9 = vweird.f32 %v11716_v51  ;;  %vm11774_vm11 = vmor %vm3703_vm10, %vm3704_vm8 }
 0x3c2   : > { %v7389_v8 = vpop.eup %7388  ;;  %v11735_v6 = vadd.f32 1.0, %v7387_v59  ;;  %vm3795_vm13 = vmor %vm3793_vm12, %vm3794_vm9 }
 0x3c3   : > { %v11699_v16 = vpop.f32.mrf.mxu0  ;;  %v4642_v60 = vmul.f32 %v4546_v28, %v2667_v21  ;;  %v3526_v28 = vsel %vm11721_vm3, %v11650_v19, %v3522_v17  ;;  %v3530_v21 = vor.u32 1.1754944e-38, %v3529_v7  ;;  %vm3618_vm7 = vcmp.eq.f32.partialorder %v3617_v4, 8.507059e+37 }
 0x3c4   : > { %v11701_v3 = vpop.f32.mrf.mxu1  ;;  %v3790_v17 = vsub.f32 1.0, %v3789_v50  ;;  %7390 = vrcp.f32 %v11735_v6  ;;  %vm3883_vm2 = vweird.f32 %v11735_v6 }
 0x3c5   : > { %5263 = vmatmul.bf16.gmra.mxu2 %v12960_v57  ;;  %5312 = vmatmul.bf16.gmra.mxu3 %v12961_v42  ;;  %v4726_v15 = vpack.c.bf16 %v4642_v60, %v4636_v2  ;;  %v3620_v60 = vor.u32 1.1754944e-38, %v3619_v47  ;;  %v3531_v36 = vsel %vm3528_vm6, %v3530_v21, %v3526_v28  ;;  %v3700_v42 = vsub.f32 1.0, %v3699_v43  ;;  %v12965_v47 = vld [vmem:[#allocation129_spill] sm:$0xff]  ;;  %v12966_v28 = vld [vmem:[#allocation47_spill] sm:$0xff] }
 0x3c6   : > { %v4552_v9 = vmul.f32 %v3531_v36, %v12928_v34  ;;  %v6446_v63 = vmul.f32 -1.442695, %v12965_v47  ;;  %v6452_v43 = vmul.f32 -1.442695, %v12966_v28  ;;  %v3791_v37 = vmul.f32 %v11716_v51, %v3790_v17 }
 0x3c7   : > { %5405 = vmatmul.bf16.gmra.mxu1 %v4726_v15  ;;  %v2620_v44 = vpop.f32.mrf.mxu2  ;;  %v3621_v57 = vsel %vm3618_vm7, %v3620_v60, %v3616_v13  ;;  %v11739_v15 = vadd.f32 1.0, %v7389_v8  ;;  %v3701_v21 = vmul.f32 %v11709_v10, %v3700_v42  ;;  %v12967_v13 = vld [vmem:[#allocation66_spill] sm:$0xff]  ;;  %v3709_v42 = vand.u32 2147483648, %v11682_v54 }
 0x3c8   : > { %v2669_v29 = vpop.f32.mrf.mxu3  ;;  %v4558_v59 = vmul.f32 %v3621_v57, %v12932_v56  ;;  %v12968_v56 = vld [vmem:[#allocation70_spill] sm:$0xff] }
 0x3c9   : > { %v2670_v7 = vadd.f32 %v2669_v29, %v2620_v44  ;;  %7392 = vrcp.f32 %v11739_v15  ;;  %v12969_v50 = vpack.c.bf16 %v12967_v13, %v12968_v56  ;;  %v3702_v36 = vadd.f32 %v11709_v10, %v3701_v21 }
 0x3ca   : > { %7394 = vpow2.f32 %v6446_v63  ;;  %v11764_v57 = vpop.eup %7390  ;;  %v3710_v21 = vor.u32 1.1754944e-38, %v3709_v42  ;;  %v12975_v42 = vld [vmem:[#allocation24_spill] sm:$0xff]  ;;  %vm3973_vm4 = vweird.f32 %v11739_v15 }
 0x3cb   : > { %v5166_v2 = vpop.f32.mrf.mxu0  ;;  %v4648_v0 = vmul.f32 %v4552_v9, %v2670_v7  ;;  %7396 = vpow2.f32 %v6452_v43  ;;  %v3706_v43 = vsel %vm11774_vm11, %v11709_v10, %v3702_v36  ;;  %v12974_v36 = vld [vmem:[#allocation87_spill] sm:$0xff]  ;;  %vm3884_vm0 = vweird.f32 %v11764_v57 }
 0x3cc   : > { %vm11827_vm3 = vmor %vm3883_vm2, %vm3884_vm0 }
 0x3cd   : > { %v5215_v23 = vpop.f32.mrf.mxu1 }
 0x3ce   : > { %v11737_v19 = vadd.f32 %v5215_v23, %v5166_v2  ;;  %v12970_v2 = vld [vmem:[#allocation81_spill] sm:$0xff] }
 0x3cf   : > { %v2622_v46 = vpop.f32.mrf.mxu2  ;;  %v12971_v60 = vpack.c.bf16 %v11101_v49, %v12970_v2  ;;  %v11769_v7 = vpop.eup %7392  ;;  %v3707_v49 = vand.u32 2147483647, %v11682_v54  ;;  %v3879_v54 = vmul.f32 %v11764_v57, %v11735_v6 }
 0x3d0   : > { %v2671_v4 = vpop.f32.mrf.mxu3  ;;  %vm3974_vm1 = vweird.f32 %v11769_v7 }
 0x3d1   : > { %5361 = vmatmul.bf16.gmra.mxu0 %v12964_v55  ;;  %v2672_v8 = vadd.f32 %v2671_v4, %v2622_v46  ;;  %v3792_v55 = vadd.f32 %v11716_v51, %v3791_v37  ;;  %v3799_v46 = vand.u32 2147483648, %v11686_v39  ;;  %v3797_v4 = vand.u32 2147483647, %v11686_v39  ;;  %vm3975_vm5 = vmor %vm3973_vm4, %vm3974_vm1 }
 0x3d2   : > { %vm3708_vm14 = vcmp.eq.f32.partialorder %v3707_v49, 8.507059e+37 }
 0x3d3   : > { %v11752_v44 = vpop.f32.mrf.mxu0  ;;  %v4654_v34 = vmul.f32 %v4558_v59, %v2672_v8  ;;  %v7395_v59 = vpop.eup %7394  ;;  %v3796_v37 = vsel %vm3795_vm13, %v11716_v51, %v3792_v55  ;;  %v3800_v13 = vor.u32 1.1754944e-38, %v3799_v46  ;;  %v3711_v56 = vsel %vm3708_vm14, %v3710_v21, %v3706_v43  ;;  %v12977_v46 = vld [vmem:[#allocation49_spill] sm:$0xff]  ;;  %v12978_v21 = vld [vmem:[#allocation50_spill] sm:$0xff] }
 0x3d4   : > { %v7397_v8 = vpop.eup %7396  ;;  %vm3798_vm15 = vcmp.eq.f32.partialorder %v3797_v4, 8.507059e+37  ;;  %v12976_v51 = vpack.c.bf16 %v12974_v36, %v12975_v42  ;;  %v4564_v49 = vmul.f32 %v3711_v56, %v12941_v58  ;;  %v6458_v43 = vmul.f32 -1.442695, %v12977_v46 }
 0x3d5   : > { %v11754_v29 = vpop.f32.mrf.mxu1  ;;  %5268 = vmatmul.bf16.gmra.mxu2 %v12969_v50  ;;  %5317 = vmatmul.bf16.gmra.mxu3 %v12971_v60  ;;  %v4732_v23 = vpack.c.bf16 %v4654_v34, %v4648_v0  ;;  %v3969_v0 = vmul.f32 %v11769_v7, %v11739_v15  ;;  %v11788_v50 = vadd.f32 1.0, %v7395_v59  ;;  %v3801_v2 = vsel %vm3798_vm15, %v3800_v13, %v3796_v37  ;;  %v12979_v13 = vld [vmem:[#allocation23_spill] sm:$0xff] }
 0x3d6   : > { %v3880_v60 = vsub.f32 1.0, %v3879_v54  ;;  %v4570_v59 = vmul.f32 %v3801_v2, %v12943_v5  ;;  %v6464_v54 = vmul.f32 -1.442695, %v12978_v21  ;;  %v12980_v5 = vld [vmem:[#allocation68_spill] sm:$0xff]  ;;  %v3889_v36 = vand.u32 2147483648, %v11735_v6 }
 0x3d7   : > { %5410 = vmatmul.bf16.gmra.mxu1 %v4732_v23  ;;  %v2625_v17 = vpop.f32.mrf.mxu2  ;;  %v11792_v23 = vadd.f32 1.0, %v7397_v8  ;;  %v3970_v55 = vsub.f32 1.0, %v3969_v0  ;;  %7398 = vrcp.f32 %v11788_v50  ;;  %vm4063_vm10 = vweird.f32 %v11788_v50 }
 0x3d8   : > { %v2674_v9 = vpop.f32.mrf.mxu3  ;;  %v3881_v37 = vmul.f32 %v11764_v57, %v3880_v60  ;;  %v4069_v52 = vand.u32 2147483648, %v11788_v50 }
 0x3d9   : > { %v2675_v63 = vadd.f32 %v2674_v9, %v2625_v17  ;;  %7400 = vrcp.f32 %v11792_v23  ;;  %v3971_v0 = vmul.f32 %v11769_v7, %v3970_v55  ;;  %v4159_v1 = vand.u32 2147483648, %v11792_v23 }
 0x3da   : > { %7402 = vpow2.f32 %v6458_v43  ;;  %v3882_v2 = vadd.f32 %v11764_v57, %v3881_v37  ;;  %v3977_v43 = vand.u32 2147483647, %v11739_v15  ;;  %vm4153_vm12 = vweird.f32 %v11792_v23 }
 0x3db   : > { %v4660_v17 = vmul.f32 %v4564_v49, %v2675_v63  ;;  %7404 = vpow2.f32 %v6464_v54  ;;  %v3972_v42 = vadd.f32 %v11769_v7, %v3971_v0 }
 0x3dc   : > { %v5171_v34 = vpop.f32.mrf.mxu0  ;;  %vm3978_vm7 = vcmp.eq.f32.partialorder %v3977_v43, 8.507059e+37 }
 0x3dd   : > { %v5220_v39 = vpop.f32.mrf.mxu1  ;;  %v11817_v60 = vpop.eup %7398 }
 0x3de   : > { %v11790_v10 = vadd.f32 %v5220_v39, %v5171_v34  ;;  %v12981_v39 = vpack.c.bf16 %v12979_v13, %v12980_v5  ;;  %v4059_v37 = vmul.f32 %v11817_v60, %v11788_v50  ;;  %vm4064_vm8 = vweird.f32 %v11817_v60 }
 0x3df   : > { %v2627_v31 = vpop.f32.mrf.mxu2  ;;  %v11822_v55 = vpop.eup %7400  ;;  %vm11877_vm11 = vmor %vm4063_vm10, %vm4064_vm8 }
 0x3e0   : > { %v2676_v4 = vpop.f32.mrf.mxu3  ;;  %v4149_v0 = vmul.f32 %v11822_v55, %v11792_v23  ;;  %vm4154_vm9 = vweird.f32 %v11822_v55 }
 0x3e1   : > { %5366 = vmatmul.bf16.gmra.mxu0 %v12976_v51  ;;  %v2677_v8 = vadd.f32 %v2676_v4, %v2627_v31  ;;  %v12982_v31 = vpack.c.bf16 %v11245_v30, %v11169_v33  ;;  %v3887_v33 = vand.u32 2147483647, %v11735_v6  ;;  %v3979_v30 = vand.u32 2147483648, %v11739_v15  ;;  %v7403_v4 = vpop.eup %7402  ;;  %vm11884_vm13 = vmor %vm4153_vm12, %vm4154_vm9 }
 0x3e2   : > { %v7405_v54 = vpop.eup %7404  ;;  %v3976_v6 = vsel %vm3975_vm5, %v11769_v7, %v3972_v42  ;;  %v11841_v5 = vadd.f32 1.0, %v7403_v4  ;;  %v12985_v7 = vpack.c.bf16 %v11271_v32, %v11210_v35 }
 0x3e3   : > { %v4666_v58 = vmul.f32 %v4570_v59, %v2677_v8  ;;  %v3886_v59 = vsel %vm11827_vm3, %v11764_v57, %v3882_v2  ;;  %v3890_v8 = vor.u32 1.1754944e-38, %v3889_v36  ;;  %vm3888_vm6 = vcmp.eq.f32.partialorder %v3887_v33, 8.507059e+37 }
 0x3e4   : > { %v11805_v9 = vpop.f32.mrf.mxu0  ;;  %v4150_v2 = vsub.f32 1.0, %v4149_v0  ;;  %7406 = vrcp.f32 %v11841_v5  ;;  %v12989_v0 = vld [vmem:[#allocation73_spill] sm:$0xff]  ;;  %vm4243_vm2 = vweird.f32 %v11841_v5  ;;  %v4249_v38 = vand.u32 2147483648, %v11841_v5 }
 0x3e5   : > { %v11807_v34 = vpop.f32.mrf.mxu1  ;;  %5273 = vmatmul.bf16.gmra.mxu2 %v12981_v39  ;;  %5322 = vmatmul.bf16.gmra.mxu3 %v12982_v31  ;;  %v4738_v56 = vpack.c.bf16 %v4666_v58, %v4660_v17  ;;  %v3980_v58 = vor.u32 1.1754944e-38, %v3979_v30  ;;  %v3891_v13 = vsel %vm3888_vm6, %v3890_v8, %v3886_v59  ;;  %v11845_v31 = vadd.f32 1.0, %v7405_v54  ;;  %v12986_v30 = vld [vmem:[#allocation56_spill] sm:$0xff] }
 0x3e6   : > { %v4576_v33 = vmul.f32 %v3891_v13, %v12956_v12  ;;  %v6470_v49 = vmul.f32 -1.442695, %v12986_v30  ;;  %v12987_v59 = vld [vmem:[#allocation44_spill] sm:$0xff]  ;;  %v4151_v32 = vmul.f32 %v11822_v55, %v4150_v2 }
 0x3e7   : > { %5415 = vmatmul.bf16.gmra.mxu1 %v4738_v56  ;;  %v2630_v51 = vpop.f32.mrf.mxu2  ;;  %v3981_v39 = vsel %vm3978_vm7, %v3980_v58, %v3976_v6  ;;  %v4060_v56 = vsub.f32 1.0, %v4059_v37  ;;  %v6476_v54 = vmul.f32 -1.442695, %v12987_v59  ;;  %7408 = vrcp.f32 %v11845_v31  ;;  %v12988_v37 = vld [vmem:[#allocation71_spill] sm:$0xff] }
 0x3e8   : > { %v2679_v63 = vpop.f32.mrf.mxu3  ;;  %v4582_v4 = vmul.f32 %v3981_v39, %v12957_v41  ;;  %7410 = vpow2.f32 %v6470_v49  ;;  %v4152_v39 = vadd.f32 %v11822_v55, %v4151_v32  ;;  %v4160_v32 = vor.u32 1.1754944e-38, %v4159_v1 }
 0x3e9   : > { %v2680_v36 = vadd.f32 %v2679_v63, %v2630_v51  ;;  %v4061_v35 = vmul.f32 %v11817_v60, %v4060_v56  ;;  %7412 = vpow2.f32 %v6476_v54  ;;  %v4339_v14 = vand.u32 2147483648, %v11845_v31 }
 0x3ea   : > { %v4156_v54 = vsel %vm11884_vm13, %v11822_v55, %v4152_v39  ;;  %v12995_v55 = vpack.c.bf16 %v11397_v62, %v11347_v22  ;;  %vm4333_vm4 = vweird.f32 %v11845_v31 }
 0x3eb   : > { %v4672_v51 = vmul.f32 %v4576_v33, %v2680_v36  ;;  %v4062_v13 = vadd.f32 %v11817_v60, %v4061_v35  ;;  %v4067_v36 = vand.u32 2147483647, %v11788_v50  ;;  %v4070_v35 = vor.u32 1.1754944e-38, %v4069_v52 }
 0x3ed   : > { %v5176_v17 = vpop.f32.mrf.mxu0  ;;  %vm4068_vm14 = vcmp.eq.f32.partialorder %v4067_v36, 8.507059e+37 }
 0x3ef   : > { %v2632_v42 = vpop.f32.mrf.mxu2 }
 0x3f0   : > { %v5225_v15 = vpop.f32.mrf.mxu1  ;;  %v2681_v43 = vpop.f32.mrf.mxu3 }
 0x3f1   : > { %v11843_v57 = vadd.f32 %v5225_v15, %v5176_v17  ;;  %5371 = vmatmul.bf16.gmra.mxu0 %v12985_v7  ;;  %v2682_v8 = vadd.f32 %v2681_v43, %v2632_v42  ;;  %v12990_v17 = vpack.c.bf16 %v12988_v37, %v12989_v0  ;;  %v11867_v15 = vpop.eup %7406  ;;  %v4157_v42 = vand.u32 2147483647, %v11792_v23 }
 0x3f2   : > { %v11872_v56 = vpop.eup %7408  ;;  %v4239_v50 = vmul.f32 %v11867_v15, %v11841_v5  ;;  %vm4244_vm0 = vweird.f32 %v11867_v15 }
 0x3f3   : > { %v4678_v6 = vmul.f32 %v4582_v4, %v2682_v8  ;;  %v7411_v33 = vpop.eup %7410  ;;  %v4066_v4 = vsel %vm11877_vm11, %v11817_v60, %v4062_v13  ;;  %v4329_v23 = vmul.f32 %v11872_v56, %v11845_v31  ;;  %vm4158_vm15 = vcmp.eq.f32.partialorder %v4157_v42, 8.507059e+37  ;;  %vm11932_vm3 = vmor %vm4243_vm2, %vm4244_vm0 }
 0x3f4   : > { %v7413_v43 = vpop.eup %7412  ;;  %v4071_v60 = vsel %vm4068_vm14, %v4070_v35, %v4066_v4  ;;  %v4240_v0 = vsub.f32 1.0, %v4239_v50  ;;  %vm4334_vm1 = vweird.f32 %v11872_v56 }
 0x3f5   : > { %v5178_v63 = vpop.f32.mrf.mxu0  ;;  %5278 = vmatmul.bf16.gmra.mxu2 %v12990_v17  ;;  %5327 = vmatmul.bf16.gmra.mxu3 %v4748_v53  ;;  %v4744_v58 = vpack.c.bf16 %v4678_v6, %v4672_v51  ;;  %v11902_v37 = vadd.f32 1.0, %v7413_v43  ;;  %v4330_v17 = vsub.f32 1.0, %v4329_v23  ;;  %v4588_v52 = vmul.f32 %v4071_v60, %v12965_v47  ;;  %vm4335_vm5 = vmor %vm4333_vm4, %vm4334_vm1 }
 0x3f6   : > { %v4241_v36 = vmul.f32 %v11867_v15, %v4240_v0 }
 0x3f7   : > { %5420 = vmatmul.bf16.gmra.mxu1 %v4744_v58  ;;  %v2635_v7 = vpop.f32.mrf.mxu2  ;;  %v4331_v42 = vmul.f32 %v11872_v56, %v4330_v17  ;;  %vm4513_vm12 = vweird.f32 %v11902_v37 }
 0x3f8   : > { %v5227_v12 = vpop.f32.mrf.mxu1  ;;  %v2684_v53 = vpop.f32.mrf.mxu3 }
 0x3f9   : > { %v11861_v41 = vadd.f32 %v5227_v12, %v5178_v63  ;;  %v11898_v63 = vadd.f32 1.0, %v7411_v33  ;;  %v4161_v12 = vsel %vm4158_vm15, %v4160_v32, %v4156_v54  ;;  %v2685_v58 = vadd.f32 %v2684_v53, %v2635_v7  ;;  %v12996_v7 = vld [vmem:[#allocation79_spill] sm:$0xff]  ;;  %v12997_v53 = vld [vmem:[#allocation77_spill] sm:$0xff] }
 0x3fa   : > { %v4594_v1 = vmul.f32 %v4161_v12, %v12966_v28  ;;  %v12998_v43 = vpack.c.bf16 %v12996_v7, %v12997_v53  ;;  %v4242_v54 = vadd.f32 %v11867_v15, %v4241_v36  ;;  %v4332_v50 = vadd.f32 %v11872_v56, %v4331_v42 }
 0x3fb   : > { %7414 = vrcp.f32 %v11898_v63  ;;  %v4684_v22 = vmul.f32 %v4588_v52, %v2685_v58  ;;  %v4247_v32 = vand.u32 2147483647, %v11841_v5  ;;  %v4250_v58 = vor.u32 1.1754944e-38, %v4249_v38 }
 0x3fc   : > { %7416 = vrcp.f32 %v11902_v37  ;;  %v4246_v60 = vsel %vm11932_vm3, %v11867_v15, %v4242_v54  ;;  %v4336_v12 = vsel %vm4335_vm5, %v11872_v56, %v4332_v50  ;;  %v4340_v5 = vor.u32 1.1754944e-38, %v4339_v14 }
 0x3fd   : > { %vm4248_vm6 = vcmp.eq.f32.partialorder %v4247_v32, 8.507059e+37  ;;  %v13001_v15 = vpack.c.bf16 %v11517_v61, %v11461_v11  ;;  %v13002_v11 = vld [vmem:[#allocation83_spill] sm:$0xff]  ;;  %v13003_v61 = vld [vmem:[#allocation76_spill] sm:$0xff]  ;;  %vm4423_vm10 = vweird.f32 %v11898_v63  ;;  %v4429_v35 = vand.u32 2147483648, %v11898_v63 }
 0x3fe   : > { %v5181_v8 = vpop.f32.mrf.mxu0  ;;  %v13004_v50 = vpack.c.bf16 %v13002_v11, %v13003_v61  ;;  %v4519_v32 = vand.u32 2147483648, %v11902_v37 }
 0x3ff   : > { %v2637_v13 = vpop.f32.mrf.mxu2 }
 0x400   : > { %v5230_v51 = vpop.f32.mrf.mxu1  ;;  %v2686_v39 = vpop.f32.mrf.mxu3 }
 0x401   : > { %v11900_v6 = vadd.f32 %v5230_v51, %v5181_v8  ;;  %5376 = vmatmul.bf16.gmra.mxu0 %v12995_v55  ;;  %v2687_v2 = vadd.f32 %v2686_v39, %v2637_v13  ;;  %v11922_v4 = vpop.eup %7414  ;;  %v4337_v51 = vand.u32 2147483647, %v11845_v31  ;;  %v4251_v39 = vsel %vm4248_vm6, %v4250_v58, %v4246_v60 }
 0x402   : > { %v11927_v8 = vpop.eup %7416  ;;  %v4419_v55 = vmul.f32 %v11922_v4, %v11898_v63  ;;  %vm4424_vm8 = vweird.f32 %v11922_v4 }
 0x403   : > { %v4690_v33 = vmul.f32 %v4594_v1, %v2687_v2  ;;  %v4509_v0 = vmul.f32 %v11927_v8, %v11902_v37  ;;  %vm4338_vm7 = vcmp.eq.f32.partialorder %v4337_v51, 8.507059e+37  ;;  %vm4514_vm9 = vweird.f32 %v11927_v8  ;;  %vm4425_vm11 = vmor %vm4423_vm10, %vm4424_vm8 }
 0x404   : > { %v4341_v52 = vsel %vm4338_vm7, %v4340_v5, %v4336_v12  ;;  %v4420_v56 = vsub.f32 1.0, %v4419_v55  ;;  %vm4515_vm13 = vmor %vm4513_vm12, %vm4514_vm9 }
 0x405   : > { %5283 = vmatmul.bf16.gmra.mxu2 %v12998_v43  ;;  %5332 = vmatmul.bf16.gmra.mxu3 %v4754_v25  ;;  %v4750_v28 = vpack.c.bf16 %v4690_v33, %v4684_v22  ;;  %v4510_v1 = vsub.f32 1.0, %v4509_v0  ;;  %v4600_v22 = vmul.f32 %v4251_v39, %v12977_v46  ;;  %v13005_v46 = vpack.c.bf16 %v11576_v18, %v11545_v24 }
 0x406   : > { %v5183_v62 = vpop.f32.mrf.mxu0  ;;  %v4427_v24 = vand.u32 2147483647, %v11898_v63  ;;  %v4517_v18 = vand.u32 2147483647, %v11902_v37  ;;  %v4430_v0 = vor.u32 1.1754944e-38, %v4429_v35  ;;  %v13006_v63 = vpack.c.bf16 %v11593_v26, %v11565_v45 }
 0x407   : > { %5425 = vmatmul.bf16.gmra.mxu1 %v4750_v28  ;;  %v2640_v23 = vpop.f32.mrf.mxu2  ;;  %v4511_v7 = vmul.f32 %v11927_v8, %v4510_v1 }
 0x408   : > { %v5232_v49 = vpop.f32.mrf.mxu1  ;;  %v2689_v25 = vpop.f32.mrf.mxu3  ;;  %vm4428_vm14 = vcmp.eq.f32.partialorder %v4427_v24, 8.507059e+37  ;;  %vm4518_vm15 = vcmp.eq.f32.partialorder %v4517_v18, 8.507059e+37 }
 0x409   : > { %v11916_v47 = vadd.f32 %v5232_v49, %v5183_v62  ;;  %v2690_v2 = vadd.f32 %v2689_v25, %v2640_v23  ;;  %v4606_v62 = vmul.f32 %v4341_v52, %v12978_v21  ;;  %v4421_v49 = vmul.f32 %v11922_v4, %v4420_v56 }
 0x40a   : > { %v4512_v14 = vadd.f32 %v11927_v8, %v4511_v7 }
 0x40b   : > { %v4696_v53 = vmul.f32 %v4600_v22, %v2690_v2  ;;  %v4422_v38 = vadd.f32 %v11922_v4, %v4421_v49 }
 0x40c   : > { %v4516_v12 = vsel %vm4515_vm13, %v11927_v8, %v4512_v14 }
 0x40d   : > { %v4426_v60 = vsel %vm4425_vm11, %v11922_v4, %v4422_v38 }
 0x40e   : > { %v5186_v17 = vpop.f32.mrf.mxu0 }
 0x40f   : > { %v2642_v36 = vpop.f32.mrf.mxu2 }
 0x410   : > { %v5235_v13 = vpop.f32.mrf.mxu1  ;;  %v2691_v42 = vpop.f32.mrf.mxu3 }
 0x411   : > { %v11947_v31 = vadd.f32 %v5235_v13, %v5186_v17  ;;  %5381 = vmatmul.bf16.gmra.mxu0 %v13001_v15  ;;  %v2692_v33 = vadd.f32 %v2691_v42, %v2642_v36  ;;  %v4520_v17 = vor.u32 1.1754944e-38, %v4519_v32  ;;  %v4431_v13 = vsel %vm4428_vm14, %v4430_v0, %v4426_v60 }
 0x412   : > { %v4612_v4 = vmul.f32 %v4431_v13, %v12986_v30 }
 0x413   : > { %v4702_v28 = vmul.f32 %v4606_v62, %v2692_v33  ;;  %v4521_v39 = vsel %vm4518_vm15, %v4520_v17, %v4516_v12 }
 0x414   : > { %v4618_v8 = vmul.f32 %v4521_v39, %v12987_v59  ;;  %v5208_v59 = vadd.f32 %v11642_v20, %v11640_v27 }
 0x415   : > { %5288 = vmatmul.bf16.gmra.mxu2 %v13004_v50  ;;  %5337 = vmatmul.bf16.gmra.mxu3 %v13005_v46  ;;  %v4756_v21 = vpack.c.bf16 %v4702_v28, %v4696_v53 }
 0x416   : > { %v5188_v43 = vpop.f32.mrf.mxu0 }
 0x417   : > { %5430 = vmatmul.bf16.gmra.mxu1 %v4756_v21 }
 0x418   : > { %v5237_v54 = vpop.f32.mrf.mxu1  ;;  %v2645_v25 = vpop.f32.mrf.mxu2 }
 0x419   : > { %v11959_v23 = vadd.f32 %v5237_v54, %v5188_v43  ;;  %v2694_v51 = vpop.f32.mrf.mxu3 }
 0x41a   : > { %v2695_v37 = vadd.f32 %v2694_v51, %v2645_v25  ;;  %v5213_v51 = vadd.f32 %v11701_v3, %v11699_v16 }
 0x41c   : > { %v4708_v1 = vmul.f32 %v4612_v4, %v2695_v37 }
 0x41e   : > { %v5191_v55 = vpop.f32.mrf.mxu0 }
 0x420   : > { %v5240_v58 = vpop.f32.mrf.mxu1  ;;  %v2647_v52 = vpop.f32.mrf.mxu2 }
 0x421   : > { %v11976_v5 = vadd.f32 %v5240_v58, %v5191_v55  ;;  %5386 = vmatmul.bf16.gmra.mxu0 %v13006_v63  ;;  %v2696_v15 = vpop.f32.mrf.mxu3 }
 0x422   : > { %v2697_v56 = vadd.f32 %v2696_v15, %v2647_v52  ;;  %v5218_v15 = vadd.f32 %v11754_v29, %v11752_v44 }
 0x424   : > { %v4714_v36 = vmul.f32 %v4618_v8, %v2697_v56 }
 0x426   : > { %v5193_v2 = vpop.f32.mrf.mxu0  ;;  %v4762_v62 = vpack.c.bf16 %v4714_v36, %v4708_v1 }
 0x428   : > { %v5242_v42 = vpop.f32.mrf.mxu1  ;;  %5435 = vmatmul.bf16.gmra.mxu1 %v4762_v62  ;;  %v5254_v33 = vpop.f32.mrf.mxu2 }
 0x429   : > { %v11983_v22 = vadd.f32 %v5242_v42, %v5193_v2  ;;  %v5303_v45 = vpop.f32.mrf.mxu3  ;;  %v5255_v49 = vadd.f32 %v5254_v33, %v11626_v48 }
 0x42b   : > { %v5304_v7 = vadd.f32 %v5303_v45, %v5255_v49 }
 0x42e   : > { %v5352_v26 = vpop.f32.mrf.mxu0 }
 0x42f   : > { %v5353_v54 = vadd.f32 %v5352_v26, %v5304_v7 }
 0x430   : > { %v5256_v53 = vpop.f32.mrf.mxu2 }
 0x431   : > { %v5305_v30 = vpop.f32.mrf.mxu3  ;;  %v5257_v28 = vadd.f32 %v5256_v53, %v5208_v59  ;;  %v5223_v53 = vadd.f32 %v11807_v34, %v11805_v9 }
 0x433   : > { %v5306_v50 = vadd.f32 %v5305_v30, %v5257_v28 }
 0x434   : > { %v5401_v11 = vpop.f32.mrf.mxu1 }
 0x435   : > { %v5402_v61 = vadd.f32 %v5401_v11, %v5353_v54 }
 0x436   : > { %v5354_v43 = vpop.f32.mrf.mxu0 }
 0x437   : > { %5441 = vst [vmem:[%s11989_s25] sm:$0xff] %v5402_v61  ;;  %v5355_v14 = vadd.f32 %v5354_v43, %v5306_v50 }
 0x438   : > { %v5259_v46 = vpop.f32.mrf.mxu2 }
 0x439   : > { %v5308_v48 = vpop.f32.mrf.mxu3  ;;  %v5260_v38 = vadd.f32 %v5259_v46, %v11684_v40 }
 0x43b   : > { %v5309_v25 = vadd.f32 %v5308_v48, %v5260_v38 }
 0x43c   : > { %v5403_v27 = vpop.f32.mrf.mxu1 }
 0x43d   : > { %v5404_v20 = vadd.f32 %v5403_v27, %v5355_v14 }
 0x43e   : > { %v5357_v21 = vpop.f32.mrf.mxu0 }
 0x43f   : > { %5442 = vst [vmem:[%s11989_s25 + $0x8] sm:$0xff] %v5404_v20  ;;  %v5358_v60 = vadd.f32 %v5357_v21, %v5309_v25 }
 0x440   : > { %v5261_v35 = vpop.f32.mrf.mxu2 }
 0x441   : > { %v5310_v32 = vpop.f32.mrf.mxu3  ;;  %v5262_v18 = vadd.f32 %v5261_v35, %v5213_v51 }
 0x443   : > { %v5311_v0 = vadd.f32 %v5310_v32, %v5262_v18 }
 0x444   : > { %v5406_v12 = vpop.f32.mrf.mxu1 }
 0x445   : > { %v5407_v55 = vadd.f32 %v5406_v12, %v5358_v60 }
 0x446   : > { %v5359_v24 = vpop.f32.mrf.mxu0 }
 0x447   : > { %5443 = vst [vmem:[%s11989_s25 + $0x10] sm:$0xff] %v5407_v55  ;;  %v5360_v39 = vadd.f32 %v5359_v24, %v5311_v0 }
 0x448   : > { %v5264_v17 = vpop.f32.mrf.mxu2 }
 0x449   : > { %v5313_v40 = vpop.f32.mrf.mxu3  ;;  %v5265_v13 = vadd.f32 %v5264_v17, %v11737_v19 }
 0x44b   : > { %v5314_v52 = vadd.f32 %v5313_v40, %v5265_v13 }
 0x44c   : > { %v5408_v63 = vpop.f32.mrf.mxu1 }
 0x44d   : > { %v5409_v37 = vadd.f32 %v5408_v63, %v5360_v39 }
 0x44e   : > { %v5362_v58 = vpop.f32.mrf.mxu0 }
 0x44f   : > { %5444 = vst [vmem:[%s11989_s25 + $0x18] sm:$0xff] %v5409_v37  ;;  %v5363_v56 = vadd.f32 %v5362_v58, %v5314_v52 }
 0x450   : > { %v5266_v16 = vpop.f32.mrf.mxu2 }
 0x451   : > { %v5315_v3 = vpop.f32.mrf.mxu3  ;;  %v5267_v8 = vadd.f32 %v5266_v16, %v5218_v15 }
 0x453   : > { %v5316_v36 = vadd.f32 %v5315_v3, %v5267_v8 }
 0x454   : > { %v5411_v1 = vpop.f32.mrf.mxu1 }
 0x455   : > { %v5412_v2 = vadd.f32 %v5411_v1, %v5363_v56 }
 0x456   : > { %v5364_v4 = vpop.f32.mrf.mxu0 }
 0x457   : > { %5445 = vst [vmem:[%s11989_s25 + $0x20] sm:$0xff] %v5412_v2  ;;  %v5365_v45 = vadd.f32 %v5364_v4, %v5316_v36 }
 0x458   : > { %v5269_v42 = vpop.f32.mrf.mxu2 }
 0x459   : > { %v5318_v19 = vpop.f32.mrf.mxu3  ;;  %v5270_v33 = vadd.f32 %v5269_v42, %v11790_v10 }
 0x45b   : > { %v5319_v7 = vadd.f32 %v5318_v19, %v5270_v33 }
 0x45c   : > { %v5413_v26 = vpop.f32.mrf.mxu1 }
 0x45d   : > { %v5414_v49 = vadd.f32 %v5413_v26, %v5365_v45 }
 0x45e   : > { %v5367_v62 = vpop.f32.mrf.mxu0 }
 0x45f   : > { %5446 = vst [vmem:[%s11989_s25 + $0x28] sm:$0xff] %v5414_v49  ;;  %v5368_v43 = vadd.f32 %v5367_v62, %v5319_v7 }
 0x460   : > { %v5271_v44 = vpop.f32.mrf.mxu2 }
 0x461   : > { %v5320_v29 = vpop.f32.mrf.mxu3  ;;  %v5272_v59 = vadd.f32 %v5271_v44, %v5223_v53 }
 0x463   : > { %v5321_v11 = vadd.f32 %v5320_v29, %v5272_v59 }
 0x464   : > { %v5416_v28 = vpop.f32.mrf.mxu1 }
 0x465   : > { %v5417_v54 = vadd.f32 %v5416_v28, %v5368_v43 }
 0x466   : > { %v5369_v30 = vpop.f32.mrf.mxu0 }
 0x467   : > { %5447 = vst [vmem:[%s11989_s25 + $0x30] sm:$0xff] %v5417_v54  ;;  %v5370_v48 = vadd.f32 %v5369_v30, %v5321_v11 }
 0x468   : > { %v5274_v61 = vpop.f32.mrf.mxu2 }
 0x469   : > { %v5323_v10 = vpop.f32.mrf.mxu3  ;;  %v5275_v46 = vadd.f32 %v5274_v61, %v11843_v57 }
 0x46b   : > { %v5324_v14 = vadd.f32 %v5323_v10, %v5275_v46 }
 0x46c   : > { %v5418_v21 = vpop.f32.mrf.mxu1 }
 0x46d   : > { %v5419_v38 = vadd.f32 %v5418_v21, %v5370_v48 }
 0x46e   : > { %v5372_v50 = vpop.f32.mrf.mxu0 }
 0x46f   : > { %5448 = vst [vmem:[%s11989_s25 + $0x38] sm:$0xff] %v5419_v38  ;;  %v5373_v25 = vadd.f32 %v5372_v50, %v5324_v14 }
 0x470   : > { %v5276_v9 = vpop.f32.mrf.mxu2 }
 0x471   : > { %v5325_v34 = vpop.f32.mrf.mxu3  ;;  %v5277_v20 = vadd.f32 %v5276_v9, %v11861_v41 }
 0x473   : > { %v5326_v51 = vadd.f32 %v5325_v34, %v5277_v20 }
 0x474   : > { %v5421_v35 = vpop.f32.mrf.mxu1 }
 0x475   : > { %v5422_v32 = vadd.f32 %v5421_v35, %v5373_v25 }
 0x476   : > { %v5374_v27 = vpop.f32.mrf.mxu0 }
 0x477   : > { %5449 = vst [vmem:[%s11989_s25 + $0x40] sm:$0xff] %v5422_v32  ;;  %v5375_v12 = vadd.f32 %v5374_v27, %v5326_v51 }
 0x478   : > { %v5279_v24 = vpop.f32.mrf.mxu2 }
 0x479   : > { %v5328_v18 = vpop.f32.mrf.mxu3  ;;  %v5280_v60 = vadd.f32 %v5279_v24, %v11900_v6 }
 0x47b   : > { %v5329_v17 = vadd.f32 %v5328_v18, %v5280_v60 }
 0x47c   : > { %v5423_v55 = vpop.f32.mrf.mxu1 }
 0x47d   : > { %v5424_v0 = vadd.f32 %v5423_v55, %v5375_v12 }
 0x47e   : > { %v5377_v57 = vpop.f32.mrf.mxu0 }
 0x47f   : > { %5450 = vst [vmem:[%s11989_s25 + $0x48] sm:$0xff] %v5424_v0  ;;  %v5378_v39 = vadd.f32 %v5377_v57, %v5329_v17 }
 0x480   : > { %v5281_v40 = vpop.f32.mrf.mxu2 }
 0x481   : > { %v5330_v58 = vpop.f32.mrf.mxu3  ;;  %v5282_v13 = vadd.f32 %v5281_v40, %v11916_v47 }
 0x483   : > { %v5331_v52 = vadd.f32 %v5330_v58, %v5282_v13 }
 0x484   : > { %v5426_v63 = vpop.f32.mrf.mxu1 }
 0x485   : > { %v5427_v37 = vadd.f32 %v5426_v63, %v5378_v39 }
 0x486   : > { %v5379_v41 = vpop.f32.mrf.mxu0 }
 0x487   : > { %5451 = vst [vmem:[%s11989_s25 + $0x50] sm:$0xff] %v5427_v37  ;;  %v5380_v15 = vadd.f32 %v5379_v41, %v5331_v52 }
 0x488   : > { %v5284_v16 = vpop.f32.mrf.mxu2 }
 0x489   : > { %v5333_v3 = vpop.f32.mrf.mxu3  ;;  %v5285_v6 = vadd.f32 %v5284_v16, %v11947_v31 }
 0x48b   : > { %v5334_v1 = vadd.f32 %v5333_v3, %v5285_v6 }
 0x48c   : > { %v5428_v8 = vpop.f32.mrf.mxu1 }
 0x48d   : > { %v5429_v56 = vadd.f32 %v5428_v8, %v5380_v15 }
 0x48e   : > { %v5382_v4 = vpop.f32.mrf.mxu0 }
 0x48f   : > { %5452 = vst [vmem:[%s11989_s25 + $0x58] sm:$0xff] %v5429_v56  ;;  %v5383_v42 = vadd.f32 %v5382_v4, %v5334_v1 }
 0x490   : > { %v5286_v2 = vpop.f32.mrf.mxu2 }
 0x491   : > { %v5335_v36 = vpop.f32.mrf.mxu3  ;;  %v5287_v47 = vadd.f32 %v5286_v2, %v11959_v23 }
 0x493   : > { %v5336_v45 = vadd.f32 %v5335_v36, %v5287_v47 }
 0x494   : > { %v5431_v19 = vpop.f32.mrf.mxu1 }
 0x495   : > { %v5432_v62 = vadd.f32 %v5431_v19, %v5383_v42 }
 0x496   : > { %v5384_v33 = vpop.f32.mrf.mxu0 }
 0x497   : > { %5453 = vst [vmem:[%s11989_s25 + $0x60] sm:$0xff] %v5432_v62  ;;  %v5385_v49 = vadd.f32 %v5384_v33, %v5336_v45 }
 0x498   : > { %v5289_v26 = vpop.f32.mrf.mxu2 }
 0x499   : > { %v5290_v31 = vadd.f32 %v5289_v26, %v11976_v5  ;;  %v5338_v7 = vpop.f32.mrf.mxu3 }
 0x49b   : > { %v5339_v53 = vadd.f32 %v5338_v7, %v5290_v31 }
 0x49c   : > { %v5433_v44 = vpop.f32.mrf.mxu1 }
 0x49d   : > { %v5434_v29 = vadd.f32 %v5433_v44, %v5385_v49 }
 0x49e   : > { %v5387_v30 = vpop.f32.mrf.mxu0 }
 0x49f   : > { %5454 = vst [vmem:[%s11989_s25 + $0x68] sm:$0xff] %v5434_v29  ;;  %v5388_v43 = vadd.f32 %v5387_v30, %v5339_v53 }
 0x4a0   : > { %v5291_v23 = vpop.f32.mrf.mxu2 }
 0x4a1   : > { %v5292_v59 = vadd.f32 %v5291_v23, %v11983_v22  ;;  %v5340_v11 = vpop.f32.mrf.mxu3 }
 0x4a3   : > { %v5341_v5 = vadd.f32 %v5340_v11, %v5292_v59 }
 0x4a5   : > { %v5436_v28 = vpop.f32.mrf.mxu1 }
 0x4a6   : > { %v5437_v54 = vadd.f32 %v5436_v28, %v5388_v43  ;;  %v5389_v61 = vpop.f32.mrf.mxu0 }
 0x4a7   : > { %v5390_v10 = vadd.f32 %v5389_v61, %v5341_v5 }
 0x4a8   : > { %5455 = vst [vmem:[%s11989_s25 + $0x70] sm:$0xff] %v5437_v54 }
 0x4ad   : > { %v5438_v22 = vpop.f32.mrf.mxu1 }
 0x4ae   : > { %v5439_v50 = vadd.f32 %v5438_v22, %v5390_v10 }
 0x4b0   : > { %5456 = vst [vmem:[%s11989_s25 + $0x78] sm:$0xff] %v5439_v50 }
 0x4b1   : > { %7565 = shalt.err (!%p7562_p0)
}
 0x4b2   : > { %s7640_s8 = smov 128   ;;  %s7641_s1 = smov 256  }
 0x4b3   : > { %s7642_s30 = smov 8  }
 0x4b4   : > { %6945 = dma.vmem_to_hbm [thread:$0]  (%p7757_p3), %s5473_s21, 2048, %s5475_s22, %s5458_s18, %s7640_s8, %s7641_s1, %s7642_s30  }
 0x4b5 PF: > { %s5489_s23 = sand.u32 1, %s7608_s15   ;;  %p6962_p5 = pnand %p5606_p11, %p7717_p6 }
 0x4b6   : > { %s5490_s25 = scalar_lea.sflag [#allocation4], %s5489_s23 }
 0x4b7   : > { %p6963_p7 = pneg %p6962_p5 }
 0x4b9   : > { %7603 = dma.done.wait (%p6963_p7), %s5490_s25, 2048  }
 0x4ba   : > { %7605 = vsyncadd (%p6963_p7), %s5490_s25, 4294965248  ;;  %s22_s20 = sadd.s32 1, %s7628_s20   ;;  %s13007_s15 = smov %s7612_s16 }
 0x4bb   : > { %p19_p9 = scmp.ge.s32.totalorder %s22_s20, 4   ;;  %s13008_s16 = smov %s7616_s17 }
 0x4bc   : > { %s13009_s17 = smov %s7769_s12  ;;  %s13010_s18 = smov %s7624_s19 }
 0x4bd   : > { %s13011_s19 = smov %s13013_s9  ;;  %21 = sbr.rel (!%p19_p9) target bundleno = 11 (0xb), region = 97 }
 0x4c2   :  { %5496 = vsyncpa [#allocation3], 1 }
 0x4c3   :  { %5498 = vsyncpa [#allocation3 + $0x1], 1 }
 0x4c4   :  { %5499 = vsyncpa [#allocation6], 1 }
 0x4c5   :  { %5500 = vsyncpa [#allocation9], 1 }
 0x4c6   :  { %5502 = vsyncpa [#allocation9 + $0x1], 1 }
 0x4c7   :  { %5503 = vsyncpa [#allocation4], 1 }
 0x4c8   :  { %5505 = vsyncpa [#allocation4 + $0x1], 1 }

</bundles_post_ra>
